<compile_context>
chip_gen: v5e
topology: v5e:2x2
jax: 0.10.0
libtpu: 0.0.40
codegen_flags: <defaults>
</compile_context>

<pallas_src>
import functools
import math

import jax
import jax.numpy as jnp
from jax.experimental import pallas as pl
from jax.experimental.pallas import tpu as pltpu

LN_EPS = 1e-5      # GPT2 layer_norm_epsilon
NEG_INF = -1e30    # additive causal mask value (kept in f32 only)


# ---------------------------------------------------------------------------
# shared math helpers (pure jnp -> usable both inside kernels and in the ref)
# ---------------------------------------------------------------------------
def _layer_norm(x, gamma, beta):
    mean = jnp.mean(x, axis=-1, keepdims=True)
    var = jnp.mean((x - mean) ** 2, axis=-1, keepdims=True)
    return (x - mean) * jax.lax.rsqrt(var + LN_EPS) * gamma + beta


def _gelu_new(x):
    # GPT2 "gelu_new" (tanh approximation), computed in f32
    return 0.5 * x * (1.0 + jnp.tanh(math.sqrt(2.0 / math.pi) * (x + 0.044715 * x ** 3)))


def _mxu_dot(a, b):
    # bf16 MXU matmul with f32 accumulation
    return jnp.dot(a.astype(jnp.bfloat16), b.astype(jnp.bfloat16),
                   preferred_element_type=jnp.float32)


def _mxu_einsum(eq, a, b):
    # bf16 batched MXU matmul (single leading batch dim) with f32 accumulation
    return jnp.einsum(eq, a.astype(jnp.bfloat16), b.astype(jnp.bfloat16),
                      preferred_element_type=jnp.float32)


# ---------------------------------------------------------------------------
# BlockSpec helpers
# ---------------------------------------------------------------------------
def _const_spec(shape):
    """Grid-invariant block (whole array, index (0,...)); single-buffered if supported."""
    n = len(shape)
    imap = lambda b, _n=n: (0,) * _n
    try:
        return pl.BlockSpec(tuple(shape), imap, pipeline_mode=pl.Buffered(1))
    except Exception:  # older jax without pipeline_mode / Buffered
        return pl.BlockSpec(tuple(shape), imap)


def _choose_b_tile(B, max_tile=8):
    """Largest divisor of B <= max_tile, preferring >=2 grid steps (dual-TC chips)."""
    bt = 1
    for cand in range(1, min(B, max_tile) + 1):
        if B % cand == 0:
            bt = cand
    if bt == B and B > 1:
        for cand in range(bt // 2, 0, -1):
            if B % cand == 0:
                bt = cand
                break
    return bt


# ---------------------------------------------------------------------------
# kernel 1: a fused stack of GPT2 blocks (LN -> MHA -> res -> LN -> MLP -> res)
# grid = (B // B_tile,); one (B_tile, T, D) activation slab per grid step.
# Weights for all fused layers live fully in VMEM (single-buffered).
# The learned position embedding (wpe) is fused into the first call.
# ---------------------------------------------------------------------------
def _blocks_kernel(n_head, n_layers, add_wpe, *refs):
    o_ref = refs[-1]
    x_ref = refs[0]
    mask_ref = refs[1]
    if add_wpe:
        wpe_ref = refs[2]
        wrefs = refs[3:-1]
    else:
        wpe_ref = None
        wrefs = refs[2:-1]

    Bt, T, D = x_ref.shape
    hd = D // n_head

    h = x_ref[...].astype(jnp.float32)                       # (Bt, T, D) residual (f32)
    if add_wpe:
        h = h + wpe_ref[...].astype(jnp.float32)[None]       # fused position-embedding add
    mask = mask_ref[...][None]                                # (1, T, T) additive causal mask

    for l in range(n_layers):
        (ln1_g, ln1_b, w_qkv, b_qkv, w_ao, b_ao,
         ln2_g, ln2_b, w_fc, b_fc, w_mo, b_mo) = wrefs[12 * l: 12 * (l + 1)]

        h2d = h.reshape(Bt * T, D)                            # M = Bt*T for all dense matmuls

        # ---- attention ----
        hn = _layer_norm(h2d, ln1_g[...], ln1_b[...])         # f32 statistics
        qkv = (_mxu_dot(hn, w_qkv[...]) + b_qkv[...]).reshape(Bt, T, 3 * D)
        # 1/sqrt(hd) is folded into the Q weight columns at init time.

        # head-major (n_head*Bt, T, hd) slabs for the batched score / context matmuls
        qh = jnp.concatenate(
            [qkv[:, :, i * hd:(i + 1) * hd] for i in range(n_head)], axis=0)
        kh = jnp.concatenate(
            [qkv[:, :, D + i * hd:D + (i + 1) * hd] for i in range(n_head)], axis=0)
        vh = jnp.concatenate(
            [qkv[:, :, 2 * D + i * hd:2 * D + (i + 1) * hd] for i in range(n_head)], axis=0)

        s = _mxu_einsum('gtd,gsd->gts', qh, kh) + mask        # (G, T, T) f32
        m = jnp.max(s, axis=-1, keepdims=True)
        p = jnp.exp(s - m)
        denom = jnp.sum(p, axis=-1, keepdims=True)
        ctx = _mxu_einsum('gts,gsd->gtd', p, vh)              # unnormalized PV
        ctx = ctx * pl.reciprocal(denom, approx=True)         # post-matmul normalization (EUP)

        # per-head output projection accumulated in vregs (w_ao stored as (n_head, hd, D))
        attn = _mxu_dot(ctx[0:Bt].reshape(Bt * T, hd), w_ao[0])
        for i in range(1, n_head):
            attn = attn + _mxu_dot(ctx[i * Bt:(i + 1) * Bt].reshape(Bt * T, hd), w_ao[i])
        h2d = h2d + attn + b_ao[...]

        # ---- MLP ----
        hn2 = _layer_norm(h2d, ln2_g[...], ln2_b[...])
        fc = _mxu_dot(hn2, w_fc[...]) + b_fc[...]
        h2d = h2d + _mxu_dot(_gelu_new(fc), w_mo[...]) + b_mo[...]

        h = h2d.reshape(Bt, T, D)

    o_ref[...] = h.astype(o_ref.dtype)                        # bf16 inter-call residual carry


def transformer_blocks(x, layer_params, n_head, mask, wpe=None, b_tile=None):
    B, T, D = x.shape
    n_layers = len(layer_params)
    add_wpe = wpe is not None
    if b_tile is None:
        b_tile = _choose_b_tile(B)
    grid = (B // b_tile,)

    kernel = functools.partial(_blocks_kernel, n_head, n_layers, add_wpe)

    flat_w = [p for bp in layer_params for p in bp]

    in_specs = [pl.BlockSpec((b_tile, T, D), lambda b: (b, 0, 0)),
                _const_spec(mask.shape)]
    args = [x, mask]
    if add_wpe:
        in_specs.append(_const_spec(wpe.shape))
        args.append(wpe)
    in_specs += [_const_spec(p.shape) for p in flat_w]
    args += flat_w

    # ---- advisory cost estimate (per call, whole grid) ----
    d2 = D * D
    flops = n_layers * (24 * B * T * d2 + 4 * B * T * T * D)
    transcendentals = n_layers * (B * n_head * T * T + 2 * B * T * D)
    weight_bytes = sum(math.prod(p.shape) * p.dtype.itemsize for p in flat_w)
    const_bytes = math.prod(mask.shape) * mask.dtype.itemsize
    if add_wpe:
        const_bytes += math.prod(wpe.shape) * wpe.dtype.itemsize
    bytes_accessed = B * T * D * (x.dtype.itemsize + 2) + weight_bytes + const_bytes
    cost = pl.CostEstimate(flops=int(flops),
                           transcendentals=int(transcendentals),
                           bytes_accessed=int(bytes_accessed))

    # ---- scoped-VMEM limit: actual footprint + headroom, capped below v7x's 64 MiB/TC ----
    G = b_tile * n_head
    interm_bytes = 4 * (3 * b_tile * T * D + 2 * G * T * T + 8 * b_tile * T * D
                        + 4 * b_tile * T * D)
    act_bytes = 2 * b_tile * T * D * x.dtype.itemsize + 2 * b_tile * T * D * 2
    vmem_limit = int(min(48 << 20,
                         max(16 << 20,
                             weight_bytes + const_bytes + act_bytes
                             + 2 * interm_bytes + (4 << 20))))

    return pl.pallas_call(
        kernel,
        out_shape=jax.ShapeDtypeStruct((B, T, D), jnp.bfloat16),
        grid=grid,
        in_specs=in_specs,
        out_specs=pl.BlockSpec((b_tile, T, D), lambda b: (b, 0, 0)),
        compiler_params=pltpu.CompilerParams(
            dimension_semantics=("parallel",),
            vmem_limit_bytes=vmem_limit),
        cost_estimate=cost,
    )(*args)


# ---------------------------------------------------------------------------
# kernel 2: final LayerNorm (ln_f) + flatten + classification head.
# Reduction grid over T tiles: the (T, D, n_pad) head weight is streamed tile by
# tile; logits accumulate in a resident f32 output block (init under pl.when).
# Logits are lane-padded to a multiple of 128 and sliced back in the wrapper.
# ---------------------------------------------------------------------------
def _head_kernel(x_ref, lnf_g, lnf_b, w_ref, b_ref, hid_ref, logit_ref):
    x = x_ref[...].astype(jnp.float32)                        # (B, Tt, D)
    hn = _layer_norm(x, lnf_g[...], lnf_b[...])
    hid_ref[...] = hn.astype(hid_ref.dtype)

    @pl.when(pl.program_id(0) == 0)
    def _():
        logit_ref[...] = jnp.broadcast_to(b_ref[...], logit_ref.shape).astype(jnp.float32)

    t_tile = x_ref.shape[1]
    acc = jnp.zeros(logit_ref.shape, jnp.float32)
    for t in range(t_tile):                                   # small unroll (<= 16)
        acc = acc + _mxu_dot(hn[:, t, :], w_ref[t])
    logit_ref[...] = logit_ref[...] + acc


def final_head(x, lnf_g, lnf_b, w_head_t, b_head):
    B, T, D = x.shape
    n_out = w_head_t.shape[1]
    n_pad = ((n_out + 127) // 128) * 128                      # lane-dense logits output
    t_tile = 16 if T % 16 == 0 else (8 if T % 8 == 0 else T)

    w3 = jnp.pad(w_head_t.reshape(T, D, n_out), ((0, 0), (0, 0), (0, n_pad - n_out)))
    b_pad = jnp.pad(b_head, ((0, 0), (0, n_pad - n_out)))

    hid, logits_pad = pl.pallas_call(
        _head_kernel,
        out_shape=(jax.ShapeDtypeStruct((B, T, D), jnp.float32),
                   jax.ShapeDtypeStruct((B, n_pad), jnp.float32)),
        grid=(T // t_tile,),
        in_specs=[pl.BlockSpec((B, t_tile, D), lambda t: (0, t, 0)),
                  _const_spec(lnf_g.shape),
                  _const_spec(lnf_b.shape),
                  pl.BlockSpec((t_tile, D, n_pad), lambda t: (t, 0, 0)),
                  _const_spec(b_pad.shape)],
        out_specs=(pl.BlockSpec((B, t_tile, D), lambda t: (0, t, 0)),
                   pl.BlockSpec((B, n_pad), lambda t: (0, 0))),
        compiler_params=pltpu.CompilerParams(
            dimension_semantics=("arbitrary",)),
    )(x, lnf_g, lnf_b, w3, b_pad)
    return hid, logits_pad[:, :n_out]


# ---------------------------------------------------------------------------
# full forward = GPT2Model(inputs_embeds=x)  ->  (last_hidden_state, logits)
# ---------------------------------------------------------------------------
def transformer_forward(x, params, n_head, blocks_per_call=2):
    wpe, blocks, lnf_g, lnf_b, w_head_t, b_head = params
    B, T, D = x.shape

    # additive causal mask, built once per forward and passed to every block call
    row = jnp.arange(T, dtype=jnp.int32)[:, None]
    col = jnp.arange(T, dtype=jnp.int32)[None, :]
    mask = jnp.where(col <= row, 0.0, NEG_INF).astype(jnp.float32)

    h = x
    for start in range(0, len(blocks), blocks_per_call):
        chunk = blocks[start:start + blocks_per_call]
        h = transformer_blocks(h, chunk, n_head, mask,
                               wpe=wpe if start == 0 else None)
    return final_head(h, lnf_g, lnf_b, w_head_t, b_head)


# ---------------------------------------------------------------------------
# deterministic parameter init (shapes mirror GPT2 Conv1D / LayerNorm / Linear)
# matmul weights stored in bf16; biases / LN params / wpe in f32.
# 1/sqrt(head_dim) is folded into the Q columns of c_attn (one-time transform);
# the attn c_proj weight is stored as a (n_head, hd, D) per-head view.
# ---------------------------------------------------------------------------
def init_params(key, n_embd, n_positions, n_layer, n_head, n_class):
    D = n_embd
    hd = D // n_head
    keys = jax.random.split(key, n_layer + 2)
    wpe = 0.02 * jax.random.normal(keys[0], (n_positions, D), jnp.float32)

    qkv_scale = jnp.concatenate(
        [jnp.full((1, D), 1.0 / math.sqrt(hd), jnp.float32),
         jnp.ones((1, 2 * D), jnp.float32)], axis=1)

    blocks = []
    for l in range(n_layer):
        ks = jax.random.split(keys[1 + l], 4)
        w_qkv = 0.02 * jax.random.normal(ks[0], (D, 3 * D), jnp.float32) * qkv_scale
        w_ao = 0.02 * jax.random.normal(ks[1], (D, D), jnp.float32)
        blocks.append((
            jnp.ones((1, D), jnp.float32),                                              # ln1 gamma
            jnp.zeros((1, D), jnp.float32),                                             # ln1 beta
            w_qkv.astype(jnp.bfloat16),                                                 # c_attn W (Q pre-scaled)
            (jnp.zeros((1, 3 * D), jnp.float32) * qkv_scale),                           # c_attn b (Q pre-scaled)
            w_ao.reshape(n_head, hd, D).astype(jnp.bfloat16),                           # attn c_proj W (per-head)
            jnp.zeros((1, D), jnp.float32),                                             # attn c_proj b
            jnp.ones((1, D), jnp.float32),                                              # ln2 gamma
            jnp.zeros((1, D), jnp.float32),                                             # ln2 beta
            (0.02 * jax.random.normal(ks[2], (D, 4 * D), jnp.float32)).astype(jnp.bfloat16),  # mlp c_fc W
            jnp.zeros((1, 4 * D), jnp.float32),                                         # mlp c_fc b
            (0.02 * jax.random.normal(ks[3], (4 * D, D), jnp.float32)).astype(jnp.bfloat16),  # mlp c_proj W
            jnp.zeros((1, D), jnp.float32),                                             # mlp c_proj b
        ))

    lnf_g = jnp.ones((1, D), jnp.float32)
    lnf_b = jnp.zeros((1, D), jnp.float32)
    n_out = n_class - 1
    # head weight stored pre-transposed: (T*D, n_out)  (PyTorch Linear weight is (n_out, T*D))
    w_head_t = (0.02 * jax.random.normal(keys[-1], (n_positions * D, n_out),
                                         jnp.float32)).astype(jnp.bfloat16)
    b_head = jnp.zeros((1, n_out), jnp.float32)
    return wpe, blocks, lnf_g, lnf_b, w_head_t, b_head


# ---------------------------------------------------------------------------
# pure-JAX reference (same bf16-matmul / f32-accum math, same bf16 inter-chunk
# residual carry and post-matmul softmax normalization) for verification.
# ---------------------------------------------------------------------------
def ref_forward(x, params, n_head, blocks_per_call=2):
    wpe, blocks, lnf_g, lnf_b, w_head_t, b_head = params
    B, T, D = x.shape
    hd = D // n_head
    mask = jnp.where(jnp.arange(T)[None, :] <= jnp.arange(T)[:, None],
                     0.0, NEG_INF).astype(jnp.float32)
    h = x.astype(jnp.float32) + wpe[None]
    for li, (ln1_g, ln1_b, w_qkv, b_qkv, w_ao, b_ao,
             ln2_g, ln2_b, w_fc, b_fc, w_mo, b_mo) in enumerate(blocks):
        hn = _layer_norm(h, ln1_g, ln1_b)
        qkv = (_mxu_dot(hn.reshape(B * T, D), w_qkv) + b_qkv).reshape(B, T, 3 * D)
        q, k, v = qkv[..., :D], qkv[..., D:2 * D], qkv[..., 2 * D:]
        qh = q.reshape(B, T, n_head, hd).transpose(0, 2, 1, 3)
        kh = k.reshape(B, T, n_head, hd).transpose(0, 2, 1, 3)
        vh = v.reshape(B, T, n_head, hd).transpose(0, 2, 1, 3)
        s = _mxu_einsum('bhtd,bhsd->bhts', qh, kh) + mask[None, None]
        p = jnp.exp(s - jnp.max(s, axis=-1, keepdims=True))
        denom = jnp.sum(p, axis=-1, keepdims=True)
        ctx = _mxu_einsum('bhts,bhsd->bhtd', p, vh) / denom
        ctx = ctx.transpose(0, 2, 1, 3).reshape(B * T, D)
        h = h + (_mxu_dot(ctx, w_ao.reshape(D, D)) + b_ao).reshape(B, T, D)
        hn2 = _layer_norm(h, ln2_g, ln2_b)
        mlp = _mxu_dot(_gelu_new(_mxu_dot(hn2.reshape(B * T, D), w_fc) + b_fc), w_mo) + b_mo
        h = h + mlp.reshape(B, T, D)
        if (li + 1) % blocks_per_call == 0 or li == len(blocks) - 1:
            h = h.astype(jnp.bfloat16).astype(jnp.float32)    # matches bf16 inter-call carry
    hl = _layer_norm(h, lnf_g, lnf_b)
    logits = _mxu_dot(hl.reshape(B, -1), w_head_t) + b_head
    return hl, logits


if __name__ == "__main__":
    # small config consistent with the module's forward (T must equal n_positions);
    # D = 128 keeps the lane (minor) axis full-width; head_dim = 128 / 4 = 32.
    B, n_embd, n_positions, n_layer, n_head, n_class = 4, 128, 8, 4, 4, 2

    key = jax.random.PRNGKey(0)
    k_param, k_x = jax.random.split(key)
    params = init_params(k_param, n_embd, n_positions, n_layer, n_head, n_class)
    x = jax.random.normal(k_x, (B, n_positions, n_embd), jnp.float32)

    fwd = jax.jit(functools.partial(transformer_forward, n_head=n_head))
    last_hidden, logits = fwd(x, params)
    last_hidden = jax.block_until_ready(last_hidden)
    logits = jax.block_until_ready(logits)

    ref_hidden, ref_logits = ref_forward(x, params, n_head)
    assert last_hidden.shape == (B, n_positions, n_embd)
    assert logits.shape == (B, n_class - 1)
    assert jnp.allclose(last_hidden, ref_hidden, rtol=3e-2, atol=3e-2), \
        float(jnp.max(jnp.abs(last_hidden - ref_hidden)))
    assert jnp.allclose(logits, ref_logits, rtol=3e-2, atol=3e-2), \
        float(jnp.max(jnp.abs(logits - ref_logits)))

    print("KERNEL_OK")
</pallas_src>

<mosaic_0001>
module attributes {stable_mosaic.version = 11 : i64} {
  func.func @_blocks_kernel(%arg0: i32, %arg1: memref<2x8x128xf32, #tpu.memory_space<vmem>>, %arg2: memref<8x8xf32, #tpu.memory_space<vmem>>, %arg3: memref<8x128xf32, #tpu.memory_space<vmem>>, %arg4: memref<1x128xf32, #tpu.memory_space<vmem>>, %arg5: memref<1x128xf32, #tpu.memory_space<vmem>>, %arg6: memref<128x384xbf16, #tpu.memory_space<vmem>>, %arg7: memref<1x384xf32, #tpu.memory_space<vmem>>, %arg8: memref<4x32x128xbf16, #tpu.memory_space<vmem>>, %arg9: memref<1x128xf32, #tpu.memory_space<vmem>>, %arg10: memref<1x128xf32, #tpu.memory_space<vmem>>, %arg11: memref<1x128xf32, #tpu.memory_space<vmem>>, %arg12: memref<128x512xbf16, #tpu.memory_space<vmem>>, %arg13: memref<1x512xf32, #tpu.memory_space<vmem>>, %arg14: memref<512x128xbf16, #tpu.memory_space<vmem>>, %arg15: memref<1x128xf32, #tpu.memory_space<vmem>>, %arg16: memref<1x128xf32, #tpu.memory_space<vmem>>, %arg17: memref<1x128xf32, #tpu.memory_space<vmem>>, %arg18: memref<128x384xbf16, #tpu.memory_space<vmem>>, %arg19: memref<1x384xf32, #tpu.memory_space<vmem>>, %arg20: memref<4x32x128xbf16, #tpu.memory_space<vmem>>, %arg21: memref<1x128xf32, #tpu.memory_space<vmem>>, %arg22: memref<1x128xf32, #tpu.memory_space<vmem>>, %arg23: memref<1x128xf32, #tpu.memory_space<vmem>>, %arg24: memref<128x512xbf16, #tpu.memory_space<vmem>>, %arg25: memref<1x512xf32, #tpu.memory_space<vmem>>, %arg26: memref<512x128xbf16, #tpu.memory_space<vmem>>, %arg27: memref<1x128xf32, #tpu.memory_space<vmem>>, %arg28: memref<2x8x128xbf16, #tpu.memory_space<vmem>>) attributes {dimension_semantics = [#tpu.dimension_semantics<parallel>], iteration_bounds = array<i64: 2>, scalar_prefetch = 0 : i64, scratch_operands = 0 : i64, tpu.core_type = #tpu.core_type<tc>, window_params = [{transform_indices = @transform_0, window_bounds = array<i64: 2, 8, 128>}, {pipeline_mode = #tpu.pipeline_mode<synchronous>, transform_indices = @transform_1, window_bounds = array<i64: 8, 8>}, {pipeline_mode = #tpu.pipeline_mode<synchronous>, transform_indices = @transform_2, window_bounds = array<i64: 8, 128>}, {pipeline_mode = #tpu.pipeline_mode<synchronous>, transform_indices = @transform_3, window_bounds = array<i64: 1, 128>}, {pipeline_mode = #tpu.pipeline_mode<synchronous>, transform_indices = @transform_4, window_bounds = array<i64: 1, 128>}, {pipeline_mode = #tpu.pipeline_mode<synchronous>, transform_indices = @transform_5, window_bounds = array<i64: 128, 384>}, {pipeline_mode = #tpu.pipeline_mode<synchronous>, transform_indices = @transform_6, window_bounds = array<i64: 1, 384>}, {pipeline_mode = #tpu.pipeline_mode<synchronous>, transform_indices = @transform_7, window_bounds = array<i64: 4, 32, 128>}, {pipeline_mode = #tpu.pipeline_mode<synchronous>, transform_indices = @transform_8, window_bounds = array<i64: 1, 128>}, {pipeline_mode = #tpu.pipeline_mode<synchronous>, transform_indices = @transform_9, window_bounds = array<i64: 1, 128>}, {pipeline_mode = #tpu.pipeline_mode<synchronous>, transform_indices = @transform_10, window_bounds = array<i64: 1, 128>}, {pipeline_mode = #tpu.pipeline_mode<synchronous>, transform_indices = @transform_11, window_bounds = array<i64: 128, 512>}, {pipeline_mode = #tpu.pipeline_mode<synchronous>, transform_indices = @transform_12, window_bounds = array<i64: 1, 512>}, {pipeline_mode = #tpu.pipeline_mode<synchronous>, transform_indices = @transform_13, window_bounds = array<i64: 512, 128>}, {pipeline_mode = #tpu.pipeline_mode<synchronous>, transform_indices = @transform_14, window_bounds = array<i64: 1, 128>}, {pipeline_mode = #tpu.pipeline_mode<synchronous>, transform_indices = @transform_15, window_bounds = array<i64: 1, 128>}, {pipeline_mode = #tpu.pipeline_mode<synchronous>, transform_indices = @transform_16, window_bounds = array<i64: 1, 128>}, {pipeline_mode = #tpu.pipeline_mode<synchronous>, transform_indices = @transform_17, window_bounds = array<i64: 128, 384>}, {pipeline_mode = #tpu.pipeline_mode<synchronous>, transform_indices = @transform_18, window_bounds = array<i64: 1, 384>}, {pipeline_mode = #tpu.pipeline_mode<synchronous>, transform_indices = @transform_19, window_bounds = array<i64: 4, 32, 128>}, {pipeline_mode = #tpu.pipeline_mode<synchronous>, transform_indices = @transform_20, window_bounds = array<i64: 1, 128>}, {pipeline_mode = #tpu.pipeline_mode<synchronous>, transform_indices = @transform_21, window_bounds = array<i64: 1, 128>}, {pipeline_mode = #tpu.pipeline_mode<synchronous>, transform_indices = @transform_22, window_bounds = array<i64: 1, 128>}, {pipeline_mode = #tpu.pipeline_mode<synchronous>, transform_indices = @transform_23, window_bounds = array<i64: 128, 512>}, {pipeline_mode = #tpu.pipeline_mode<synchronous>, transform_indices = @transform_24, window_bounds = array<i64: 1, 512>}, {pipeline_mode = #tpu.pipeline_mode<synchronous>, transform_indices = @transform_25, window_bounds = array<i64: 512, 128>}, {pipeline_mode = #tpu.pipeline_mode<synchronous>, transform_indices = @transform_26, window_bounds = array<i64: 1, 128>}, {transform_indices = @transform_27, window_bounds = array<i64: 2, 8, 128>}]} {
    %c0 = arith.constant 0 : index
    %c0_0 = arith.constant 0 : index
    %c0_1 = arith.constant 0 : index
    %0 = vector.load %arg1[%c0, %c0_0, %c0_1] : memref<2x8x128xf32, #tpu.memory_space<vmem>>, vector<2x8x128xf32>
    %c0_2 = arith.constant 0 : index
    %c0_3 = arith.constant 0 : index
    %1 = vector.load %arg3[%c0_2, %c0_3] : memref<8x128xf32, #tpu.memory_space<vmem>>, vector<8x128xf32>
    %2 = vector.shape_cast %1 : vector<8x128xf32> to vector<1x8x128xf32>
    %3 = vector.broadcast %2 : vector<1x8x128xf32> to vector<2x8x128xf32>
    %4 = arith.addf %0, %3 : vector<2x8x128xf32>
    %c0_4 = arith.constant 0 : index
    %c0_5 = arith.constant 0 : index
    %5 = vector.load %arg2[%c0_4, %c0_5] : memref<8x8xf32, #tpu.memory_space<vmem>>, vector<8x8xf32>
    %6 = vector.shape_cast %5 : vector<8x8xf32> to vector<1x8x8xf32>
    %7 = vector.shape_cast %4 : vector<2x8x128xf32> to vector<16x128xf32>
    %c0_6 = arith.constant 0 : index
    %c0_7 = arith.constant 0 : index
    %8 = vector.load %arg4[%c0_6, %c0_7] : memref<1x128xf32, #tpu.memory_space<vmem>>, vector<1x128xf32>
    %c0_8 = arith.constant 0 : index
    %c0_9 = arith.constant 0 : index
    %9 = vector.load %arg5[%c0_8, %c0_9] : memref<1x128xf32, #tpu.memory_space<vmem>>, vector<1x128xf32>
    %cst = arith.constant dense<0.000000e+00> : vector<16xf32>
    %10 = vector.multi_reduction <add>, %7, %cst [1] : vector<16x128xf32> to vector<16xf32>
    %11 = vector.shape_cast %10 : vector<16xf32> to vector<16x1xf32>
    %cst_10 = arith.constant 1.280000e+02 : f32
    %12 = vector.broadcast %cst_10 : f32 to vector<16x1xf32>
    %13 = arith.divf %11, %12 : vector<16x1xf32>
    %14 = vector.broadcast %13 : vector<16x1xf32> to vector<16x128xf32>
    %15 = arith.subf %7, %14 : vector<16x128xf32>
    %16 = arith.mulf %15, %15 : vector<16x128xf32>
    %cst_11 = arith.constant dense<0.000000e+00> : vector<16xf32>
    %17 = vector.multi_reduction <add>, %16, %cst_11 [1] : vector<16x128xf32> to vector<16xf32>
    %18 = vector.shape_cast %17 : vector<16xf32> to vector<16x1xf32>
    %cst_12 = arith.constant 1.280000e+02 : f32
    %19 = vector.broadcast %cst_12 : f32 to vector<16x1xf32>
    %20 = arith.divf %18, %19 : vector<16x1xf32>
    %21 = vector.broadcast %13 : vector<16x1xf32> to vector<16x128xf32>
    %22 = arith.subf %7, %21 : vector<16x128xf32>
    %cst_13 = arith.constant 9.99999974E-6 : f32
    %23 = vector.broadcast %cst_13 : f32 to vector<16x1xf32>
    %24 = arith.addf %20, %23 : vector<16x1xf32>
    %25 = math.rsqrt %24 : vector<16x1xf32>
    %26 = vector.broadcast %25 : vector<16x1xf32> to vector<16x128xf32>
    %27 = arith.mulf %22, %26 : vector<16x128xf32>
    %28 = vector.broadcast %8 : vector<1x128xf32> to vector<16x128xf32>
    %29 = arith.mulf %27, %28 : vector<16x128xf32>
    %30 = vector.broadcast %9 : vector<1x128xf32> to vector<16x128xf32>
    %31 = arith.addf %29, %30 : vector<16x128xf32>
    %c0_14 = arith.constant 0 : index
    %c0_15 = arith.constant 0 : index
    %32 = vector.load %arg6[%c0_14, %c0_15] : memref<128x384xbf16, #tpu.memory_space<vmem>>, vector<128x384xbf16>
    %33 = arith.truncf %31 : vector<16x128xf32> to vector<16x128xbf16>
    %cst_16 = arith.constant dense<0.000000e+00> : vector<16x384xf32>
    %34 = tpu.matmul %33, %32, %cst_16 {dimension_numbers = #tpu.dot_dimension_numbers<[1], [0], [0], [1], [0, 0, 1, 1], [], []>} : vector<16x128xbf16>, vector<128x384xbf16>, vector<16x384xf32> -> vector<16x384xf32>
    %c0_17 = arith.constant 0 : index
    %c0_18 = arith.constant 0 : index
    %35 = vector.load %arg7[%c0_17, %c0_18] : memref<1x384xf32, #tpu.memory_space<vmem>>, vector<1x384xf32>
    %36 = vector.broadcast %35 : vector<1x384xf32> to vector<16x384xf32>
    %37 = arith.addf %34, %36 : vector<16x384xf32>
    %38 = vector.shape_cast %37 : vector<16x384xf32> to vector<2x8x384xf32>
    %39 = vector.extract_strided_slice %38 {offsets = [0, 0, 0], sizes = [2, 8, 32], strides = [1, 1, 1]} : vector<2x8x384xf32> to vector<2x8x32xf32>
    %40 = vector.extract_strided_slice %38 {offsets = [0, 0, 32], sizes = [2, 8, 32], strides = [1, 1, 1]} : vector<2x8x384xf32> to vector<2x8x32xf32>
    %41 = vector.extract_strided_slice %38 {offsets = [0, 0, 64], sizes = [2, 8, 32], strides = [1, 1, 1]} : vector<2x8x384xf32> to vector<2x8x32xf32>
    %42 = vector.extract_strided_slice %38 {offsets = [0, 0, 96], sizes = [2, 8, 32], strides = [1, 1, 1]} : vector<2x8x384xf32> to vector<2x8x32xf32>
    %43 = tpu.concatenate %39, %40, %41, %42 in 0 : vector<2x8x32xf32>, vector<2x8x32xf32>, vector<2x8x32xf32>, vector<2x8x32xf32> -> vector<8x8x32xf32>
    %44 = vector.extract_strided_slice %38 {offsets = [0, 0, 128], sizes = [2, 8, 32], strides = [1, 1, 1]} : vector<2x8x384xf32> to vector<2x8x32xf32>
    %45 = vector.extract_strided_slice %38 {offsets = [0, 0, 160], sizes = [2, 8, 32], strides = [1, 1, 1]} : vector<2x8x384xf32> to vector<2x8x32xf32>
    %46 = vector.extract_strided_slice %38 {offsets = [0, 0, 192], sizes = [2, 8, 32], strides = [1, 1, 1]} : vector<2x8x384xf32> to vector<2x8x32xf32>
    %47 = vector.extract_strided_slice %38 {offsets = [0, 0, 224], sizes = [2, 8, 32], strides = [1, 1, 1]} : vector<2x8x384xf32> to vector<2x8x32xf32>
    %48 = tpu.concatenate %44, %45, %46, %47 in 0 : vector<2x8x32xf32>, vector<2x8x32xf32>, vector<2x8x32xf32>, vector<2x8x32xf32> -> vector<8x8x32xf32>
    %49 = vector.extract_strided_slice %38 {offsets = [0, 0, 256], sizes = [2, 8, 32], strides = [1, 1, 1]} : vector<2x8x384xf32> to vector<2x8x32xf32>
    %50 = vector.extract_strided_slice %38 {offsets = [0, 0, 288], sizes = [2, 8, 32], strides = [1, 1, 1]} : vector<2x8x384xf32> to vector<2x8x32xf32>
    %51 = vector.extract_strided_slice %38 {offsets = [0, 0, 320], sizes = [2, 8, 32], strides = [1, 1, 1]} : vector<2x8x384xf32> to vector<2x8x32xf32>
    %52 = vector.extract_strided_slice %38 {offsets = [0, 0, 352], sizes = [2, 8, 32], strides = [1, 1, 1]} : vector<2x8x384xf32> to vector<2x8x32xf32>
    %53 = tpu.concatenate %49, %50, %51, %52 in 0 : vector<2x8x32xf32>, vector<2x8x32xf32>, vector<2x8x32xf32>, vector<2x8x32xf32> -> vector<8x8x32xf32>
    %54 = arith.truncf %43 : vector<8x8x32xf32> to vector<8x8x32xbf16>
    %55 = arith.truncf %48 : vector<8x8x32xf32> to vector<8x8x32xbf16>
    "tpu.trace_start"() <{level = 10 : i32, message = "gtd,gsd->gts"}> : () -> ()
    %cst_19 = arith.constant dense<0.000000e+00> : vector<8x8x8xf32>
    %56 = tpu.matmul %54, %55, %cst_19 {dimension_numbers = #tpu.dot_dimension_numbers<[2], [2], [1], [1], [0, 0, 0, 1, 1, 1], [0], [0]>} : vector<8x8x32xbf16>, vector<8x8x32xbf16>, vector<8x8x8xf32> -> vector<8x8x8xf32>
    "tpu.trace_stop"() : () -> ()
    %57 = vector.broadcast %6 : vector<1x8x8xf32> to vector<8x8x8xf32>
    %58 = arith.addf %56, %57 : vector<8x8x8xf32>
    %cst_20 = arith.constant dense<0xFF800000> : vector<8x8xf32>
    %59 = vector.multi_reduction <maximumf>, %58, %cst_20 [2] : vector<8x8x8xf32> to vector<8x8xf32>
    %60 = vector.shape_cast %59 : vector<8x8xf32> to vector<8x8x1xf32>
    %61 = vector.broadcast %60 : vector<8x8x1xf32> to vector<8x8x8xf32>
    %62 = arith.subf %58, %61 : vector<8x8x8xf32>
    %63 = math.exp %62 : vector<8x8x8xf32>
    %cst_21 = arith.constant dense<0.000000e+00> : vector<8x8xf32>
    %64 = vector.multi_reduction <add>, %63, %cst_21 [2] : vector<8x8x8xf32> to vector<8x8xf32>
    %65 = vector.shape_cast %64 : vector<8x8xf32> to vector<8x8x1xf32>
    %66 = arith.truncf %63 : vector<8x8x8xf32> to vector<8x8x8xbf16>
    %67 = arith.truncf %53 : vector<8x8x32xf32> to vector<8x8x32xbf16>
    "tpu.trace_start"() <{level = 10 : i32, message = "gts,gsd->gtd"}> : () -> ()
    %cst_22 = arith.constant dense<0.000000e+00> : vector<8x8x32xf32>
    %68 = tpu.matmul %66, %67, %cst_22 {dimension_numbers = #tpu.dot_dimension_numbers<[2], [1], [1], [2], [0, 0, 0, 1, 1, 2], [0], [0]>} : vector<8x8x8xbf16>, vector<8x8x32xbf16>, vector<8x8x32xf32> -> vector<8x8x32xf32>
    "tpu.trace_stop"() : () -> ()
    %69 = tpu.reciprocal %65 {approx = true} : vector<8x8x1xf32> -> vector<8x8x1xf32>
    %70 = vector.broadcast %69 : vector<8x8x1xf32> to vector<8x8x32xf32>
    %71 = arith.mulf %68, %70 : vector<8x8x32xf32>
    %72 = vector.extract_strided_slice %71 {offsets = [0, 0, 0], sizes = [2, 8, 32], strides = [1, 1, 1]} : vector<8x8x32xf32> to vector<2x8x32xf32>
    %73 = vector.shape_cast %72 : vector<2x8x32xf32> to vector<16x32xf32>
    %c0_23 = arith.constant 0 : index
    %c0_24 = arith.constant 0 : index
    %c0_25 = arith.constant 0 : index
    %74 = vector.load %arg8[%c0_23, %c0_24, %c0_25] : memref<4x32x128xbf16, #tpu.memory_space<vmem>>, vector<1x32x128xbf16>
    %75 = vector.shape_cast %74 : vector<1x32x128xbf16> to vector<32x128xbf16>
    %76 = arith.truncf %73 : vector<16x32xf32> to vector<16x32xbf16>
    %cst_26 = arith.constant dense<0.000000e+00> : vector<16x128xf32>
    %77 = tpu.matmul %76, %75, %cst_26 {dimension_numbers = #tpu.dot_dimension_numbers<[1], [0], [0], [1], [0, 0, 1, 1], [], []>} : vector<16x32xbf16>, vector<32x128xbf16>, vector<16x128xf32> -> vector<16x128xf32>
    %78 = vector.extract_strided_slice %71 {offsets = [2, 0, 0], sizes = [2, 8, 32], strides = [1, 1, 1]} : vector<8x8x32xf32> to vector<2x8x32xf32>
    %79 = vector.shape_cast %78 : vector<2x8x32xf32> to vector<16x32xf32>
    %c1 = arith.constant 1 : index
    %c0_27 = arith.constant 0 : index
    %c0_28 = arith.constant 0 : index
    %80 = vector.load %arg8[%c1, %c0_27, %c0_28] : memref<4x32x128xbf16, #tpu.memory_space<vmem>>, vector<1x32x128xbf16>
    %81 = vector.shape_cast %80 : vector<1x32x128xbf16> to vector<32x128xbf16>
    %82 = arith.truncf %79 : vector<16x32xf32> to vector<16x32xbf16>
    %cst_29 = arith.constant dense<0.000000e+00> : vector<16x128xf32>
    %83 = tpu.matmul %82, %81, %cst_29 {dimension_numbers = #tpu.dot_dimension_numbers<[1], [0], [0], [1], [0, 0, 1, 1], [], []>} : vector<16x32xbf16>, vector<32x128xbf16>, vector<16x128xf32> -> vector<16x128xf32>
    %84 = arith.addf %77, %83 : vector<16x128xf32>
    %85 = vector.extract_strided_slice %71 {offsets = [4, 0, 0], sizes = [2, 8, 32], strides = [1, 1, 1]} : vector<8x8x32xf32> to vector<2x8x32xf32>
    %86 = vector.shape_cast %85 : vector<2x8x32xf32> to vector<16x32xf32>
    %c2 = arith.constant 2 : index
    %c0_30 = arith.constant 0 : index
    %c0_31 = arith.constant 0 : index
    %87 = vector.load %arg8[%c2, %c0_30, %c0_31] : memref<4x32x128xbf16, #tpu.memory_space<vmem>>, vector<1x32x128xbf16>
    %88 = vector.shape_cast %87 : vector<1x32x128xbf16> to vector<32x128xbf16>
    %89 = arith.truncf %86 : vector<16x32xf32> to vector<16x32xbf16>
    %cst_32 = arith.constant dense<0.000000e+00> : vector<16x128xf32>
    %90 = tpu.matmul %89, %88, %cst_32 {dimension_numbers = #tpu.dot_dimension_numbers<[1], [0], [0], [1], [0, 0, 1, 1], [], []>} : vector<16x32xbf16>, vector<32x128xbf16>, vector<16x128xf32> -> vector<16x128xf32>
    %91 = arith.addf %84, %90 : vector<16x128xf32>
    %92 = vector.extract_strided_slice %71 {offsets = [6, 0, 0], sizes = [2, 8, 32], strides = [1, 1, 1]} : vector<8x8x32xf32> to vector<2x8x32xf32>
    %93 = vector.shape_cast %92 : vector<2x8x32xf32> to vector<16x32xf32>
    %c3 = arith.constant 3 : index
    %c0_33 = arith.constant 0 : index
    %c0_34 = arith.constant 0 : index
    %94 = vector.load %arg8[%c3, %c0_33, %c0_34] : memref<4x32x128xbf16, #tpu.memory_space<vmem>>, vector<1x32x128xbf16>
    %95 = vector.shape_cast %94 : vector<1x32x128xbf16> to vector<32x128xbf16>
    %96 = arith.truncf %93 : vector<16x32xf32> to vector<16x32xbf16>
    %cst_35 = arith.constant dense<0.000000e+00> : vector<16x128xf32>
    %97 = tpu.matmul %96, %95, %cst_35 {dimension_numbers = #tpu.dot_dimension_numbers<[1], [0], [0], [1], [0, 0, 1, 1], [], []>} : vector<16x32xbf16>, vector<32x128xbf16>, vector<16x128xf32> -> vector<16x128xf32>
    %98 = arith.addf %91, %97 : vector<16x128xf32>
    %99 = arith.addf %7, %98 : vector<16x128xf32>
    %c0_36 = arith.constant 0 : index
    %c0_37 = arith.constant 0 : index
    %100 = vector.load %arg9[%c0_36, %c0_37] : memref<1x128xf32, #tpu.memory_space<vmem>>, vector<1x128xf32>
    %101 = vector.broadcast %100 : vector<1x128xf32> to vector<16x128xf32>
    %102 = arith.addf %99, %101 : vector<16x128xf32>
    %c0_38 = arith.constant 0 : index
    %c0_39 = arith.constant 0 : index
    %103 = vector.load %arg10[%c0_38, %c0_39] : memref<1x128xf32, #tpu.memory_space<vmem>>, vector<1x128xf32>
    %c0_40 = arith.constant 0 : index
    %c0_41 = arith.constant 0 : index
    %104 = vector.load %arg11[%c0_40, %c0_41] : memref<1x128xf32, #tpu.memory_space<vmem>>, vector<1x128xf32>
    %cst_42 = arith.constant dense<0.000000e+00> : vector<16xf32>
    %105 = vector.multi_reduction <add>, %102, %cst_42 [1] : vector<16x128xf32> to vector<16xf32>
    %106 = vector.shape_cast %105 : vector<16xf32> to vector<16x1xf32>
    %cst_43 = arith.constant 1.280000e+02 : f32
    %107 = vector.broadcast %cst_43 : f32 to vector<16x1xf32>
    %108 = arith.divf %106, %107 : vector<16x1xf32>
    %109 = vector.broadcast %108 : vector<16x1xf32> to vector<16x128xf32>
    %110 = arith.subf %102, %109 : vector<16x128xf32>
    %111 = arith.mulf %110, %110 : vector<16x128xf32>
    %cst_44 = arith.constant dense<0.000000e+00> : vector<16xf32>
    %112 = vector.multi_reduction <add>, %111, %cst_44 [1] : vector<16x128xf32> to vector<16xf32>
    %113 = vector.shape_cast %112 : vector<16xf32> to vector<16x1xf32>
    %cst_45 = arith.constant 1.280000e+02 : f32
    %114 = vector.broadcast %cst_45 : f32 to vector<16x1xf32>
    %115 = arith.divf %113, %114 : vector<16x1xf32>
    %116 = vector.broadcast %108 : vector<16x1xf32> to vector<16x128xf32>
    %117 = arith.subf %102, %116 : vector<16x128xf32>
    %cst_46 = arith.constant 9.99999974E-6 : f32
    %118 = vector.broadcast %cst_46 : f32 to vector<16x1xf32>
    %119 = arith.addf %115, %118 : vector<16x1xf32>
    %120 = math.rsqrt %119 : vector<16x1xf32>
    %121 = vector.broadcast %120 : vector<16x1xf32> to vector<16x128xf32>
    %122 = arith.mulf %117, %121 : vector<16x128xf32>
    %123 = vector.broadcast %103 : vector<1x128xf32> to vector<16x128xf32>
    %124 = arith.mulf %122, %123 : vector<16x128xf32>
    %125 = vector.broadcast %104 : vector<1x128xf32> to vector<16x128xf32>
    %126 = arith.addf %124, %125 : vector<16x128xf32>
    %c0_47 = arith.constant 0 : index
    %c0_48 = arith.constant 0 : index
    %127 = vector.load %arg12[%c0_47, %c0_48] : memref<128x512xbf16, #tpu.memory_space<vmem>>, vector<128x512xbf16>
    %128 = arith.truncf %126 : vector<16x128xf32> to vector<16x128xbf16>
    %cst_49 = arith.constant dense<0.000000e+00> : vector<16x512xf32>
    %129 = tpu.matmul %128, %127, %cst_49 {dimension_numbers = #tpu.dot_dimension_numbers<[1], [0], [0], [1], [0, 0, 1, 1], [], []>} : vector<16x128xbf16>, vector<128x512xbf16>, vector<16x512xf32> -> vector<16x512xf32>
    %c0_50 = arith.constant 0 : index
    %c0_51 = arith.constant 0 : index
    %130 = vector.load %arg13[%c0_50, %c0_51] : memref<1x512xf32, #tpu.memory_space<vmem>>, vector<1x512xf32>
    %131 = vector.broadcast %130 : vector<1x512xf32> to vector<16x512xf32>
    %132 = arith.addf %129, %131 : vector<16x512xf32>
    %cst_52 = arith.constant 5.000000e-01 : f32
    %133 = vector.broadcast %cst_52 : f32 to vector<16x512xf32>
    %134 = arith.mulf %133, %132 : vector<16x512xf32>
    %135 = arith.mulf %132, %132 : vector<16x512xf32>
    %136 = arith.mulf %132, %135 : vector<16x512xf32>
    %cst_53 = arith.constant 4.471500e-02 : f32
    %137 = vector.broadcast %cst_53 : f32 to vector<16x512xf32>
    %138 = arith.mulf %137, %136 : vector<16x512xf32>
    %139 = arith.addf %132, %138 : vector<16x512xf32>
    %cst_54 = arith.constant 0.797884583 : f32
    %140 = vector.broadcast %cst_54 : f32 to vector<16x512xf32>
    %141 = arith.mulf %140, %139 : vector<16x512xf32>
    %142 = math.tanh %141 : vector<16x512xf32>
    %cst_55 = arith.constant 1.000000e+00 : f32
    %143 = vector.broadcast %cst_55 : f32 to vector<16x512xf32>
    %144 = arith.addf %143, %142 : vector<16x512xf32>
    %145 = arith.mulf %134, %144 : vector<16x512xf32>
    %c0_56 = arith.constant 0 : index
    %c0_57 = arith.constant 0 : index
    %146 = vector.load %arg14[%c0_56, %c0_57] : memref<512x128xbf16, #tpu.memory_space<vmem>>, vector<512x128xbf16>
    %147 = arith.truncf %145 : vector<16x512xf32> to vector<16x512xbf16>
    %cst_58 = arith.constant dense<0.000000e+00> : vector<16x128xf32>
    %148 = tpu.matmul %147, %146, %cst_58 {dimension_numbers = #tpu.dot_dimension_numbers<[1], [0], [0], [1], [0, 0, 1, 1], [], []>} : vector<16x512xbf16>, vector<512x128xbf16>, vector<16x128xf32> -> vector<16x128xf32>
    %149 = arith.addf %102, %148 : vector<16x128xf32>
    %c0_59 = arith.constant 0 : index
    %c0_60 = arith.constant 0 : index
    %150 = vector.load %arg15[%c0_59, %c0_60] : memref<1x128xf32, #tpu.memory_space<vmem>>, vector<1x128xf32>
    %151 = vector.broadcast %150 : vector<1x128xf32> to vector<16x128xf32>
    %152 = arith.addf %149, %151 : vector<16x128xf32>
    %153 = vector.shape_cast %152 : vector<16x128xf32> to vector<2x8x128xf32>
    %154 = vector.shape_cast %153 : vector<2x8x128xf32> to vector<16x128xf32>
    %c0_61 = arith.constant 0 : index
    %c0_62 = arith.constant 0 : index
    %155 = vector.load %arg16[%c0_61, %c0_62] : memref<1x128xf32, #tpu.memory_space<vmem>>, vector<1x128xf32>
    %c0_63 = arith.constant 0 : index
    %c0_64 = arith.constant 0 : index
    %156 = vector.load %arg17[%c0_63, %c0_64] : memref<1x128xf32, #tpu.memory_space<vmem>>, vector<1x128xf32>
    %cst_65 = arith.constant dense<0.000000e+00> : vector<16xf32>
    %157 = vector.multi_reduction <add>, %154, %cst_65 [1] : vector<16x128xf32> to vector<16xf32>
    %158 = vector.shape_cast %157 : vector<16xf32> to vector<16x1xf32>
    %cst_66 = arith.constant 1.280000e+02 : f32
    %159 = vector.broadcast %cst_66 : f32 to vector<16x1xf32>
    %160 = arith.divf %158, %159 : vector<16x1xf32>
    %161 = vector.broadcast %160 : vector<16x1xf32> to vector<16x128xf32>
    %162 = arith.subf %154, %161 : vector<16x128xf32>
    %163 = arith.mulf %162, %162 : vector<16x128xf32>
    %cst_67 = arith.constant dense<0.000000e+00> : vector<16xf32>
    %164 = vector.multi_reduction <add>, %163, %cst_67 [1] : vector<16x128xf32> to vector<16xf32>
    %165 = vector.shape_cast %164 : vector<16xf32> to vector<16x1xf32>
    %cst_68 = arith.constant 1.280000e+02 : f32
    %166 = vector.broadcast %cst_68 : f32 to vector<16x1xf32>
    %167 = arith.divf %165, %166 : vector<16x1xf32>
    %168 = vector.broadcast %160 : vector<16x1xf32> to vector<16x128xf32>
    %169 = arith.subf %154, %168 : vector<16x128xf32>
    %cst_69 = arith.constant 9.99999974E-6 : f32
    %170 = vector.broadcast %cst_69 : f32 to vector<16x1xf32>
    %171 = arith.addf %167, %170 : vector<16x1xf32>
    %172 = math.rsqrt %171 : vector<16x1xf32>
    %173 = vector.broadcast %172 : vector<16x1xf32> to vector<16x128xf32>
    %174 = arith.mulf %169, %173 : vector<16x128xf32>
    %175 = vector.broadcast %155 : vector<1x128xf32> to vector<16x128xf32>
    %176 = arith.mulf %174, %175 : vector<16x128xf32>
    %177 = vector.broadcast %156 : vector<1x128xf32> to vector<16x128xf32>
    %178 = arith.addf %176, %177 : vector<16x128xf32>
    %c0_70 = arith.constant 0 : index
    %c0_71 = arith.constant 0 : index
    %179 = vector.load %arg18[%c0_70, %c0_71] : memref<128x384xbf16, #tpu.memory_space<vmem>>, vector<128x384xbf16>
    %180 = arith.truncf %178 : vector<16x128xf32> to vector<16x128xbf16>
    %cst_72 = arith.constant dense<0.000000e+00> : vector<16x384xf32>
    %181 = tpu.matmul %180, %179, %cst_72 {dimension_numbers = #tpu.dot_dimension_numbers<[1], [0], [0], [1], [0, 0, 1, 1], [], []>} : vector<16x128xbf16>, vector<128x384xbf16>, vector<16x384xf32> -> vector<16x384xf32>
    %c0_73 = arith.constant 0 : index
    %c0_74 = arith.constant 0 : index
    %182 = vector.load %arg19[%c0_73, %c0_74] : memref<1x384xf32, #tpu.memory_space<vmem>>, vector<1x384xf32>
    %183 = vector.broadcast %182 : vector<1x384xf32> to vector<16x384xf32>
    %184 = arith.addf %181, %183 : vector<16x384xf32>
    %185 = vector.shape_cast %184 : vector<16x384xf32> to vector<2x8x384xf32>
    %186 = vector.extract_strided_slice %185 {offsets = [0, 0, 0], sizes = [2, 8, 32], strides = [1, 1, 1]} : vector<2x8x384xf32> to vector<2x8x32xf32>
    %187 = vector.extract_strided_slice %185 {offsets = [0, 0, 32], sizes = [2, 8, 32], strides = [1, 1, 1]} : vector<2x8x384xf32> to vector<2x8x32xf32>
    %188 = vector.extract_strided_slice %185 {offsets = [0, 0, 64], sizes = [2, 8, 32], strides = [1, 1, 1]} : vector<2x8x384xf32> to vector<2x8x32xf32>
    %189 = vector.extract_strided_slice %185 {offsets = [0, 0, 96], sizes = [2, 8, 32], strides = [1, 1, 1]} : vector<2x8x384xf32> to vector<2x8x32xf32>
    %190 = tpu.concatenate %186, %187, %188, %189 in 0 : vector<2x8x32xf32>, vector<2x8x32xf32>, vector<2x8x32xf32>, vector<2x8x32xf32> -> vector<8x8x32xf32>
    %191 = vector.extract_strided_slice %185 {offsets = [0, 0, 128], sizes = [2, 8, 32], strides = [1, 1, 1]} : vector<2x8x384xf32> to vector<2x8x32xf32>
    %192 = vector.extract_strided_slice %185 {offsets = [0, 0, 160], sizes = [2, 8, 32], strides = [1, 1, 1]} : vector<2x8x384xf32> to vector<2x8x32xf32>
    %193 = vector.extract_strided_slice %185 {offsets = [0, 0, 192], sizes = [2, 8, 32], strides = [1, 1, 1]} : vector<2x8x384xf32> to vector<2x8x32xf32>
    %194 = vector.extract_strided_slice %185 {offsets = [0, 0, 224], sizes = [2, 8, 32], strides = [1, 1, 1]} : vector<2x8x384xf32> to vector<2x8x32xf32>
    %195 = tpu.concatenate %191, %192, %193, %194 in 0 : vector<2x8x32xf32>, vector<2x8x32xf32>, vector<2x8x32xf32>, vector<2x8x32xf32> -> vector<8x8x32xf32>
    %196 = vector.extract_strided_slice %185 {offsets = [0, 0, 256], sizes = [2, 8, 32], strides = [1, 1, 1]} : vector<2x8x384xf32> to vector<2x8x32xf32>
    %197 = vector.extract_strided_slice %185 {offsets = [0, 0, 288], sizes = [2, 8, 32], strides = [1, 1, 1]} : vector<2x8x384xf32> to vector<2x8x32xf32>
    %198 = vector.extract_strided_slice %185 {offsets = [0, 0, 320], sizes = [2, 8, 32], strides = [1, 1, 1]} : vector<2x8x384xf32> to vector<2x8x32xf32>
    %199 = vector.extract_strided_slice %185 {offsets = [0, 0, 352], sizes = [2, 8, 32], strides = [1, 1, 1]} : vector<2x8x384xf32> to vector<2x8x32xf32>
    %200 = tpu.concatenate %196, %197, %198, %199 in 0 : vector<2x8x32xf32>, vector<2x8x32xf32>, vector<2x8x32xf32>, vector<2x8x32xf32> -> vector<8x8x32xf32>
    %201 = arith.truncf %190 : vector<8x8x32xf32> to vector<8x8x32xbf16>
    %202 = arith.truncf %195 : vector<8x8x32xf32> to vector<8x8x32xbf16>
    "tpu.trace_start"() <{level = 10 : i32, message = "gtd,gsd->gts"}> : () -> ()
    %cst_75 = arith.constant dense<0.000000e+00> : vector<8x8x8xf32>
    %203 = tpu.matmul %201, %202, %cst_75 {dimension_numbers = #tpu.dot_dimension_numbers<[2], [2], [1], [1], [0, 0, 0, 1, 1, 1], [0], [0]>} : vector<8x8x32xbf16>, vector<8x8x32xbf16>, vector<8x8x8xf32> -> vector<8x8x8xf32>
    "tpu.trace_stop"() : () -> ()
    %204 = vector.broadcast %6 : vector<1x8x8xf32> to vector<8x8x8xf32>
    %205 = arith.addf %203, %204 : vector<8x8x8xf32>
    %cst_76 = arith.constant dense<0xFF800000> : vector<8x8xf32>
    %206 = vector.multi_reduction <maximumf>, %205, %cst_76 [2] : vector<8x8x8xf32> to vector<8x8xf32>
    %207 = vector.shape_cast %206 : vector<8x8xf32> to vector<8x8x1xf32>
    %208 = vector.broadcast %207 : vector<8x8x1xf32> to vector<8x8x8xf32>
    %209 = arith.subf %205, %208 : vector<8x8x8xf32>
    %210 = math.exp %209 : vector<8x8x8xf32>
    %cst_77 = arith.constant dense<0.000000e+00> : vector<8x8xf32>
    %211 = vector.multi_reduction <add>, %210, %cst_77 [2] : vector<8x8x8xf32> to vector<8x8xf32>
    %212 = vector.shape_cast %211 : vector<8x8xf32> to vector<8x8x1xf32>
    %213 = arith.truncf %210 : vector<8x8x8xf32> to vector<8x8x8xbf16>
    %214 = arith.truncf %200 : vector<8x8x32xf32> to vector<8x8x32xbf16>
    "tpu.trace_start"() <{level = 10 : i32, message = "gts,gsd->gtd"}> : () -> ()
    %cst_78 = arith.constant dense<0.000000e+00> : vector<8x8x32xf32>
    %215 = tpu.matmul %213, %214, %cst_78 {dimension_numbers = #tpu.dot_dimension_numbers<[2], [1], [1], [2], [0, 0, 0, 1, 1, 2], [0], [0]>} : vector<8x8x8xbf16>, vector<8x8x32xbf16>, vector<8x8x32xf32> -> vector<8x8x32xf32>
    "tpu.trace_stop"() : () -> ()
    %216 = tpu.reciprocal %212 {approx = true} : vector<8x8x1xf32> -> vector<8x8x1xf32>
    %217 = vector.broadcast %216 : vector<8x8x1xf32> to vector<8x8x32xf32>
    %218 = arith.mulf %215, %217 : vector<8x8x32xf32>
    %219 = vector.extract_strided_slice %218 {offsets = [0, 0, 0], sizes = [2, 8, 32], strides = [1, 1, 1]} : vector<8x8x32xf32> to vector<2x8x32xf32>
    %220 = vector.shape_cast %219 : vector<2x8x32xf32> to vector<16x32xf32>
    %c0_79 = arith.constant 0 : index
    %c0_80 = arith.constant 0 : index
    %c0_81 = arith.constant 0 : index
    %221 = vector.load %arg20[%c0_79, %c0_80, %c0_81] : memref<4x32x128xbf16, #tpu.memory_space<vmem>>, vector<1x32x128xbf16>
    %222 = vector.shape_cast %221 : vector<1x32x128xbf16> to vector<32x128xbf16>
    %223 = arith.truncf %220 : vector<16x32xf32> to vector<16x32xbf16>
    %cst_82 = arith.constant dense<0.000000e+00> : vector<16x128xf32>
    %224 = tpu.matmul %223, %222, %cst_82 {dimension_numbers = #tpu.dot_dimension_numbers<[1], [0], [0], [1], [0, 0, 1, 1], [], []>} : vector<16x32xbf16>, vector<32x128xbf16>, vector<16x128xf32> -> vector<16x128xf32>
    %225 = vector.extract_strided_slice %218 {offsets = [2, 0, 0], sizes = [2, 8, 32], strides = [1, 1, 1]} : vector<8x8x32xf32> to vector<2x8x32xf32>
    %226 = vector.shape_cast %225 : vector<2x8x32xf32> to vector<16x32xf32>
    %c1_83 = arith.constant 1 : index
    %c0_84 = arith.constant 0 : index
    %c0_85 = arith.constant 0 : index
    %227 = vector.load %arg20[%c1_83, %c0_84, %c0_85] : memref<4x32x128xbf16, #tpu.memory_space<vmem>>, vector<1x32x128xbf16>
    %228 = vector.shape_cast %227 : vector<1x32x128xbf16> to vector<32x128xbf16>
    %229 = arith.truncf %226 : vector<16x32xf32> to vector<16x32xbf16>
    %cst_86 = arith.constant dense<0.000000e+00> : vector<16x128xf32>
    %230 = tpu.matmul %229, %228, %cst_86 {dimension_numbers = #tpu.dot_dimension_numbers<[1], [0], [0], [1], [0, 0, 1, 1], [], []>} : vector<16x32xbf16>, vector<32x128xbf16>, vector<16x128xf32> -> vector<16x128xf32>
    %231 = arith.addf %224, %230 : vector<16x128xf32>
    %232 = vector.extract_strided_slice %218 {offsets = [4, 0, 0], sizes = [2, 8, 32], strides = [1, 1, 1]} : vector<8x8x32xf32> to vector<2x8x32xf32>
    %233 = vector.shape_cast %232 : vector<2x8x32xf32> to vector<16x32xf32>
    %c2_87 = arith.constant 2 : index
    %c0_88 = arith.constant 0 : index
    %c0_89 = arith.constant 0 : index
    %234 = vector.load %arg20[%c2_87, %c0_88, %c0_89] : memref<4x32x128xbf16, #tpu.memory_space<vmem>>, vector<1x32x128xbf16>
    %235 = vector.shape_cast %234 : vector<1x32x128xbf16> to vector<32x128xbf16>
    %236 = arith.truncf %233 : vector<16x32xf32> to vector<16x32xbf16>
    %cst_90 = arith.constant dense<0.000000e+00> : vector<16x128xf32>
    %237 = tpu.matmul %236, %235, %cst_90 {dimension_numbers = #tpu.dot_dimension_numbers<[1], [0], [0], [1], [0, 0, 1, 1], [], []>} : vector<16x32xbf16>, vector<32x128xbf16>, vector<16x128xf32> -> vector<16x128xf32>
    %238 = arith.addf %231, %237 : vector<16x128xf32>
    %239 = vector.extract_strided_slice %218 {offsets = [6, 0, 0], sizes = [2, 8, 32], strides = [1, 1, 1]} : vector<8x8x32xf32> to vector<2x8x32xf32>
    %240 = vector.shape_cast %239 : vector<2x8x32xf32> to vector<16x32xf32>
    %c3_91 = arith.constant 3 : index
    %c0_92 = arith.constant 0 : index
    %c0_93 = arith.constant 0 : index
    %241 = vector.load %arg20[%c3_91, %c0_92, %c0_93] : memref<4x32x128xbf16, #tpu.memory_space<vmem>>, vector<1x32x128xbf16>
    %242 = vector.shape_cast %241 : vector<1x32x128xbf16> to vector<32x128xbf16>
    %243 = arith.truncf %240 : vector<16x32xf32> to vector<16x32xbf16>
    %cst_94 = arith.constant dense<0.000000e+00> : vector<16x128xf32>
    %244 = tpu.matmul %243, %242, %cst_94 {dimension_numbers = #tpu.dot_dimension_numbers<[1], [0], [0], [1], [0, 0, 1, 1], [], []>} : vector<16x32xbf16>, vector<32x128xbf16>, vector<16x128xf32> -> vector<16x128xf32>
    %245 = arith.addf %238, %244 : vector<16x128xf32>
    %246 = arith.addf %154, %245 : vector<16x128xf32>
    %c0_95 = arith.constant 0 : index
    %c0_96 = arith.constant 0 : index
    %247 = vector.load %arg21[%c0_95, %c0_96] : memref<1x128xf32, #tpu.memory_space<vmem>>, vector<1x128xf32>
    %248 = vector.broadcast %247 : vector<1x128xf32> to vector<16x128xf32>
    %249 = arith.addf %246, %248 : vector<16x128xf32>
    %c0_97 = arith.constant 0 : index
    %c0_98 = arith.constant 0 : index
    %250 = vector.load %arg22[%c0_97, %c0_98] : memref<1x128xf32, #tpu.memory_space<vmem>>, vector<1x128xf32>
    %c0_99 = arith.constant 0 : index
    %c0_100 = arith.constant 0 : index
    %251 = vector.load %arg23[%c0_99, %c0_100] : memref<1x128xf32, #tpu.memory_space<vmem>>, vector<1x128xf32>
    %cst_101 = arith.constant dense<0.000000e+00> : vector<16xf32>
    %252 = vector.multi_reduction <add>, %249, %cst_101 [1] : vector<16x128xf32> to vector<16xf32>
    %253 = vector.shape_cast %252 : vector<16xf32> to vector<16x1xf32>
    %cst_102 = arith.constant 1.280000e+02 : f32
    %254 = vector.broadcast %cst_102 : f32 to vector<16x1xf32>
    %255 = arith.divf %253, %254 : vector<16x1xf32>
    %256 = vector.broadcast %255 : vector<16x1xf32> to vector<16x128xf32>
    %257 = arith.subf %249, %256 : vector<16x128xf32>
    %258 = arith.mulf %257, %257 : vector<16x128xf32>
    %cst_103 = arith.constant dense<0.000000e+00> : vector<16xf32>
    %259 = vector.multi_reduction <add>, %258, %cst_103 [1] : vector<16x128xf32> to vector<16xf32>
    %260 = vector.shape_cast %259 : vector<16xf32> to vector<16x1xf32>
    %cst_104 = arith.constant 1.280000e+02 : f32
    %261 = vector.broadcast %cst_104 : f32 to vector<16x1xf32>
    %262 = arith.divf %260, %261 : vector<16x1xf32>
    %263 = vector.broadcast %255 : vector<16x1xf32> to vector<16x128xf32>
    %264 = arith.subf %249, %263 : vector<16x128xf32>
    %cst_105 = arith.constant 9.99999974E-6 : f32
    %265 = vector.broadcast %cst_105 : f32 to vector<16x1xf32>
    %266 = arith.addf %262, %265 : vector<16x1xf32>
    %267 = math.rsqrt %266 : vector<16x1xf32>
    %268 = vector.broadcast %267 : vector<16x1xf32> to vector<16x128xf32>
    %269 = arith.mulf %264, %268 : vector<16x128xf32>
    %270 = vector.broadcast %250 : vector<1x128xf32> to vector<16x128xf32>
    %271 = arith.mulf %269, %270 : vector<16x128xf32>
    %272 = vector.broadcast %251 : vector<1x128xf32> to vector<16x128xf32>
    %273 = arith.addf %271, %272 : vector<16x128xf32>
    %c0_106 = arith.constant 0 : index
    %c0_107 = arith.constant 0 : index
    %274 = vector.load %arg24[%c0_106, %c0_107] : memref<128x512xbf16, #tpu.memory_space<vmem>>, vector<128x512xbf16>
    %275 = arith.truncf %273 : vector<16x128xf32> to vector<16x128xbf16>
    %cst_108 = arith.constant dense<0.000000e+00> : vector<16x512xf32>
    %276 = tpu.matmul %275, %274, %cst_108 {dimension_numbers = #tpu.dot_dimension_numbers<[1], [0], [0], [1], [0, 0, 1, 1], [], []>} : vector<16x128xbf16>, vector<128x512xbf16>, vector<16x512xf32> -> vector<16x512xf32>
    %c0_109 = arith.constant 0 : index
    %c0_110 = arith.constant 0 : index
    %277 = vector.load %arg25[%c0_109, %c0_110] : memref<1x512xf32, #tpu.memory_space<vmem>>, vector<1x512xf32>
    %278 = vector.broadcast %277 : vector<1x512xf32> to vector<16x512xf32>
    %279 = arith.addf %276, %278 : vector<16x512xf32>
    %cst_111 = arith.constant 5.000000e-01 : f32
    %280 = vector.broadcast %cst_111 : f32 to vector<16x512xf32>
    %281 = arith.mulf %280, %279 : vector<16x512xf32>
    %282 = arith.mulf %279, %279 : vector<16x512xf32>
    %283 = arith.mulf %279, %282 : vector<16x512xf32>
    %cst_112 = arith.constant 4.471500e-02 : f32
    %284 = vector.broadcast %cst_112 : f32 to vector<16x512xf32>
    %285 = arith.mulf %284, %283 : vector<16x512xf32>
    %286 = arith.addf %279, %285 : vector<16x512xf32>
    %cst_113 = arith.constant 0.797884583 : f32
    %287 = vector.broadcast %cst_113 : f32 to vector<16x512xf32>
    %288 = arith.mulf %287, %286 : vector<16x512xf32>
    %289 = math.tanh %288 : vector<16x512xf32>
    %cst_114 = arith.constant 1.000000e+00 : f32
    %290 = vector.broadcast %cst_114 : f32 to vector<16x512xf32>
    %291 = arith.addf %290, %289 : vector<16x512xf32>
    %292 = arith.mulf %281, %291 : vector<16x512xf32>
    %c0_115 = arith.constant 0 : index
    %c0_116 = arith.constant 0 : index
    %293 = vector.load %arg26[%c0_115, %c0_116] : memref<512x128xbf16, #tpu.memory_space<vmem>>, vector<512x128xbf16>
    %294 = arith.truncf %292 : vector<16x512xf32> to vector<16x512xbf16>
    %cst_117 = arith.constant dense<0.000000e+00> : vector<16x128xf32>
    %295 = tpu.matmul %294, %293, %cst_117 {dimension_numbers = #tpu.dot_dimension_numbers<[1], [0], [0], [1], [0, 0, 1, 1], [], []>} : vector<16x512xbf16>, vector<512x128xbf16>, vector<16x128xf32> -> vector<16x128xf32>
    %296 = arith.addf %249, %295 : vector<16x128xf32>
    %c0_118 = arith.constant 0 : index
    %c0_119 = arith.constant 0 : index
    %297 = vector.load %arg27[%c0_118, %c0_119] : memref<1x128xf32, #tpu.memory_space<vmem>>, vector<1x128xf32>
    %298 = vector.broadcast %297 : vector<1x128xf32> to vector<16x128xf32>
    %299 = arith.addf %296, %298 : vector<16x128xf32>
    %300 = vector.shape_cast %299 : vector<16x128xf32> to vector<2x8x128xf32>
    %301 = arith.truncf %300 : vector<2x8x128xf32> to vector<2x8x128xbf16>
    %c0_120 = arith.constant 0 : index
    %c0_121 = arith.constant 0 : index
    %c0_122 = arith.constant 0 : index
    %302 = vector.load %arg28[%c0_120, %c0_121, %c0_122] : memref<2x8x128xbf16, #tpu.memory_space<vmem>>, vector<2x8x128xbf16>
    tpu.vector_store %arg28[%c0_120, %c0_121, %c0_122], %301 {strides = array<i32>} : memref<2x8x128xbf16, #tpu.memory_space<vmem>>, vector<2x8x128xbf16>,
    return
  }
  func.func @transform_0(%arg0: i32) -> (i32, i32, i32) {
    %c0_i32 = arith.constant 0 : i32
    %c0_i32_0 = arith.constant 0 : i32
    %c0_i32_1 = arith.constant 0 : i32
    return %arg0, %c0_i32, %c0_i32_0 : i32, i32, i32
  }
  func.func @transform_1(%arg0: i32) -> (i32, i32) {
    %c0_i32 = arith.constant 0 : i32
    %c0_i32_0 = arith.constant 0 : i32
    %c0_i32_1 = arith.constant 0 : i32
    return %c0_i32, %c0_i32_0 : i32, i32
  }
  func.func @transform_2(%arg0: i32) -> (i32, i32) {
    %c0_i32 = arith.constant 0 : i32
    %c0_i32_0 = arith.constant 0 : i32
    %c0_i32_1 = arith.constant 0 : i32
    return %c0_i32, %c0_i32_0 : i32, i32
  }
  func.func @transform_3(%arg0: i32) -> (i32, i32) {
    %c0_i32 = arith.constant 0 : i32
    %c0_i32_0 = arith.constant 0 : i32
    %c0_i32_1 = arith.constant 0 : i32
    return %c0_i32, %c0_i32_0 : i32, i32
  }
  func.func @transform_4(%arg0: i32) -> (i32, i32) {
    %c0_i32 = arith.constant 0 : i32
    %c0_i32_0 = arith.constant 0 : i32
    %c0_i32_1 = arith.constant 0 : i32
    return %c0_i32, %c0_i32_0 : i32, i32
  }
  func.func @transform_5(%arg0: i32) -> (i32, i32) {
    %c0_i32 = arith.constant 0 : i32
    %c0_i32_0 = arith.constant 0 : i32
    %c0_i32_1 = arith.constant 0 : i32
    return %c0_i32, %c0_i32_0 : i32, i32
  }
  func.func @transform_6(%arg0: i32) -> (i32, i32) {
    %c0_i32 = arith.constant 0 : i32
    %c0_i32_0 = arith.constant 0 : i32
    %c0_i32_1 = arith.constant 0 : i32
    return %c0_i32, %c0_i32_0 : i32, i32
  }
  func.func @transform_7(%arg0: i32) -> (i32, i32, i32) {
    %c0_i32 = arith.constant 0 : i32
    %c0_i32_0 = arith.constant 0 : i32
    %c0_i32_1 = arith.constant 0 : i32
    %c0_i32_2 = arith.constant 0 : i32
    return %c0_i32, %c0_i32_0, %c0_i32_1 : i32, i32, i32
  }
  func.func @transform_8(%arg0: i32) -> (i32, i32) {
    %c0_i32 = arith.constant 0 : i32
    %c0_i32_0 = arith.constant 0 : i32
    %c0_i32_1 = arith.constant 0 : i32
    return %c0_i32, %c0_i32_0 : i32, i32
  }
  func.func @transform_9(%arg0: i32) -> (i32, i32) {
    %c0_i32 = arith.constant 0 : i32
    %c0_i32_0 = arith.constant 0 : i32
    %c0_i32_1 = arith.constant 0 : i32
    return %c0_i32, %c0_i32_0 : i32, i32
  }
  func.func @transform_10(%arg0: i32) -> (i32, i32) {
    %c0_i32 = arith.constant 0 : i32
    %c0_i32_0 = arith.constant 0 : i32
    %c0_i32_1 = arith.constant 0 : i32
    return %c0_i32, %c0_i32_0 : i32, i32
  }
  func.func @transform_11(%arg0: i32) -> (i32, i32) {
    %c0_i32 = arith.constant 0 : i32
    %c0_i32_0 = arith.constant 0 : i32
    %c0_i32_1 = arith.constant 0 : i32
    return %c0_i32, %c0_i32_0 : i32, i32
  }
  func.func @transform_12(%arg0: i32) -> (i32, i32) {
    %c0_i32 = arith.constant 0 : i32
    %c0_i32_0 = arith.constant 0 : i32
    %c0_i32_1 = arith.constant 0 : i32
    return %c0_i32, %c0_i32_0 : i32, i32
  }
  func.func @transform_13(%arg0: i32) -> (i32, i32) {
    %c0_i32 = arith.constant 0 : i32
    %c0_i32_0 = arith.constant 0 : i32
    %c0_i32_1 = arith.constant 0 : i32
    return %c0_i32, %c0_i32_0 : i32, i32
  }
  func.func @transform_14(%arg0: i32) -> (i32, i32) {
    %c0_i32 = arith.constant 0 : i32
    %c0_i32_0 = arith.constant 0 : i32
    %c0_i32_1 = arith.constant 0 : i32
    return %c0_i32, %c0_i32_0 : i32, i32
  }
  func.func @transform_15(%arg0: i32) -> (i32, i32) {
    %c0_i32 = arith.constant 0 : i32
    %c0_i32_0 = arith.constant 0 : i32
    %c0_i32_1 = arith.constant 0 : i32
    return %c0_i32, %c0_i32_0 : i32, i32
  }
  func.func @transform_16(%arg0: i32) -> (i32, i32) {
    %c0_i32 = arith.constant 0 : i32
    %c0_i32_0 = arith.constant 0 : i32
    %c0_i32_1 = arith.constant 0 : i32
    return %c0_i32, %c0_i32_0 : i32, i32
  }
  func.func @transform_17(%arg0: i32) -> (i32, i32) {
    %c0_i32 = arith.constant 0 : i32
    %c0_i32_0 = arith.constant 0 : i32
    %c0_i32_1 = arith.constant 0 : i32
    return %c0_i32, %c0_i32_0 : i32, i32
  }
  func.func @transform_18(%arg0: i32) -> (i32, i32) {
    %c0_i32 = arith.constant 0 : i32
    %c0_i32_0 = arith.constant 0 : i32
    %c0_i32_1 = arith.constant 0 : i32
    return %c0_i32, %c0_i32_0 : i32, i32
  }
  func.func @transform_19(%arg0: i32) -> (i32, i32, i32) {
    %c0_i32 = arith.constant 0 : i32
    %c0_i32_0 = arith.constant 0 : i32
    %c0_i32_1 = arith.constant 0 : i32
    %c0_i32_2 = arith.constant 0 : i32
    return %c0_i32, %c0_i32_0, %c0_i32_1 : i32, i32, i32
  }
  func.func @transform_20(%arg0: i32) -> (i32, i32) {
    %c0_i32 = arith.constant 0 : i32
    %c0_i32_0 = arith.constant 0 : i32
    %c0_i32_1 = arith.constant 0 : i32
    return %c0_i32, %c0_i32_0 : i32, i32
  }
  func.func @transform_21(%arg0: i32) -> (i32, i32) {
    %c0_i32 = arith.constant 0 : i32
    %c0_i32_0 = arith.constant 0 : i32
    %c0_i32_1 = arith.constant 0 : i32
    return %c0_i32, %c0_i32_0 : i32, i32
  }
  func.func @transform_22(%arg0: i32) -> (i32, i32) {
    %c0_i32 = arith.constant 0 : i32
    %c0_i32_0 = arith.constant 0 : i32
    %c0_i32_1 = arith.constant 0 : i32
    return %c0_i32, %c0_i32_0 : i32, i32
  }
  func.func @transform_23(%arg0: i32) -> (i32, i32) {
    %c0_i32 = arith.constant 0 : i32
    %c0_i32_0 = arith.constant 0 : i32
    %c0_i32_1 = arith.constant 0 : i32
    return %c0_i32, %c0_i32_0 : i32, i32
  }
  func.func @transform_24(%arg0: i32) -> (i32, i32) {
    %c0_i32 = arith.constant 0 : i32
    %c0_i32_0 = arith.constant 0 : i32
    %c0_i32_1 = arith.constant 0 : i32
    return %c0_i32, %c0_i32_0 : i32, i32
  }
  func.func @transform_25(%arg0: i32) -> (i32, i32) {
    %c0_i32 = arith.constant 0 : i32
    %c0_i32_0 = arith.constant 0 : i32
    %c0_i32_1 = arith.constant 0 : i32
    return %c0_i32, %c0_i32_0 : i32, i32
  }
  func.func @transform_26(%arg0: i32) -> (i32, i32) {
    %c0_i32 = arith.constant 0 : i32
    %c0_i32_0 = arith.constant 0 : i32
    %c0_i32_1 = arith.constant 0 : i32
    return %c0_i32, %c0_i32_0 : i32, i32
  }
  func.func @transform_27(%arg0: i32) -> (i32, i32, i32) {
    %c0_i32 = arith.constant 0 : i32
    %c0_i32_0 = arith.constant 0 : i32
    %c0_i32_1 = arith.constant 0 : i32
    return %arg0, %c0_i32, %c0_i32_0 : i32, i32, i32
  }
}

module attributes {stable_mosaic.version = 11 : i64} {
  func.func @_blocks_kernel(%arg0: i32, %arg1: memref<2x8x128xbf16, #tpu.memory_space<vmem>>, %arg2: memref<8x8xf32, #tpu.memory_space<vmem>>, %arg3: memref<1x128xf32, #tpu.memory_space<vmem>>, %arg4: memref<1x128xf32, #tpu.memory_space<vmem>>, %arg5: memref<128x384xbf16, #tpu.memory_space<vmem>>, %arg6: memref<1x384xf32, #tpu.memory_space<vmem>>, %arg7: memref<4x32x128xbf16, #tpu.memory_space<vmem>>, %arg8: memref<1x128xf32, #tpu.memory_space<vmem>>, %arg9: memref<1x128xf32, #tpu.memory_space<vmem>>, %arg10: memref<1x128xf32, #tpu.memory_space<vmem>>, %arg11: memref<128x512xbf16, #tpu.memory_space<vmem>>, %arg12: memref<1x512xf32, #tpu.memory_space<vmem>>, %arg13: memref<512x128xbf16, #tpu.memory_space<vmem>>, %arg14: memref<1x128xf32, #tpu.memory_space<vmem>>, %arg15: memref<1x128xf32, #tpu.memory_space<vmem>>, %arg16: memref<1x128xf32, #tpu.memory_space<vmem>>, %arg17: memref<128x384xbf16, #tpu.memory_space<vmem>>, %arg18: memref<1x384xf32, #tpu.memory_space<vmem>>, %arg19: memref<4x32x128xbf16, #tpu.memory_space<vmem>>, %arg20: memref<1x128xf32, #tpu.memory_space<vmem>>, %arg21: memref<1x128xf32, #tpu.memory_space<vmem>>, %arg22: memref<1x128xf32, #tpu.memory_space<vmem>>, %arg23: memref<128x512xbf16, #tpu.memory_space<vmem>>, %arg24: memref<1x512xf32, #tpu.memory_space<vmem>>, %arg25: memref<512x128xbf16, #tpu.memory_space<vmem>>, %arg26: memref<1x128xf32, #tpu.memory_space<vmem>>, %arg27: memref<2x8x128xbf16, #tpu.memory_space<vmem>>) attributes {dimension_semantics = [#tpu.dimension_semantics<parallel>], iteration_bounds = array<i64: 2>, scalar_prefetch = 0 : i64, scratch_operands = 0 : i64, tpu.core_type = #tpu.core_type<tc>, window_params = [{transform_indices = @transform_0, window_bounds = array<i64: 2, 8, 128>}, {pipeline_mode = #tpu.pipeline_mode<synchronous>, transform_indices = @transform_1, window_bounds = array<i64: 8, 8>}, {pipeline_mode = #tpu.pipeline_mode<synchronous>, transform_indices = @transform_2, window_bounds = array<i64: 1, 128>}, {pipeline_mode = #tpu.pipeline_mode<synchronous>, transform_indices = @transform_3, window_bounds = array<i64: 1, 128>}, {pipeline_mode = #tpu.pipeline_mode<synchronous>, transform_indices = @transform_4, window_bounds = array<i64: 128, 384>}, {pipeline_mode = #tpu.pipeline_mode<synchronous>, transform_indices = @transform_5, window_bounds = array<i64: 1, 384>}, {pipeline_mode = #tpu.pipeline_mode<synchronous>, transform_indices = @transform_6, window_bounds = array<i64: 4, 32, 128>}, {pipeline_mode = #tpu.pipeline_mode<synchronous>, transform_indices = @transform_7, window_bounds = array<i64: 1, 128>}, {pipeline_mode = #tpu.pipeline_mode<synchronous>, transform_indices = @transform_8, window_bounds = array<i64: 1, 128>}, {pipeline_mode = #tpu.pipeline_mode<synchronous>, transform_indices = @transform_9, window_bounds = array<i64: 1, 128>}, {pipeline_mode = #tpu.pipeline_mode<synchronous>, transform_indices = @transform_10, window_bounds = array<i64: 128, 512>}, {pipeline_mode = #tpu.pipeline_mode<synchronous>, transform_indices = @transform_11, window_bounds = array<i64: 1, 512>}, {pipeline_mode = #tpu.pipeline_mode<synchronous>, transform_indices = @transform_12, window_bounds = array<i64: 512, 128>}, {pipeline_mode = #tpu.pipeline_mode<synchronous>, transform_indices = @transform_13, window_bounds = array<i64: 1, 128>}, {pipeline_mode = #tpu.pipeline_mode<synchronous>, transform_indices = @transform_14, window_bounds = array<i64: 1, 128>}, {pipeline_mode = #tpu.pipeline_mode<synchronous>, transform_indices = @transform_15, window_bounds = array<i64: 1, 128>}, {pipeline_mode = #tpu.pipeline_mode<synchronous>, transform_indices = @transform_16, window_bounds = array<i64: 128, 384>}, {pipeline_mode = #tpu.pipeline_mode<synchronous>, transform_indices = @transform_17, window_bounds = array<i64: 1, 384>}, {pipeline_mode = #tpu.pipeline_mode<synchronous>, transform_indices = @transform_18, window_bounds = array<i64: 4, 32, 128>}, {pipeline_mode = #tpu.pipeline_mode<synchronous>, transform_indices = @transform_19, window_bounds = array<i64: 1, 128>}, {pipeline_mode = #tpu.pipeline_mode<synchronous>, transform_indices = @transform_20, window_bounds = array<i64: 1, 128>}, {pipeline_mode = #tpu.pipeline_mode<synchronous>, transform_indices = @transform_21, window_bounds = array<i64: 1, 128>}, {pipeline_mode = #tpu.pipeline_mode<synchronous>, transform_indices = @transform_22, window_bounds = array<i64: 128, 512>}, {pipeline_mode = #tpu.pipeline_mode<synchronous>, transform_indices = @transform_23, window_bounds = array<i64: 1, 512>}, {pipeline_mode = #tpu.pipeline_mode<synchronous>, transform_indices = @transform_24, window_bounds = array<i64: 512, 128>}, {pipeline_mode = #tpu.pipeline_mode<synchronous>, transform_indices = @transform_25, window_bounds = array<i64: 1, 128>}, {transform_indices = @transform_26, window_bounds = array<i64: 2, 8, 128>}]} {
    %c0 = arith.constant 0 : index
    %c0_0 = arith.constant 0 : index
    %c0_1 = arith.constant 0 : index
    %0 = vector.load %arg1[%c0, %c0_0, %c0_1] : memref<2x8x128xbf16, #tpu.memory_space<vmem>>, vector<2x8x128xbf16>
    %1 = arith.extf %0 : vector<2x8x128xbf16> to vector<2x8x128xf32>
    %c0_2 = arith.constant 0 : index
    %c0_3 = arith.constant 0 : index
    %2 = vector.load %arg2[%c0_2, %c0_3] : memref<8x8xf32, #tpu.memory_space<vmem>>, vector<8x8xf32>
    %3 = vector.shape_cast %2 : vector<8x8xf32> to vector<1x8x8xf32>
    %4 = vector.shape_cast %1 : vector<2x8x128xf32> to vector<16x128xf32>
    %c0_4 = arith.constant 0 : index
    %c0_5 = arith.constant 0 : index
    %5 = vector.load %arg3[%c0_4, %c0_5] : memref<1x128xf32, #tpu.memory_space<vmem>>, vector<1x128xf32>
    %c0_6 = arith.constant 0 : index
    %c0_7 = arith.constant 0 : index
    %6 = vector.load %arg4[%c0_6, %c0_7] : memref<1x128xf32, #tpu.memory_space<vmem>>, vector<1x128xf32>
    %cst = arith.constant dense<0.000000e+00> : vector<16xf32>
    %7 = vector.multi_reduction <add>, %4, %cst [1] : vector<16x128xf32> to vector<16xf32>
    %8 = vector.shape_cast %7 : vector<16xf32> to vector<16x1xf32>
    %cst_8 = arith.constant 1.280000e+02 : f32
    %9 = vector.broadcast %cst_8 : f32 to vector<16x1xf32>
    %10 = arith.divf %8, %9 : vector<16x1xf32>
    %11 = vector.broadcast %10 : vector<16x1xf32> to vector<16x128xf32>
    %12 = arith.subf %4, %11 : vector<16x128xf32>
    %13 = arith.mulf %12, %12 : vector<16x128xf32>
    %cst_9 = arith.constant dense<0.000000e+00> : vector<16xf32>
    %14 = vector.multi_reduction <add>, %13, %cst_9 [1] : vector<16x128xf32> to vector<16xf32>
    %15 = vector.shape_cast %14 : vector<16xf32> to vector<16x1xf32>
    %cst_10 = arith.constant 1.280000e+02 : f32
    %16 = vector.broadcast %cst_10 : f32 to vector<16x1xf32>
    %17 = arith.divf %15, %16 : vector<16x1xf32>
    %18 = vector.broadcast %10 : vector<16x1xf32> to vector<16x128xf32>
    %19 = arith.subf %4, %18 : vector<16x128xf32>
    %cst_11 = arith.constant 9.99999974E-6 : f32
    %20 = vector.broadcast %cst_11 : f32 to vector<16x1xf32>
    %21 = arith.addf %17, %20 : vector<16x1xf32>
    %22 = math.rsqrt %21 : vector<16x1xf32>
    %23 = vector.broadcast %22 : vector<16x1xf32> to vector<16x128xf32>
    %24 = arith.mulf %19, %23 : vector<16x128xf32>
    %25 = vector.broadcast %5 : vector<1x128xf32> to vector<16x128xf32>
    %26 = arith.mulf %24, %25 : vector<16x128xf32>
    %27 = vector.broadcast %6 : vector<1x128xf32> to vector<16x128xf32>
    %28 = arith.addf %26, %27 : vector<16x128xf32>
    %c0_12 = arith.constant 0 : index
    %c0_13 = arith.constant 0 : index
    %29 = vector.load %arg5[%c0_12, %c0_13] : memref<128x384xbf16, #tpu.memory_space<vmem>>, vector<128x384xbf16>
    %30 = arith.truncf %28 : vector<16x128xf32> to vector<16x128xbf16>
    %cst_14 = arith.constant dense<0.000000e+00> : vector<16x384xf32>
    %31 = tpu.matmul %30, %29, %cst_14 {dimension_numbers = #tpu.dot_dimension_numbers<[1], [0], [0], [1], [0, 0, 1, 1], [], []>} : vector<16x128xbf16>, vector<128x384xbf16>, vector<16x384xf32> -> vector<16x384xf32>
    %c0_15 = arith.constant 0 : index
    %c0_16 = arith.constant 0 : index
    %32 = vector.load %arg6[%c0_15, %c0_16] : memref<1x384xf32, #tpu.memory_space<vmem>>, vector<1x384xf32>
    %33 = vector.broadcast %32 : vector<1x384xf32> to vector<16x384xf32>
    %34 = arith.addf %31, %33 : vector<16x384xf32>
    %35 = vector.shape_cast %34 : vector<16x384xf32> to vector<2x8x384xf32>
    %36 = vector.extract_strided_slice %35 {offsets = [0, 0, 0], sizes = [2, 8, 32], strides = [1, 1, 1]} : vector<2x8x384xf32> to vector<2x8x32xf32>
    %37 = vector.extract_strided_slice %35 {offsets = [0, 0, 32], sizes = [2, 8, 32], strides = [1, 1, 1]} : vector<2x8x384xf32> to vector<2x8x32xf32>
    %38 = vector.extract_strided_slice %35 {offsets = [0, 0, 64], sizes = [2, 8, 32], strides = [1, 1, 1]} : vector<2x8x384xf32> to vector<2x8x32xf32>
    %39 = vector.extract_strided_slice %35 {offsets = [0, 0, 96], sizes = [2, 8, 32], strides = [1, 1, 1]} : vector<2x8x384xf32> to vector<2x8x32xf32>
    %40 = tpu.concatenate %36, %37, %38, %39 in 0 : vector<2x8x32xf32>, vector<2x8x32xf32>, vector<2x8x32xf32>, vector<2x8x32xf32> -> vector<8x8x32xf32>
    %41 = vector.extract_strided_slice %35 {offsets = [0, 0, 128], sizes = [2, 8, 32], strides = [1, 1, 1]} : vector<2x8x384xf32> to vector<2x8x32xf32>
    %42 = vector.extract_strided_slice %35 {offsets = [0, 0, 160], sizes = [2, 8, 32], strides = [1, 1, 1]} : vector<2x8x384xf32> to vector<2x8x32xf32>
    %43 = vector.extract_strided_slice %35 {offsets = [0, 0, 192], sizes = [2, 8, 32], strides = [1, 1, 1]} : vector<2x8x384xf32> to vector<2x8x32xf32>
    %44 = vector.extract_strided_slice %35 {offsets = [0, 0, 224], sizes = [2, 8, 32], strides = [1, 1, 1]} : vector<2x8x384xf32> to vector<2x8x32xf32>
    %45 = tpu.concatenate %41, %42, %43, %44 in 0 : vector<2x8x32xf32>, vector<2x8x32xf32>, vector<2x8x32xf32>, vector<2x8x32xf32> -> vector<8x8x32xf32>
    %46 = vector.extract_strided_slice %35 {offsets = [0, 0, 256], sizes = [2, 8, 32], strides = [1, 1, 1]} : vector<2x8x384xf32> to vector<2x8x32xf32>
    %47 = vector.extract_strided_slice %35 {offsets = [0, 0, 288], sizes = [2, 8, 32], strides = [1, 1, 1]} : vector<2x8x384xf32> to vector<2x8x32xf32>
    %48 = vector.extract_strided_slice %35 {offsets = [0, 0, 320], sizes = [2, 8, 32], strides = [1, 1, 1]} : vector<2x8x384xf32> to vector<2x8x32xf32>
    %49 = vector.extract_strided_slice %35 {offsets = [0, 0, 352], sizes = [2, 8, 32], strides = [1, 1, 1]} : vector<2x8x384xf32> to vector<2x8x32xf32>
    %50 = tpu.concatenate %46, %47, %48, %49 in 0 : vector<2x8x32xf32>, vector<2x8x32xf32>, vector<2x8x32xf32>, vector<2x8x32xf32> -> vector<8x8x32xf32>
    %51 = arith.truncf %40 : vector<8x8x32xf32> to vector<8x8x32xbf16>
    %52 = arith.truncf %45 : vector<8x8x32xf32> to vector<8x8x32xbf16>
    "tpu.trace_start"() <{level = 10 : i32, message = "gtd,gsd->gts"}> : () -> ()
    %cst_17 = arith.constant dense<0.000000e+00> : vector<8x8x8xf32>
    %53 = tpu.matmul %51, %52, %cst_17 {dimension_numbers = #tpu.dot_dimension_numbers<[2], [2], [1], [1], [0, 0, 0, 1, 1, 1], [0], [0]>} : vector<8x8x32xbf16>, vector<8x8x32xbf16>, vector<8x8x8xf32> -> vector<8x8x8xf32>
    "tpu.trace_stop"() : () -> ()
    %54 = vector.broadcast %3 : vector<1x8x8xf32> to vector<8x8x8xf32>
    %55 = arith.addf %53, %54 : vector<8x8x8xf32>
    %cst_18 = arith.constant dense<0xFF800000> : vector<8x8xf32>
    %56 = vector.multi_reduction <maximumf>, %55, %cst_18 [2] : vector<8x8x8xf32> to vector<8x8xf32>
    %57 = vector.shape_cast %56 : vector<8x8xf32> to vector<8x8x1xf32>
    %58 = vector.broadcast %57 : vector<8x8x1xf32> to vector<8x8x8xf32>
    %59 = arith.subf %55, %58 : vector<8x8x8xf32>
    %60 = math.exp %59 : vector<8x8x8xf32>
    %cst_19 = arith.constant dense<0.000000e+00> : vector<8x8xf32>
    %61 = vector.multi_reduction <add>, %60, %cst_19 [2] : vector<8x8x8xf32> to vector<8x8xf32>
    %62 = vector.shape_cast %61 : vector<8x8xf32> to vector<8x8x1xf32>
    %63 = arith.truncf %60 : vector<8x8x8xf32> to vector<8x8x8xbf16>
    %64 = arith.truncf %50 : vector<8x8x32xf32> to vector<8x8x32xbf16>
    "tpu.trace_start"() <{level = 10 : i32, message = "gts,gsd->gtd"}> : () -> ()
    %cst_20 = arith.constant dense<0.000000e+00> : vector<8x8x32xf32>
    %65 = tpu.matmul %63, %64, %cst_20 {dimension_numbers = #tpu.dot_dimension_numbers<[2], [1], [1], [2], [0, 0, 0, 1, 1, 2], [0], [0]>} : vector<8x8x8xbf16>, vector<8x8x32xbf16>, vector<8x8x32xf32> -> vector<8x8x32xf32>
    "tpu.trace_stop"() : () -> ()
    %66 = tpu.reciprocal %62 {approx = true} : vector<8x8x1xf32> -> vector<8x8x1xf32>
    %67 = vector.broadcast %66 : vector<8x8x1xf32> to vector<8x8x32xf32>
    %68 = arith.mulf %65, %67 : vector<8x8x32xf32>
    %69 = vector.extract_strided_slice %68 {offsets = [0, 0, 0], sizes = [2, 8, 32], strides = [1, 1, 1]} : vector<8x8x32xf32> to vector<2x8x32xf32>
    %70 = vector.shape_cast %69 : vector<2x8x32xf32> to vector<16x32xf32>
    %c0_21 = arith.constant 0 : index
    %c0_22 = arith.constant 0 : index
    %c0_23 = arith.constant 0 : index
    %71 = vector.load %arg7[%c0_21, %c0_22, %c0_23] : memref<4x32x128xbf16, #tpu.memory_space<vmem>>, vector<1x32x128xbf16>
    %72 = vector.shape_cast %71 : vector<1x32x128xbf16> to vector<32x128xbf16>
    %73 = arith.truncf %70 : vector<16x32xf32> to vector<16x32xbf16>
    %cst_24 = arith.constant dense<0.000000e+00> : vector<16x128xf32>
    %74 = tpu.matmul %73, %72, %cst_24 {dimension_numbers = #tpu.dot_dimension_numbers<[1], [0], [0], [1], [0, 0, 1, 1], [], []>} : vector<16x32xbf16>, vector<32x128xbf16>, vector<16x128xf32> -> vector<16x128xf32>
    %75 = vector.extract_strided_slice %68 {offsets = [2, 0, 0], sizes = [2, 8, 32], strides = [1, 1, 1]} : vector<8x8x32xf32> to vector<2x8x32xf32>
    %76 = vector.shape_cast %75 : vector<2x8x32xf32> to vector<16x32xf32>
    %c1 = arith.constant 1 : index
    %c0_25 = arith.constant 0 : index
    %c0_26 = arith.constant 0 : index
    %77 = vector.load %arg7[%c1, %c0_25, %c0_26] : memref<4x32x128xbf16, #tpu.memory_space<vmem>>, vector<1x32x128xbf16>
    %78 = vector.shape_cast %77 : vector<1x32x128xbf16> to vector<32x128xbf16>
    %79 = arith.truncf %76 : vector<16x32xf32> to vector<16x32xbf16>
    %cst_27 = arith.constant dense<0.000000e+00> : vector<16x128xf32>
    %80 = tpu.matmul %79, %78, %cst_27 {dimension_numbers = #tpu.dot_dimension_numbers<[1], [0], [0], [1], [0, 0, 1, 1], [], []>} : vector<16x32xbf16>, vector<32x128xbf16>, vector<16x128xf32> -> vector<16x128xf32>
    %81 = arith.addf %74, %80 : vector<16x128xf32>
    %82 = vector.extract_strided_slice %68 {offsets = [4, 0, 0], sizes = [2, 8, 32], strides = [1, 1, 1]} : vector<8x8x32xf32> to vector<2x8x32xf32>
    %83 = vector.shape_cast %82 : vector<2x8x32xf32> to vector<16x32xf32>
    %c2 = arith.constant 2 : index
    %c0_28 = arith.constant 0 : index
    %c0_29 = arith.constant 0 : index
    %84 = vector.load %arg7[%c2, %c0_28, %c0_29] : memref<4x32x128xbf16, #tpu.memory_space<vmem>>, vector<1x32x128xbf16>
    %85 = vector.shape_cast %84 : vector<1x32x128xbf16> to vector<32x128xbf16>
    %86 = arith.truncf %83 : vector<16x32xf32> to vector<16x32xbf16>
    %cst_30 = arith.constant dense<0.000000e+00> : vector<16x128xf32>
    %87 = tpu.matmul %86, %85, %cst_30 {dimension_numbers = #tpu.dot_dimension_numbers<[1], [0], [0], [1], [0, 0, 1, 1], [], []>} : vector<16x32xbf16>, vector<32x128xbf16>, vector<16x128xf32> -> vector<16x128xf32>
    %88 = arith.addf %81, %87 : vector<16x128xf32>
    %89 = vector.extract_strided_slice %68 {offsets = [6, 0, 0], sizes = [2, 8, 32], strides = [1, 1, 1]} : vector<8x8x32xf32> to vector<2x8x32xf32>
    %90 = vector.shape_cast %89 : vector<2x8x32xf32> to vector<16x32xf32>
    %c3 = arith.constant 3 : index
    %c0_31 = arith.constant 0 : index
    %c0_32 = arith.constant 0 : index
    %91 = vector.load %arg7[%c3, %c0_31, %c0_32] : memref<4x32x128xbf16, #tpu.memory_space<vmem>>, vector<1x32x128xbf16>
    %92 = vector.shape_cast %91 : vector<1x32x128xbf16> to vector<32x128xbf16>
    %93 = arith.truncf %90 : vector<16x32xf32> to vector<16x32xbf16>
    %cst_33 = arith.constant dense<0.000000e+00> : vector<16x128xf32>
    %94 = tpu.matmul %93, %92, %cst_33 {dimension_numbers = #tpu.dot_dimension_numbers<[1], [0], [0], [1], [0, 0, 1, 1], [], []>} : vector<16x32xbf16>, vector<32x128xbf16>, vector<16x128xf32> -> vector<16x128xf32>
    %95 = arith.addf %88, %94 : vector<16x128xf32>
    %96 = arith.addf %4, %95 : vector<16x128xf32>
    %c0_34 = arith.constant 0 : index
    %c0_35 = arith.constant 0 : index
    %97 = vector.load %arg8[%c0_34, %c0_35] : memref<1x128xf32, #tpu.memory_space<vmem>>, vector<1x128xf32>
    %98 = vector.broadcast %97 : vector<1x128xf32> to vector<16x128xf32>
    %99 = arith.addf %96, %98 : vector<16x128xf32>
    %c0_36 = arith.constant 0 : index
    %c0_37 = arith.constant 0 : index
    %100 = vector.load %arg9[%c0_36, %c0_37] : memref<1x128xf32, #tpu.memory_space<vmem>>, vector<1x128xf32>
    %c0_38 = arith.constant 0 : index
    %c0_39 = arith.constant 0 : index
    %101 = vector.load %arg10[%c0_38, %c0_39] : memref<1x128xf32, #tpu.memory_space<vmem>>, vector<1x128xf32>
    %cst_40 = arith.constant dense<0.000000e+00> : vector<16xf32>
    %102 = vector.multi_reduction <add>, %99, %cst_40 [1] : vector<16x128xf32> to vector<16xf32>
    %103 = vector.shape_cast %102 : vector<16xf32> to vector<16x1xf32>
    %cst_41 = arith.constant 1.280000e+02 : f32
    %104 = vector.broadcast %cst_41 : f32 to vector<16x1xf32>
    %105 = arith.divf %103, %104 : vector<16x1xf32>
    %106 = vector.broadcast %105 : vector<16x1xf32> to vector<16x128xf32>
    %107 = arith.subf %99, %106 : vector<16x128xf32>
    %108 = arith.mulf %107, %107 : vector<16x128xf32>
    %cst_42 = arith.constant dense<0.000000e+00> : vector<16xf32>
    %109 = vector.multi_reduction <add>, %108, %cst_42 [1] : vector<16x128xf32> to vector<16xf32>
    %110 = vector.shape_cast %109 : vector<16xf32> to vector<16x1xf32>
    %cst_43 = arith.constant 1.280000e+02 : f32
    %111 = vector.broadcast %cst_43 : f32 to vector<16x1xf32>
    %112 = arith.divf %110, %111 : vector<16x1xf32>
    %113 = vector.broadcast %105 : vector<16x1xf32> to vector<16x128xf32>
    %114 = arith.subf %99, %113 : vector<16x128xf32>
    %cst_44 = arith.constant 9.99999974E-6 : f32
    %115 = vector.broadcast %cst_44 : f32 to vector<16x1xf32>
    %116 = arith.addf %112, %115 : vector<16x1xf32>
    %117 = math.rsqrt %116 : vector<16x1xf32>
    %118 = vector.broadcast %117 : vector<16x1xf32> to vector<16x128xf32>
    %119 = arith.mulf %114, %118 : vector<16x128xf32>
    %120 = vector.broadcast %100 : vector<1x128xf32> to vector<16x128xf32>
    %121 = arith.mulf %119, %120 : vector<16x128xf32>
    %122 = vector.broadcast %101 : vector<1x128xf32> to vector<16x128xf32>
    %123 = arith.addf %121, %122 : vector<16x128xf32>
    %c0_45 = arith.constant 0 : index
    %c0_46 = arith.constant 0 : index
    %124 = vector.load %arg11[%c0_45, %c0_46] : memref<128x512xbf16, #tpu.memory_space<vmem>>, vector<128x512xbf16>
    %125 = arith.truncf %123 : vector<16x128xf32> to vector<16x128xbf16>
    %cst_47 = arith.constant dense<0.000000e+00> : vector<16x512xf32>
    %126 = tpu.matmul %125, %124, %cst_47 {dimension_numbers = #tpu.dot_dimension_numbers<[1], [0], [0], [1], [0, 0, 1, 1], [], []>} : vector<16x128xbf16>, vector<128x512xbf16>, vector<16x512xf32> -> vector<16x512xf32>
    %c0_48 = arith.constant 0 : index
    %c0_49 = arith.constant 0 : index
    %127 = vector.load %arg12[%c0_48, %c0_49] : memref<1x512xf32, #tpu.memory_space<vmem>>, vector<1x512xf32>
    %128 = vector.broadcast %127 : vector<1x512xf32> to vector<16x512xf32>
    %129 = arith.addf %126, %128 : vector<16x512xf32>
    %cst_50 = arith.constant 5.000000e-01 : f32
    %130 = vector.broadcast %cst_50 : f32 to vector<16x512xf32>
    %131 = arith.mulf %130, %129 : vector<16x512xf32>
    %132 = arith.mulf %129, %129 : vector<16x512xf32>
    %133 = arith.mulf %129, %132 : vector<16x512xf32>
    %cst_51 = arith.constant 4.471500e-02 : f32
    %134 = vector.broadcast %cst_51 : f32 to vector<16x512xf32>
    %135 = arith.mulf %134, %133 : vector<16x512xf32>
    %136 = arith.addf %129, %135 : vector<16x512xf32>
    %cst_52 = arith.constant 0.797884583 : f32
    %137 = vector.broadcast %cst_52 : f32 to vector<16x512xf32>
    %138 = arith.mulf %137, %136 : vector<16x512xf32>
    %139 = math.tanh %138 : vector<16x512xf32>
    %cst_53 = arith.constant 1.000000e+00 : f32
    %140 = vector.broadcast %cst_53 : f32 to vector<16x512xf32>
    %141 = arith.addf %140, %139 : vector<16x512xf32>
    %142 = arith.mulf %131, %141 : vector<16x512xf32>
    %c0_54 = arith.constant 0 : index
    %c0_55 = arith.constant 0 : index
    %143 = vector.load %arg13[%c0_54, %c0_55] : memref<512x128xbf16, #tpu.memory_space<vmem>>, vector<512x128xbf16>
    %144 = arith.truncf %142 : vector<16x512xf32> to vector<16x512xbf16>
    %cst_56 = arith.constant dense<0.000000e+00> : vector<16x128xf32>
    %145 = tpu.matmul %144, %143, %cst_56 {dimension_numbers = #tpu.dot_dimension_numbers<[1], [0], [0], [1], [0, 0, 1, 1], [], []>} : vector<16x512xbf16>, vector<512x128xbf16>, vector<16x128xf32> -> vector<16x128xf32>
    %146 = arith.addf %99, %145 : vector<16x128xf32>
    %c0_57 = arith.constant 0 : index
    %c0_58 = arith.constant 0 : index
    %147 = vector.load %arg14[%c0_57, %c0_58] : memref<1x128xf32, #tpu.memory_space<vmem>>, vector<1x128xf32>
    %148 = vector.broadcast %147 : vector<1x128xf32> to vector<16x128xf32>
    %149 = arith.addf %146, %148 : vector<16x128xf32>
    %150 = vector.shape_cast %149 : vector<16x128xf32> to vector<2x8x128xf32>
    %151 = vector.shape_cast %150 : vector<2x8x128xf32> to vector<16x128xf32>
    %c0_59 = arith.constant 0 : index
    %c0_60 = arith.constant 0 : index
    %152 = vector.load %arg15[%c0_59, %c0_60] : memref<1x128xf32, #tpu.memory_space<vmem>>, vector<1x128xf32>
    %c0_61 = arith.constant 0 : index
    %c0_62 = arith.constant 0 : index
    %153 = vector.load %arg16[%c0_61, %c0_62] : memref<1x128xf32, #tpu.memory_space<vmem>>, vector<1x128xf32>
    %cst_63 = arith.constant dense<0.000000e+00> : vector<16xf32>
    %154 = vector.multi_reduction <add>, %151, %cst_63 [1] : vector<16x128xf32> to vector<16xf32>
    %155 = vector.shape_cast %154 : vector<16xf32> to vector<16x1xf32>
    %cst_64 = arith.constant 1.280000e+02 : f32
    %156 = vector.broadcast %cst_64 : f32 to vector<16x1xf32>
    %157 = arith.divf %155, %156 : vector<16x1xf32>
    %158 = vector.broadcast %157 : vector<16x1xf32> to vector<16x128xf32>
    %159 = arith.subf %151, %158 : vector<16x128xf32>
    %160 = arith.mulf %159, %159 : vector<16x128xf32>
    %cst_65 = arith.constant dense<0.000000e+00> : vector<16xf32>
    %161 = vector.multi_reduction <add>, %160, %cst_65 [1] : vector<16x128xf32> to vector<16xf32>
    %162 = vector.shape_cast %161 : vector<16xf32> to vector<16x1xf32>
    %cst_66 = arith.constant 1.280000e+02 : f32
    %163 = vector.broadcast %cst_66 : f32 to vector<16x1xf32>
    %164 = arith.divf %162, %163 : vector<16x1xf32>
    %165 = vector.broadcast %157 : vector<16x1xf32> to vector<16x128xf32>
    %166 = arith.subf %151, %165 : vector<16x128xf32>
    %cst_67 = arith.constant 9.99999974E-6 : f32
    %167 = vector.broadcast %cst_67 : f32 to vector<16x1xf32>
    %168 = arith.addf %164, %167 : vector<16x1xf32>
    %169 = math.rsqrt %168 : vector<16x1xf32>
    %170 = vector.broadcast %169 : vector<16x1xf32> to vector<16x128xf32>
    %171 = arith.mulf %166, %170 : vector<16x128xf32>
    %172 = vector.broadcast %152 : vector<1x128xf32> to vector<16x128xf32>
    %173 = arith.mulf %171, %172 : vector<16x128xf32>
    %174 = vector.broadcast %153 : vector<1x128xf32> to vector<16x128xf32>
    %175 = arith.addf %173, %174 : vector<16x128xf32>
    %c0_68 = arith.constant 0 : index
    %c0_69 = arith.constant 0 : index
    %176 = vector.load %arg17[%c0_68, %c0_69] : memref<128x384xbf16, #tpu.memory_space<vmem>>, vector<128x384xbf16>
    %177 = arith.truncf %175 : vector<16x128xf32> to vector<16x128xbf16>
    %cst_70 = arith.constant dense<0.000000e+00> : vector<16x384xf32>
    %178 = tpu.matmul %177, %176, %cst_70 {dimension_numbers = #tpu.dot_dimension_numbers<[1], [0], [0], [1], [0, 0, 1, 1], [], []>} : vector<16x128xbf16>, vector<128x384xbf16>, vector<16x384xf32> -> vector<16x384xf32>
    %c0_71 = arith.constant 0 : index
    %c0_72 = arith.constant 0 : index
    %179 = vector.load %arg18[%c0_71, %c0_72] : memref<1x384xf32, #tpu.memory_space<vmem>>, vector<1x384xf32>
    %180 = vector.broadcast %179 : vector<1x384xf32> to vector<16x384xf32>
    %181 = arith.addf %178, %180 : vector<16x384xf32>
    %182 = vector.shape_cast %181 : vector<16x384xf32> to vector<2x8x384xf32>
    %183 = vector.extract_strided_slice %182 {offsets = [0, 0, 0], sizes = [2, 8, 32], strides = [1, 1, 1]} : vector<2x8x384xf32> to vector<2x8x32xf32>
    %184 = vector.extract_strided_slice %182 {offsets = [0, 0, 32], sizes = [2, 8, 32], strides = [1, 1, 1]} : vector<2x8x384xf32> to vector<2x8x32xf32>
    %185 = vector.extract_strided_slice %182 {offsets = [0, 0, 64], sizes = [2, 8, 32], strides = [1, 1, 1]} : vector<2x8x384xf32> to vector<2x8x32xf32>
    %186 = vector.extract_strided_slice %182 {offsets = [0, 0, 96], sizes = [2, 8, 32], strides = [1, 1, 1]} : vector<2x8x384xf32> to vector<2x8x32xf32>
    %187 = tpu.concatenate %183, %184, %185, %186 in 0 : vector<2x8x32xf32>, vector<2x8x32xf32>, vector<2x8x32xf32>, vector<2x8x32xf32> -> vector<8x8x32xf32>
    %188 = vector.extract_strided_slice %182 {offsets = [0, 0, 128], sizes = [2, 8, 32], strides = [1, 1, 1]} : vector<2x8x384xf32> to vector<2x8x32xf32>
    %189 = vector.extract_strided_slice %182 {offsets = [0, 0, 160], sizes = [2, 8, 32], strides = [1, 1, 1]} : vector<2x8x384xf32> to vector<2x8x32xf32>
    %190 = vector.extract_strided_slice %182 {offsets = [0, 0, 192], sizes = [2, 8, 32], strides = [1, 1, 1]} : vector<2x8x384xf32> to vector<2x8x32xf32>
    %191 = vector.extract_strided_slice %182 {offsets = [0, 0, 224], sizes = [2, 8, 32], strides = [1, 1, 1]} : vector<2x8x384xf32> to vector<2x8x32xf32>
    %192 = tpu.concatenate %188, %189, %190, %191 in 0 : vector<2x8x32xf32>, vector<2x8x32xf32>, vector<2x8x32xf32>, vector<2x8x32xf32> -> vector<8x8x32xf32>
    %193 = vector.extract_strided_slice %182 {offsets = [0, 0, 256], sizes = [2, 8, 32], strides = [1, 1, 1]} : vector<2x8x384xf32> to vector<2x8x32xf32>
    %194 = vector.extract_strided_slice %182 {offsets = [0, 0, 288], sizes = [2, 8, 32], strides = [1, 1, 1]} : vector<2x8x384xf32> to vector<2x8x32xf32>
    %195 = vector.extract_strided_slice %182 {offsets = [0, 0, 320], sizes = [2, 8, 32], strides = [1, 1, 1]} : vector<2x8x384xf32> to vector<2x8x32xf32>
    %196 = vector.extract_strided_slice %182 {offsets = [0, 0, 352], sizes = [2, 8, 32], strides = [1, 1, 1]} : vector<2x8x384xf32> to vector<2x8x32xf32>
    %197 = tpu.concatenate %193, %194, %195, %196 in 0 : vector<2x8x32xf32>, vector<2x8x32xf32>, vector<2x8x32xf32>, vector<2x8x32xf32> -> vector<8x8x32xf32>
    %198 = arith.truncf %187 : vector<8x8x32xf32> to vector<8x8x32xbf16>
    %199 = arith.truncf %192 : vector<8x8x32xf32> to vector<8x8x32xbf16>
    "tpu.trace_start"() <{level = 10 : i32, message = "gtd,gsd->gts"}> : () -> ()
    %cst_73 = arith.constant dense<0.000000e+00> : vector<8x8x8xf32>
    %200 = tpu.matmul %198, %199, %cst_73 {dimension_numbers = #tpu.dot_dimension_numbers<[2], [2], [1], [1], [0, 0, 0, 1, 1, 1], [0], [0]>} : vector<8x8x32xbf16>, vector<8x8x32xbf16>, vector<8x8x8xf32> -> vector<8x8x8xf32>
    "tpu.trace_stop"() : () -> ()
    %201 = vector.broadcast %3 : vector<1x8x8xf32> to vector<8x8x8xf32>
    %202 = arith.addf %200, %201 : vector<8x8x8xf32>
    %cst_74 = arith.constant dense<0xFF800000> : vector<8x8xf32>
    %203 = vector.multi_reduction <maximumf>, %202, %cst_74 [2] : vector<8x8x8xf32> to vector<8x8xf32>
    %204 = vector.shape_cast %203 : vector<8x8xf32> to vector<8x8x1xf32>
    %205 = vector.broadcast %204 : vector<8x8x1xf32> to vector<8x8x8xf32>
    %206 = arith.subf %202, %205 : vector<8x8x8xf32>
    %207 = math.exp %206 : vector<8x8x8xf32>
    %cst_75 = arith.constant dense<0.000000e+00> : vector<8x8xf32>
    %208 = vector.multi_reduction <add>, %207, %cst_75 [2] : vector<8x8x8xf32> to vector<8x8xf32>
    %209 = vector.shape_cast %208 : vector<8x8xf32> to vector<8x8x1xf32>
    %210 = arith.truncf %207 : vector<8x8x8xf32> to vector<8x8x8xbf16>
    %211 = arith.truncf %197 : vector<8x8x32xf32> to vector<8x8x32xbf16>
    "tpu.trace_start"() <{level = 10 : i32, message = "gts,gsd->gtd"}> : () -> ()
    %cst_76 = arith.constant dense<0.000000e+00> : vector<8x8x32xf32>
    %212 = tpu.matmul %210, %211, %cst_76 {dimension_numbers = #tpu.dot_dimension_numbers<[2], [1], [1], [2], [0, 0, 0, 1, 1, 2], [0], [0]>} : vector<8x8x8xbf16>, vector<8x8x32xbf16>, vector<8x8x32xf32> -> vector<8x8x32xf32>
    "tpu.trace_stop"() : () -> ()
    %213 = tpu.reciprocal %209 {approx = true} : vector<8x8x1xf32> -> vector<8x8x1xf32>
    %214 = vector.broadcast %213 : vector<8x8x1xf32> to vector<8x8x32xf32>
    %215 = arith.mulf %212, %214 : vector<8x8x32xf32>
    %216 = vector.extract_strided_slice %215 {offsets = [0, 0, 0], sizes = [2, 8, 32], strides = [1, 1, 1]} : vector<8x8x32xf32> to vector<2x8x32xf32>
    %217 = vector.shape_cast %216 : vector<2x8x32xf32> to vector<16x32xf32>
    %c0_77 = arith.constant 0 : index
    %c0_78 = arith.constant 0 : index
    %c0_79 = arith.constant 0 : index
    %218 = vector.load %arg19[%c0_77, %c0_78, %c0_79] : memref<4x32x128xbf16, #tpu.memory_space<vmem>>, vector<1x32x128xbf16>
    %219 = vector.shape_cast %218 : vector<1x32x128xbf16> to vector<32x128xbf16>
    %220 = arith.truncf %217 : vector<16x32xf32> to vector<16x32xbf16>
    %cst_80 = arith.constant dense<0.000000e+00> : vector<16x128xf32>
    %221 = tpu.matmul %220, %219, %cst_80 {dimension_numbers = #tpu.dot_dimension_numbers<[1], [0], [0], [1], [0, 0, 1, 1], [], []>} : vector<16x32xbf16>, vector<32x128xbf16>, vector<16x128xf32> -> vector<16x128xf32>
    %222 = vector.extract_strided_slice %215 {offsets = [2, 0, 0], sizes = [2, 8, 32], strides = [1, 1, 1]} : vector<8x8x32xf32> to vector<2x8x32xf32>
    %223 = vector.shape_cast %222 : vector<2x8x32xf32> to vector<16x32xf32>
    %c1_81 = arith.constant 1 : index
    %c0_82 = arith.constant 0 : index
    %c0_83 = arith.constant 0 : index
    %224 = vector.load %arg19[%c1_81, %c0_82, %c0_83] : memref<4x32x128xbf16, #tpu.memory_space<vmem>>, vector<1x32x128xbf16>
    %225 = vector.shape_cast %224 : vector<1x32x128xbf16> to vector<32x128xbf16>
    %226 = arith.truncf %223 : vector<16x32xf32> to vector<16x32xbf16>
    %cst_84 = arith.constant dense<0.000000e+00> : vector<16x128xf32>
    %227 = tpu.matmul %226, %225, %cst_84 {dimension_numbers = #tpu.dot_dimension_numbers<[1], [0], [0], [1], [0, 0, 1, 1], [], []>} : vector<16x32xbf16>, vector<32x128xbf16>, vector<16x128xf32> -> vector<16x128xf32>
    %228 = arith.addf %221, %227 : vector<16x128xf32>
    %229 = vector.extract_strided_slice %215 {offsets = [4, 0, 0], sizes = [2, 8, 32], strides = [1, 1, 1]} : vector<8x8x32xf32> to vector<2x8x32xf32>
    %230 = vector.shape_cast %229 : vector<2x8x32xf32> to vector<16x32xf32>
    %c2_85 = arith.constant 2 : index
    %c0_86 = arith.constant 0 : index
    %c0_87 = arith.constant 0 : index
    %231 = vector.load %arg19[%c2_85, %c0_86, %c0_87] : memref<4x32x128xbf16, #tpu.memory_space<vmem>>, vector<1x32x128xbf16>
    %232 = vector.shape_cast %231 : vector<1x32x128xbf16> to vector<32x128xbf16>
    %233 = arith.truncf %230 : vector<16x32xf32> to vector<16x32xbf16>
    %cst_88 = arith.constant dense<0.000000e+00> : vector<16x128xf32>
    %234 = tpu.matmul %233, %232, %cst_88 {dimension_numbers = #tpu.dot_dimension_numbers<[1], [0], [0], [1], [0, 0, 1, 1], [], []>} : vector<16x32xbf16>, vector<32x128xbf16>, vector<16x128xf32> -> vector<16x128xf32>
    %235 = arith.addf %228, %234 : vector<16x128xf32>
    %236 = vector.extract_strided_slice %215 {offsets = [6, 0, 0], sizes = [2, 8, 32], strides = [1, 1, 1]} : vector<8x8x32xf32> to vector<2x8x32xf32>
    %237 = vector.shape_cast %236 : vector<2x8x32xf32> to vector<16x32xf32>
    %c3_89 = arith.constant 3 : index
    %c0_90 = arith.constant 0 : index
    %c0_91 = arith.constant 0 : index
    %238 = vector.load %arg19[%c3_89, %c0_90, %c0_91] : memref<4x32x128xbf16, #tpu.memory_space<vmem>>, vector<1x32x128xbf16>
    %239 = vector.shape_cast %238 : vector<1x32x128xbf16> to vector<32x128xbf16>
    %240 = arith.truncf %237 : vector<16x32xf32> to vector<16x32xbf16>
    %cst_92 = arith.constant dense<0.000000e+00> : vector<16x128xf32>
    %241 = tpu.matmul %240, %239, %cst_92 {dimension_numbers = #tpu.dot_dimension_numbers<[1], [0], [0], [1], [0, 0, 1, 1], [], []>} : vector<16x32xbf16>, vector<32x128xbf16>, vector<16x128xf32> -> vector<16x128xf32>
    %242 = arith.addf %235, %241 : vector<16x128xf32>
    %243 = arith.addf %151, %242 : vector<16x128xf32>
    %c0_93 = arith.constant 0 : index
    %c0_94 = arith.constant 0 : index
    %244 = vector.load %arg20[%c0_93, %c0_94] : memref<1x128xf32, #tpu.memory_space<vmem>>, vector<1x128xf32>
    %245 = vector.broadcast %244 : vector<1x128xf32> to vector<16x128xf32>
    %246 = arith.addf %243, %245 : vector<16x128xf32>
    %c0_95 = arith.constant 0 : index
    %c0_96 = arith.constant 0 : index
    %247 = vector.load %arg21[%c0_95, %c0_96] : memref<1x128xf32, #tpu.memory_space<vmem>>, vector<1x128xf32>
    %c0_97 = arith.constant 0 : index
    %c0_98 = arith.constant 0 : index
    %248 = vector.load %arg22[%c0_97, %c0_98] : memref<1x128xf32, #tpu.memory_space<vmem>>, vector<1x128xf32>
    %cst_99 = arith.constant dense<0.000000e+00> : vector<16xf32>
    %249 = vector.multi_reduction <add>, %246, %cst_99 [1] : vector<16x128xf32> to vector<16xf32>
    %250 = vector.shape_cast %249 : vector<16xf32> to vector<16x1xf32>
    %cst_100 = arith.constant 1.280000e+02 : f32
    %251 = vector.broadcast %cst_100 : f32 to vector<16x1xf32>
    %252 = arith.divf %250, %251 : vector<16x1xf32>
    %253 = vector.broadcast %252 : vector<16x1xf32> to vector<16x128xf32>
    %254 = arith.subf %246, %253 : vector<16x128xf32>
    %255 = arith.mulf %254, %254 : vector<16x128xf32>
    %cst_101 = arith.constant dense<0.000000e+00> : vector<16xf32>
    %256 = vector.multi_reduction <add>, %255, %cst_101 [1] : vector<16x128xf32> to vector<16xf32>
    %257 = vector.shape_cast %256 : vector<16xf32> to vector<16x1xf32>
    %cst_102 = arith.constant 1.280000e+02 : f32
    %258 = vector.broadcast %cst_102 : f32 to vector<16x1xf32>
    %259 = arith.divf %257, %258 : vector<16x1xf32>
    %260 = vector.broadcast %252 : vector<16x1xf32> to vector<16x128xf32>
    %261 = arith.subf %246, %260 : vector<16x128xf32>
    %cst_103 = arith.constant 9.99999974E-6 : f32
    %262 = vector.broadcast %cst_103 : f32 to vector<16x1xf32>
    %263 = arith.addf %259, %262 : vector<16x1xf32>
    %264 = math.rsqrt %263 : vector<16x1xf32>
    %265 = vector.broadcast %264 : vector<16x1xf32> to vector<16x128xf32>
    %266 = arith.mulf %261, %265 : vector<16x128xf32>
    %267 = vector.broadcast %247 : vector<1x128xf32> to vector<16x128xf32>
    %268 = arith.mulf %266, %267 : vector<16x128xf32>
    %269 = vector.broadcast %248 : vector<1x128xf32> to vector<16x128xf32>
    %270 = arith.addf %268, %269 : vector<16x128xf32>
    %c0_104 = arith.constant 0 : index
    %c0_105 = arith.constant 0 : index
    %271 = vector.load %arg23[%c0_104, %c0_105] : memref<128x512xbf16, #tpu.memory_space<vmem>>, vector<128x512xbf16>
    %272 = arith.truncf %270 : vector<16x128xf32> to vector<16x128xbf16>
    %cst_106 = arith.constant dense<0.000000e+00> : vector<16x512xf32>
    %273 = tpu.matmul %272, %271, %cst_106 {dimension_numbers = #tpu.dot_dimension_numbers<[1], [0], [0], [1], [0, 0, 1, 1], [], []>} : vector<16x128xbf16>, vector<128x512xbf16>, vector<16x512xf32> -> vector<16x512xf32>
    %c0_107 = arith.constant 0 : index
    %c0_108 = arith.constant 0 : index
    %274 = vector.load %arg24[%c0_107, %c0_108] : memref<1x512xf32, #tpu.memory_space<vmem>>, vector<1x512xf32>
    %275 = vector.broadcast %274 : vector<1x512xf32> to vector<16x512xf32>
    %276 = arith.addf %273, %275 : vector<16x512xf32>
    %cst_109 = arith.constant 5.000000e-01 : f32
    %277 = vector.broadcast %cst_109 : f32 to vector<16x512xf32>
    %278 = arith.mulf %277, %276 : vector<16x512xf32>
    %279 = arith.mulf %276, %276 : vector<16x512xf32>
    %280 = arith.mulf %276, %279 : vector<16x512xf32>
    %cst_110 = arith.constant 4.471500e-02 : f32
    %281 = vector.broadcast %cst_110 : f32 to vector<16x512xf32>
    %282 = arith.mulf %281, %280 : vector<16x512xf32>
    %283 = arith.addf %276, %282 : vector<16x512xf32>
    %cst_111 = arith.constant 0.797884583 : f32
    %284 = vector.broadcast %cst_111 : f32 to vector<16x512xf32>
    %285 = arith.mulf %284, %283 : vector<16x512xf32>
    %286 = math.tanh %285 : vector<16x512xf32>
    %cst_112 = arith.constant 1.000000e+00 : f32
    %287 = vector.broadcast %cst_112 : f32 to vector<16x512xf32>
    %288 = arith.addf %287, %286 : vector<16x512xf32>
    %289 = arith.mulf %278, %288 : vector<16x512xf32>
    %c0_113 = arith.constant 0 : index
    %c0_114 = arith.constant 0 : index
    %290 = vector.load %arg25[%c0_113, %c0_114] : memref<512x128xbf16, #tpu.memory_space<vmem>>, vector<512x128xbf16>
    %291 = arith.truncf %289 : vector<16x512xf32> to vector<16x512xbf16>
    %cst_115 = arith.constant dense<0.000000e+00> : vector<16x128xf32>
    %292 = tpu.matmul %291, %290, %cst_115 {dimension_numbers = #tpu.dot_dimension_numbers<[1], [0], [0], [1], [0, 0, 1, 1], [], []>} : vector<16x512xbf16>, vector<512x128xbf16>, vector<16x128xf32> -> vector<16x128xf32>
    %293 = arith.addf %246, %292 : vector<16x128xf32>
    %c0_116 = arith.constant 0 : index
    %c0_117 = arith.constant 0 : index
    %294 = vector.load %arg26[%c0_116, %c0_117] : memref<1x128xf32, #tpu.memory_space<vmem>>, vector<1x128xf32>
    %295 = vector.broadcast %294 : vector<1x128xf32> to vector<16x128xf32>
    %296 = arith.addf %293, %295 : vector<16x128xf32>
    %297 = vector.shape_cast %296 : vector<16x128xf32> to vector<2x8x128xf32>
    %298 = arith.truncf %297 : vector<2x8x128xf32> to vector<2x8x128xbf16>
    %c0_118 = arith.constant 0 : index
    %c0_119 = arith.constant 0 : index
    %c0_120 = arith.constant 0 : index
    %299 = vector.load %arg27[%c0_118, %c0_119, %c0_120] : memref<2x8x128xbf16, #tpu.memory_space<vmem>>, vector<2x8x128xbf16>
    tpu.vector_store %arg27[%c0_118, %c0_119, %c0_120], %298 {strides = array<i32>} : memref<2x8x128xbf16, #tpu.memory_space<vmem>>, vector<2x8x128xbf16>,
    return
  }
  func.func @transform_0(%arg0: i32) -> (i32, i32, i32) {
    %c0_i32 = arith.constant 0 : i32
    %c0_i32_0 = arith.constant 0 : i32
    %c0_i32_1 = arith.constant 0 : i32
    return %arg0, %c0_i32, %c0_i32_0 : i32, i32, i32
  }
  func.func @transform_1(%arg0: i32) -> (i32, i32) {
    %c0_i32 = arith.constant 0 : i32
    %c0_i32_0 = arith.constant 0 : i32
    %c0_i32_1 = arith.constant 0 : i32
    return %c0_i32, %c0_i32_0 : i32, i32
  }
  func.func @transform_2(%arg0: i32) -> (i32, i32) {
    %c0_i32 = arith.constant 0 : i32
    %c0_i32_0 = arith.constant 0 : i32
    %c0_i32_1 = arith.constant 0 : i32
    return %c0_i32, %c0_i32_0 : i32, i32
  }
  func.func @transform_3(%arg0: i32) -> (i32, i32) {
    %c0_i32 = arith.constant 0 : i32
    %c0_i32_0 = arith.constant 0 : i32
    %c0_i32_1 = arith.constant 0 : i32
    return %c0_i32, %c0_i32_0 : i32, i32
  }
  func.func @transform_4(%arg0: i32) -> (i32, i32) {
    %c0_i32 = arith.constant 0 : i32
    %c0_i32_0 = arith.constant 0 : i32
    %c0_i32_1 = arith.constant 0 : i32
    return %c0_i32, %c0_i32_0 : i32, i32
  }
  func.func @transform_5(%arg0: i32) -> (i32, i32) {
    %c0_i32 = arith.constant 0 : i32
    %c0_i32_0 = arith.constant 0 : i32
    %c0_i32_1 = arith.constant 0 : i32
    return %c0_i32, %c0_i32_0 : i32, i32
  }
  func.func @transform_6(%arg0: i32) -> (i32, i32, i32) {
    %c0_i32 = arith.constant 0 : i32
    %c0_i32_0 = arith.constant 0 : i32
    %c0_i32_1 = arith.constant 0 : i32
    %c0_i32_2 = arith.constant 0 : i32
    return %c0_i32, %c0_i32_0, %c0_i32_1 : i32, i32, i32
  }
  func.func @transform_7(%arg0: i32) -> (i32, i32) {
    %c0_i32 = arith.constant 0 : i32
    %c0_i32_0 = arith.constant 0 : i32
    %c0_i32_1 = arith.constant 0 : i32
    return %c0_i32, %c0_i32_0 : i32, i32
  }
  func.func @transform_8(%arg0: i32) -> (i32, i32) {
    %c0_i32 = arith.constant 0 : i32
    %c0_i32_0 = arith.constant 0 : i32
    %c0_i32_1 = arith.constant 0 : i32
    return %c0_i32, %c0_i32_0 : i32, i32
  }
  func.func @transform_9(%arg0: i32) -> (i32, i32) {
    %c0_i32 = arith.constant 0 : i32
    %c0_i32_0 = arith.constant 0 : i32
    %c0_i32_1 = arith.constant 0 : i32
    return %c0_i32, %c0_i32_0 : i32, i32
  }
  func.func @transform_10(%arg0: i32) -> (i32, i32) {
    %c0_i32 = arith.constant 0 : i32
    %c0_i32_0 = arith.constant 0 : i32
    %c0_i32_1 = arith.constant 0 : i32
    return %c0_i32, %c0_i32_0 : i32, i32
  }
  func.func @transform_11(%arg0: i32) -> (i32, i32) {
    %c0_i32 = arith.constant 0 : i32
    %c0_i32_0 = arith.constant 0 : i32
    %c0_i32_1 = arith.constant 0 : i32
    return %c0_i32, %c0_i32_0 : i32, i32
  }
  func.func @transform_12(%arg0: i32) -> (i32, i32) {
    %c0_i32 = arith.constant 0 : i32
    %c0_i32_0 = arith.constant 0 : i32
    %c0_i32_1 = arith.constant 0 : i32
    return %c0_i32, %c0_i32_0 : i32, i32
  }
  func.func @transform_13(%arg0: i32) -> (i32, i32) {
    %c0_i32 = arith.constant 0 : i32
    %c0_i32_0 = arith.constant 0 : i32
    %c0_i32_1 = arith.constant 0 : i32
    return %c0_i32, %c0_i32_0 : i32, i32
  }
  func.func @transform_14(%arg0: i32) -> (i32, i32) {
    %c0_i32 = arith.constant 0 : i32
    %c0_i32_0 = arith.constant 0 : i32
    %c0_i32_1 = arith.constant 0 : i32
    return %c0_i32, %c0_i32_0 : i32, i32
  }
  func.func @transform_15(%arg0: i32) -> (i32, i32) {
    %c0_i32 = arith.constant 0 : i32
    %c0_i32_0 = arith.constant 0 : i32
    %c0_i32_1 = arith.constant 0 : i32
    return %c0_i32, %c0_i32_0 : i32, i32
  }
  func.func @transform_16(%arg0: i32) -> (i32, i32) {
    %c0_i32 = arith.constant 0 : i32
    %c0_i32_0 = arith.constant 0 : i32
    %c0_i32_1 = arith.constant 0 : i32
    return %c0_i32, %c0_i32_0 : i32, i32
  }
  func.func @transform_17(%arg0: i32) -> (i32, i32) {
    %c0_i32 = arith.constant 0 : i32
    %c0_i32_0 = arith.constant 0 : i32
    %c0_i32_1 = arith.constant 0 : i32
    return %c0_i32, %c0_i32_0 : i32, i32
  }
  func.func @transform_18(%arg0: i32) -> (i32, i32, i32) {
    %c0_i32 = arith.constant 0 : i32
    %c0_i32_0 = arith.constant 0 : i32
    %c0_i32_1 = arith.constant 0 : i32
    %c0_i32_2 = arith.constant 0 : i32
    return %c0_i32, %c0_i32_0, %c0_i32_1 : i32, i32, i32
  }
  func.func @transform_19(%arg0: i32) -> (i32, i32) {
    %c0_i32 = arith.constant 0 : i32
    %c0_i32_0 = arith.constant 0 : i32
    %c0_i32_1 = arith.constant 0 : i32
    return %c0_i32, %c0_i32_0 : i32, i32
  }
  func.func @transform_20(%arg0: i32) -> (i32, i32) {
    %c0_i32 = arith.constant 0 : i32
    %c0_i32_0 = arith.constant 0 : i32
    %c0_i32_1 = arith.constant 0 : i32
    return %c0_i32, %c0_i32_0 : i32, i32
  }
  func.func @transform_21(%arg0: i32) -> (i32, i32) {
    %c0_i32 = arith.constant 0 : i32
    %c0_i32_0 = arith.constant 0 : i32
    %c0_i32_1 = arith.constant 0 : i32
    return %c0_i32, %c0_i32_0 : i32, i32
  }
  func.func @transform_22(%arg0: i32) -> (i32, i32) {
    %c0_i32 = arith.constant 0 : i32
    %c0_i32_0 = arith.constant 0 : i32
    %c0_i32_1 = arith.constant 0 : i32
    return %c0_i32, %c0_i32_0 : i32, i32
  }
  func.func @transform_23(%arg0: i32) -> (i32, i32) {
    %c0_i32 = arith.constant 0 : i32
    %c0_i32_0 = arith.constant 0 : i32
    %c0_i32_1 = arith.constant 0 : i32
    return %c0_i32, %c0_i32_0 : i32, i32
  }
  func.func @transform_24(%arg0: i32) -> (i32, i32) {
    %c0_i32 = arith.constant 0 : i32
    %c0_i32_0 = arith.constant 0 : i32
    %c0_i32_1 = arith.constant 0 : i32
    return %c0_i32, %c0_i32_0 : i32, i32
  }
  func.func @transform_25(%arg0: i32) -> (i32, i32) {
    %c0_i32 = arith.constant 0 : i32
    %c0_i32_0 = arith.constant 0 : i32
    %c0_i32_1 = arith.constant 0 : i32
    return %c0_i32, %c0_i32_0 : i32, i32
  }
  func.func @transform_26(%arg0: i32) -> (i32, i32, i32) {
    %c0_i32 = arith.constant 0 : i32
    %c0_i32_0 = arith.constant 0 : i32
    %c0_i32_1 = arith.constant 0 : i32
    return %arg0, %c0_i32, %c0_i32_0 : i32, i32, i32
  }
}

module attributes {stable_mosaic.version = 11 : i64} {
  func.func @_head_kernel(%arg0: i32, %arg1: memref<4x8x128xbf16, #tpu.memory_space<vmem>>, %arg2: memref<1x128xf32, #tpu.memory_space<vmem>>, %arg3: memref<1x128xf32, #tpu.memory_space<vmem>>, %arg4: memref<8x128x128xbf16, #tpu.memory_space<vmem>>, %arg5: memref<1x128xf32, #tpu.memory_space<vmem>>, %arg6: memref<4x8x128xf32, #tpu.memory_space<vmem>>, %arg7: memref<4x128xf32, #tpu.memory_space<vmem>>) attributes {dimension_semantics = [#tpu.dimension_semantics<arbitrary>], iteration_bounds = array<i64: 1>, scalar_prefetch = 0 : i64, scratch_operands = 0 : i64, tpu.core_type = #tpu.core_type<tc>, window_params = [{transform_indices = @transform_0, window_bounds = array<i64: 4, 8, 128>}, {pipeline_mode = #tpu.pipeline_mode<synchronous>, transform_indices = @transform_1, window_bounds = array<i64: 1, 128>}, {pipeline_mode = #tpu.pipeline_mode<synchronous>, transform_indices = @transform_2, window_bounds = array<i64: 1, 128>}, {transform_indices = @transform_3, window_bounds = array<i64: 8, 128, 128>}, {pipeline_mode = #tpu.pipeline_mode<synchronous>, transform_indices = @transform_4, window_bounds = array<i64: 1, 128>}, {transform_indices = @transform_5, window_bounds = array<i64: 4, 8, 128>}, {pipeline_mode = #tpu.pipeline_mode<synchronous>, transform_indices = @transform_6, window_bounds = array<i64: 4, 128>}]} {
    %c0 = arith.constant 0 : index
    %c0_0 = arith.constant 0 : index
    %c0_1 = arith.constant 0 : index
    %0 = vector.load %arg1[%c0, %c0_0, %c0_1] : memref<4x8x128xbf16, #tpu.memory_space<vmem>>, vector<4x8x128xbf16>
    %1 = arith.extf %0 : vector<4x8x128xbf16> to vector<4x8x128xf32>
    %c0_2 = arith.constant 0 : index
    %c0_3 = arith.constant 0 : index
    %2 = vector.load %arg2[%c0_2, %c0_3] : memref<1x128xf32, #tpu.memory_space<vmem>>, vector<1x128xf32>
    %c0_4 = arith.constant 0 : index
    %c0_5 = arith.constant 0 : index
    %3 = vector.load %arg3[%c0_4, %c0_5] : memref<1x128xf32, #tpu.memory_space<vmem>>, vector<1x128xf32>
    %cst = arith.constant dense<0.000000e+00> : vector<4x8xf32>
    %4 = vector.multi_reduction <add>, %1, %cst [2] : vector<4x8x128xf32> to vector<4x8xf32>
    %5 = vector.shape_cast %4 : vector<4x8xf32> to vector<4x8x1xf32>
    %cst_6 = arith.constant 1.280000e+02 : f32
    %6 = vector.broadcast %cst_6 : f32 to vector<4x8x1xf32>
    %7 = arith.divf %5, %6 : vector<4x8x1xf32>
    %8 = vector.broadcast %7 : vector<4x8x1xf32> to vector<4x8x128xf32>
    %9 = arith.subf %1, %8 : vector<4x8x128xf32>
    %10 = arith.mulf %9, %9 : vector<4x8x128xf32>
    %cst_7 = arith.constant dense<0.000000e+00> : vector<4x8xf32>
    %11 = vector.multi_reduction <add>, %10, %cst_7 [2] : vector<4x8x128xf32> to vector<4x8xf32>
    %12 = vector.shape_cast %11 : vector<4x8xf32> to vector<4x8x1xf32>
    %cst_8 = arith.constant 1.280000e+02 : f32
    %13 = vector.broadcast %cst_8 : f32 to vector<4x8x1xf32>
    %14 = arith.divf %12, %13 : vector<4x8x1xf32>
    %15 = vector.broadcast %7 : vector<4x8x1xf32> to vector<4x8x128xf32>
    %16 = arith.subf %1, %15 : vector<4x8x128xf32>
    %cst_9 = arith.constant 9.99999974E-6 : f32
    %17 = vector.broadcast %cst_9 : f32 to vector<4x8x1xf32>
    %18 = arith.addf %14, %17 : vector<4x8x1xf32>
    %19 = math.rsqrt %18 : vector<4x8x1xf32>
    %20 = vector.broadcast %19 : vector<4x8x1xf32> to vector<4x8x128xf32>
    %21 = arith.mulf %16, %20 : vector<4x8x128xf32>
    %22 = vector.shape_cast %2 : vector<1x128xf32> to vector<1x1x128xf32>
    %23 = vector.broadcast %22 : vector<1x1x128xf32> to vector<4x8x128xf32>
    %24 = arith.mulf %21, %23 : vector<4x8x128xf32>
    %25 = vector.shape_cast %3 : vector<1x128xf32> to vector<1x1x128xf32>
    %26 = vector.broadcast %25 : vector<1x1x128xf32> to vector<4x8x128xf32>
    %27 = arith.addf %24, %26 : vector<4x8x128xf32>
    %c0_10 = arith.constant 0 : index
    %c0_11 = arith.constant 0 : index
    %c0_12 = arith.constant 0 : index
    %28 = vector.load %arg6[%c0_10, %c0_11, %c0_12] : memref<4x8x128xf32, #tpu.memory_space<vmem>>, vector<4x8x128xf32>
    tpu.vector_store %arg6[%c0_10, %c0_11, %c0_12], %27 {strides = array<i32>} : memref<4x8x128xf32, #tpu.memory_space<vmem>>, vector<4x8x128xf32>,
    %c0_i32 = arith.constant 0 : i32
    %29 = arith.cmpi eq, %arg0, %c0_i32 : i32
    %30 = arith.extui %29 : i1 to i32
    %c0_i32_13 = arith.constant 0 : i32
    %31 = arith.cmpi ne, %30, %c0_i32_13 : i32
    scf.if %31 {
      %c0_44 = arith.constant 0 : index
      %c0_45 = arith.constant 0 : index
      %92 = vector.load %arg5[%c0_44, %c0_45] : memref<1x128xf32, #tpu.memory_space<vmem>>, vector<1x128xf32>
      %93 = vector.shape_cast %92 : vector<1x128xf32> to vector<1x128xf32>
      %94 = vector.broadcast %93 : vector<1x128xf32> to vector<4x128xf32>
      %c0_46 = arith.constant 0 : index
      %c0_47 = arith.constant 0 : index
      %95 = vector.load %arg7[%c0_46, %c0_47] : memref<4x128xf32, #tpu.memory_space<vmem>>, vector<4x128xf32>
      tpu.vector_store %arg7[%c0_46, %c0_47], %94 {strides = array<i32>} : memref<4x128xf32, #tpu.memory_space<vmem>>, vector<4x128xf32>,
    } else {
    }
    %cst_14 = arith.constant 0.000000e+00 : f32
    %32 = vector.broadcast %cst_14 : f32 to vector<4x128xf32>
    %33 = vector.extract_strided_slice %27 {offsets = [0, 0, 0], sizes = [4, 1, 128], strides = [1, 1, 1]} : vector<4x8x128xf32> to vector<4x1x128xf32>
    %34 = vector.shape_cast %33 : vector<4x1x128xf32> to vector<4x128xf32>
    %c0_15 = arith.constant 0 : index
    %c0_16 = arith.constant 0 : index
    %c0_17 = arith.constant 0 : index
    %35 = vector.load %arg4[%c0_15, %c0_16, %c0_17] : memref<8x128x128xbf16, #tpu.memory_space<vmem>>, vector<1x128x128xbf16>
    %36 = vector.shape_cast %35 : vector<1x128x128xbf16> to vector<128x128xbf16>
    %37 = arith.truncf %34 : vector<4x128xf32> to vector<4x128xbf16>
    %cst_18 = arith.constant dense<0.000000e+00> : vector<4x128xf32>
    %38 = tpu.matmul %37, %36, %cst_18 {dimension_numbers = #tpu.dot_dimension_numbers<[1], [0], [0], [1], [0, 0, 1, 1], [], []>} : vector<4x128xbf16>, vector<128x128xbf16>, vector<4x128xf32> -> vector<4x128xf32>
    %39 = arith.addf %32, %38 : vector<4x128xf32>
    %40 = vector.extract_strided_slice %27 {offsets = [0, 1, 0], sizes = [4, 1, 128], strides = [1, 1, 1]} : vector<4x8x128xf32> to vector<4x1x128xf32>
    %41 = vector.shape_cast %40 : vector<4x1x128xf32> to vector<4x128xf32>
    %c1 = arith.constant 1 : index
    %c0_19 = arith.constant 0 : index
    %c0_20 = arith.constant 0 : index
    %42 = vector.load %arg4[%c1, %c0_19, %c0_20] : memref<8x128x128xbf16, #tpu.memory_space<vmem>>, vector<1x128x128xbf16>
    %43 = vector.shape_cast %42 : vector<1x128x128xbf16> to vector<128x128xbf16>
    %44 = arith.truncf %41 : vector<4x128xf32> to vector<4x128xbf16>
    %cst_21 = arith.constant dense<0.000000e+00> : vector<4x128xf32>
    %45 = tpu.matmul %44, %43, %cst_21 {dimension_numbers = #tpu.dot_dimension_numbers<[1], [0], [0], [1], [0, 0, 1, 1], [], []>} : vector<4x128xbf16>, vector<128x128xbf16>, vector<4x128xf32> -> vector<4x128xf32>
    %46 = arith.addf %39, %45 : vector<4x128xf32>
    %47 = vector.extract_strided_slice %27 {offsets = [0, 2, 0], sizes = [4, 1, 128], strides = [1, 1, 1]} : vector<4x8x128xf32> to vector<4x1x128xf32>
    %48 = vector.shape_cast %47 : vector<4x1x128xf32> to vector<4x128xf32>
    %c2 = arith.constant 2 : index
    %c0_22 = arith.constant 0 : index
    %c0_23 = arith.constant 0 : index
    %49 = vector.load %arg4[%c2, %c0_22, %c0_23] : memref<8x128x128xbf16, #tpu.memory_space<vmem>>, vector<1x128x128xbf16>
    %50 = vector.shape_cast %49 : vector<1x128x128xbf16> to vector<128x128xbf16>
    %51 = arith.truncf %48 : vector<4x128xf32> to vector<4x128xbf16>
    %cst_24 = arith.constant dense<0.000000e+00> : vector<4x128xf32>
    %52 = tpu.matmul %51, %50, %cst_24 {dimension_numbers = #tpu.dot_dimension_numbers<[1], [0], [0], [1], [0, 0, 1, 1], [], []>} : vector<4x128xbf16>, vector<128x128xbf16>, vector<4x128xf32> -> vector<4x128xf32>
    %53 = arith.addf %46, %52 : vector<4x128xf32>
    %54 = vector.extract_strided_slice %27 {offsets = [0, 3, 0], sizes = [4, 1, 128], strides = [1, 1, 1]} : vector<4x8x128xf32> to vector<4x1x128xf32>
    %55 = vector.shape_cast %54 : vector<4x1x128xf32> to vector<4x128xf32>
    %c3 = arith.constant 3 : index
    %c0_25 = arith.constant 0 : index
    %c0_26 = arith.constant 0 : index
    %56 = vector.load %arg4[%c3, %c0_25, %c0_26] : memref<8x128x128xbf16, #tpu.memory_space<vmem>>, vector<1x128x128xbf16>
    %57 = vector.shape_cast %56 : vector<1x128x128xbf16> to vector<128x128xbf16>
    %58 = arith.truncf %55 : vector<4x128xf32> to vector<4x128xbf16>
    %cst_27 = arith.constant dense<0.000000e+00> : vector<4x128xf32>
    %59 = tpu.matmul %58, %57, %cst_27 {dimension_numbers = #tpu.dot_dimension_numbers<[1], [0], [0], [1], [0, 0, 1, 1], [], []>} : vector<4x128xbf16>, vector<128x128xbf16>, vector<4x128xf32> -> vector<4x128xf32>
    %60 = arith.addf %53, %59 : vector<4x128xf32>
    %61 = vector.extract_strided_slice %27 {offsets = [0, 4, 0], sizes = [4, 1, 128], strides = [1, 1, 1]} : vector<4x8x128xf32> to vector<4x1x128xf32>
    %62 = vector.shape_cast %61 : vector<4x1x128xf32> to vector<4x128xf32>
    %c4 = arith.constant 4 : index
    %c0_28 = arith.constant 0 : index
    %c0_29 = arith.constant 0 : index
    %63 = vector.load %arg4[%c4, %c0_28, %c0_29] : memref<8x128x128xbf16, #tpu.memory_space<vmem>>, vector<1x128x128xbf16>
    %64 = vector.shape_cast %63 : vector<1x128x128xbf16> to vector<128x128xbf16>
    %65 = arith.truncf %62 : vector<4x128xf32> to vector<4x128xbf16>
    %cst_30 = arith.constant dense<0.000000e+00> : vector<4x128xf32>
    %66 = tpu.matmul %65, %64, %cst_30 {dimension_numbers = #tpu.dot_dimension_numbers<[1], [0], [0], [1], [0, 0, 1, 1], [], []>} : vector<4x128xbf16>, vector<128x128xbf16>, vector<4x128xf32> -> vector<4x128xf32>
    %67 = arith.addf %60, %66 : vector<4x128xf32>
    %68 = vector.extract_strided_slice %27 {offsets = [0, 5, 0], sizes = [4, 1, 128], strides = [1, 1, 1]} : vector<4x8x128xf32> to vector<4x1x128xf32>
    %69 = vector.shape_cast %68 : vector<4x1x128xf32> to vector<4x128xf32>
    %c5 = arith.constant 5 : index
    %c0_31 = arith.constant 0 : index
    %c0_32 = arith.constant 0 : index
    %70 = vector.load %arg4[%c5, %c0_31, %c0_32] : memref<8x128x128xbf16, #tpu.memory_space<vmem>>, vector<1x128x128xbf16>
    %71 = vector.shape_cast %70 : vector<1x128x128xbf16> to vector<128x128xbf16>
    %72 = arith.truncf %69 : vector<4x128xf32> to vector<4x128xbf16>
    %cst_33 = arith.constant dense<0.000000e+00> : vector<4x128xf32>
    %73 = tpu.matmul %72, %71, %cst_33 {dimension_numbers = #tpu.dot_dimension_numbers<[1], [0], [0], [1], [0, 0, 1, 1], [], []>} : vector<4x128xbf16>, vector<128x128xbf16>, vector<4x128xf32> -> vector<4x128xf32>
    %74 = arith.addf %67, %73 : vector<4x128xf32>
    %75 = vector.extract_strided_slice %27 {offsets = [0, 6, 0], sizes = [4, 1, 128], strides = [1, 1, 1]} : vector<4x8x128xf32> to vector<4x1x128xf32>
    %76 = vector.shape_cast %75 : vector<4x1x128xf32> to vector<4x128xf32>
    %c6 = arith.constant 6 : index
    %c0_34 = arith.constant 0 : index
    %c0_35 = arith.constant 0 : index
    %77 = vector.load %arg4[%c6, %c0_34, %c0_35] : memref<8x128x128xbf16, #tpu.memory_space<vmem>>, vector<1x128x128xbf16>
    %78 = vector.shape_cast %77 : vector<1x128x128xbf16> to vector<128x128xbf16>
    %79 = arith.truncf %76 : vector<4x128xf32> to vector<4x128xbf16>
    %cst_36 = arith.constant dense<0.000000e+00> : vector<4x128xf32>
    %80 = tpu.matmul %79, %78, %cst_36 {dimension_numbers = #tpu.dot_dimension_numbers<[1], [0], [0], [1], [0, 0, 1, 1], [], []>} : vector<4x128xbf16>, vector<128x128xbf16>, vector<4x128xf32> -> vector<4x128xf32>
    %81 = arith.addf %74, %80 : vector<4x128xf32>
    %82 = vector.extract_strided_slice %27 {offsets = [0, 7, 0], sizes = [4, 1, 128], strides = [1, 1, 1]} : vector<4x8x128xf32> to vector<4x1x128xf32>
    %83 = vector.shape_cast %82 : vector<4x1x128xf32> to vector<4x128xf32>
    %c7 = arith.constant 7 : index
    %c0_37 = arith.constant 0 : index
    %c0_38 = arith.constant 0 : index
    %84 = vector.load %arg4[%c7, %c0_37, %c0_38] : memref<8x128x128xbf16, #tpu.memory_space<vmem>>, vector<1x128x128xbf16>
    %85 = vector.shape_cast %84 : vector<1x128x128xbf16> to vector<128x128xbf16>
    %86 = arith.truncf %83 : vector<4x128xf32> to vector<4x128xbf16>
    %cst_39 = arith.constant dense<0.000000e+00> : vector<4x128xf32>
    %87 = tpu.matmul %86, %85, %cst_39 {dimension_numbers = #tpu.dot_dimension_numbers<[1], [0], [0], [1], [0, 0, 1, 1], [], []>} : vector<4x128xbf16>, vector<128x128xbf16>, vector<4x128xf32> -> vector<4x128xf32>
    %88 = arith.addf %81, %87 : vector<4x128xf32>
    %c0_40 = arith.constant 0 : index
    %c0_41 = arith.constant 0 : index
    %89 = vector.load %arg7[%c0_40, %c0_41] : memref<4x128xf32, #tpu.memory_space<vmem>>, vector<4x128xf32>
    %90 = arith.addf %89, %88 : vector<4x128xf32>
    %c0_42 = arith.constant 0 : index
    %c0_43 = arith.constant 0 : index
    %91 = vector.load %arg7[%c0_42, %c0_43] : memref<4x128xf32, #tpu.memory_space<vmem>>, vector<4x128xf32>
    tpu.vector_store %arg7[%c0_42, %c0_43], %90 {strides = array<i32>} : memref<4x128xf32, #tpu.memory_space<vmem>>, vector<4x128xf32>,
    return
  }
  func.func @transform_0(%arg0: i32) -> (i32, i32, i32) {
    %c0_i32 = arith.constant 0 : i32
    %c0_i32_0 = arith.constant 0 : i32
    %c0_i32_1 = arith.constant 0 : i32
    return %c0_i32, %arg0, %c0_i32_0 : i32, i32, i32
  }
  func.func @transform_1(%arg0: i32) -> (i32, i32) {
    %c0_i32 = arith.constant 0 : i32
    %c0_i32_0 = arith.constant 0 : i32
    %c0_i32_1 = arith.constant 0 : i32
    return %c0_i32, %c0_i32_0 : i32, i32
  }
  func.func @transform_2(%arg0: i32) -> (i32, i32) {
    %c0_i32 = arith.constant 0 : i32
    %c0_i32_0 = arith.constant 0 : i32
    %c0_i32_1 = arith.constant 0 : i32
    return %c0_i32, %c0_i32_0 : i32, i32
  }
  func.func @transform_3(%arg0: i32) -> (i32, i32, i32) {
    %c0_i32 = arith.constant 0 : i32
    %c0_i32_0 = arith.constant 0 : i32
    %c0_i32_1 = arith.constant 0 : i32
    return %arg0, %c0_i32, %c0_i32_0 : i32, i32, i32
  }
  func.func @transform_4(%arg0: i32) -> (i32, i32) {
    %c0_i32 = arith.constant 0 : i32
    %c0_i32_0 = arith.constant 0 : i32
    %c0_i32_1 = arith.constant 0 : i32
    return %c0_i32, %c0_i32_0 : i32, i32
  }
  func.func @transform_5(%arg0: i32) -> (i32, i32, i32) {
    %c0_i32 = arith.constant 0 : i32
    %c0_i32_0 = arith.constant 0 : i32
    %c0_i32_1 = arith.constant 0 : i32
    return %c0_i32, %arg0, %c0_i32_0 : i32, i32, i32
  }
  func.func @transform_6(%arg0: i32) -> (i32, i32) {
    %c0_i32 = arith.constant 0 : i32
    %c0_i32_0 = arith.constant 0 : i32
    %c0_i32_1 = arith.constant 0 : i32
    return %c0_i32, %c0_i32_0 : i32, i32
  }
}

</mosaic_0001>

<bundles_post_ra>
// kernel: transformer_forward.5
= control target key start
LH: loop header
LB: loop body
LE: loop exit
PB: predicated region body
PF: predicated region fallthrough
CT: control target
= control target key end

     0   :  { %s1732_s0 = inlined_call_operand.vmem [shape: bf16[4,8,128], index: 0, kind: input, shape index: {}]   ;;  %s1733_s1 = inlined_call_operand.vmem [shape: f32[1,128], index: 1, kind: input, shape index: {}]   ;;  %s1734_s2 = inlined_call_operand.vmem [shape: f32[1,128], index: 2, kind: input, shape index: {}]   ;;  %s1735_s3 = inlined_call_operand.vmem [shape: bf16[8,128,128], index: 3, kind: input, shape index: {}]   ;;  %s1736_s4 = inlined_call_operand.vmem [shape: f32[1,128], index: 4, kind: input, shape index: {}]   ;;  %s1737_s5 = inlined_call_operand.hbm [shape: f32[4,8,128], index: 5, kind: output, shape index: {0}]   ;;  %s1738_s6 = inlined_call_operand.vmem [shape: f32[4,128], index: 6, kind: output, shape index: {1}]  }
   0x1   :  { %v1324_v0 = vld [vmem:[%s1732_s0 + $0x8] sm:$0xff]   ;;  %v1317_v1 = vld [vmem:[%s1732_s0] sm:$0xff]  }
   0x2   :  { %v1322_v2 = vunpack.c.l.bf16 %v1324_v0  ;;  %v1318_v3 = vunpack.c.l.bf16 %v1317_v1 }
   0x3   :  { %12 = vsyncpa [#allocation3], 0  ;;  %v1323_v4 = vunpack.c.h.bf16 %v1324_v0  ;;  %v1319_v5 = vunpack.c.h.bf16 %v1317_v1  ;;  %v1368_v6 = vmov 128.0   ;;  %v1267_v29 = vld [vmem:[%s1735_s3 + $0x78] sm:$0xff]  ;;  %v1266_v33 = vld [vmem:[%s1735_s3 + $0x70] sm:$0xff]  ;;  %vm193_vm13 = vcmask 1041409  }
   0x4   :  { %37 = vadd.xlane.f32.xlu1 %v1322_v2  ;;  %33 = vadd.xlane.f32.xlu0 %v1318_v3  ;;  %1332 = vrcp.f32 %v1368_v6  ;;  %v1259_v30 = vld [vmem:[%s1735_s3 + $0x38] sm:$0xff]  ;;  %v1258_v34 = vld [vmem:[%s1735_s3 + $0x30] sm:$0xff]  ;;  %v1265_v37 = vld [vmem:[%s1735_s3 + $0x68] sm:$0xff]  ;;  %vm196_vm14 = vcmask 1042434   ;;  %vm199_vm15 = vcmask 1043459   ;;  %s868_s30 = sshll.u32 %s1737_s5, 4  ;;  %s869_s30 = int_to_ptr.hbm [resolvable:$true] %s868_s30 }
   0x5   :  { %251 = vmatpush.bf16.msra.mxu0 %v1267_v29  ;;  %v1275_v31 = vld [vmem:[%s1735_s3 + $0xb8] sm:$0xff]  ;;  %320 = vmatpush.bf16.msra.mxu1 %v1259_v30  ;;  %v1274_v35 = vld [vmem:[%s1735_s3 + $0xb0] sm:$0xff]  ;;  %v1257_v38 = vld [vmem:[%s1735_s3 + $0x28] sm:$0xff]  ;;  %s1369_s7 = smov [#allocation2]   ;;  %s1370_s9 = smov 128  }
   0x6   :  { %v1283_v32 = vld [vmem:[%s1735_s3 + $0xf8] sm:$0xff]  ;;  %406 = vmatpush.bf16.msra.mxu2 %v1275_v31  ;;  %v1282_v36 = vld [vmem:[%s1735_s3 + $0xf0] sm:$0xff]  ;;  %v1273_v39 = vld [vmem:[%s1735_s3 + $0xa8] sm:$0xff]  ;;  %s866_s8 = sshll.u32 %s1369_s7, 4  ;;  %s1371_s10 = smov 8   ;;  %s867_s8 = int_to_ptr.vmem [resolvable:$true] %s866_s8 }
   0x7   :  { %493 = vmatpush.bf16.msra.mxu3 %v1283_v32  ;;  %v1281_v40 = vld [vmem:[%s1735_s3 + $0xe8] sm:$0xff]  ;;  %v1264_v41 = vld [vmem:[%s1735_s3 + $0x60] sm:$0xff]  ;;  %v1263_v45 = vld [vmem:[%s1735_s3 + $0x58] sm:$0xff] }
   0x8   :  { %v1256_v42 = vld [vmem:[%s1735_s3 + $0x20] sm:$0xff]  ;;  %v1255_v46 = vld [vmem:[%s1735_s3 + $0x18] sm:$0xff]  ;;  %v1262_v49 = vld [vmem:[%s1735_s3 + $0x50] sm:$0xff] }
   0x9   :  { %252 = vmatpush.bf16.msra.mxu0 %v1266_v33  ;;  %321 = vmatpush.bf16.msra.mxu1 %v1258_v34  ;;  %v1272_v43 = vld [vmem:[%s1735_s3 + $0xa0] sm:$0xff]  ;;  %v1271_v47 = vld [vmem:[%s1735_s3 + $0x98] sm:$0xff]  ;;  %v1254_v50 = vld [vmem:[%s1735_s3 + $0x10] sm:$0xff] }
   0xa   :  { %v1333_v7 = vpop.eup %1332  ;;  %407 = vmatpush.bf16.msra.mxu2 %v1274_v35  ;;  %v1280_v44 = vld [vmem:[%s1735_s3 + $0xe0] sm:$0xff]  ;;  %v1279_v48 = vld [vmem:[%s1735_s3 + $0xd8] sm:$0xff]  ;;  %v1270_v51 = vld [vmem:[%s1735_s3 + $0x90] sm:$0xff] }
   0xb   :  { %v42_v8 = vmul.f32 128.0, %v1333_v7  ;;  %vm46_vm0 = vweird.f32 %v1333_v7  ;;  %494 = vmatpush.bf16.msra.mxu3 %v1282_v36  ;;  %v1278_v52 = vld [vmem:[%s1735_s3 + $0xd0] sm:$0xff]  ;;  %v1261_v53 = vld [vmem:[%s1735_s3 + $0x48] sm:$0xff]  ;;  %v1260_v57 = vld [vmem:[%s1735_s3 + $0x40] sm:$0xff] }
   0xc   :  { %39 = vadd.xlane.f32.xlu1 %v1323_v4  ;;  %35 = vadd.xlane.f32.xlu0 %v1319_v5  ;;  %v1253_v54 = vld [vmem:[%s1735_s3 + $0x8] sm:$0xff]  ;;  %v1291_v58 = vld [vmem:[%s1735_s3 + $0x138] sm:$0xff]  ;;  %v1252_v59 = vld [vmem:[%s1735_s3] sm:$0xff] }
   0xd   :  { %v43_v9 = vsub.f32 1.0, %v42_v8  ;;  %253 = vmatpush.bf16.msra.mxu0 %v1265_v37  ;;  %322 = vmatpush.bf16.msra.mxu1 %v1257_v38  ;;  %v1269_v55 = vld [vmem:[%s1735_s3 + $0x88] sm:$0xff]  ;;  %v1268_v60 = vld [vmem:[%s1735_s3 + $0x80] sm:$0xff]  ;;  %v1299_v0 = vld [vmem:[%s1735_s3 + $0x178] sm:$0xff] }
   0xe   :  { %408 = vmatpush.bf16.msra.mxu2 %v1273_v39  ;;  %v1277_v56 = vld [vmem:[%s1735_s3 + $0xc8] sm:$0xff]  ;;  %v1276_v61 = vld [vmem:[%s1735_s3 + $0xc0] sm:$0xff]  ;;  %v1307_v1 = vld [vmem:[%s1735_s3 + $0x1b8] sm:$0xff] }
   0xf   :  { %v44_v10 = vmul.f32 %v1333_v7, %v43_v9  ;;  %495 = vmatpush.bf16.msra.mxu3 %v1281_v40  ;;  %v1298_v8 = vld [vmem:[%s1735_s3 + $0x170] sm:$0xff]  ;;  %v1312_v29 = vld [vmem:[%s1735_s3 + $0x1e0] sm:$0xff]  ;;  %v1287_v34 = vld [vmem:[%s1735_s3 + $0x118] sm:$0xff] }
  0x10   :  { %v1306_v9 = vld [vmem:[%s1735_s3 + $0x1b0] sm:$0xff]  ;;  %v1295_v38 = vld [vmem:[%s1735_s3 + $0x158] sm:$0xff] }
  0x11   :  { %v45_v11 = vadd.f32 %v1333_v7, %v44_v10  ;;  %254 = vmatpush.bf16.msra.mxu0 %v1264_v41  ;;  %323 = vmatpush.bf16.msra.mxu1 %v1256_v42  ;;  %v1314_v10 = vld [vmem:[%s1735_s3 + $0x1f0] sm:$0xff]  ;;  %v1303_v39 = vld [vmem:[%s1735_s3 + $0x198] sm:$0xff] }
  0x12   :  { %409 = vmatpush.bf16.msra.mxu2 %v1272_v43  ;;  %v1311_v40 = vld [vmem:[%s1735_s3 + $0x1d8] sm:$0xff]  ;;  %v1286_v42 = vld [vmem:[%s1735_s3 + $0x110] sm:$0xff] }
  0x13   :  { %v1413_v12 = vsel %vm46_vm0, %v1333_v7, %v45_v11  ;;  %496 = vmatpush.bf16.msra.mxu3 %v1280_v44  ;;  %v1289_v11 = vld [vmem:[%s1735_s3 + $0x128] sm:$0xff] }
  0x15   :  { %255 = vmatpush.bf16.msra.mxu0 %v1263_v45  ;;  %324 = vmatpush.bf16.msra.mxu1 %v1255_v46  ;;  %v1294_v45 = vld [vmem:[%s1735_s3 + $0x150] sm:$0xff] }
  0x16   :  { %410 = vmatpush.bf16.msra.mxu2 %v1271_v47  ;;  %v1302_v46 = vld [vmem:[%s1735_s3 + $0x190] sm:$0xff] }
  0x17   :  { %497 = vmatpush.bf16.msra.mxu3 %v1279_v48 }
  0x19   :  { %256 = vmatpush.bf16.msra.mxu0 %v1262_v49  ;;  %325 = vmatpush.bf16.msra.mxu1 %v1254_v50  ;;  %v1310_v50 = vld [vmem:[%s1735_s3 + $0x1d0] sm:$0xff] }
  0x1a   :  { %411 = vmatpush.bf16.msra.mxu2 %v1270_v51  ;;  %v1285_v51 = vld [vmem:[%s1735_s3 + $0x108] sm:$0xff] }
  0x1b   :  { %498 = vmatpush.bf16.msra.mxu3 %v1278_v52  ;;  %v1329_v52 = vld [vmem:[%s1733_s1] ss:$0 sm:$0xff] }
  0x1d   :  { %257 = vmatpush.bf16.msra.mxu0 %v1261_v53  ;;  %326 = vmatpush.bf16.msra.mxu1 %v1253_v54 }
  0x1e   :  { %412 = vmatpush.bf16.msra.mxu2 %v1269_v55 }
  0x1f   :  { %499 = vmatpush.bf16.msra.mxu3 %v1277_v56 }
  0x21   :  { %258 = vmatpush.bf16.msra.mxu0 %v1260_v57  ;;  %327 = vmatpush.bf16.msra.mxu1 %v1252_v59  ;;  %v1330_v57 = vld [vmem:[%s1734_s2] ss:$0 sm:$0xff] }
  0x22   :  { %413 = vmatpush.bf16.msra.mxu2 %v1268_v60 }
  0x23   :  { %500 = vmatpush.bf16.msra.mxu3 %v1276_v61  ;;  %v1293_v61 = vld [vmem:[%s1735_s3 + $0x148] sm:$0xff] }
  0x25   :  { %581 = vmatpush.bf16.msrb.mxu0 %v1291_v58  ;;  %669 = vmatpush.bf16.msrb.mxu1 %v1299_v0 }
  0x26   :  { %757 = vmatpush.bf16.msrb.mxu2 %v1307_v1  ;;  %v1284_v1 = vld [vmem:[%s1735_s3 + $0x100] sm:$0xff] }
  0x29   :  { %670 = vmatpush.bf16.msrb.mxu1 %v1298_v8  ;;  %v1300_v8 = vld [vmem:[%s1735_s3 + $0x180] sm:$0xff] }
  0x2a   :  { %758 = vmatpush.bf16.msrb.mxu2 %v1306_v9 }
  0x77   :  { %v38_v13 = vpop.xlane.xlu1 %37  ;;  %v34_v14 = vpop.xlane.xlu0 %33 }
  0x78   :  { %v50_v15 = vmul.f32 %v1413_v12, %v38_v13  ;;  %v48_v16 = vmul.f32 %v1413_v12, %v34_v14 }
  0x7a   :  { %v1417_v17 = vsub.f32 %v1322_v2, %v50_v15  ;;  %v1419_v18 = vsub.f32 %v1318_v3, %v48_v16  ;;  %v1315_v2 = vld [vmem:[%s1735_s3 + $0x1f8] sm:$0xff]  ;;  %v1297_v15 = vld [vmem:[%s1735_s3 + $0x168] sm:$0xff] }
  0x7b   :  { %845 = vmatpush.bf16.msrb.mxu3 %v1315_v2  ;;  %v1305_v16 = vld [vmem:[%s1735_s3 + $0x1a8] sm:$0xff]  ;;  %671 = vmatpush.bf16.msrb.mxu1 %v1297_v15 }
  0x7c   :  { %v58_v19 = vmul.f32 %v1417_v17, %v1417_v17  ;;  %v56_v20 = vmul.f32 %v1419_v18, %v1419_v18  ;;  %759 = vmatpush.bf16.msrb.mxu2 %v1305_v16 }
  0x7e   :  { %64 = vadd.xlane.f32.xlu0 %v58_v19  ;;  %60 = vadd.xlane.f32.xlu2 %v56_v20  ;;  %v1313_v19 = vld [vmem:[%s1735_s3 + $0x1e8] sm:$0xff] }
  0x7f   :  { %v40_v21 = vpop.xlane.xlu1 %39  ;;  %v36_v22 = vpop.xlane.xlu0 %35  ;;  %846 = vmatpush.bf16.msrb.mxu3 %v1314_v10 }
  0x80   :  { %v51_v23 = vmul.f32 %v1413_v12, %v40_v21  ;;  %v49_v24 = vmul.f32 %v1413_v12, %v36_v22  ;;  %v1288_v22 = vld [vmem:[%s1735_s3 + $0x120] sm:$0xff] }
  0x82   :  { %v1427_v25 = vsub.f32 %v1323_v4, %v51_v23  ;;  %v1429_v26 = vsub.f32 %v1319_v5, %v49_v24  ;;  %v1290_v5 = vld [vmem:[%s1735_s3 + $0x130] sm:$0xff]  ;;  %v1296_v23 = vld [vmem:[%s1735_s3 + $0x160] sm:$0xff] }
  0x83   :  { %582 = vmatpush.bf16.msrb.mxu0 %v1290_v5  ;;  %847 = vmatpush.bf16.msrb.mxu3 %v1313_v19 }
  0x84   :  { %v59_v27 = vmul.f32 %v1427_v25, %v1427_v25  ;;  %v57_v28 = vmul.f32 %v1429_v26, %v1429_v26  ;;  %672 = vmatpush.bf16.msrb.mxu1 %v1296_v23 }
  0x86   :  { %66 = vadd.xlane.f32.xlu1 %v59_v27  ;;  %62 = vadd.xlane.f32.xlu2 %v57_v28 }
  0x87   :  { %583 = vmatpush.bf16.msrb.mxu0 %v1289_v11  ;;  %848 = vmatpush.bf16.msrb.mxu3 %v1312_v29  ;;  %v1308_v11 = vld [vmem:[%s1735_s3 + $0x1c0] sm:$0xff] }
  0x88   :  { %673 = vmatpush.bf16.msrb.mxu1 %v1295_v38 }
  0x8b   :  { %584 = vmatpush.bf16.msrb.mxu0 %v1288_v22  ;;  %849 = vmatpush.bf16.msrb.mxu3 %v1311_v40 }
  0x8c   :  { %674 = vmatpush.bf16.msrb.mxu1 %v1294_v45 }
  0x8f   :  { %585 = vmatpush.bf16.msrb.mxu0 %v1287_v34  ;;  %850 = vmatpush.bf16.msrb.mxu3 %v1310_v50 }
  0x90   :  { %675 = vmatpush.bf16.msrb.mxu1 %v1293_v61 }
  0x93   :  { %586 = vmatpush.bf16.msrb.mxu0 %v1286_v42 }
  0x97   :  { %587 = vmatpush.bf16.msrb.mxu0 %v1285_v51 }
  0x9b   :  { %588 = vmatpush.bf16.msrb.mxu0 %v1284_v1 }
  0xf1   :  { %v61_v62 = vpop.xlane.xlu2 %60  ;;  %v65_v63 = vpop.xlane.xlu0 %64 }
  0xf2   :  { %v68_v3 = vmul.f32 %v61_v62, %v1413_v12  ;;  %v70_v4 = vmul.f32 %v65_v63, %v1413_v12  ;;  %v1301_v62 = vld [vmem:[%s1735_s3 + $0x188] sm:$0xff] }
  0xf4   :  { %v1548_v6 = vadd.f32 1e-05, %v68_v3  ;;  %v1550_v7 = vadd.f32 1e-05, %v70_v4 }
  0xf6   :  { %1334 = vrsqrt.f32 %v1548_v6  ;;  %vm82_vm3 = vweird.f32 %v1548_v6  ;;  %vm102_vm5 = vweird.f32 %v1550_v7 }
  0xf7   :  { %1336 = vrsqrt.f32 %v1550_v7 }
  0xf9   :  { %v67_v13 = vpop.xlane.xlu1 %66  ;;  %v63_v14 = vpop.xlane.xlu2 %62 }
  0xfa   :  { %v71_v20 = vmul.f32 %v67_v13, %v1413_v12  ;;  %v69_v21 = vmul.f32 %v63_v14, %v1413_v12  ;;  %v1304_v12 = vld [vmem:[%s1735_s3 + $0x1a0] sm:$0xff] }
  0xfb   :  { %760 = vmatpush.bf16.msrb.mxu2 %v1304_v12 }
  0xfc   :  { %v1335_v24 = vpop.eup %1334  ;;  %v1583_v27 = vadd.f32 1e-05, %v71_v20  ;;  %v1585_v28 = vadd.f32 1e-05, %v69_v21 }
  0xfd   :  { %v1337_v30 = vpop.eup %1336  ;;  %v77_v31 = vmul.f32 %v1335_v24, %v1548_v6  ;;  %vm83_vm1 = vweird.f32 %v1335_v24 }
  0xfe   :  { %v97_v32 = vmul.f32 %v1337_v30, %v1550_v7  ;;  %1338 = vrsqrt.f32 %v1583_v27  ;;  %vm103_vm2 = vweird.f32 %v1337_v30  ;;  %vm84_vm4 = vmor %vm82_vm3, %vm83_vm1  ;;  %vm112_vm9 = vweird.f32 %v1583_v27 }
  0xff   :  { %v78_v33 = vmul.f32 %v1335_v24, %v77_v31  ;;  %1340 = vrsqrt.f32 %v1585_v28  ;;  %761 = vmatpush.bf16.msrb.mxu2 %v1303_v39  ;;  %vm104_vm6 = vmor %vm102_vm5, %vm103_vm2  ;;  %vm92_vm11 = vweird.f32 %v1585_v28 }
 0x100   :  { %v98_v35 = vmul.f32 %v1337_v30, %v97_v32 }
 0x101   :  { %v79_v36 = vmul.f32 0.5, %v78_v33 }
 0x102   :  { %v99_v37 = vmul.f32 0.5, %v98_v35 }
 0x103   :  { %v80_v41 = vsub.f32 1.5, %v79_v36  ;;  %762 = vmatpush.bf16.msrb.mxu2 %v1302_v46 }
 0x104   :  { %v1612_v43 = vpop.eup %1338  ;;  %v100_v44 = vsub.f32 1.5, %v99_v37 }
 0x105   :  { %v1341_v47 = vpop.eup %1340  ;;  %v81_v48 = vmul.f32 %v1335_v24, %v80_v41  ;;  %v107_v49 = vmul.f32 %v1612_v43, %v1583_v27  ;;  %vm113_vm7 = vweird.f32 %v1612_v43 }
 0x106   :  { %v101_v53 = vmul.f32 %v1337_v30, %v100_v44  ;;  %v87_v54 = vmul.f32 %v1341_v47, %v1585_v28  ;;  %vm93_vm8 = vweird.f32 %v1341_v47  ;;  %vm114_vm10 = vmor %vm112_vm9, %vm113_vm7 }
 0x107   :  { %v85_v55 = vsel %vm84_vm4, %v1335_v24, %v81_v48  ;;  %v108_v56 = vmul.f32 %v1612_v43, %v107_v49  ;;  %763 = vmatpush.bf16.msrb.mxu2 %v1301_v62  ;;  %vm94_vm12 = vmor %vm92_vm11, %vm93_vm8 }
 0x108   :  { %v116_v58 = vmul.f32 %v85_v55, %v1419_v18  ;;  %v105_v59 = vsel %vm104_vm6, %v1337_v30, %v101_v53  ;;  %v88_v60 = vmul.f32 %v1341_v47, %v87_v54  ;;  %v1309_v18 = vld [vmem:[%s1735_s3 + $0x1c8] sm:$0xff] }
 0x109   :  { %v118_v63 = vmul.f32 %v105_v59, %v1417_v17  ;;  %v109_v0 = vmul.f32 0.5, %v108_v56  ;;  %v1292_v17 = vld [vmem:[%s1735_s3 + $0x140] sm:$0xff]  ;;  %851 = vmatpush.bf16.msrb.mxu3 %v1309_v18 }
 0x10a   :  { %v123_v2 = vmul.f32 %v1329_v52, %v116_v58  ;;  %v89_v3 = vmul.f32 0.5, %v88_v60  ;;  %676 = vmatpush.bf16.msrb.mxu1 %v1292_v17 }
 0x10b   :  { %v125_v4 = vmul.f32 %v1329_v52, %v118_v63  ;;  %v110_v5 = vsub.f32 1.5, %v109_v0  ;;  %764 = vmatpush.bf16.msrb.mxu2 %v1300_v8 }
 0x10c   :  { %v130_v6 = vadd.f32 %v1330_v57, %v123_v2  ;;  %v90_v7 = vsub.f32 1.5, %v89_v3 }
 0x10d   :  { %v132_v9 = vadd.f32 %v1330_v57, %v125_v4  ;;  %v111_v10 = vmul.f32 %v1612_v43, %v110_v5  ;;  %852 = vmatpush.bf16.msrb.mxu3 %v1308_v11 }
 0x10e   :  { %134 = vst [vmem:[#allocation2] sm:$0xff] %v130_v6  ;;  %v91_v13 = vmul.f32 %v1341_v47, %v90_v7  ;;  %v163_v19 = vpack.c.bf16 %v130_v6, %v130_v6 }
 0x10f   :  { %136 = vst [vmem:[#allocation2 + $0x10] sm:$0xff] %v132_v9  ;;  %v115_v14 = vsel %vm114_vm10, %v1612_v43, %v111_v10  ;;  %v165_v21 = vpack.c.bf16 %v132_v9, %v132_v9 }
 0x110   :  { %v119_v15 = vmul.f32 %v115_v14, %v1427_v25  ;;  %v95_v16 = vsel %vm94_vm12, %v1341_v47, %v91_v13  ;;  %v188_v27 = vunpack.c.l.b16 %v163_v19 }
 0x111   :  { %v117_v20 = vmul.f32 %v95_v16, %v1429_v26  ;;  %v1673_v12 = vunpack.c.l.b16 %v165_v21 }
 0x112   :  { %v126_v22 = vmul.f32 %v1329_v52, %v119_v15  ;;  %v192_v32 = vrot.slane %v188_v27, 1  ;;  %v350_v26 = vrot.slane %v188_v27, 2  ;;  %v437_v36 = vrot.slane %v188_v27, 3 }
 0x113   :  { %v124_v23 = vmul.f32 %v1329_v52, %v117_v20  ;;  %v195_v33 = vrot.slane %v1673_v12, 7  ;;  %v266_v35 = vrot.slane %v1673_v12, 6  ;;  %v440_v44 = vrot.slane %v1673_v12, 1 }
 0x114   :  { %v133_v24 = vadd.f32 %v1330_v57, %v126_v22  ;;  %v524_v60 = vrot.slane %v188_v27, 4  ;;  %v612_v18 = vrot.slane %v188_v27, 5  ;;  %v700_v1 = vrot.slane %v188_v27, 6 }
 0x115   :  { %v131_v28 = vadd.f32 %v1330_v57, %v124_v23  ;;  %v527_v2 = vrot.slane %v1673_v12, 2  ;;  %v788_v3 = vrot.slane %v188_v27, 7  ;;  %v615_v7 = vrot.slane %v1673_v12, 3 }
 0x116   :  { %137 = vst [vmem:[#allocation2 + $0x18] sm:$0xff] %v133_v24  ;;  %v166_v29 = vpack.c.bf16 %v133_v24, %v133_v24  ;;  %v703_v17 = vrot.slane %v1673_v12, 4  ;;  %v791_v10 = vrot.slane %v1673_v12, 5 }
 0x117   :  { %135 = vst [vmem:[#allocation2 + $0x8] sm:$0xff] %v131_v28  ;;  %v164_v30 = vpack.c.bf16 %v131_v28, %v131_v28 }
 0x118   :  { %v1675_v25 = vunpack.c.l.b16 %v166_v29  ;;  %874 = dma.vmem_to_hbm [thread:$0]  %s867_s8, 512, %s869_s30, [#allocation3], %s1370_s9, %s1370_s9, %s1371_s10  }
 0x119   :  { %v189_v31 = vunpack.c.l.b16 %v164_v30  ;;  %v1331_v29 = vld [vmem:[%s1736_s4] ss:$0 sm:$0xff] }
 0x11a   :  { %v198_v34 = vrot.slane %v1675_v25, 6  ;;  %v268_v42 = vrot.slane %v1675_v25, 5  ;;  %v354_v43 = vrot.slane %v1675_v25, 7  ;;  %v529_v9 = vrot.slane %v1675_v25, 1  ;;  %146 = vst [vmem:[%s1738_s6] sm:$0xf] %v1331_v29 }
 0x11b   :  { %v194_v37 = vsel %vm193_vm13, %v189_v31, %v192_v32  ;;  %v264_v38 = vrot.slane %v189_v31, 7  ;;  %v351_v39 = vrot.slane %v189_v31, 1  ;;  %v438_v40 = vrot.slane %v189_v31, 2 }
 0x11c   :  { %v197_v41 = vsel %vm196_vm14, %v195_v33, %v194_v37  ;;  %v525_v59 = vrot.slane %v189_v31, 3  ;;  %v613_v61 = vrot.slane %v189_v31, 4  ;;  %v701_v62 = vrot.slane %v189_v31, 5 }
 0x11d   :  { %v200_v45 = vsel %vm199_vm15, %v198_v34, %v197_v41  ;;  %v265_v46 = vsel %vm193_vm13, %v264_v38, %v188_v27  ;;  %v352_v47 = vsel %vm193_vm13, %v351_v39, %v350_v26  ;;  %v439_v48 = vsel %vm193_vm13, %v438_v40, %v437_v36 }
 0x11e   :  { %v201_v49 = vpack.c.b16 %v200_v45, %v200_v45  ;;  %v267_v50 = vsel %vm196_vm14, %v266_v35, %v265_v46  ;;  %v353_v51 = vsel %vm196_vm14, %v1673_v12, %v352_v47  ;;  %v441_v52 = vsel %vm196_vm14, %v440_v44, %v439_v48 }
 0x11f   :  { %v269_v53 = vsel %vm199_vm15, %v268_v42, %v267_v50  ;;  %v355_v54 = vsel %vm199_vm15, %v354_v43, %v353_v51  ;;  %v442_v55 = vsel %vm199_vm15, %v1675_v25, %v441_v52  ;;  %v789_v63 = vrot.slane %v189_v31, 6 }
 0x120   :  { %259 = vmatmul.bf16.vlgmr.msra.gmra.mxu0 %v201_v49  ;;  %v270_v56 = vpack.c.b16 %v269_v53, %v269_v53  ;;  %v356_v57 = vpack.c.b16 %v355_v54, %v355_v54  ;;  %v443_v58 = vpack.c.b16 %v442_v55, %v442_v55  ;;  %v526_v0 = vsel %vm193_vm13, %v525_v59, %v524_v60 }
 0x121   :  { %v614_v4 = vsel %vm193_vm13, %v613_v61, %v612_v18  ;;  %v702_v5 = vsel %vm193_vm13, %v701_v62, %v700_v1  ;;  %v528_v6 = vsel %vm196_vm14, %v527_v2, %v526_v0  ;;  %v790_v8 = vsel %vm193_vm13, %v789_v63, %v788_v3  ;;  %v859_v47 = vld [vmem:[%s1738_s6] sm:$0xf] }
 0x122   :  { %328 = vmatmul.bf16.vlgmr.msra.gmra.mxu1 %v270_v56  ;;  %414 = vmatmul.bf16.vlgmr.msra.gmra.mxu2 %v356_v57  ;;  %v616_v11 = vsel %vm196_vm14, %v615_v7, %v614_v4  ;;  %v704_v13 = vsel %vm196_vm14, %v703_v17, %v702_v5  ;;  %v530_v14 = vsel %vm199_vm15, %v529_v9, %v528_v6  ;;  %v617_v15 = vrot.slane %v1675_v25, 2 }
 0x123   :  { %501 = vmatmul.bf16.vlgmr.msra.gmra.mxu3 %v443_v58  ;;  %v705_v16 = vrot.slane %v1675_v25, 3  ;;  %v792_v19 = vsel %vm196_vm14, %v791_v10, %v790_v8  ;;  %v793_v20 = vrot.slane %v1675_v25, 4  ;;  %v531_v23 = vpack.c.b16 %v530_v14, %v530_v14 }
 0x124   :  { %v618_v21 = vsel %vm199_vm15, %v617_v15, %v616_v11 }
 0x125   :  { %v706_v22 = vsel %vm199_vm15, %v705_v16, %v704_v13  ;;  %v794_v24 = vsel %vm199_vm15, %v793_v20, %v792_v19  ;;  %v619_v27 = vpack.c.b16 %v618_v21, %v618_v21 }
 0x126   :  { %v707_v28 = vpack.c.b16 %v706_v22, %v706_v22  ;;  %v795_v12 = vpack.c.b16 %v794_v24, %v794_v24 }
 0x130   :  { %589 = vmatmul.bf16.vlgmr.msrb.gmra.mxu0 %v531_v23 }
 0x132   :  { %677 = vmatmul.bf16.vlgmr.msrb.gmra.mxu1 %v619_v27  ;;  %765 = vmatmul.bf16.vlgmr.msrb.gmra.mxu2 %v707_v28 }
 0x133   :  { %853 = vmatmul.bf16.vlgmr.msrb.gmra.mxu3 %v795_v12 }
 0x19d   :  { %v260_v30 = vpop.f32.mrf.mxu0 }
 0x19f   :  { %v329_v25 = vpop.f32.mrf.mxu1 }
 0x1a0   :  { %v330_v34 = vadd.f32 %v329_v25, %v260_v30 }
 0x1a5   :  { %v262_v31 = vpop.f32.mrf.mxu0  ;;  %v415_v32 = vpop.f32.mrf.mxu2 }
 0x1a6   :  { %v502_v26 = vpop.f32.mrf.mxu3  ;;  %v419_v35 = vadd.f32 %v415_v32, %v330_v34 }
 0x1a7   :  { %v331_v33 = vpop.f32.mrf.mxu1 }
 0x1a8   :  { %v506_v38 = vadd.f32 %v502_v26, %v419_v35 }
 0x1ad   :  { %v417_v36 = vpop.f32.mrf.mxu2  ;;  %v590_v37 = vpop.f32.mrf.mxu0 }
 0x1ae   :  { %v504_v39 = vpop.f32.mrf.mxu3  ;;  %v594_v41 = vadd.f32 %v590_v37, %v506_v38 }
 0x1af   :  { %v678_v40 = vpop.f32.mrf.mxu1 }
 0x1b0   :  { %v682_v42 = vadd.f32 %v678_v40, %v594_v41 }
 0x1b5   :  { %v592_v43 = vpop.f32.mrf.mxu0  ;;  %v766_v44 = vpop.f32.mrf.mxu2 }
 0x1b6   :  { %v770_v45 = vadd.f32 %v766_v44, %v682_v42  ;;  %v854_v46 = vpop.f32.mrf.mxu3 }
 0x1b7   :  { %v680_v48 = vpop.f32.mrf.mxu1 }
 0x1b8   :  { %v858_v49 = vadd.f32 %v854_v46, %v770_v45 }
 0x1ba   :  { %v860_v50 = vadd.f32 %v859_v47, %v858_v49 }
 0x1bc   :  { %861 = vst [vmem:[%s1738_s6] sm:$0xf] %v860_v50 }
 0x1bd   :  { %v768_v51 = vpop.f32.mrf.mxu2 }
 0x1be   :  { %v856_v52 = vpop.f32.mrf.mxu3 }
 0x1bf   :  { %1366 = dma.done.wait [#allocation3], 512  }
 0x1c0   :  { %1367 = vsyncadd [#allocation3], 4294966784 }
 0x1c1   :  { %883 = vsyncpa [#allocation3], 1 }

// kernel: transformer_forward.3
= control target key start
LH: loop header
LB: loop body
LE: loop exit
PB: predicated region body
PF: predicated region fallthrough
CT: control target
= control target key end

     0   :  { %s7316_s0 = inlined_call_operand.vmem [shape: f32[4,8,128], index: 0, kind: input, shape index: {}]   ;;  %s7317_s1 = inlined_call_operand.vmem [shape: f32[8,8], index: 1, kind: input, shape index: {}]   ;;  %s7318_s2 = inlined_call_operand.vmem [shape: f32[8,128], index: 2, kind: input, shape index: {}]   ;;  %s7319_s3 = inlined_call_operand.vmem [shape: f32[1,128], index: 3, kind: input, shape index: {}]   ;;  %s7320_s4 = inlined_call_operand.vmem [shape: f32[1,128], index: 4, kind: input, shape index: {}]   ;;  %s7321_s5 = inlined_call_operand.hbm [shape: bf16[128,384], index: 5, kind: input, shape index: {}]   ;;  %s7322_s6 = inlined_call_operand.vmem [shape: f32[1,384], index: 6, kind: input, shape index: {}]   ;;  %s7323_s7 = inlined_call_operand.hbm [shape: bf16[4,32,128], index: 7, kind: input, shape index: {}]   ;;  %s7324_s8 = inlined_call_operand.vmem [shape: f32[1,128], index: 8, kind: input, shape index: {}]   ;;  %s7325_s9 = inlined_call_operand.hbm [shape: f32[1,128], index: 9, kind: input, shape index: {}]   ;;  %s7326_s10 = inlined_call_operand.hbm [shape: f32[1,128], index: 10, kind: input, shape index: {}]   ;;  %s7327_s11 = inlined_call_operand.hbm [shape: bf16[128,512], index: 11, kind: input, shape index: {}]   ;;  %s7328_s12 = inlined_call_operand.vmem [shape: f32[1,512], index: 12, kind: input, shape index: {}]   ;;  %s7329_s13 = inlined_call_operand.hbm [shape: bf16[512,128], index: 13, kind: input, shape index: {}]   ;;  %s7330_s14 = inlined_call_operand.vmem [shape: f32[1,128], index: 14, kind: input, shape index: {}]   ;;  %s7331_s15 = inlined_call_operand.hbm [shape: f32[1,128], index: 15, kind: input, shape index: {}]   ;;  %s7332_s16 = inlined_call_operand.hbm [shape: f32[1,128], index: 16, kind: input, shape index: {}]   ;;  %s7333_s17 = inlined_call_operand.hbm [shape: bf16[128,384], index: 17, kind: input, shape index: {}]   ;;  %s7334_s18 = inlined_call_operand.hbm [shape: f32[1,384], index: 18, kind: input, shape index: {}]   ;;  %s7335_s19 = inlined_call_operand.hbm [shape: bf16[4,32,128], index: 19, kind: input, shape index: {}]   ;;  %s7336_s20 = inlined_call_operand.hbm [shape: f32[1,128], index: 20, kind: input, shape index: {}]   ;;  %s7337_s21 = inlined_call_operand.hbm [shape: f32[1,128], index: 21, kind: input, shape index: {}]   ;;  %s7338_s22 = inlined_call_operand.hbm [shape: f32[1,128], index: 22, kind: input, shape index: {}]   ;;  %s7339_s23 = inlined_call_operand.hbm [shape: bf16[128,512], index: 23, kind: input, shape index: {}]   ;;  %s7340_s24 = inlined_call_operand.hbm [shape: f32[1,512], index: 24, kind: input, shape index: {}]   ;;  %s7341_s25 = inlined_call_operand.hbm [shape: bf16[512,128], index: 25, kind: input, shape index: {}]   ;;  %s7342_s26 = inlined_call_operand.hbm [shape: f32[1,128], index: 26, kind: input, shape index: {}]   ;;  %s7343_s27 = inlined_call_operand.vmem [shape: bf16[4,8,128], index: 27, kind: output, shape index: {}]  }
   0x1   :  { %7353 = sst [smem:[#allocation40_spill]] %s7316_s0 }
   0x2   :  { %7354 = sst [smem:[#allocation41_spill]] %s7317_s1 }
   0x3   :  { %7355 = sst [smem:[#allocation42_spill]] %s7318_s2 }
   0x4   :  { %7356 = sst [smem:[#allocation43_spill]] %s7319_s3 }
   0x5   :  { %7357 = sst [smem:[#allocation44_spill]] %s7320_s4 }
   0x6   :  { %7358 = sst [smem:[#allocation45_spill]] %s7321_s5 }
   0x7   :  { %7359 = sst [smem:[#allocation46_spill]] %s7322_s6 }
   0x8   :  { %7360 = sst [smem:[#allocation47_spill]] %s7323_s7 }
   0x9   :  { %7361 = sst [smem:[#allocation48_spill]] %s7324_s8 }
   0xa   :  { %7362 = sst [smem:[#allocation49_spill]] %s7325_s9 }
   0xb   :  { %7363 = sst [smem:[#allocation50_spill]] %s7326_s10 }
   0xc   :  { %7364 = sst [smem:[#allocation51_spill]] %s7327_s11 }
   0xd   :  { %7365 = sst [smem:[#allocation52_spill]] %s7329_s13 }
   0xe   :  { %7366 = sst [smem:[#allocation53_spill]] %s7330_s14 }
   0xf   :  { %7367 = sst [smem:[#allocation54_spill]] %s7332_s16 }
  0x10   :  { %7368 = sst [smem:[#allocation55_spill]] %s7334_s18 }
  0x11   :  { %7369 = sst [smem:[#allocation56_spill]] %s7343_s27 }
  0x12   :  { %32 = vsyncpa [#allocation3], 0 }
  0x13   :  { %33 = vsyncpa [#allocation5], 0 }
  0x14   :  { %34 = vsyncpa [#allocation8], 0 }
  0x15   :  { %35 = vsyncpa [#allocation11], 0 }
  0x16   :  { %36 = vsyncpa [#allocation14], 0 }
  0x17   :  { %37 = vsyncpa [#allocation17], 0 }
  0x18   :  { %38 = vsyncpa [#allocation20], 0 }
  0x19   :  { %39 = vsyncpa [#allocation23], 0 }
  0x1a   :  { %40 = vsyncpa [#allocation26], 0 }
  0x1b   :  { %41 = vsyncpa [#allocation29], 0  ;;  %s6725_s7 = smov 0  }
  0x1c LB: > { %s7370_s30 = sld [smem:[#allocation47_spill]]  ;;  %s7345_s5 = sadd.s32 4294967295, %s6555_s7   ;;  %s6555_s7 = sphi %s6725_s7, %s47_s7  }
  0x1d   : > { %p4563_p0 = scmp.ge.s32.totalorder %s6555_s7, 1  ;;  %p650_p1 = scmp.lt.s32.totalorder %s6555_s7, 3 }
  0x1e   : > { %p6738_p2 = scmp.eq.s32.totalorder %s7345_s5, 0  ;;  %s6557_s10 = smov [#allocation4]  }
  0x1f   : > { %p6742_p3 = pnand %p4563_p0, %p650_p1  ;;  %s692_s29 = sshll.u32 %s6557_s10, 4  ;;  %s693_s29 = int_to_ptr.vmem [resolvable:$true] %s692_s29 }
  0x20   : > { %s7373_s11 = sld [smem:[#allocation50_spill]]  ;;  %s6558_s4 = smov [#allocation7]  }
  0x21   : > { %p5685_p4 = pneg %p6742_p3  ;;  %s722_s8 = sshll.u32 %s6558_s4, 4  ;;  %s723_s8 = int_to_ptr.vmem [resolvable:$true] %s722_s8 }
  0x22   : > { %s690_s9 = sshll.u32 %s7370_s30, 4  ;;  %s7375_s13 = sld [smem:[#allocation52_spill]]  ;;  %s691_s9 = int_to_ptr.hbm [resolvable:$true] %s690_s9 }
  0x23   : > { %p6753_p5 = pnand %p6738_p2, %p5685_p4  ;;  %s7346_s27 = smov 64  }
  0x24   : > { %s7348_s1 = smov 4   ;;  %s6561_s6 = smov [#allocation10]  }
  0x25   : > { %5691 = dma.hbm_to_vmem [thread:$0]  (!%p6753_p5), %s691_s9, 1024, %s693_s29, [#allocation5], %s7346_s27, %s7346_s27, %s7348_s1  }
  0x26   : > { %s720_s2 = sshll.u32 %s7373_s11, 4  ;;  %s750_s11 = sshll.u32 %s6561_s6, 4  ;;  %s721_s2 = int_to_ptr.hbm [resolvable:$true] %s720_s2  ;;  %s751_s11 = int_to_ptr.vmem [resolvable:$true] %s750_s11 }
  0x27   : > { %5697 = dma.hbm_to_vmem [thread:$0]  (!%p6753_p5), %s721_s2, 16, %s723_s8, [#allocation8]  }
  0x28   : > { %s748_s5 = sshll.u32 %s7375_s13, 4  ;;  %s7376_s16 = sld [smem:[#allocation54_spill]]  ;;  %s749_s5 = int_to_ptr.hbm [resolvable:$true] %s748_s5 }
  0x29   : > { %5703 = dma.hbm_to_vmem [thread:$0]  (!%p6753_p5), %s749_s5, 4096, %s751_s11, [#allocation11], %s7346_s27, %s7346_s27, %s7348_s1  }
  0x2a   : > { %s7377_s18 = sld [smem:[#allocation55_spill]]  ;;  %s6562_s29 = smov [#allocation13]  }
  0x2b   : > { %s780_s2 = sshll.u32 %s6562_s29, 4  ;;  %s6563_s14 = smov [#allocation16]   ;;  %s781_s2 = int_to_ptr.vmem [resolvable:$true] %s780_s2 }
  0x2c   : > { %s806_s8 = sshll.u32 %s6563_s14, 4  ;;  %s854_s11 = sshll.u32 %s7338_s22, 4  ;;  %s807_s8 = int_to_ptr.vmem [resolvable:$true] %s806_s8  ;;  %s855_s11 = int_to_ptr.hbm [resolvable:$true] %s854_s11 }
  0x2d   : > { %s6564_s10 = smov [#allocation19]   ;;  %s880_s4 = sshll.u32 %s7340_s24, 4  ;;  %s881_s4 = int_to_ptr.hbm [resolvable:$true] %s880_s4 }
  0x2e   : > { %s778_s30 = sshll.u32 %s7376_s16, 4  ;;  %s830_s16 = sshll.u32 %s7336_s20, 4  ;;  %s779_s30 = int_to_ptr.hbm [resolvable:$true] %s778_s30  ;;  %s831_s16 = int_to_ptr.hbm [resolvable:$true] %s830_s16 }
  0x2f   : > { %5709 = dma.hbm_to_vmem [thread:$0]  (!%p6753_p5), %s779_s30, 16, %s781_s2, [#allocation14]  }
  0x30   : > { %s804_s9 = sshll.u32 %s7377_s18, 4  ;;  %s832_s29 = sshll.u32 %s6564_s10, 4  ;;  %s805_s9 = int_to_ptr.hbm [resolvable:$true] %s804_s9  ;;  %s833_s29 = int_to_ptr.vmem [resolvable:$true] %s832_s29 }
  0x31   : > { %5715 = dma.hbm_to_vmem [thread:$0]  (!%p6753_p5), %s805_s9, 48, %s807_s8, [#allocation17]  }
  0x32   : > { %5721 = dma.hbm_to_vmem [thread:$0]  (!%p6753_p5), %s831_s16, 16, %s833_s29, [#allocation20]  }
  0x33   : > { %s6565_s30 = smov [#allocation22]   ;;  %s7378_s13 = sld [smem:[#allocation45_spill]] }
  0x34   : > { %s856_s2 = sshll.u32 %s6565_s30, 4  ;;  %s6566_s10 = smov [#allocation25]   ;;  %s857_s2 = int_to_ptr.vmem [resolvable:$true] %s856_s2 }
  0x35   : > { %5727 = dma.hbm_to_vmem [thread:$0]  (!%p6753_p5), %s855_s11, 16, %s857_s2, [#allocation23]  }
  0x36   : > { %s882_s27 = sshll.u32 %s6566_s10, 4  ;;  %s6567_s16 = smov [#allocation2]   ;;  %s883_s27 = int_to_ptr.vmem [resolvable:$true] %s882_s27 }
  0x37   : > { %5733 = dma.hbm_to_vmem [thread:$0]  (!%p6753_p5), %s881_s4, 64, %s883_s27, [#allocation26]  }
  0x38   : > { %s675_s29 = sshll.u32 %s6567_s16, 4  ;;  %s7350_s30 = smov 192   ;;  %s676_s29 = int_to_ptr.vmem [resolvable:$true] %s675_s29 }
  0x39   : > { %s673_s5 = sshll.u32 %s7378_s13, 4  ;;  %s6569_s14 = smov 12   ;;  %s674_s5 = int_to_ptr.hbm [resolvable:$true] %s673_s5 }
  0x3a   : > { %5688 = dma.hbm_to_vmem [thread:$0]  (!%p6753_p5), %s674_s5, 3072, %s676_s29, [#allocation3], %s7350_s30, %s7350_s30, %s6569_s14  }
  0x3b   : > { %s7379_s6 = sld [smem:[#allocation49_spill]]  ;;  %s6570_s8 = smov [#allocation6]  }
  0x3c   : > { %s710_s13 = sshll.u32 %s6570_s8, 4  ;;  %s7380_s10 = sld [smem:[#allocation51_spill]]  ;;  %s711_s13 = int_to_ptr.vmem [resolvable:$true] %s710_s13 }
  0x3d   : > { %s6571_s1 = smov [#allocation9]   ;;  %s7351_s5 = smov 256  }
  0x3e   : > { %s733_s18 = sshll.u32 %s6571_s1, 4  ;;  %s7352_s29 = smov 16   ;;  %s734_s18 = int_to_ptr.vmem [resolvable:$true] %s733_s18 }
  0x3f   : > { %s6574_s8 = smov [#allocation12]   ;;  %s6575_s4 = smov [#allocation15]  }
  0x40   : > { %s768_s27 = sshll.u32 %s6574_s8, 4  ;;  %s7381_s11 = smov 192   ;;  %s769_s27 = int_to_ptr.vmem [resolvable:$true] %s768_s27 }
  0x41   : > { %s708_s9 = sshll.u32 %s7379_s6, 4  ;;  %s766_s6 = sshll.u32 %s7331_s15, 4  ;;  %s709_s9 = int_to_ptr.hbm [resolvable:$true] %s708_s9  ;;  %s767_s6 = int_to_ptr.hbm [resolvable:$true] %s766_s6 }
  0x42   : > { %s731_s16 = sshll.u32 %s7380_s10, 4  ;;  %s791_s10 = sshll.u32 %s6575_s4, 4  ;;  %s732_s16 = int_to_ptr.hbm [resolvable:$true] %s731_s16  ;;  %s792_s10 = int_to_ptr.vmem [resolvable:$true] %s791_s10 }
  0x43   : > { %5694 = dma.hbm_to_vmem [thread:$0]  (!%p6753_p5), %s709_s9, 16, %s711_s13, [#allocation5]  }
  0x44   : > { %5700 = dma.hbm_to_vmem [thread:$0]  (!%p6753_p5), %s732_s16, 4096, %s734_s18, [#allocation8], %s7351_s5, %s7351_s5, %s7352_s29  }
  0x45   : > { %s789_s13 = sshll.u32 %s7333_s17, 4  ;;  %s815_s16 = sshll.u32 %s7335_s19, 4  ;;  %s790_s13 = int_to_ptr.hbm [resolvable:$true] %s789_s13  ;;  %s816_s16 = int_to_ptr.hbm [resolvable:$true] %s815_s16 }
  0x46   : > { %5706 = dma.hbm_to_vmem [thread:$0]  (!%p6753_p5), %s767_s6, 16, %s769_s27, [#allocation11]  }
  0x47   : > { %5712 = dma.hbm_to_vmem [thread:$0]  (!%p6753_p5), %s790_s13, 3072, %s792_s10, [#allocation14], %s7381_s11, %s7381_s11, %s6569_s14  }
  0x48   : > { %s842_s9 = sshll.u32 %s7337_s21, 4  ;;  %s6576_s6 = smov [#allocation18]   ;;  %s843_s9 = int_to_ptr.hbm [resolvable:$true] %s842_s9 }
  0x49   : > { %s817_s27 = sshll.u32 %s6576_s6, 4  ;;  %s7382_s30 = smov 4   ;;  %s818_s27 = int_to_ptr.vmem [resolvable:$true] %s817_s27 }
  0x4a   : > { %s7383_s1 = smov 64   ;;  %s6577_s4 = smov [#allocation21]  }
  0x4b   : > { %5718 = dma.hbm_to_vmem [thread:$0]  (!%p6753_p5), %s816_s16, 1024, %s818_s27, [#allocation17], %s7383_s1, %s7383_s1, %s7382_s30  }
  0x4c   : > { %s844_s18 = sshll.u32 %s6577_s4, 4  ;;  %s865_s14 = sshll.u32 %s7339_s23, 4  ;;  %s845_s18 = int_to_ptr.vmem [resolvable:$true] %s844_s18  ;;  %s866_s14 = int_to_ptr.hbm [resolvable:$true] %s865_s14 }
  0x4d   : > { %5724 = dma.hbm_to_vmem [thread:$0]  (!%p6753_p5), %s843_s9, 16, %s845_s18, [#allocation20]  }
  0x4e   : > { %s891_s11 = sshll.u32 %s7341_s25, 4  ;;  %s6578_s2 = smov [#allocation24]   ;;  %s892_s11 = int_to_ptr.hbm [resolvable:$true] %s891_s11 }
  0x4f   : > { %s867_s8 = sshll.u32 %s6578_s2, 4  ;;  %s7384_s16 = smov 16   ;;  %s868_s8 = int_to_ptr.vmem [resolvable:$true] %s867_s8 }
  0x50   : > { %s7385_s6 = smov 256   ;;  %s6579_s5 = smov [#allocation27]  }
  0x51   : > { %5730 = dma.hbm_to_vmem [thread:$0]  (!%p6753_p5), %s866_s14, 4096, %s868_s8, [#allocation23], %s7385_s6, %s7385_s6, %s7384_s16  }
  0x52   : > { %s893_s29 = sshll.u32 %s6579_s5, 4  ;;  %s906_s9 = sshll.u32 %s7342_s26, 4  ;;  %s894_s29 = int_to_ptr.vmem [resolvable:$true] %s893_s29  ;;  %s907_s9 = int_to_ptr.hbm [resolvable:$true] %s906_s9 }
  0x53   : > { %5736 = dma.hbm_to_vmem [thread:$0]  (!%p6753_p5), %s892_s11, 4096, %s894_s29, [#allocation26], %s7383_s1, %s7383_s1, %s7382_s30  }
  0x54   : > { %s6580_s18 = smov [#allocation28]   ;;  %930 = sbr.rel (%p6742_p3) target bundleno = 3496 (0xda8), region = 128 }
  0x55   : > { %s908_s13 = sshll.u32 %s6580_s18, 4  ;;  %s909_s13 = int_to_ptr.vmem [resolvable:$true] %s908_s13 }
  0x56   : > { %5739 = dma.hbm_to_vmem [thread:$0]  (!%p6753_p5), %s907_s9, 16, %s909_s13, [#allocation29]  }
  0x59   : > { %6514 = dma.done.wait (%p6738_p2), [#allocation3], 3072  }
  0x5a   : > { %6516 = vsyncadd (%p6738_p2), [#allocation3], 4294964224 }
  0x5b   : > { %6518 = dma.done.wait (%p6738_p2), [#allocation5], 1040  }
  0x5c   : > { %6520 = vsyncadd (%p6738_p2), [#allocation5], 4294966256 }
  0x5d   : > { %6522 = dma.done.wait (%p6738_p2), [#allocation8], 4112  }
  0x5e   : > { %6524 = vsyncadd (%p6738_p2), [#allocation8], 4294963184 }
  0x5f   : > { %6526 = dma.done.wait (%p6738_p2), [#allocation11], 4112  }
  0x60   : > { %6528 = vsyncadd (%p6738_p2), [#allocation11], 4294963184 }
  0x61   : > { %6530 = dma.done.wait (%p6738_p2), [#allocation14], 3088  }
  0x62   : > { %6532 = vsyncadd (%p6738_p2), [#allocation14], 4294964208 }
  0x63   : > { %6534 = dma.done.wait (%p6738_p2), [#allocation17], 1072  }
  0x64   : > { %6536 = vsyncadd (%p6738_p2), [#allocation17], 4294966224 }
  0x65   : > { %6538 = dma.done.wait (%p6738_p2), [#allocation20], 32  }
  0x66   : > { %6540 = vsyncadd (%p6738_p2), [#allocation20], 4294967264 }
  0x67   : > { %6542 = dma.done.wait (%p6738_p2), [#allocation23], 4112  }
  0x68   : > { %6544 = vsyncadd (%p6738_p2), [#allocation23], 4294963184 }
  0x69   : > { %6546 = dma.done.wait (%p6738_p2), [#allocation26], 4160  }
  0x6a   : > { %6548 = vsyncadd (%p6738_p2), [#allocation26], 4294963136 }
  0x6b   : > { %6550 = dma.done.wait (%p6738_p2), [#allocation29], 16  }
  0x6c   : > { %6552 = vsyncadd (%p6738_p2), [#allocation29], 4294967280  ;;  %s7386_s0 = sadd.s32 4294967295, %s6555_s7   ;;  %s7387_s10 = sld [smem:[#allocation40_spill]]  ;;  %v6581_v5 = vmov 128.0   ;;  %vm1453_vm7 = vcmask 261120  }
  0x6d   : > { %s4602_s3 = sshll.u32 %s7386_s0, 1  ;;  %s7388_s16 = sld [smem:[#allocation42_spill]]  ;;  %5854 = vrcp.f32 %v6581_v5  ;;  %v4692_v20 = vld [vmem:[#allocation2 + $0xa8] sm:$0xf]  ;;  %v5438_v21 = vld [vmem:[#allocation2 + $0xb0] sm:$0xf0] }
  0x6e   : > { %p1089_p6 = scmp.lt.s32.totalorder %s4602_s3, 3  ;;  %v5437_v22 = vld [vmem:[#allocation2 + $0xac] sm:$0xf]  ;;  %v4693_v23 = vor.u32 %v5438_v21, %v4692_v20  ;;  %v4694_v24 = vld [vmem:[#allocation2 + $0xb4] sm:$0xf0]  ;;  %s7389_s5 = sld [smem:[#allocation43_spill]] }
  0x6f   : > { %v4700_v25 = vld [vmem:[#allocation2 + $0xb0] sm:$0xf]  ;;  %v5439_v26 = vld [vmem:[#allocation2 + $0xb8] sm:$0xf0]  ;;  %v4697_v27 = vor.u32 %v5437_v22, %v4694_v24  ;;  %v5434_v31 = vld [vmem:[#allocation2 + $0x94] sm:$0xf] }
  0x70   : > { %s7397_s3 = smov (!%p1089_p6, %s4602_s3), 3  ;;  %v4701_v28 = vor.u32 %v5439_v26, %v4700_v25  ;;  %1335 = vmatpush.bf16.msra.mxu0 %v4693_v23  ;;  %v4680_v29 = vld [vmem:[#allocation2 + $0x90] sm:$0xf]  ;;  %v5435_v30 = vld [vmem:[#allocation2 + $0x98] sm:$0xf0]  ;;  %s7390_s4 = sld [smem:[#allocation44_spill]] }
  0x71   : > { %s4603_s30 = sshll.u32 %s7397_s3, 3  ;;  %1349 = vmatpush.bf16.msra.mxu1 %v4697_v27  ;;  %v4681_v32 = vor.u32 %v5435_v30, %v4680_v29  ;;  %v4682_v33 = vld [vmem:[#allocation2 + $0x9c] sm:$0xf0]  ;;  %v4688_v34 = vld [vmem:[#allocation2 + $0x98] sm:$0xf]  ;;  %s7391_s13 = sld [smem:[#allocation46_spill]] }
  0x72   : > { %s1092_s11 = scalar_lea.vmem %s7387_s10, %s4603_s30  ;;  %1363 = vmatpush.bf16.msra.mxu2 %v4701_v28  ;;  %v5436_v35 = vld [vmem:[#allocation2 + $0xa0] sm:$0xf0]  ;;  %v4685_v36 = vor.u32 %v5434_v31, %v4682_v33  ;;  %v4668_v38 = vld [vmem:[#allocation2 + $0x78] sm:$0xf]  ;;  %v5431_v40 = vld [vmem:[#allocation2 + $0x7c] sm:$0xf] }
  0x73   : > { %v1101_v0 = vld [vmem:[%s1092_s11] sm:$0xff]  ;;  %v1102_v3 = vld [vmem:[%s1092_s11 + $0x8] sm:$0xff]  ;;  %v5855_v6 = vpop.eup %5854  ;;  %v4689_v37 = vor.u32 %v5436_v35, %v4688_v34  ;;  %v4658_v51 = vld [vmem:[#allocation2 + $0x6c] sm:$0xf0]  ;;  %s6582_s0 = smov 32   ;;  %s6583_s30 = smov 96  }
  0x74   : > { %v1103_v1 = vld [vmem:[%s7388_s16] sm:$0xff]  ;;  %v1114_v7 = vmul.f32 128.0, %v5855_v6  ;;  %vm1118_vm0 = vweird.f32 %v5855_v6  ;;  %1336 = vmatpush.bf16.msra.mxu0 %v4681_v32  ;;  %v4670_v42 = vld [vmem:[#allocation2 + $0x84] sm:$0xf0]  ;;  %v5433_v44 = vld [vmem:[#allocation2 + $0x88] sm:$0xf0] }
  0x75   : > { %v6918_v2 = vadd.f32 %v1103_v1, %v1101_v0  ;;  %v6921_v4 = vadd.f32 %v1103_v1, %v1102_v3  ;;  %1350 = vmatpush.bf16.msra.mxu1 %v4685_v36  ;;  %v5432_v39 = vld [vmem:[#allocation2 + $0x80] sm:$0xf0]  ;;  %v4676_v43 = vld [vmem:[#allocation2 + $0x80] sm:$0xf]  ;;  %v4673_v45 = vor.u32 %v5431_v40, %v4670_v42  ;;  %v5429_v48 = vld [vmem:[#allocation2 + $0x68] sm:$0xf0] }
  0x76   : > { %v1115_v8 = vsub.f32 1.0, %v1114_v7  ;;  %1364 = vmatpush.bf16.msra.mxu2 %v4689_v37  ;;  %v4669_v41 = vor.u32 %v5432_v39, %v4668_v38  ;;  %v4677_v46 = vor.u32 %v5433_v44, %v4676_v43  ;;  %v4656_v47 = vld [vmem:[#allocation2 + $0x60] sm:$0xf]  ;;  %v5428_v49 = vld [vmem:[#allocation2 + $0x64] sm:$0xf]  ;;  %s6584_s1 = smov 64  }
  0x77   : > { %1109 = vadd.xlane.f32.xlu0 %v6918_v2  ;;  %v4657_v50 = vor.u32 %v5429_v48, %v4656_v47  ;;  %v4664_v52 = vld [vmem:[#allocation2 + $0x68] sm:$0xf]  ;;  %v5430_v53 = vld [vmem:[#allocation2 + $0x70] sm:$0xf0]  ;;  %v4661_v54 = vor.u32 %v5428_v49, %v4658_v51  ;;  %v5425_v58 = vld [vmem:[#allocation2 + $0x4c] sm:$0xf] }
  0x78   : > { %v1116_v9 = vmul.f32 %v5855_v6, %v1115_v8  ;;  %1337 = vmatpush.bf16.msra.mxu0 %v4669_v41  ;;  %v4665_v55 = vor.u32 %v5430_v53, %v4664_v52  ;;  %v4644_v56 = vld [vmem:[#allocation2 + $0x48] sm:$0xf]  ;;  %v5426_v57 = vld [vmem:[#allocation2 + $0x50] sm:$0xf0]  ;;  %v4646_v60 = vld [vmem:[#allocation2 + $0x54] sm:$0xf0] }
  0x79   : > { %1351 = vmatpush.bf16.msra.mxu1 %v4673_v45  ;;  %v4645_v59 = vor.u32 %v5426_v57, %v4644_v56  ;;  %v4652_v61 = vld [vmem:[#allocation2 + $0x50] sm:$0xf]  ;;  %v5427_v62 = vld [vmem:[#allocation2 + $0x58] sm:$0xf0]  ;;  %v4649_v63 = vor.u32 %v5425_v58, %v4646_v60  ;;  %v5422_v5 = vld [vmem:[#allocation2 + $0x34] sm:$0xf] }
  0x7a   : > { %v1117_v10 = vadd.f32 %v5855_v6, %v1116_v9  ;;  %1365 = vmatpush.bf16.msra.mxu2 %v4677_v46  ;;  %v4653_v0 = vor.u32 %v5427_v62, %v4652_v61  ;;  %v4632_v1 = vld [vmem:[#allocation2 + $0x30] sm:$0xf]  ;;  %v5423_v3 = vld [vmem:[#allocation2 + $0x38] sm:$0xf0]  ;;  %v4634_v7 = vld [vmem:[#allocation2 + $0x3c] sm:$0xf0] }
  0x7b   : > { %v4640_v8 = vld [vmem:[#allocation2 + $0x38] sm:$0xf]  ;;  %v5424_v9 = vld [vmem:[#allocation2 + $0x40] sm:$0xf0]  ;;  %v4628_v20 = vld [vmem:[#allocation2 + $0x20] sm:$0xf] }
  0x7c   : > { %v6924_v11 = vsel %vm1118_vm0, %v5855_v6, %v1117_v10  ;;  %1338 = vmatpush.bf16.msra.mxu0 %v4657_v50  ;;  %v4633_v6 = vor.u32 %v5423_v3, %v4632_v1  ;;  %v4637_v10 = vor.u32 %v5422_v5, %v4634_v7  ;;  %v5421_v21 = vld [vmem:[#allocation2 + $0x28] sm:$0xf0]  ;;  %v4608_v24 = vld [vmem:[#allocation2] sm:$0xf]  ;;  %v5416_v26 = vld [vmem:[#allocation2 + $0x4] sm:$0xf] }
  0x7d   : > { %1352 = vmatpush.bf16.msra.mxu1 %v4661_v54  ;;  %v4629_v23 = vor.u32 %v5421_v21, %v4628_v20  ;;  %v5417_v25 = vld [vmem:[#allocation2 + $0x8] sm:$0xf0]  ;;  %v4610_v29 = vld [vmem:[#allocation2 + $0xc] sm:$0xf0]  ;;  %v4616_v30 = vld [vmem:[#allocation2 + $0x8] sm:$0xf] }
  0x7e   : > { %1366 = vmatpush.bf16.msra.mxu2 %v4665_v55  ;;  %v4609_v28 = vor.u32 %v5417_v25, %v4608_v24  ;;  %v5418_v31 = vld [vmem:[#allocation2 + $0x10] sm:$0xf0]  ;;  %v4613_v33 = vor.u32 %v5416_v26, %v4610_v29  ;;  %v5842_v52 = vld [vmem:[%s7389_s5] ss:$0 sm:$0xff]  ;;  %vm1698_vm8 = vcmask 1043456   ;;  %s7392_s11 = sld [smem:[#allocation41_spill]] }
  0x7f   : > { %1111 = vadd.xlane.f32.xlu0 %v6921_v4  ;;  %v4617_v34 = vor.u32 %v5418_v31, %v4616_v30  ;;  %v5843_v57 = vld [vmem:[%s7390_s4] ss:$0 sm:$0xff]  ;;  %vm1606_vm9 = vcmask 64512   ;;  %s7393_s16 = sld [smem:[#allocation48_spill]]  ;;  %s4605_s18 = sshll.u32 %s7397_s3, 2 }
  0x80   : > { %1339 = vmatpush.bf16.msra.mxu0 %v4645_v59  ;;  %s7394_s27 = sld [smem:[#allocation53_spill]] }
  0x81   : > { %1353 = vmatpush.bf16.msra.mxu1 %v4649_v63 }
  0x82   : > { %1367 = vmatpush.bf16.msra.mxu2 %v4653_v0 }
  0x84   : > { %1340 = vmatpush.bf16.msra.mxu0 %v4633_v6 }
  0x85   : > { %1354 = vmatpush.bf16.msra.mxu1 %v4637_v10 }
  0xea   : > { %v1110_v12 = vpop.xlane.xlu0 %1109 }
  0xeb   : > { %v1120_v13 = vmul.f32 %v6924_v11, %v1110_v12  ;;  %v4641_v12 = vor.u32 %v5424_v9, %v4640_v8 }
  0xed   : > { %v6928_v14 = vsub.f32 %v6918_v2, %v1120_v13  ;;  %1368 = vmatpush.bf16.msra.mxu2 %v4641_v12  ;;  %v4620_v13 = vld [vmem:[#allocation2 + $0x18] sm:$0xf] }
  0xef   : > { %v1124_v15 = vmul.f32 %v6928_v14, %v6928_v14 }
  0xf1   : > { %1126 = vadd.xlane.f32.xlu1 %v1124_v15  ;;  %v5420_v15 = vld [vmem:[#allocation2 + $0x20] sm:$0xf0]  ;;  %1369 = vmatpush.bf16.msra.mxu2 %v4629_v23 }
  0xf2   : > { %v1112_v16 = vpop.xlane.xlu0 %1111 }
  0xf3   : > { %v1121_v17 = vmul.f32 %v6924_v11, %v1112_v16  ;;  %v5419_v16 = vld [vmem:[#allocation2 + $0x1c] sm:$0xf] }
  0xf5   : > { %v6934_v18 = vsub.f32 %v6921_v4, %v1121_v17  ;;  %v4621_v17 = vor.u32 %v5420_v15, %v4620_v13  ;;  %1370 = vmatpush.bf16.msra.mxu2 %v4617_v34 }
  0xf7   : > { %v1125_v19 = vmul.f32 %v6934_v18, %v6934_v18  ;;  %1341 = vmatpush.bf16.msra.mxu0 %v4621_v17 }
  0xf9   : > { %1128 = vadd.xlane.f32.xlu1 %v1125_v19  ;;  %v4622_v19 = vld [vmem:[#allocation2 + $0x24] sm:$0xf0] }
  0xfa   : > { %v4625_v22 = vor.u32 %v5419_v16, %v4622_v19 }
  0xfb   : > { %1342 = vmatpush.bf16.msra.mxu0 %v4609_v28 }
  0xfc   : > { %1355 = vmatpush.bf16.msra.mxu1 %v4625_v22 }
 0x100   : > { %1356 = vmatpush.bf16.msra.mxu1 %v4613_v33 }
 0x164   : > { %v1127_v27 = vpop.xlane.xlu1 %1126 }
 0x165   : > { %v1130_v32 = vmul.f32 %v1127_v27, %v6924_v11 }
 0x167   : > { %v1132_v35 = vadd.f32 1e-05, %v1130_v32 }
 0x169   : > { %5856 = vrsqrt.f32 %v1132_v35  ;;  %vm1140_vm2 = vweird.f32 %v1132_v35 }
 0x16c   : > { %v1129_v36 = vpop.xlane.xlu1 %1128 }
 0x16d   : > { %v1131_v37 = vmul.f32 %v1129_v36, %v6924_v11 }
 0x16f   : > { %v5857_v38 = vpop.eup %5856  ;;  %v1133_v39 = vadd.f32 1e-05, %v1131_v37 }
 0x170   : > { %v1135_v40 = vmul.f32 %v5857_v38, %v1132_v35  ;;  %vm1141_vm1 = vweird.f32 %v5857_v38 }
 0x171   : > { %5858 = vrsqrt.f32 %v1133_v39  ;;  %vm1142_vm3 = vmor %vm1140_vm2, %vm1141_vm1  ;;  %vm1150_vm5 = vweird.f32 %v1133_v39 }
 0x172   : > { %v1136_v41 = vmul.f32 %v5857_v38, %v1135_v40 }
 0x174   : > { %v1137_v42 = vmul.f32 0.5, %v1136_v41 }
 0x176   : > { %v1138_v43 = vsub.f32 1.5, %v1137_v42 }
 0x177   : > { %v5859_v44 = vpop.eup %5858 }
 0x178   : > { %v1139_v45 = vmul.f32 %v5857_v38, %v1138_v43  ;;  %v1145_v46 = vmul.f32 %v5859_v44, %v1133_v39  ;;  %vm1151_vm4 = vweird.f32 %v5859_v44 }
 0x179   : > { %vm1152_vm6 = vmor %vm1150_vm5, %vm1151_vm4 }
 0x17a   : > { %v1146_v47 = vmul.f32 %v5859_v44, %v1145_v46  ;;  %v1143_v48 = vsel %vm1142_vm3, %v5857_v38, %v1139_v45 }
 0x17b   : > { %v1154_v51 = vmul.f32 %v1143_v48, %v6928_v14  ;;  %v1199_v14 = vld [vmem:[%s7391_s13] sm:$0x7] }
 0x17c   : > { %v1147_v49 = vmul.f32 0.5, %v1146_v47  ;;  %v1201_v62 = vperm.slane %v1199_v14, 0  ;;  %v1202_v63 = vperm.slane %v1199_v14, 1  ;;  %v1203_v22 = vperm.slane %v1199_v14, 2 }
 0x17d   : > { %v1159_v56 = vmul.f32 %v5842_v52, %v1154_v51 }
 0x17e   : > { %v1148_v50 = vsub.f32 1.5, %v1147_v49 }
 0x17f   : > { %v1164_v59 = vadd.f32 %v5843_v57, %v1159_v56 }
 0x180   : > { %v1149_v53 = vmul.f32 %v5859_v44, %v1148_v50 }
 0x182   : > { %v1153_v54 = vsel %vm1152_vm6, %v5859_v44, %v1149_v53 }
 0x183   : > { %v1155_v55 = vmul.f32 %v1153_v54, %v6934_v18 }
 0x185   : > { %v1160_v58 = vmul.f32 %v5842_v52, %v1155_v55 }
 0x187   : > { %v1165_v60 = vadd.f32 %v5843_v57, %v1160_v58 }
 0x189   : > { %v1198_v61 = vpack.c.bf16 %v1165_v60, %v1164_v59  ;;  %v6992_v60 = vld [vmem:[%s7392_s11] sm:$0xff] }
 0x18b   : > { %1343 = vmatmul.bf16.vlgmr.msra.gmra.mxu0 %v1198_v61  ;;  %1357 = vmatmul.bf16.vlgmr.msra.gmra.mxu1 %v1198_v61 }
 0x18c   : > { %1371 = vmatmul.bf16.vlgmr.msra.gmra.mxu2 %v1198_v61 }
 0x208   : > { %v1344_v0 = vpop.f32.mrf.mxu0  ;;  %v1358_v18 = vpop.f32.mrf.mxu1 }
 0x209   : > { %v1345_v1 = vadd.f32 %v1344_v0, %v1201_v62  ;;  %v1359_v3 = vadd.f32 %v1358_v18, %v1202_v63 }
 0x20b   : > { %1411 = vrot.lane.b32.xlu1 %v1359_v3, %s6582_s0  ;;  %v5812_v5 = vpack.i.bf16 %v1345_v1, %v1359_v3  ;;  %v1445_v6 = vpack.c.bf16 %v1359_v3, %v1359_v3  ;;  %v1437_v15 = vpack.c.bf16 %v1345_v1, %v1345_v1 }
 0x20d   : > { %5813 = vrot.lane.b32.xlu2 %v5812_v5, %s6583_s30  ;;  %v1458_v7 = vsel %vm1453_vm7, %v1445_v6, 0 }
 0x20e   : > { %1467 = vmatpush.bf16.xpose.msra.mxu3 %v1458_v7 }
 0x20f   : > { %v1372_v20 = vpop.f32.mrf.mxu2 }
 0x210   : > { %v1346_v8 = vpop.f32.mrf.mxu0  ;;  %v1360_v9 = vpop.f32.mrf.mxu1  ;;  %v6967_v24 = vadd.f32 %v1372_v20, %v1203_v22 }
 0x211   : > { %v1347_v10 = vadd.f32 %v1346_v8, %v1201_v62  ;;  %v1361_v12 = vadd.f32 %v1360_v9, %v1202_v63 }
 0x212   : > { %v1687_v40 = vpack.c.bf16 %v6967_v24, %v6967_v24 }
 0x213   : > { %1401 = vrot.lane.b32.xlu0 %v1361_v12, %s6583_s30  ;;  %1393 = vrot.lane.b32.xlu1 %v1347_v10, %s6582_s0  ;;  %v5817_v13 = vpack.i.bf16 %v1347_v10, %v1361_v12  ;;  %v1446_v16 = vpack.c.bf16 %v1361_v12, %v1361_v12  ;;  %v1438_v19 = vpack.c.bf16 %v1347_v10, %v1347_v10 }
 0x214   : > { %v1700_v44 = vsel %vm1698_vm8, %v1687_v40, 0 }
 0x215   : > { %5818 = vrot.lane.b32.xlu2 %v5817_v13, %s6584_s1  ;;  %4702 = vmatmul.msk.bf16.vlgmr.msra.gmra.mxu3 %vm1453_vm7, %v1437_v15  ;;  %v1477_v17 = vsel %vm1453_vm7, %v1446_v16, 0 }
 0x216   : > { %1486 = vmatpush.bf16.xpose.msrb.mxu3 %v1477_v17 }
 0x217   : > { %v1374_v21 = vpop.f32.mrf.mxu2 }
 0x218   : > { %v6965_v23 = vadd.f32 %v1374_v21, %v1203_v22 }
 0x21a   : > { %v5822_v25 = vpack.i.bf16 %v6965_v23, %v6967_v24  ;;  %v1688_v33 = vpack.c.bf16 %v6965_v23, %v6965_v23 }
 0x21b   : > { %1385 = vrot.lane.b32.xlu0 %v1345_v1, %s6584_s1 }
 0x21c   : > { %v1719_v37 = vsel %vm1698_vm8, %v1688_v33, 0 }
 0x21d   : > { %1405 = vrot.lane.b32.xlu2 %v1359_v3, %s6584_s1 }
 0x225   : > { %1391 = vrot.lane.b32.xlu2 %v1345_v1, %s6582_s0  ;;  %4703 = vmatmul.msk.bf16.vlgmr.msrb.gmra.mxu3 %vm1453_vm7, %v1438_v19 }
 0x22d   : > { %1381 = vrot.lane.b32.xlu2 %v1347_v10, %s6583_s30 }
 0x235   : > { %1413 = vrot.lane.b32.xlu2 %v1361_v12, %s6582_s0 }
 0x23d   : > { %5823 = vrot.lane.b32.xlu2 %v5822_v25, %s6583_s30 }
 0x267   : > { %v5814_v26 = vpop.permute.xlu2 %5813 }
 0x268   : > { %v5815_v27 = vunpack.i.l.bf16 %v5814_v26  ;;  %v5816_v30 = vunpack.i.h.bf16 %v5814_v26 }
 0x26a   : > { %v1447_v28 = vpack.c.bf16 %v5815_v27, %v5815_v27  ;;  %v1439_v34 = vpack.c.bf16 %v5816_v30, %v5816_v30 }
 0x26c   : > { %v1496_v29 = vsel %vm1453_vm7, %v1447_v28, 0 }
 0x26d   : > { %1505 = vmatpush.bf16.xpose.msra.mxu3 %v1496_v29 }
 0x26f   : > { %v5819_v31 = vpop.permute.xlu2 %5818 }
 0x270   : > { %v5820_v32 = vunpack.i.l.bf16 %v5819_v31  ;;  %v5821_v38 = vunpack.i.h.bf16 %v5819_v31 }
 0x272   : > { %v1450_v35 = vpack.c.bf16 %v5820_v32, %v5820_v32  ;;  %v1442_v42 = vpack.c.bf16 %v5821_v38, %v5821_v38 }
 0x274   : > { %4704 = vmatmul.msk.bf16.vlgmr.msra.gmra.mxu3 %vm1453_vm7, %v1439_v34  ;;  %v1553_v36 = vsel %vm1453_vm7, %v1450_v35, 0 }
 0x275   : > { %1562 = vmatpush.bf16.xpose.msrb.mxu2 %v1553_v36 }
 0x277   : > { %v1406_v39 = vpop.permute.xlu2 %1405 }
 0x278   : > { %v1449_v41 = vpack.c.bf16 %v1406_v39, %v1406_v39 }
 0x27a   : > { %v1534_v43 = vsel %vm1453_vm7, %v1449_v41, 0 }
 0x27b   : > { %1543 = vmatpush.bf16.xpose.msrb.mxu1 %v1534_v43 }
 0x27c   : > { %4707 = vmatmul.msk.bf16.vlgmr.msrb.gmra.mxu2 %vm1453_vm7, %v1442_v42 }
 0x27d   : > { %1728 = vmatpush.bf16.msra.mxu2 %v1719_v37  ;;  %v1412_v45 = vpop.permute.xlu1 %1411 }
 0x27e   : > { %v1451_v46 = vpack.c.bf16 %v1412_v45, %v1412_v45 }
 0x27f   : > { %v1392_v47 = vpop.permute.xlu2 %1391 }
 0x280   : > { %v1572_v48 = vsel %vm1453_vm7, %v1451_v46, 0  ;;  %v1443_v50 = vpack.c.bf16 %v1392_v47, %v1392_v47 }
 0x281   : > { %1581 = vmatpush.bf16.xpose.msrb.mxu3 %v1572_v48 }
 0x283   : > { %1709 = vmatpush.bf16.msra.mxu1 %v1700_v44  ;;  %v5827_v44 = vpack.i.bf16 %v6967_v24, %v6965_v23 }
 0x285   : > { %v1402_v49 = vpop.permute.xlu0 %1401  ;;  %v1394_v3 = vpop.permute.xlu1 %1393 }
 0x286   : > { %v1448_v51 = vpack.c.bf16 %v1402_v49, %v1402_v49  ;;  %v1444_v8 = vpack.c.bf16 %v1394_v3, %v1394_v3 }
 0x287   : > { %v1382_v52 = vpop.permute.xlu2 %1381 }
 0x288   : > { %4708 = vmatmul.msk.bf16.vlgmr.msrb.gmra.mxu3 %vm1453_vm7, %v1443_v50  ;;  %v1515_v53 = vsel %vm1453_vm7, %v1448_v51, 0  ;;  %v1440_v55 = vpack.c.bf16 %v1382_v52, %v1382_v52 }
 0x289   : > { %1524 = vmatpush.bf16.xpose.msrb.mxu0 %v1515_v53 }
 0x28d   : > { %v1386_v54 = vpop.permute.xlu0 %1385 }
 0x28e   : > { %v1441_v56 = vpack.c.bf16 %v1386_v54, %v1386_v54 }
 0x28f   : > { %v1414_v57 = vpop.permute.xlu2 %1413 }
 0x290   : > { %v1452_v58 = vpack.c.bf16 %v1414_v57, %v1414_v57  ;;  %4705 = vmatmul.msk.bf16.vlgmr.msrb.gmra.mxu0 %vm1453_vm7, %v1440_v55  ;;  %4706 = vmatmul.msk.bf16.vlgmr.msrb.gmra.mxu1 %vm1453_vm7, %v1441_v56 }
 0x292   : > { %v1591_v59 = vsel %vm1453_vm7, %v1452_v58, 0 }
 0x293   : > { %1600 = vmatpush.bf16.xpose.msra.mxu0 %v1591_v59 }
 0x297   : > { %v5824_v61 = vpop.permute.xlu2 %5823 }
 0x298   : > { %v5826_v14 = vunpack.i.h.bf16 %v5824_v61  ;;  %v5825_v62 = vunpack.i.l.bf16 %v5824_v61  ;;  %v1469_v63 = vpop.f32.mrf.mxu3 }
 0x299   : > { %v1470_v0 = vadd.f32 %v1469_v63, %v6992_v60 }
 0x29a   : > { %v1690_v18 = vpack.c.bf16 %v5826_v14, %v5826_v14  ;;  %v1689_v1 = vpack.c.bf16 %v5825_v62, %v5825_v62 }
 0x29b   : > { %v1607_v5 = vsel %vm1606_vm9, %v1470_v0, -inf }
 0x29c   : > { %1608 = vmax.xlane.f32.xlu2 %v1607_v5  ;;  %v1738_v6 = vsel %vm1698_vm8, %v1689_v1, 0  ;;  %v1757_v7 = vsel %vm1698_vm8, %v1690_v18, 0 }
 0x29d   : > { %1747 = vmatpush.bf16.msra.mxu3 %v1738_v6  ;;  %1766 = vmatpush.bf16.msrb.mxu0 %v1757_v7 }
 0x2a0   : > { %v1471_v9 = vpop.f32.mrf.mxu3  ;;  %4709 = vmatmul.msk.bf16.vlgmr.msra.gmra.mxu0 %vm1453_vm7, %v1444_v8 }
 0x2a8   : > { %v1488_v10 = vpop.f32.mrf.mxu3 }
 0x2a9   : > { %v1489_v12 = vadd.f32 %v1488_v10, %v6992_v60 }
 0x2ab   : > { %v1610_v13 = vsel %vm1606_vm9, %v1489_v12, -inf }
 0x2ac   : > { %1611 = vmax.xlane.f32.xlu0 %v1610_v13 }
 0x2b0   : > { %v1490_v15 = vpop.f32.mrf.mxu3 }
 0x2b4   : > { %1431 = vrot.lane.b32.xlu2 %v6967_v24, %s6582_s0 }
 0x2f7   : > { %v1507_v16 = vpop.f32.mrf.mxu3 }
 0x2f8   : > { %v1508_v17 = vadd.f32 %v1507_v16, %v6992_v60 }
 0x2fa   : > { %v1613_v19 = vsel %vm1606_vm9, %v1508_v17, -inf }
 0x2fb   : > { %1614 = vmax.xlane.f32.xlu1 %v1613_v19 }
 0x2ff   : > { %v1509_v20 = vpop.f32.mrf.mxu3  ;;  %v1564_v21 = vpop.f32.mrf.mxu2 }
 0x300   : > { %v7006_v22 = vadd.f32 %v1564_v21, %v6992_v60 }
 0x302   : > { %v1622_v25 = vsel %vm1606_vm9, %v7006_v22, -inf }
 0x303   : > { %1623 = vmax.xlane.f32.xlu1 %v1622_v25 }
 0x307   : > { %v1566_v26 = vpop.f32.mrf.mxu2 }
 0x30b   : > { %v1583_v27 = vpop.f32.mrf.mxu3 }
 0x30c   : > { %v1584_v47 = vadd.f32 %v1583_v27, %v6992_v60 }
 0x30d   : > { %v1526_v28 = vpop.f32.mrf.mxu0  ;;  %v1545_v29 = vpop.f32.mrf.mxu1 }
 0x30e   : > { %v1546_v30 = vadd.f32 %v1545_v29, %v6992_v60  ;;  %v1527_v36 = vadd.f32 %v1526_v28, %v6992_v60  ;;  %v1625_v51 = vsel %vm1606_vm9, %v1584_v47, -inf }
 0x30f   : > { %v1609_v31 = vpop.xlane.xlu2 %1608 }
 0x310   : > { %v1631_v32 = vsub.f32 %v1470_v0, %v1609_v31  ;;  %v1619_v33 = vsel %vm1606_vm9, %v1546_v30, -inf  ;;  %v1616_v41 = vsel %vm1606_vm9, %v1527_v36, -inf }
 0x311   : > { %1620 = vmax.xlane.f32.xlu0 %v1619_v33 }
 0x312   : > { %v1639_v34 = vmul.f32 1.442695, %v1631_v32 }
 0x313   : > { %v1585_v35 = vpop.f32.mrf.mxu3 }
 0x314   : > { %5860 = vpow2.f32 %v1639_v34  ;;  %v5441_v34 = vld [vmem:[#allocation4 + $0x8] sm:$0xff] }
 0x315   : > { %v1528_v37 = vpop.f32.mrf.mxu0  ;;  %v1547_v38 = vpop.f32.mrf.mxu1 }
 0x317   : > { %v1432_v39 = vpop.permute.xlu2 %1431 }
 0x318   : > { %v1693_v40 = vpack.c.bf16 %v1432_v39, %v1432_v39 }
 0x319   : > { %1617 = vmax.xlane.f32.xlu0 %v1616_v41 }
 0x31a   : > { %v5861_v42 = vpop.eup %5860  ;;  %v1814_v43 = vsel %vm1698_vm8, %v1693_v40, 0  ;;  %v5440_v40 = vld [vmem:[#allocation4] sm:$0xff] }
 0x31b   : > { %v1679_v45 = vpack.c.bf16 %v5861_v42, %v5861_v42  ;;  %1823 = vmatpush.bf16.msrb.mxu3 %v1814_v43  ;;  %v1655_v46 = vsel %vm1606_vm9, %v5861_v42, 0.0 }
 0x31c   : > { %5828 = vrot.lane.b32.xlu1 %v5827_v44, %s6584_s1  ;;  %1656 = vadd.xlane.f32.xlu2 %v1655_v46 }
 0x31d   : > { %v1602_v48 = vpop.f32.mrf.mxu0  ;;  %4710 = vmatmul.msk.bf16.vlgmr.msra.gmra.mxu1 %vm1606_vm9, %v1679_v45 }
 0x31e   : > { %v7023_v24 = vadd.f32 %v1602_v48, %v6992_v60 }
 0x31f   : > { %v1612_v49 = vpop.xlane.xlu0 %1611 }
 0x320   : > { %v1632_v50 = vsub.f32 %v1489_v12, %v1612_v49  ;;  %v1628_v54 = vsel %vm1606_vm9, %v7023_v24, -inf }
 0x321   : > { %1626 = vmax.xlane.f32.xlu0 %v1625_v51 }
 0x322   : > { %v1641_v52 = vmul.f32 1.442695, %v1632_v50 }
 0x324   : > { %5862 = vpow2.f32 %v1641_v52 }
 0x325   : > { %v1604_v53 = vpop.f32.mrf.mxu0 }
 0x329   : > { %1629 = vmax.xlane.f32.xlu0 %v1628_v54 }
 0x32a   : > { %v5863_v55 = vpop.eup %5862 }
 0x32b   : > { %v1680_v56 = vpack.c.bf16 %v5863_v55, %v5863_v55  ;;  %v1658_v57 = vsel %vm1606_vm9, %v5863_v55, 0.0 }
 0x32d   : > { %4711 = vmatmul.msk.bf16.vlgmr.msra.gmra.mxu2 %vm1606_vm9, %v1680_v56  ;;  %v5443_v56 = vld [vmem:[#allocation4 + $0x18] sm:$0xff] }
 0x33d   : > { %1433 = vrot.lane.b32.xlu0 %v6965_v23, %s6582_s0 }
 0x346   : > { %1659 = vadd.xlane.f32.xlu1 %v1658_v57  ;;  %v5442_v57 = vld [vmem:[#allocation4 + $0x10] sm:$0xff] }
 0x36e   : > { %v1615_v58 = vpop.xlane.xlu1 %1614 }
 0x36f   : > { %v1633_v59 = vsub.f32 %v1508_v17, %v1615_v58  ;;  %v5445_v58 = vld [vmem:[#allocation4 + $0x28] sm:$0xff] }
 0x371   : > { %v1643_v60 = vmul.f32 1.442695, %v1633_v59  ;;  %v5444_v59 = vld [vmem:[#allocation4 + $0x20] sm:$0xff] }
 0x373   : > { %5864 = vpow2.f32 %v1643_v60 }
 0x376   : > { %v1624_v63 = vpop.xlane.xlu1 %1623 }
 0x377   : > { %v1636_v0 = vsub.f32 %v7006_v22, %v1624_v63  ;;  %v5447_v63 = vld [vmem:[#allocation4 + $0x38] sm:$0xff] }
 0x379   : > { %v5865_v61 = vpop.eup %5864  ;;  %v1649_v3 = vmul.f32 1.442695, %v1636_v0 }
 0x37a   : > { %v1681_v14 = vpack.c.bf16 %v5865_v61, %v5865_v61  ;;  %v1661_v62 = vsel %vm1606_vm9, %v5865_v61, 0.0 }
 0x37b   : > { %1662 = vadd.xlane.f32.xlu1 %v1661_v62 }
 0x37c   : > { %4712 = vmatmul.msk.bf16.vlgmr.msra.gmra.mxu3 %vm1606_vm9, %v1681_v14 }
 0x37d   : > { %1960 = vmatpush.bf16.msra.mxu3 %v5445_v58 }
 0x381   : > { %1961 = vmatpush.bf16.msra.mxu3 %v5444_v59  ;;  %v4868_v59 = vld [vmem:[#allocation9 + $0xe0] sm:$0xf] }
 0x384   : > { %v1621_v18 = vpop.xlane.xlu0 %1620 }
 0x385   : > { %v1635_v1 = vsub.f32 %v1546_v30, %v1621_v18 }
 0x387   : > { %v1647_v23 = vmul.f32 1.442695, %v1635_v1  ;;  %v5446_v1 = vld [vmem:[#allocation4 + $0x30] sm:$0xff] }
 0x389   : > { %5866 = vpow2.f32 %v1647_v23 }
 0x38a   : > { %5868 = vpow2.f32 %v1649_v3 }
 0x38c   : > { %v1618_v5 = vpop.xlane.xlu0 %1617 }
 0x38d   : > { %v1634_v6 = vsub.f32 %v1527_v36, %v1618_v5 }
 0x38e   : > { %v5829_v7 = vpop.permute.xlu1 %5828 }
 0x38f   : > { %v5867_v8 = vpop.eup %5866  ;;  %v1645_v9 = vmul.f32 1.442695, %v1634_v6  ;;  %v5831_v10 = vunpack.i.h.bf16 %v5829_v7  ;;  %v5830_v12 = vunpack.i.l.bf16 %v5829_v7  ;;  %v1657_v49 = vpop.xlane.xlu2 %1656 }
 0x390   : > { %v1667_v13 = vsel %vm1606_vm9, %v5867_v8, 0.0  ;;  %v5869_v17 = vpop.eup %5868  ;;  %v1683_v25 = vpack.c.bf16 %v5867_v8, %v5867_v8 }
 0x391   : > { %5870 = vpow2.f32 %v1645_v9  ;;  %v1691_v15 = vpack.c.bf16 %v5831_v10, %v5831_v10  ;;  %v1692_v16 = vpack.c.bf16 %v5830_v12, %v5830_v12  ;;  %1668 = vadd.xlane.f32.xlu0 %v1667_v13  ;;  %v1684_v22 = vpack.c.bf16 %v5869_v17, %v5869_v17 }
 0x392   : > { %v1670_v39 = vsel %vm1606_vm9, %v5869_v17, 0.0 }
 0x393   : > { %v1776_v19 = vsel %vm1698_vm8, %v1691_v15, 0  ;;  %v1795_v20 = vsel %vm1698_vm8, %v1692_v16, 0 }
 0x394   : > { %1785 = vmatpush.bf16.msrb.mxu1 %v1776_v19  ;;  %1804 = vmatpush.bf16.msrb.mxu2 %v1795_v20  ;;  %v1627_v21 = vpop.xlane.xlu0 %1626 }
 0x395   : > { %v1637_v26 = vsub.f32 %v1584_v47, %v1627_v21 }
 0x397   : > { %v5871_v27 = vpop.eup %5870  ;;  %v1651_v28 = vmul.f32 1.442695, %v1637_v26  ;;  %4714 = vmatmul.msk.bf16.vlgmr.msrb.gmra.mxu1 %vm1606_vm9, %v1683_v25  ;;  %4715 = vmatmul.msk.bf16.vlgmr.msrb.gmra.mxu2 %vm1606_vm9, %v1684_v22 }
 0x398   : > { %v1682_v29 = vpack.c.bf16 %v5871_v27, %v5871_v27  ;;  %v1664_v30 = vsel %vm1606_vm9, %v5871_v27, 0.0  ;;  %1925 = vmatpush.bf16.msra.mxu2 %v5441_v34  ;;  %1896 = vmatpush.bf16.msra.mxu1 %v5443_v56 }
 0x399   : > { %5872 = vpow2.f32 %v1651_v28  ;;  %1665 = vadd.xlane.f32.xlu2 %v1664_v30 }
 0x39a   : > { %v1711_v31 = vpop.f32.mrf.mxu1  ;;  %4713 = vmatmul.msk.bf16.vlgmr.msrb.gmra.mxu0 %vm1606_vm9, %v1682_v29 }
 0x39c   : > { %v1630_v32 = vpop.xlane.xlu0 %1629  ;;  %1926 = vmatpush.bf16.msra.mxu2 %v5440_v40  ;;  %1897 = vmatpush.bf16.msra.mxu1 %v5442_v57 }
 0x39d   : > { %v1638_v33 = vsub.f32 %v7023_v24, %v1630_v32 }
 0x39f   : > { %v5873_v35 = vpop.eup %5872  ;;  %v1653_v36 = vmul.f32 1.442695, %v1638_v33 }
 0x3a0   : > { %v1685_v37 = vpack.c.bf16 %v5873_v35, %v5873_v35  ;;  %v1673_v38 = vsel %vm1606_vm9, %v5873_v35, 0.0 }
 0x3a1   : > { %5874 = vpow2.f32 %v1653_v36  ;;  %1674 = vadd.xlane.f32.xlu1 %v1673_v38  ;;  %1671 = vadd.xlane.f32.xlu2 %v1670_v39 }
 0x3a2   : > { %v1713_v41 = vpop.f32.mrf.mxu1  ;;  %4716 = vmatmul.msk.bf16.vlgmr.msrb.gmra.mxu3 %vm1606_vm9, %v1685_v37  ;;  %5876 = vrcp.f32 %v1657_v49 }
 0x3a7   : > { %v5875_v42 = vpop.eup %5874 }
 0x3a8   : > { %v1676_v43 = vsel %vm1606_vm9, %v5875_v42, 0.0  ;;  %v1686_v48 = vpack.c.bf16 %v5875_v42, %v5875_v42  ;;  %v5877_v52 = vpop.eup %5876  ;;  %v5844_v42 = vld [vmem:[%s7393_s16] ss:$0 sm:$0xff] }
 0x3a9   : > { %1677 = vadd.xlane.f32.xlu2 %v1676_v43  ;;  %v1856_v53 = vmul.f32 %v5877_v52, %v1711_v31 }
 0x3af   : > { %v1434_v44 = vpop.permute.xlu0 %1433 }
 0x3b0   : > { %v1694_v45 = vpack.c.bf16 %v1434_v44, %v1434_v44  ;;  %v1730_v46 = vpop.f32.mrf.mxu2 }
 0x3b2   : > { %v1833_v47 = vsel %vm1698_vm8, %v1694_v45, 0 }
 0x3b3   : > { %1842 = vmatpush.bf16.msra.mxu0 %v1833_v47 }
 0x3b6   : > { %4717 = vmatmul.msk.bf16.vlgmr.msra.gmra.mxu0 %vm1606_vm9, %v1686_v48 }
 0x3b7   : > { %1997 = vmatpush.bf16.msrb.mxu0 %v5447_v63  ;;  %v4876_v63 = vld [vmem:[#allocation9 + $0xe8] sm:$0xf] }
 0x3b8   : > { %v1732_v50 = vpop.f32.mrf.mxu2 }
 0x3b9   : > { %v1660_v51 = vpop.xlane.xlu1 %1659 }
 0x3ba   : > { %5878 = vrcp.f32 %v1660_v51 }
 0x3bb   : > { %1998 = vmatpush.bf16.msrb.mxu0 %v5446_v1 }
 0x3c0   : > { %v5879_v24 = vpop.eup %5878 }
 0x3c1   : > { %v1857_v54 = vmul.f32 %v5879_v24, %v1730_v46 }
 0x3c3   : > { %v1868_v55 = vpack.c.bf16 %v1857_v54, %v1856_v53 }
 0x3c5   : > { %4735 = vmatmul.msk.bf16.vlgmr.msra.gmra.mxu2 %vm1453_vm7, %v1868_v55 }
 0x3ee   : > { %v1663_v62 = vpop.xlane.xlu1 %1662 }
 0x3ef   : > { %5880 = vrcp.f32 %v1663_v62  ;;  %v4870_v62 = vld [vmem:[#allocation9 + $0xf0] sm:$0xf0] }
 0x3f5   : > { %v5881_v3 = vpop.eup %5880 }
 0x3ff   : > { %v1749_v60 = vpop.f32.mrf.mxu3 }
 0x400   : > { %v1858_v7 = vmul.f32 %v5881_v3, %v1749_v60  ;;  %v5478_v60 = vld [vmem:[#allocation9 + $0xec] sm:$0xf0]  ;;  %v4878_v3 = vld [vmem:[#allocation9 + $0xf8] sm:$0xf0] }
 0x404   : > { %v1669_v0 = vpop.xlane.xlu0 %1668 }
 0x407   : > { %v1751_v61 = vpop.f32.mrf.mxu3 }
 0x408   : > { %v5476_v61 = vld [vmem:[#allocation9 + $0xe4] sm:$0xf] }
 0x40c   : > { %v1666_v14 = vpop.xlane.xlu2 %1665 }
 0x40d   : > { %5882 = vrcp.f32 %v1666_v14  ;;  %v4869_v14 = vor.u32 %v5478_v60, %v4868_v59  ;;  %v4788_v60 = vld [vmem:[#allocation9 + $0x40] sm:$0xf] }
 0x40e   : > { %5884 = vrcp.f32 %v1669_v0  ;;  %v5479_v0 = vld [vmem:[#allocation9 + $0xf4] sm:$0xf0] }
 0x40f   : > { %v4877_v1 = vor.u32 %v5479_v0, %v4876_v63  ;;  %2270 = vmatpush.bf16.msrb.mxu1 %v4869_v14  ;;  %v5456_v14 = vld [vmem:[#allocation9 + $0x44] sm:$0xf]  ;;  %v4790_v63 = vld [vmem:[#allocation9 + $0x50] sm:$0xf0]  ;;  %v4796_v0 = vld [vmem:[#allocation9 + $0x48] sm:$0xf] }
 0x411   : > { %2298 = vmatpush.bf16.msrb.mxu3 %v4877_v1  ;;  %v4793_v1 = vor.u32 %v5456_v14, %v4790_v63 }
 0x413   : > { %v5883_v5 = vpop.eup %5882 }
 0x414   : > { %v1787_v18 = vpop.f32.mrf.mxu1  ;;  %v1672_v23 = vpop.xlane.xlu2 %1671 }
 0x415   : > { %5886 = vrcp.f32 %v1672_v23  ;;  %v5885_v12 = vpop.eup %5884  ;;  %v1675_v25 = vpop.xlane.xlu1 %1674  ;;  %v5477_v23 = vld [vmem:[#allocation9 + $0xec] sm:$0xf] }
 0x416   : > { %v1860_v16 = vmul.f32 %v5885_v12, %v1787_v18  ;;  %5888 = vrcp.f32 %v1675_v25  ;;  %v4873_v18 = vor.u32 %v5476_v61, %v4870_v62  ;;  %v4860_v12 = vld [vmem:[#allocation9 + $0xc8] sm:$0xf]  ;;  %v5468_v25 = vld [vmem:[#allocation9 + $0xa4] sm:$0xf]  ;;  %v5458_v61 = vld [vmem:[#allocation9 + $0x4c] sm:$0xf0] }
 0x417   : > { %v1768_v6 = vpop.f32.mrf.mxu0  ;;  %v4789_v62 = vor.u32 %v5458_v61, %v4788_v60  ;;  %v5846_v61 = vld [vmem:[#allocation7] ss:$0 sm:$0xff] }
 0x418   : > { %v1859_v8 = vmul.f32 %v5883_v5, %v1768_v6  ;;  %v4881_v5 = vor.u32 %v5477_v23, %v4878_v3  ;;  %2284 = vmatpush.bf16.msrb.mxu2 %v4873_v18  ;;  %v4852_v6 = vld [vmem:[#allocation9 + $0xc0] sm:$0xf]  ;;  %v5459_v18 = vld [vmem:[#allocation9 + $0x54] sm:$0xf0]  ;;  %v5457_v3 = vld [vmem:[#allocation9 + $0x4c] sm:$0xf] }
 0x419   : > { %v4797_v23 = vor.u32 %v5459_v18, %v4796_v0  ;;  %v5487_v18 = vld [vmem:[#allocation10 + $0x38] sm:$0xff] }
 0x41a   : > { %v1874_v9 = vpack.c.bf16 %v1859_v8, %v1858_v7  ;;  %v1806_v10 = vpop.f32.mrf.mxu2  ;;  %v5474_v7 = vld [vmem:[#allocation9 + $0xcc] sm:$0xf0]  ;;  %v5472_v8 = vld [vmem:[#allocation9 + $0xc4] sm:$0xf]  ;;  %2312 = vmatpush.bf16.msra.mxu0 %v4881_v5  ;;  %v4798_v5 = vld [vmem:[#allocation9 + $0x58] sm:$0xf0] }
 0x41b   : > { %v5887_v13 = vpop.eup %5886 }
 0x41c   : > { %v1789_v15 = vpop.f32.mrf.mxu1  ;;  %4726 = vmatmul.msk.bf16.vlgmr.msra.gmra.mxu1 %vm1453_vm7, %v1874_v9  ;;  %v1861_v17 = vmul.f32 %v5887_v13, %v1806_v10  ;;  %v1678_v26 = vpop.xlane.xlu2 %1677  ;;  %v4853_v9 = vor.u32 %v5474_v7, %v4852_v6  ;;  %v4854_v10 = vld [vmem:[#allocation9 + $0xd0] sm:$0xf0]  ;;  %v5475_v13 = vld [vmem:[#allocation9 + $0xd4] sm:$0xf0]  ;;  %v4801_v6 = vor.u32 %v5457_v3, %v4798_v5  ;;  %v4772_v7 = vld [vmem:[#allocation9 + $0x20] sm:$0xf] }
 0x41d   : > { %5890 = vrcp.f32 %v1678_v26  ;;  %v5889_v28 = vpop.eup %5888  ;;  %v4857_v15 = vor.u32 %v5472_v8, %v4854_v10  ;;  %v5454_v8 = vld [vmem:[#allocation9 + $0x2c] sm:$0xf0]  ;;  %v5495_v3 = vld [vmem:[#allocation10 + $0x78] sm:$0xff]  ;;  %v5485_v5 = vld [vmem:[#allocation10 + $0x28] sm:$0xff] }
 0x41e   : > { %v1938_v19 = vpack.c.bf16 %v1861_v17, %v1860_v16  ;;  %v4861_v16 = vor.u32 %v5475_v13, %v4860_v12  ;;  %v5473_v17 = vld [vmem:[#allocation9 + $0xcc] sm:$0xf]  ;;  %2271 = vmatpush.bf16.msrb.mxu1 %v4853_v9  ;;  %v5452_v9 = vld [vmem:[#allocation9 + $0x24] sm:$0xf]  ;;  %v4773_v10 = vor.u32 %v5454_v8, %v4772_v7  ;;  %v4774_v12 = vld [vmem:[#allocation9 + $0x30] sm:$0xf0] }
 0x41f   : > { %v1770_v20 = vpop.f32.mrf.mxu0  ;;  %2285 = vmatpush.bf16.msrb.mxu2 %v4857_v15  ;;  %v4780_v13 = vld [vmem:[#allocation9 + $0x28] sm:$0xf]  ;;  %v5455_v15 = vld [vmem:[#allocation9 + $0x34] sm:$0xf0]  ;;  %v5494_v7 = vld [vmem:[#allocation10 + $0x70] sm:$0xff] }
 0x420   : > { %4744 = vmatmul.msk.bf16.vlgmr.msra.gmra.mxu3 %vm1453_vm7, %v1938_v19  ;;  %v4862_v19 = vld [vmem:[#allocation9 + $0xd8] sm:$0xf0]  ;;  %v5502_v8 = vld [vmem:[#allocation10 + $0xb0] sm:$0xff] }
 0x421   : > { %v4865_v20 = vor.u32 %v5473_v17, %v4862_v19  ;;  %2299 = vmatpush.bf16.msrb.mxu3 %v4861_v16  ;;  %v4777_v17 = vor.u32 %v5452_v9, %v4774_v12  ;;  %v4781_v19 = vor.u32 %v5455_v15, %v4780_v13  ;;  %v5484_v9 = vld [vmem:[#allocation10 + $0x20] sm:$0xff]  ;;  %v5493_v12 = vld [vmem:[#allocation10 + $0x68] sm:$0xff]  ;;  %v5483_v15 = vld [vmem:[#allocation10 + $0x18] sm:$0xff] }
 0x422   : > { %v1808_v21 = vpop.f32.mrf.mxu2  ;;  %v5501_v13 = vld [vmem:[#allocation10 + $0xa8] sm:$0xff] }
 0x423   : > { %v5891_v29 = vpop.eup %5890  ;;  %v4836_v21 = vld [vmem:[#allocation9 + $0xa0] sm:$0xf]  ;;  %2313 = vmatpush.bf16.msra.mxu0 %v4865_v20  ;;  %v5453_v20 = vld [vmem:[#allocation9 + $0x2c] sm:$0xf] }
 0x425   : > { %v1825_v22 = vpop.f32.mrf.mxu3 }
 0x426   : > { %v1862_v31 = vmul.f32 %v5889_v28, %v1825_v22  ;;  %v5470_v22 = vld [vmem:[#allocation9 + $0xac] sm:$0xf0]  ;;  %v4844_v28 = vld [vmem:[#allocation9 + $0xa8] sm:$0xf] }
 0x427   : > { %v4837_v26 = vor.u32 %v5470_v22, %v4836_v21  ;;  %v4782_v21 = vld [vmem:[#allocation9 + $0x38] sm:$0xf0]  ;;  %v4756_v22 = vld [vmem:[#allocation9] sm:$0xf] }
 0x429   : > { %2272 = vmatpush.bf16.msrb.mxu1 %v4837_v26  ;;  %v4785_v26 = vor.u32 %v5453_v20, %v4782_v21  ;;  %v5482_v20 = vld [vmem:[#allocation10 + $0x10] sm:$0xff] }
 0x42a   : > { %v5506_v21 = vld [vmem:[#allocation10 + $0xd0] sm:$0xff] }
 0x42d   : > { %v1827_v27 = vpop.f32.mrf.mxu3 }
 0x42e   : > { %v4838_v27 = vld [vmem:[#allocation9 + $0xb0] sm:$0xf0] }
 0x433   : > { %v1844_v30 = vpop.f32.mrf.mxu0 }
 0x434   : > { %v1863_v32 = vmul.f32 %v5891_v29, %v1844_v30  ;;  %v5471_v29 = vld [vmem:[#allocation9 + $0xb4] sm:$0xf0]  ;;  %v4841_v30 = vor.u32 %v5468_v25, %v4838_v27  ;;  %v5450_v27 = vld [vmem:[#allocation9 + $0xc] sm:$0xf0] }
 0x436   : > { %v1975_v33 = vpack.c.bf16 %v1863_v32, %v1862_v31  ;;  %v4845_v31 = vor.u32 %v5471_v29, %v4844_v28  ;;  %v5469_v32 = vld [vmem:[#allocation9 + $0xac] sm:$0xf]  ;;  %2286 = vmatpush.bf16.msrb.mxu2 %v4841_v30  ;;  %v5448_v28 = vld [vmem:[#allocation9 + $0x4] sm:$0xf]  ;;  %v4758_v29 = vld [vmem:[#allocation9 + $0x10] sm:$0xf0]  ;;  %v4757_v30 = vor.u32 %v5450_v27, %v4756_v22 }
 0x437   : > { %v5491_v22 = vld [vmem:[#allocation10 + $0x58] sm:$0xff]  ;;  %v5481_v27 = vld [vmem:[#allocation10 + $0x8] sm:$0xff] }
 0x438   : > { %4753 = vmatmul.msk.bf16.vlgmr.msrb.gmra.mxu0 %vm1453_vm7, %v1975_v33  ;;  %v4846_v33 = vld [vmem:[#allocation9 + $0xb8] sm:$0xf0]  ;;  %2300 = vmatpush.bf16.msrb.mxu3 %v4845_v31  ;;  %v4761_v31 = vor.u32 %v5448_v28, %v4758_v29  ;;  %v5505_v28 = vld [vmem:[#allocation10 + $0xc8] sm:$0xff]  ;;  %v5490_v29 = vld [vmem:[#allocation10 + $0x50] sm:$0xff] }
 0x43b   : > { %v1846_v34 = vpop.f32.mrf.mxu0 }
 0x43c   : > { %v4849_v34 = vor.u32 %v5469_v32, %v4846_v33  ;;  %v4764_v32 = vld [vmem:[#allocation9 + $0x8] sm:$0xf]  ;;  %v5451_v33 = vld [vmem:[#allocation9 + $0x14] sm:$0xf0] }
 0x43e   : > { %2314 = vmatpush.bf16.msra.mxu0 %v4849_v34  ;;  %v5449_v34 = vld [vmem:[#allocation9 + $0xc] sm:$0xf] }
 0x448   : > { %v1928_v36 = vpop.f32.mrf.mxu2 }
 0x450   : > { %v1930_v45 = vpop.f32.mrf.mxu2 }
 0x499   : > { %v1899_v35 = vpop.f32.mrf.mxu1 }
 0x49a   : > { %v1929_v38 = vadd.f32 %v1928_v36, %v1899_v35  ;;  %v4820_v35 = vld [vmem:[#allocation9 + $0x80] sm:$0xf]  ;;  %v5466_v36 = vld [vmem:[#allocation9 + $0x8c] sm:$0xf0] }
 0x4a1   : > { %v1901_v43 = vpop.f32.mrf.mxu1 }
 0x4a2   : > { %v1931_v47 = vadd.f32 %v1930_v45, %v1901_v43  ;;  %v4830_v45 = vld [vmem:[#allocation9 + $0x98] sm:$0xf0] }
 0x4a3   : > { %v1963_v37 = vpop.f32.mrf.mxu3 }
 0x4a4   : > { %v1968_v39 = vadd.f32 %v1963_v37, %v1929_v38  ;;  %v5464_v37 = vld [vmem:[#allocation9 + $0x84] sm:$0xf]  ;;  %v4821_v38 = vor.u32 %v5466_v36, %v4820_v35  ;;  %v4765_v36 = vor.u32 %v5451_v33, %v4764_v32 }
 0x4a5   : > { %v5480_v33 = vld [vmem:[#allocation10] sm:$0xff] }
 0x4a6   : > { %2273 = vmatpush.bf16.msrb.mxu1 %v4821_v38 }
 0x4ab   : > { %v1965_v46 = vpop.f32.mrf.mxu3 }
 0x4ac   : > { %v1969_v49 = vadd.f32 %v1965_v46, %v1931_v47  ;;  %v4804_v47 = vld [vmem:[#allocation9 + $0x60] sm:$0xf] }
 0x4b5   : > { %v2000_v40 = vpop.f32.mrf.mxu0 }
 0x4b6   : > { %v2005_v41 = vadd.f32 %v2000_v40, %v1968_v39  ;;  %v4822_v39 = vld [vmem:[#allocation9 + $0x90] sm:$0xf0]  ;;  %v4828_v40 = vld [vmem:[#allocation9 + $0x88] sm:$0xf] }
 0x4b8   : > { %v2007_v44 = vadd.f32 %v2005_v41, %v6918_v2  ;;  %v5467_v41 = vld [vmem:[#allocation9 + $0x94] sm:$0xf0] }
 0x4b9   : > { %v4829_v43 = vor.u32 %v5467_v41, %v4828_v40 }
 0x4ba   : > { %v7056_v48 = vadd.f32 %v5844_v42, %v2007_v44  ;;  %v5465_v44 = vld [vmem:[#allocation9 + $0x8c] sm:$0xf] }
 0x4bb   : > { %v4833_v46 = vor.u32 %v5465_v44, %v4830_v45  ;;  %2301 = vmatpush.bf16.msrb.mxu3 %v4829_v43 }
 0x4bc   : > { %2017 = vadd.xlane.f32.xlu0 %v7056_v48 }
 0x4bd   : > { %v2002_v50 = vpop.f32.mrf.mxu0  ;;  %2315 = vmatpush.bf16.msra.mxu0 %v4833_v46 }
 0x4be   : > { %v2006_v51 = vadd.f32 %v2002_v50, %v1969_v49  ;;  %v5462_v49 = vld [vmem:[#allocation9 + $0x6c] sm:$0xf0]  ;;  %v5460_v50 = vld [vmem:[#allocation9 + $0x64] sm:$0xf] }
 0x4c0   : > { %v2008_v52 = vadd.f32 %v2006_v51, %v6921_v4  ;;  %v4805_v51 = vor.u32 %v5462_v49, %v4804_v47 }
 0x4c2   : > { %v7060_v24 = vadd.f32 %v5844_v42, %v2008_v52  ;;  %v4825_v42 = vor.u32 %v5464_v37, %v4822_v39  ;;  %v4806_v52 = vld [vmem:[#allocation9 + $0x70] sm:$0xf0]  ;;  %2274 = vmatpush.bf16.msrb.mxu1 %v4805_v51  ;;  %v4766_v37 = vld [vmem:[#allocation9 + $0x18] sm:$0xf0] }
 0x4c3   : > { %v4769_v38 = vor.u32 %v5449_v34, %v4766_v37  ;;  %v5504_v34 = vld [vmem:[#allocation10 + $0xc0] sm:$0xff]  ;;  %v5497_v37 = vld [vmem:[#allocation10 + $0x88] sm:$0xff] }
 0x4c4   : > { %2019 = vadd.xlane.f32.xlu1 %v7060_v24  ;;  %2287 = vmatpush.bf16.msrb.mxu2 %v4825_v42 }
 0x4c6   : > { %2275 = vmatpush.bf16.msrb.mxu1 %v4789_v62 }
 0x4ca   : > { %2276 = vmatpush.bf16.msrb.mxu1 %v4773_v10  ;;  %v5508_v10 = vld [vmem:[#allocation10 + $0xe0] sm:$0xff] }
 0x4ce   : > { %2277 = vmatpush.bf16.msrb.mxu1 %v4757_v30  ;;  %v5498_v30 = vld [vmem:[#allocation10 + $0x90] sm:$0xff] }
 0x4d2   : > { %2658 = vmatpush.bf16.msra.mxu1 %v5487_v18 }
 0x52f   : > { %v2018_v53 = vpop.xlane.xlu0 %2017 }
 0x530   : > { %v2021_v54 = vmul.f32 %v2018_v53, %v6924_v11  ;;  %v4812_v53 = vld [vmem:[#allocation9 + $0x68] sm:$0xf] }
 0x532   : > { %v7065_v2 = vsub.f32 %v7056_v48, %v2021_v54  ;;  %v5463_v54 = vld [vmem:[#allocation9 + $0x74] sm:$0xf0] }
 0x534   : > { %v2025_v55 = vmul.f32 %v7065_v2, %v7065_v2 }
 0x536   : > { %2027 = vadd.xlane.f32.xlu2 %v2025_v55  ;;  %v4809_v55 = vor.u32 %v5460_v50, %v4806_v52 }
 0x537   : > { %v2020_v56 = vpop.xlane.xlu1 %2019 }
 0x538   : > { %v2022_v57 = vmul.f32 %v2020_v56, %v6924_v11  ;;  %v4813_v56 = vor.u32 %v5463_v54, %v4812_v53  ;;  %2288 = vmatpush.bf16.msrb.mxu2 %v4809_v55 }
 0x53a   : > { %v7071_v58 = vsub.f32 %v7060_v24, %v2022_v57  ;;  %v5461_v57 = vld [vmem:[#allocation9 + $0x6c] sm:$0xf]  ;;  %2302 = vmatpush.bf16.msrb.mxu3 %v4813_v56  ;;  %v5845_v56 = vld [vmem:[#allocation6] ss:$0 sm:$0xff] }
 0x53c   : > { %v2026_v4 = vmul.f32 %v7071_v58, %v7071_v58  ;;  %2289 = vmatpush.bf16.msrb.mxu2 %v4793_v1  ;;  %v5511_v1 = vld [vmem:[#allocation10 + $0xf8] sm:$0xff] }
 0x53e   : > { %2029 = vadd.xlane.f32.xlu0 %v2026_v4  ;;  %v4814_v4 = vld [vmem:[#allocation9 + $0x78] sm:$0xf0]  ;;  %2303 = vmatpush.bf16.msrb.mxu3 %v4797_v23  ;;  %v5510_v23 = vld [vmem:[#allocation10 + $0xf0] sm:$0xff] }
 0x53f   : > { %v4817_v59 = vor.u32 %v5461_v57, %v4814_v4 }
 0x540   : > { %2290 = vmatpush.bf16.msrb.mxu2 %v4777_v17  ;;  %v5492_v17 = vld [vmem:[#allocation10 + $0x60] sm:$0xff] }
 0x541   : > { %2316 = vmatpush.bf16.msra.mxu0 %v4817_v59 }
 0x542   : > { %2304 = vmatpush.bf16.msrb.mxu3 %v4781_v19  ;;  %v5500_v19 = vld [vmem:[#allocation10 + $0xa0] sm:$0xff] }
 0x544   : > { %2291 = vmatpush.bf16.msrb.mxu2 %v4761_v31 }
 0x545   : > { %2317 = vmatpush.bf16.msra.mxu0 %v4801_v6  ;;  %v5509_v6 = vld [vmem:[#allocation10 + $0xe8] sm:$0xff] }
 0x546   : > { %2305 = vmatpush.bf16.msrb.mxu3 %v4765_v36  ;;  %v5489_v36 = vld [vmem:[#allocation10 + $0x48] sm:$0xff] }
 0x548   : > { %2672 = vmatpush.bf16.msra.mxu2 %v5495_v3 }
 0x549   : > { %2318 = vmatpush.bf16.msra.mxu0 %v4785_v26  ;;  %v7082_v26 = vld [vmem:[%s7328_s12] sm:$0xf] }
 0x54a   : > { %v2102_v31 = vperm.slane %v7082_v26, 0  ;;  %v2105_v32 = vperm.slane %v7082_v26, 3 }
 0x54c   : > { %2673 = vmatpush.bf16.msra.mxu2 %v5494_v7 }
 0x54d   : > { %2319 = vmatpush.bf16.msra.mxu0 %v4769_v38 }
 0x550   : > { %2674 = vmatpush.bf16.msra.mxu2 %v5493_v12 }
 0x551   : > { %2700 = vmatpush.bf16.msrb.mxu0 %v5511_v1 }
 0x554   : > { %2675 = vmatpush.bf16.msra.mxu2 %v5492_v17 }
 0x555   : > { %2701 = vmatpush.bf16.msrb.mxu0 %v5510_v23 }
 0x558   : > { %2676 = vmatpush.bf16.msra.mxu2 %v5491_v22 }
 0x559   : > { %2702 = vmatpush.bf16.msrb.mxu0 %v5509_v6 }
 0x55c   : > { %2677 = vmatpush.bf16.msra.mxu2 %v5490_v29 }
 0x55d   : > { %2703 = vmatpush.bf16.msrb.mxu0 %v5508_v10 }
 0x560   : > { %2678 = vmatpush.bf16.msra.mxu2 %v5489_v36 }
 0x5a9   : > { %v2028_v16 = vpop.xlane.xlu2 %2027 }
 0x5aa   : > { %v2031_v25 = vmul.f32 %v2028_v16, %v6924_v11  ;;  %v5507_v16 = vld [vmem:[#allocation10 + $0xd8] sm:$0xff] }
 0x5ab   : > { %2704 = vmatpush.bf16.msrb.mxu0 %v5507_v16 }
 0x5ac   : > { %v2033_v35 = vadd.f32 1e-05, %v2031_v25  ;;  %v5499_v25 = vld [vmem:[#allocation10 + $0x98] sm:$0xff] }
 0x5ae   : > { %5892 = vrsqrt.f32 %v2033_v35  ;;  %vm2041_vm11 = vweird.f32 %v2033_v35 }
 0x5af   : > { %2705 = vmatpush.bf16.msrb.mxu0 %v5506_v21 }
 0x5b1   : > { %v2030_v39 = vpop.xlane.xlu0 %2029 }
 0x5b2   : > { %v2032_v40 = vmul.f32 %v2030_v39, %v6924_v11 }
 0x5b3   : > { %2706 = vmatpush.bf16.msrb.mxu0 %v5505_v28 }
 0x5b4   : > { %v5893_v41 = vpop.eup %5892  ;;  %v2034_v42 = vadd.f32 1e-05, %v2032_v40 }
 0x5b5   : > { %v2036_v43 = vmul.f32 %v5893_v41, %v2033_v35  ;;  %vm2042_vm10 = vweird.f32 %v5893_v41 }
 0x5b6   : > { %5894 = vrsqrt.f32 %v2034_v42  ;;  %vm2043_vm12 = vmor %vm2041_vm11, %vm2042_vm10  ;;  %vm2051_vm14 = vweird.f32 %v2034_v42 }
 0x5b7   : > { %v2037_v44 = vmul.f32 %v5893_v41, %v2036_v43  ;;  %2707 = vmatpush.bf16.msrb.mxu0 %v5504_v34  ;;  %v5488_v43 = vld [vmem:[#allocation10 + $0x40] sm:$0xff] }
 0x5b8   : > { %2679 = vmatpush.bf16.msra.mxu2 %v5488_v43 }
 0x5b9   : > { %v2038_v45 = vmul.f32 0.5, %v2037_v44  ;;  %v5496_v44 = vld [vmem:[#allocation10 + $0x80] sm:$0xff] }
 0x5bb   : > { %v2039_v46 = vsub.f32 1.5, %v2038_v45 }
 0x5bc   : > { %v5895_v47 = vpop.eup %5894 }
 0x5bd   : > { %v2040_v49 = vmul.f32 %v5893_v41, %v2039_v46  ;;  %v2046_v50 = vmul.f32 %v5895_v47, %v2034_v42  ;;  %vm2052_vm13 = vweird.f32 %v5895_v47  ;;  %v2103_v42 = vperm.slane %v7082_v26, 1 }
 0x5be   : > { %vm2053_vm15 = vmor %vm2051_vm14, %vm2052_vm13  ;;  %v2104_v46 = vperm.slane %v7082_v26, 2 }
 0x5bf   : > { %v2047_v51 = vmul.f32 %v5895_v47, %v2046_v50  ;;  %v2044_v52 = vsel %vm2043_vm12, %v5893_v41, %v2040_v49 }
 0x5c0   : > { %v2055_v55 = vmul.f32 %v2044_v52, %v7065_v2  ;;  %v5486_v2 = vld [vmem:[#allocation10 + $0x30] sm:$0xff] }
 0x5c1   : > { %v2048_v53 = vmul.f32 0.5, %v2047_v51  ;;  %2659 = vmatpush.bf16.msra.mxu1 %v5486_v2 }
 0x5c2   : > { %v2060_v60 = vmul.f32 %v5845_v56, %v2055_v55 }
 0x5c3   : > { %v2049_v54 = vsub.f32 1.5, %v2048_v53 }
 0x5c4   : > { %v2065_v62 = vadd.f32 %v5846_v61, %v2060_v60 }
 0x5c5   : > { %v2050_v57 = vmul.f32 %v5895_v47, %v2049_v54  ;;  %2660 = vmatpush.bf16.msra.mxu1 %v5485_v5 }
 0x5c7   : > { %v2054_v4 = vsel %vm2053_vm15, %v5895_v47, %v2050_v57 }
 0x5c8   : > { %v2056_v59 = vmul.f32 %v2054_v4, %v7071_v58  ;;  %v5503_v58 = vld [vmem:[#allocation10 + $0xb8] sm:$0xff] }
 0x5c9   : > { %2686 = vmatpush.bf16.msra.mxu3 %v5503_v58  ;;  %2661 = vmatpush.bf16.msra.mxu1 %v5484_v9 }
 0x5ca   : > { %v2061_v14 = vmul.f32 %v5845_v56, %v2056_v59 }
 0x5cc   : > { %v2066_v63 = vadd.f32 %v5846_v61, %v2061_v14 }
 0x5cd   : > { %2687 = vmatpush.bf16.msra.mxu3 %v5502_v8  ;;  %2662 = vmatpush.bf16.msra.mxu1 %v5483_v15 }
 0x5ce   : > { %v2099_v0 = vpack.c.bf16 %v2066_v63, %v2065_v62 }
 0x5d0   : > { %2278 = vmatmul.bf16.vlgmr.msrb.gmra.mxu1 %v2099_v0  ;;  %2292 = vmatmul.bf16.vlgmr.msrb.gmra.mxu2 %v2099_v0 }
 0x5d1   : > { %2306 = vmatmul.bf16.vlgmr.msrb.gmra.mxu3 %v2099_v0  ;;  %2320 = vmatmul.bf16.vlgmr.msra.gmra.mxu0 %v2099_v0 }
 0x5d2   : > { %2688 = vmatpush.bf16.msra.mxu3 %v5501_v13  ;;  %2663 = vmatpush.bf16.msra.mxu1 %v5482_v20 }
 0x5d6   : > { %2689 = vmatpush.bf16.msra.mxu3 %v5500_v19  ;;  %2664 = vmatpush.bf16.msra.mxu1 %v5481_v27 }
 0x5da   : > { %2690 = vmatpush.bf16.msra.mxu3 %v5499_v25  ;;  %2665 = vmatpush.bf16.msra.mxu1 %v5480_v33 }
 0x5de   : > { %2691 = vmatpush.bf16.msra.mxu3 %v5498_v30 }
 0x5e2   : > { %2692 = vmatpush.bf16.msra.mxu3 %v5497_v37 }
 0x5e6   : > { %2693 = vmatpush.bf16.msra.mxu3 %v5496_v44 }
 0x64d   : > { %v2279_v35 = vpop.f32.mrf.mxu1 }
 0x64e   : > { %v7086_v38 = vadd.f32 %v2279_v35, %v2102_v31  ;;  %v2321_v39 = vpop.f32.mrf.mxu0 }
 0x64f   : > { %v7088_v40 = vadd.f32 %v2321_v39, %v2105_v32 }
 0x650   : > { %v2334_v41 = vmul.f32 %v7086_v38, %v7086_v38  ;;  %v2326_v44 = vmul.f32 0.5, %v7086_v38 }
 0x651   : > { %v2337_v45 = vmul.f32 %v7088_v40, %v7088_v40 }
 0x652   : > { %v2342_v47 = vmul.f32 %v2334_v41, %v7086_v38 }
 0x653   : > { %v2345_v49 = vmul.f32 %v2337_v45, %v7088_v40  ;;  %v2293_v50 = vpop.f32.mrf.mxu2 }
 0x654   : > { %v2350_v51 = vmul.f32 0.044715, %v2342_v47  ;;  %v7098_v52 = vadd.f32 %v2293_v50, %v2103_v42  ;;  %v2307_v53 = vpop.f32.mrf.mxu3 }
 0x655   : > { %v2353_v54 = vmul.f32 0.044715, %v2345_v49  ;;  %v7100_v55 = vadd.f32 %v2307_v53, %v2104_v46  ;;  %v2281_v56 = vpop.f32.mrf.mxu1  ;;  %v2329_v49 = vmul.f32 0.5, %v7088_v40 }
 0x656   : > { %v2358_v57 = vadd.f32 %v2350_v51, %v7086_v38  ;;  %v2335_v4 = vmul.f32 %v7098_v52, %v7098_v52  ;;  %v2282_v59 = vadd.f32 %v2281_v56, %v2102_v31  ;;  %v2323_v60 = vpop.f32.mrf.mxu0  ;;  %v2327_v38 = vmul.f32 0.5, %v7098_v52 }
 0x657   : > { %v2361_v61 = vadd.f32 %v2353_v54, %v7088_v40  ;;  %v2336_v14 = vmul.f32 %v7100_v55, %v7100_v55  ;;  %v2324_v62 = vadd.f32 %v2323_v60, %v2105_v32  ;;  %v2328_v40 = vmul.f32 0.5, %v7100_v55 }
 0x658   : > { %v2343_v63 = vmul.f32 %v2335_v4, %v7098_v52  ;;  %v2338_v0 = vmul.f32 %v2282_v59, %v2282_v59  ;;  %v2366_v2 = vmul.f32 0.7978846, %v2358_v57  ;;  %v2330_v45 = vmul.f32 0.5, %v2282_v59 }
 0x659   : > { %v2344_v18 = vmul.f32 %v2336_v14, %v7100_v55  ;;  %v2341_v1 = vmul.f32 %v2324_v62, %v2324_v62  ;;  %v2369_v58 = vmul.f32 0.7978846, %v2361_v61  ;;  %v2333_v50 = vmul.f32 0.5, %v2324_v62 }
 0x65a   : > { %v2351_v23 = vmul.f32 0.044715, %v2343_v63  ;;  %v2346_v3 = vmul.f32 %v2338_v0, %v2282_v59  ;;  %5896 = vtanh.f32 %v2366_v2 }
 0x65b   : > { %v2352_v5 = vmul.f32 0.044715, %v2344_v18  ;;  %v2349_v6 = vmul.f32 %v2341_v1, %v2324_v62  ;;  %v2295_v7 = vpop.f32.mrf.mxu2  ;;  %5898 = vtanh.f32 %v2369_v58 }
 0x65c   : > { %v2359_v8 = vadd.f32 %v2351_v23, %v7098_v52  ;;  %v2354_v9 = vmul.f32 0.044715, %v2346_v3  ;;  %v2296_v10 = vadd.f32 %v2295_v7, %v2103_v42  ;;  %v2309_v12 = vpop.f32.mrf.mxu3 }
 0x65d   : > { %v2360_v13 = vadd.f32 %v2352_v5, %v7100_v55  ;;  %v2357_v15 = vmul.f32 0.044715, %v2349_v6  ;;  %v2310_v16 = vadd.f32 %v2309_v12, %v2104_v46  ;;  %v5847_v55 = vld [vmem:[%s7394_s27] ss:$0 sm:$0xff] }
 0x65e   : > { %v2362_v17 = vadd.f32 %v2354_v9, %v2282_v59  ;;  %v2339_v19 = vmul.f32 %v2296_v10, %v2296_v10  ;;  %v2367_v22 = vmul.f32 0.7978846, %v2359_v8  ;;  %v2331_v59 = vmul.f32 0.5, %v2296_v10 }
 0x65f   : > { %v2365_v20 = vadd.f32 %v2357_v15, %v2324_v62  ;;  %v2340_v21 = vmul.f32 %v2310_v16, %v2310_v16  ;;  %v2368_v27 = vmul.f32 0.7978846, %v2360_v13  ;;  %v2332_v62 = vmul.f32 0.5, %v2310_v16 }
 0x660   : > { %v2370_v25 = vmul.f32 0.7978846, %v2362_v17  ;;  %v2347_v26 = vmul.f32 %v2339_v19, %v2296_v10  ;;  %v5897_v32 = vpop.eup %5896 }
 0x661   : > { %v2373_v28 = vmul.f32 0.7978846, %v2365_v20  ;;  %v2348_v29 = vmul.f32 %v2340_v21, %v2310_v16  ;;  %v5899_v34 = vpop.eup %5898  ;;  %v2382_v37 = vadd.f32 1.0, %v5897_v32 }
 0x662   : > { %5900 = vtanh.f32 %v2370_v25  ;;  %v2355_v30 = vmul.f32 0.044715, %v2347_v26  ;;  %v2385_v42 = vadd.f32 1.0, %v5899_v34 }
 0x663   : > { %5902 = vtanh.f32 %v2373_v28  ;;  %v2356_v31 = vmul.f32 0.044715, %v2348_v29  ;;  %v2390_v54 = vmul.f32 %v2382_v37, %v2326_v44  ;;  %v5534_v37 = vld [vmem:[#allocation15 + $0xb0] sm:$0xf0]  ;;  %v5535_v44 = vld [vmem:[#allocation15 + $0xb8] sm:$0xf0] }
 0x664   : > { %5904 = vtanh.f32 %v2367_v22  ;;  %v2363_v33 = vadd.f32 %v2355_v30, %v2296_v10  ;;  %v2393_v57 = vmul.f32 %v2385_v42, %v2329_v49  ;;  %v5098_v42 = vld [vmem:[#allocation15 + $0xb4] sm:$0xf0]  ;;  %v5531_v49 = vld [vmem:[#allocation15 + $0x98] sm:$0xf0] }
 0x665   : > { %5906 = vtanh.f32 %v2368_v27  ;;  %v2364_v35 = vadd.f32 %v2356_v31, %v2310_v16 }
 0x666   : > { %v2371_v36 = vmul.f32 0.7978846, %v2363_v33 }
 0x667   : > { %v2372_v39 = vmul.f32 0.7978846, %v2364_v35 }
 0x668   : > { %v5901_v41 = vpop.eup %5900  ;;  %5908 = vtanh.f32 %v2371_v36  ;;  %v5096_v36 = vld [vmem:[#allocation15 + $0xa8] sm:$0xf] }
 0x669   : > { %v5903_v43 = vpop.eup %5902  ;;  %v2386_v46 = vadd.f32 1.0, %v5901_v41  ;;  %5910 = vtanh.f32 %v2372_v39  ;;  %v5533_v39 = vld [vmem:[#allocation15 + $0xac] sm:$0xf]  ;;  %v5097_v41 = vor.u32 %v5534_v37, %v5096_v36  ;;  %v5032_v36 = vld [vmem:[#allocation15 + $0x20] sm:$0xf] }
 0x66a   : > { %v5905_v47 = vpop.eup %5904  ;;  %v2389_v51 = vadd.f32 1.0, %v5903_v43  ;;  %v5104_v43 = vld [vmem:[#allocation15 + $0xb0] sm:$0xf]  ;;  %v5517_v37 = vld [vmem:[#allocation15 + $0x28] sm:$0xf0] }
 0x66b   : > { %v5907_v53 = vpop.eup %5906  ;;  %v2394_v56 = vmul.f32 %v2386_v46, %v2330_v45  ;;  %v2383_v60 = vadd.f32 1.0, %v5905_v47  ;;  %v5101_v45 = vor.u32 %v5533_v39, %v5098_v42  ;;  %v5105_v46 = vor.u32 %v5535_v44, %v5104_v43  ;;  %2943 = vmatpush.bf16.msrb.mxu1 %v5097_v41  ;;  %v5084_v47 = vld [vmem:[#allocation15 + $0x90] sm:$0xf]  ;;  %v5012_v43 = vld [vmem:[#allocation15] sm:$0xf] }
 0x66c   : > { %v2397_v4 = vmul.f32 %v2389_v51, %v2333_v50  ;;  %v2384_v63 = vadd.f32 1.0, %v5907_v53  ;;  %v5530_v50 = vld [vmem:[#allocation15 + $0x94] sm:$0xf]  ;;  %v5085_v51 = vor.u32 %v5531_v49, %v5084_v47  ;;  %v5086_v53 = vld [vmem:[#allocation15 + $0x9c] sm:$0xf0]  ;;  %v5033_v42 = vor.u32 %v5517_v37, %v5032_v36 }
 0x66d   : > { %v2462_v61 = vpack.c.bf16 %v2394_v56, %v2390_v54  ;;  %v2391_v23 = vmul.f32 %v2383_v60, %v2327_v38  ;;  %2957 = vmatpush.bf16.msrb.mxu2 %v5101_v45  ;;  %2971 = vmatpush.bf16.msrb.mxu3 %v5105_v46  ;;  %v5092_v54 = vld [vmem:[#allocation15 + $0x98] sm:$0xf]  ;;  %v5532_v56 = vld [vmem:[#allocation15 + $0xa0] sm:$0xf0]  ;;  %v5529_v38 = vld [vmem:[#allocation15 + $0x88] sm:$0xf0] }
 0x66e   : > { %v5909_v14 = vpop.eup %5908  ;;  %v2465_v0 = vpack.c.bf16 %v2397_v4, %v2393_v57  ;;  %v2392_v58 = vmul.f32 %v2384_v63, %v2328_v40  ;;  %v5089_v57 = vor.u32 %v5530_v50, %v5086_v53  ;;  %v5093_v4 = vor.u32 %v5532_v56, %v5092_v54  ;;  %v5072_v60 = vld [vmem:[#allocation15 + $0x78] sm:$0xf]  ;;  %v5060_v40 = vld [vmem:[#allocation15 + $0x60] sm:$0xf]  ;;  %v5513_v44 = vld [vmem:[#allocation15 + $0x8] sm:$0xf0] }
 0x66f   : > { %v5911_v18 = vpop.eup %5910  ;;  %v2387_v1 = vadd.f32 1.0, %v5909_v14  ;;  %2666 = vmatmul.bf16.vlgmr.msra.gmra.mxu1 %v2462_v61  ;;  %v5528_v61 = vld [vmem:[#allocation15 + $0x80] sm:$0xf0]  ;;  %v5527_v14 = vld [vmem:[#allocation15 + $0x7c] sm:$0xf]  ;;  %v5013_v47 = vor.u32 %v5513_v44, %v5012_v43 }
 0x670   : > { %v2388_v2 = vadd.f32 1.0, %v5911_v18  ;;  %2708 = vmatmul.bf16.vlgmr.msrb.gmra.mxu0 %v2465_v0  ;;  %2944 = vmatpush.bf16.msrb.mxu1 %v5085_v51  ;;  %v5073_v63 = vor.u32 %v5528_v61, %v5072_v60  ;;  %v5074_v0 = vld [vmem:[#allocation15 + $0x84] sm:$0xf0]  ;;  %v5080_v18 = vld [vmem:[#allocation15 + $0x80] sm:$0xf] }
 0x671   : > { %v2395_v3 = vmul.f32 %v2387_v1, %v2331_v59  ;;  %2958 = vmatpush.bf16.msrb.mxu2 %v5089_v57  ;;  %2972 = vmatpush.bf16.msrb.mxu3 %v5093_v4  ;;  %v5077_v59 = vor.u32 %v5527_v14, %v5074_v0  ;;  %v5081_v1 = vor.u32 %v5529_v38, %v5080_v18  ;;  %v5512_v45 = vld [vmem:[#allocation15 + $0x4] sm:$0xf]  ;;  %v5014_v49 = vld [vmem:[#allocation15 + $0xc] sm:$0xf0]  ;;  %v5020_v50 = vld [vmem:[#allocation15 + $0x8] sm:$0xf] }
 0x672   : > { %v2396_v5 = vmul.f32 %v2388_v2, %v2332_v62  ;;  %v5525_v62 = vld [vmem:[#allocation15 + $0x68] sm:$0xf0]  ;;  %v5524_v2 = vld [vmem:[#allocation15 + $0x64] sm:$0xf]  ;;  %v5514_v51 = vld [vmem:[#allocation15 + $0x10] sm:$0xf0]  ;;  %v5017_v53 = vor.u32 %v5512_v45, %v5014_v49 }
 0x673   : > { %v2463_v6 = vpack.c.bf16 %v2395_v3, %v2391_v23  ;;  %v5061_v23 = vor.u32 %v5525_v62, %v5060_v40  ;;  %v5062_v3 = vld [vmem:[#allocation15 + $0x6c] sm:$0xf0]  ;;  %v5021_v54 = vor.u32 %v5514_v51, %v5020_v50 }
 0x674   : > { %v2464_v7 = vpack.c.bf16 %v2396_v5, %v2392_v58  ;;  %2945 = vmatpush.bf16.msrb.mxu1 %v5073_v63  ;;  %v5068_v58 = vld [vmem:[#allocation15 + $0x68] sm:$0xf]  ;;  %v5526_v5 = vld [vmem:[#allocation15 + $0x70] sm:$0xf0] }
 0x675   : > { %2680 = vmatmul.bf16.vlgmr.msra.gmra.mxu2 %v2463_v6  ;;  %2973 = vmatpush.bf16.msrb.mxu3 %v5081_v1  ;;  %v5065_v6 = vor.u32 %v5524_v2, %v5062_v3 }
 0x676   : > { %2694 = vmatmul.bf16.vlgmr.msra.gmra.mxu3 %v2464_v7  ;;  %2959 = vmatpush.bf16.msrb.mxu2 %v5077_v59  ;;  %v5069_v7 = vor.u32 %v5526_v5, %v5068_v58  ;;  %v5848_v58 = vld [vmem:[#allocation12] ss:$0 sm:$0xff] }
 0x678   : > { %2946 = vmatpush.bf16.msrb.mxu1 %v5061_v23 }
 0x679   : > { %2974 = vmatpush.bf16.msrb.mxu3 %v5069_v7 }
 0x67a   : > { %2960 = vmatpush.bf16.msrb.mxu2 %v5065_v6 }
 0x6ec   : > { %v2667_v8 = vpop.f32.mrf.mxu1 }
 0x6ed   : > { %v2709_v10 = vpop.f32.mrf.mxu0 }
 0x6f4   : > { %v2669_v17 = vpop.f32.mrf.mxu1 }
 0x6f5   : > { %v2711_v26 = vpop.f32.mrf.mxu0 }
 0x6f8   : > { %v2681_v9 = vpop.f32.mrf.mxu2 }
 0x6f9   : > { %v2682_v12 = vadd.f32 %v2681_v9, %v2667_v8  ;;  %v2695_v52 = vpop.f32.mrf.mxu3  ;;  %v5048_v8 = vld [vmem:[#allocation15 + $0x48] sm:$0xf]  ;;  %v5522_v9 = vld [vmem:[#allocation15 + $0x50] sm:$0xf0] }
 0x6fb   : > { %v2696_v13 = vadd.f32 %v2695_v52, %v2682_v12  ;;  %v5521_v12 = vld [vmem:[#allocation15 + $0x4c] sm:$0xf]  ;;  %v5049_v52 = vor.u32 %v5522_v9, %v5048_v8  ;;  %v5849_v9 = vld [vmem:[#allocation13] ss:$0 sm:$0xff] }
 0x6fd   : > { %v2710_v15 = vadd.f32 %v2709_v10, %v2696_v13  ;;  %v5050_v10 = vld [vmem:[#allocation15 + $0x54] sm:$0xf0]  ;;  %v5056_v13 = vld [vmem:[#allocation15 + $0x50] sm:$0xf]  ;;  %2947 = vmatpush.bf16.msrb.mxu1 %v5049_v52 }
 0x6ff   : > { %v2714_v16 = vadd.f32 %v2710_v15, %v7056_v48  ;;  %v5523_v15 = vld [vmem:[#allocation15 + $0x58] sm:$0xf0] }
 0x700   : > { %v2683_v19 = vpop.f32.mrf.mxu2 }
 0x701   : > { %v2684_v20 = vadd.f32 %v2683_v19, %v2669_v17  ;;  %v7120_v21 = vadd.f32 %v5847_v55, %v2714_v16  ;;  %v2697_v22 = vpop.f32.mrf.mxu3  ;;  %v5057_v16 = vor.u32 %v5523_v15, %v5056_v13  ;;  %v5036_v17 = vld [vmem:[#allocation15 + $0x30] sm:$0xf]  ;;  %v5519_v19 = vld [vmem:[#allocation15 + $0x38] sm:$0xf0] }
 0x703   : > { %v2698_v25 = vadd.f32 %v2697_v22, %v2684_v20  ;;  %2724 = vadd.xlane.f32.xlu1 %v7120_v21  ;;  %2975 = vmatpush.bf16.msrb.mxu3 %v5057_v16  ;;  %v5518_v20 = vld [vmem:[#allocation15 + $0x34] sm:$0xf]  ;;  %v5037_v22 = vor.u32 %v5519_v19, %v5036_v17 }
 0x705   : > { %v2712_v27 = vadd.f32 %v2711_v26, %v2698_v25  ;;  %v5038_v25 = vld [vmem:[#allocation15 + $0x3c] sm:$0xf0]  ;;  %v5044_v26 = vld [vmem:[#allocation15 + $0x38] sm:$0xf]  ;;  %2948 = vmatpush.bf16.msrb.mxu1 %v5037_v22 }
 0x707   : > { %v2715_v28 = vadd.f32 %v2712_v27, %v7060_v24  ;;  %v5520_v27 = vld [vmem:[#allocation15 + $0x40] sm:$0xf0] }
 0x709   : > { %v7124_v29 = vadd.f32 %v5847_v55, %v2715_v28  ;;  %v5053_v55 = vor.u32 %v5521_v12, %v5050_v10  ;;  %v5041_v28 = vor.u32 %v5518_v20, %v5038_v25 }
 0x70b   : > { %2726 = vadd.xlane.f32.xlu2 %v7124_v29  ;;  %2961 = vmatpush.bf16.msrb.mxu2 %v5053_v55  ;;  %v2807_v55 = vld [vmem:[#allocation16] sm:$0x7] }
 0x70c   : > { %v2810_v16 = vperm.slane %v2807_v55, 1  ;;  %v2809_v17 = vperm.slane %v2807_v55, 0  ;;  %v2811_v36 = vperm.slane %v2807_v55, 2 }
 0x70f   : > { %2962 = vmatpush.bf16.msrb.mxu2 %v5041_v28 }
 0x776   : > { %v2725_v30 = vpop.xlane.xlu1 %2724 }
 0x777   : > { %v2728_v48 = vmul.f32 %v2725_v30, %v6924_v11  ;;  %v5045_v30 = vor.u32 %v5520_v27, %v5044_v26 }
 0x779   : > { %v7129_v31 = vsub.f32 %v7120_v21, %v2728_v48  ;;  %2976 = vmatpush.bf16.msrb.mxu3 %v5045_v30  ;;  %v5024_v48 = vld [vmem:[#allocation15 + $0x18] sm:$0xf] }
 0x77b   : > { %v2732_v32 = vmul.f32 %v7129_v31, %v7129_v31 }
 0x77d   : > { %2734 = vadd.xlane.f32.xlu0 %v2732_v32  ;;  %v5516_v32 = vld [vmem:[#allocation15 + $0x20] sm:$0xf0]  ;;  %2977 = vmatpush.bf16.msrb.mxu3 %v5033_v42 }
 0x77e   : > { %v2727_v33 = vpop.xlane.xlu2 %2726 }
 0x77f   : > { %v2729_v34 = vmul.f32 %v2727_v33, %v6924_v11  ;;  %v5515_v33 = vld [vmem:[#allocation15 + $0x1c] sm:$0xf] }
 0x781   : > { %v7135_v35 = vsub.f32 %v7124_v29, %v2729_v34  ;;  %v5025_v34 = vor.u32 %v5516_v32, %v5024_v48  ;;  %2978 = vmatpush.bf16.msrb.mxu3 %v5021_v54 }
 0x783   : > { %v2733_v24 = vmul.f32 %v7135_v35, %v7135_v35  ;;  %2949 = vmatpush.bf16.msrb.mxu1 %v5025_v34 }
 0x785   : > { %2736 = vadd.xlane.f32.xlu1 %v2733_v24  ;;  %v5026_v24 = vld [vmem:[#allocation15 + $0x24] sm:$0xf0] }
 0x786   : > { %v5029_v41 = vor.u32 %v5515_v33, %v5026_v24 }
 0x787   : > { %2950 = vmatpush.bf16.msrb.mxu1 %v5013_v47 }
 0x788   : > { %2963 = vmatpush.bf16.msrb.mxu2 %v5029_v41 }
 0x78c   : > { %2964 = vmatpush.bf16.msrb.mxu2 %v5017_v53 }
 0x7f0   : > { %v2735_v39 = vpop.xlane.xlu0 %2734 }
 0x7f1   : > { %v2738_v46 = vmul.f32 %v2735_v39, %v6924_v11 }
 0x7f3   : > { %v2740_v56 = vadd.f32 1e-05, %v2738_v46 }
 0x7f5   : > { %5912 = vrsqrt.f32 %v2740_v56  ;;  %vm2748_vm1 = vweird.f32 %v2740_v56 }
 0x7f8   : > { %v2737_v57 = vpop.xlane.xlu1 %2736 }
 0x7f9   : > { %v2739_v4 = vmul.f32 %v2737_v57, %v6924_v11 }
 0x7fb   : > { %v5913_v60 = vpop.eup %5912  ;;  %v2741_v61 = vadd.f32 1e-05, %v2739_v4 }
 0x7fc   : > { %v2743_v14 = vmul.f32 %v5913_v60, %v2740_v56  ;;  %vm2749_vm0 = vweird.f32 %v5913_v60 }
 0x7fd   : > { %5914 = vrsqrt.f32 %v2741_v61  ;;  %vm2750_vm2 = vmor %vm2748_vm1, %vm2749_vm0  ;;  %vm2758_vm4 = vweird.f32 %v2741_v61 }
 0x7fe   : > { %v2744_v63 = vmul.f32 %v5913_v60, %v2743_v14 }
 0x800   : > { %v2745_v0 = vmul.f32 0.5, %v2744_v63 }
 0x802   : > { %v2746_v18 = vsub.f32 1.5, %v2745_v0 }
 0x803   : > { %v5915_v38 = vpop.eup %5914 }
 0x804   : > { %v2747_v59 = vmul.f32 %v5913_v60, %v2746_v18  ;;  %v2753_v1 = vmul.f32 %v5915_v38, %v2741_v61  ;;  %vm2759_vm3 = vweird.f32 %v5915_v38 }
 0x805   : > { %vm2760_vm5 = vmor %vm2758_vm4, %vm2759_vm3 }
 0x806   : > { %v2754_v40 = vmul.f32 %v5915_v38, %v2753_v1  ;;  %v2751_v62 = vsel %vm2750_vm2, %v5913_v60, %v2747_v59 }
 0x807   : > { %v2762_v3 = vmul.f32 %v2751_v62, %v7129_v31 }
 0x808   : > { %v2755_v2 = vmul.f32 0.5, %v2754_v40 }
 0x809   : > { %v2767_v8 = vmul.f32 %v5848_v58, %v2762_v3  ;;  %v7180_v3 = vld [vmem:[%s7392_s11] sm:$0xff] }
 0x80a   : > { %v2756_v23 = vsub.f32 1.5, %v2755_v2 }
 0x80b   : > { %v2772_v52 = vadd.f32 %v5849_v9, %v2767_v8 }
 0x80c   : > { %v2757_v5 = vmul.f32 %v5915_v38, %v2756_v23 }
 0x80e   : > { %v2761_v6 = vsel %vm2760_vm5, %v5915_v38, %v2757_v5 }
 0x80f   : > { %v2763_v7 = vmul.f32 %v2761_v6, %v7135_v35 }
 0x811   : > { %v2768_v12 = vmul.f32 %v5848_v58, %v2763_v7 }
 0x813   : > { %v2773_v10 = vadd.f32 %v5849_v9, %v2768_v12 }
 0x815   : > { %v2806_v13 = vpack.c.bf16 %v2773_v10, %v2772_v52 }
 0x817   : > { %2951 = vmatmul.bf16.vlgmr.msrb.gmra.mxu1 %v2806_v13  ;;  %2965 = vmatmul.bf16.vlgmr.msrb.gmra.mxu2 %v2806_v13 }
 0x818   : > { %2979 = vmatmul.bf16.vlgmr.msrb.gmra.mxu3 %v2806_v13 }
 0x894   : > { %v2952_v15 = vpop.f32.mrf.mxu1 }
 0x895   : > { %v2953_v27 = vadd.f32 %v2952_v15, %v2809_v17 }
 0x897   : > { %v3045_v48 = vpack.c.bf16 %v2953_v27, %v2953_v27 }
 0x89a   : > { %v2966_v31 = vpop.f32.mrf.mxu2 }
 0x89b   : > { %v2967_v19 = vadd.f32 %v2966_v31, %v2810_v16  ;;  %v2980_v34 = vpop.f32.mrf.mxu3 }
 0x89c   : > { %v2954_v20 = vpop.f32.mrf.mxu1  ;;  %v7158_v41 = vadd.f32 %v2980_v34, %v2811_v36 }
 0x89d   : > { %v2955_v22 = vadd.f32 %v2954_v20, %v2809_v17  ;;  %v3053_v25 = vpack.c.bf16 %v2967_v19, %v2967_v19 }
 0x89e   : > { %v3293_v47 = vpack.c.bf16 %v7158_v41, %v7158_v41 }
 0x89f   : > { %v3065_v35 = vsel %vm1453_vm7, %v3053_v25, 0  ;;  %v5832_v26 = vpack.i.bf16 %v2967_v19, %v2955_v22  ;;  %v3046_v37 = vpack.c.bf16 %v2955_v22, %v2955_v22 }
 0x8a0   : > { %3074 = vmatpush.bf16.xpose.msra.mxu0 %v3065_v35  ;;  %v3305_v51 = vsel %vm1698_vm8, %v3293_v47, 0 }
 0x8a1   : > { %5833 = vrot.lane.b32.xlu0 %v5832_v26, %s6583_s30 }
 0x8a2   : > { %v2968_v28 = vpop.f32.mrf.mxu2 }
 0x8a3   : > { %v2969_v30 = vadd.f32 %v2968_v28, %v2810_v16  ;;  %v2982_v24 = vpop.f32.mrf.mxu3 }
 0x8a4   : > { %v7155_v39 = vadd.f32 %v2982_v24, %v2811_v36 }
 0x8a5   : > { %3021 = vrot.lane.b32.xlu1 %v2969_v30, %s6582_s0  ;;  %3009 = vrot.lane.b32.xlu2 %v2969_v30, %s6583_s30  ;;  %v3054_v32 = vpack.c.bf16 %v2969_v30, %v2969_v30 }
 0x8a6   : > { %v5837_v42 = vpack.i.bf16 %v7158_v41, %v7155_v39  ;;  %v3294_v8 = vpack.c.bf16 %v7155_v39, %v7155_v39 }
 0x8a7   : > { %5106 = vmatmul.msk.bf16.vlgmr.msra.gmra.mxu0 %vm1453_vm7, %v3045_v48  ;;  %v3084_v33 = vsel %vm1453_vm7, %v3054_v32, 0 }
 0x8a8   : > { %3093 = vmatpush.bf16.xpose.msrb.mxu0 %v3084_v33  ;;  %v3324_v10 = vsel %vm1698_vm8, %v3294_v8, 0 }
 0x8a9   : > { %2987 = vrot.lane.b32.xlu0 %v2953_v27, %s6583_s30 }
 0x8ad   : > { %3013 = vrot.lane.b32.xlu2 %v2967_v19, %s6584_s1  ;;  %3001 = vrot.lane.b32.xlu1 %v2955_v22, %s6582_s0 }
 0x8b1   : > { %2993 = vrot.lane.b32.xlu0 %v2953_v27, %s6584_s1 }
 0x8b5   : > { %3019 = vrot.lane.b32.xlu2 %v2967_v19, %s6582_s0  ;;  %3015 = vrot.lane.b32.xlu1 %v2969_v30, %s6584_s1 }
 0x8b7   : > { %5107 = vmatmul.msk.bf16.vlgmr.msrb.gmra.mxu0 %vm1453_vm7, %v3046_v37 }
 0x8b9   : > { %2999 = vrot.lane.b32.xlu0 %v2953_v27, %s6582_s0 }
 0x8bd   : > { %2995 = vrot.lane.b32.xlu2 %v2955_v22, %s6584_s1  ;;  %5838 = vrot.lane.b32.xlu1 %v5837_v42, %s6583_s30  ;;  %s7395_s30 = sld [smem:[#allocation56_spill]] }
 0x8c5   : > { %3033 = vrot.lane.b32.xlu1 %v7158_v41, %s6584_s1 }
 0x8ff   : > { %v3010_v43 = vpop.permute.xlu2 %3009 }
 0x900   : > { %v3056_v44 = vpack.c.bf16 %v3010_v43, %v3010_v43 }
 0x902   : > { %v3122_v45 = vsel %vm1453_vm7, %v3056_v44, 0 }
 0x903   : > { %3131 = vmatpush.bf16.xpose.msra.mxu2 %v3122_v45 }
 0x907   : > { %v3014_v46 = vpop.permute.xlu2 %3013 }
 0x908   : > { %v3057_v49 = vpack.c.bf16 %v3014_v46, %v3014_v46 }
 0x90a   : > { %v3141_v50 = vsel %vm1453_vm7, %v3057_v49, 0 }
 0x90b   : > { %3150 = vmatpush.bf16.xpose.msra.mxu3 %v3141_v50 }
 0x90f   : > { %v3020_v53 = vpop.permute.xlu2 %3019 }
 0x910   : > { %v3059_v4 = vpack.c.bf16 %v3020_v53, %v3020_v53 }
 0x912   : > { %v3179_v18 = vsel %vm1453_vm7, %v3059_v4, 0 }
 0x913   : > { %3314 = vmatpush.bf16.msrb.mxu3 %v3305_v51  ;;  %v5834_v54 = vpop.permute.xlu0 %5833 }
 0x914   : > { %v5836_v56 = vunpack.i.h.bf16 %v5834_v54  ;;  %v5835_v57 = vunpack.i.l.bf16 %v5834_v54 }
 0x916   : > { %v3055_v60 = vpack.c.bf16 %v5836_v56, %v5836_v56  ;;  %v3048_v61 = vpack.c.bf16 %v5835_v57, %v5835_v57 }
 0x917   : > { %v3022_v14 = vpop.permute.xlu1 %3021  ;;  %v2996_v15 = vpop.permute.xlu2 %2995 }
 0x918   : > { %v3060_v63 = vpack.c.bf16 %v3022_v14, %v3022_v14  ;;  %5109 = vmatmul.msk.bf16.vlgmr.msra.gmra.mxu2 %vm1453_vm7, %v3048_v61  ;;  %v3103_v0 = vsel %vm1453_vm7, %v3055_v60, 0  ;;  %v3050_v31 = vpack.c.bf16 %v2996_v15, %v2996_v15 }
 0x919   : > { %3112 = vmatpush.bf16.xpose.msra.mxu1 %v3103_v0 }
 0x91a   : > { %v3198_v38 = vsel %vm1453_vm7, %v3060_v63, 0 }
 0x91b   : > { %3207 = vmatpush.bf16.xpose.msrb.mxu2 %v3198_v38  ;;  %v2988_v59 = vpop.permute.xlu0 %2987 }
 0x91c   : > { %v3047_v1 = vpack.c.bf16 %v2988_v59, %v2988_v59 }
 0x91f   : > { %v3002_v40 = vpop.permute.xlu1 %3001 }
 0x920   : > { %5108 = vmatmul.msk.bf16.vlgmr.msra.gmra.mxu1 %vm1453_vm7, %v3047_v1  ;;  %v3052_v5 = vpack.c.bf16 %v3002_v40, %v3002_v40 }
 0x921   : > { %3188 = vmatpush.bf16.xpose.msrb.mxu1 %v3179_v18 }
 0x923   : > { %v2994_v62 = vpop.permute.xlu0 %2993 }
 0x924   : > { %v3049_v2 = vpack.c.bf16 %v2994_v62, %v2994_v62  ;;  %v3076_v23 = vpop.f32.mrf.mxu0 }
 0x925   : > { %v3077_v58 = vadd.f32 %v7180_v3, %v3076_v23 }
 0x926   : > { %5110 = vmatmul.msk.bf16.vlgmr.msra.gmra.mxu3 %vm1453_vm7, %v3049_v2 }
 0x927   : > { %v3016_v6 = vpop.permute.xlu1 %3015  ;;  %v3213_v7 = vsel %vm1606_vm9, %v3077_v58, -inf }
 0x928   : > { %v3058_v9 = vpack.c.bf16 %v3016_v6, %v3016_v6  ;;  %5113 = vmatmul.msk.bf16.vlgmr.msrb.gmra.mxu2 %vm1453_vm7, %v3052_v5  ;;  %3214 = vmax.xlane.f32.xlu0 %v3213_v7 }
 0x92a   : > { %v3160_v12 = vsel %vm1453_vm7, %v3058_v9, 0 }
 0x92b   : > { %v3000_v52 = vpop.permute.xlu0 %2999  ;;  %3169 = vmatpush.bf16.xpose.msra.mxu0 %v3160_v12 }
 0x92c   : > { %v3078_v13 = vpop.f32.mrf.mxu0  ;;  %v3051_v55 = vpack.c.bf16 %v3000_v52, %v3000_v52 }
 0x92f   : > { %v5839_v16 = vpop.permute.xlu1 %5838 }
 0x930   : > { %v5841_v17 = vunpack.i.h.bf16 %v5839_v16  ;;  %v5840_v19 = vunpack.i.l.bf16 %v5839_v16  ;;  %5112 = vmatmul.msk.bf16.vlgmr.msrb.gmra.mxu1 %vm1453_vm7, %v3051_v55 }
 0x932   : > { %v3295_v20 = vpack.c.bf16 %v5841_v17, %v5841_v17  ;;  %v3296_v22 = vpack.c.bf16 %v5840_v19, %v5840_v19  ;;  %5111 = vmatmul.msk.bf16.vlgmr.msra.gmra.mxu0 %vm1453_vm7, %v3050_v31 }
 0x933   : > { %3333 = vmatpush.bf16.msrb.mxu0 %v3324_v10 }
 0x934   : > { %v3095_v25 = vpop.f32.mrf.mxu0  ;;  %v3343_v35 = vsel %vm1698_vm8, %v3295_v20, 0  ;;  %v3362_v26 = vsel %vm1698_vm8, %v3296_v22, 0 }
 0x935   : > { %v3096_v27 = vadd.f32 %v7180_v3, %v3095_v25  ;;  %3352 = vmatpush.bf16.msra.mxu1 %v3343_v35  ;;  %3371 = vmatpush.bf16.msra.mxu2 %v3362_v26 }
 0x937   : > { %v3034_v28 = vpop.permute.xlu1 %3033  ;;  %v3216_v30 = vsel %vm1606_vm9, %v3096_v27, -inf }
 0x938   : > { %v3297_v48 = vpack.c.bf16 %v3034_v28, %v3034_v28  ;;  %3217 = vmax.xlane.f32.xlu0 %v3216_v30 }
 0x93a   : > { %v3381_v32 = vsel %vm1698_vm8, %v3297_v48, 0 }
 0x93b   : > { %3390 = vmatpush.bf16.msra.mxu3 %v3381_v32 }
 0x93c   : > { %v3097_v33 = vpop.f32.mrf.mxu0 }
 0x99b   : > { %v3133_v34 = vpop.f32.mrf.mxu2  ;;  %v3215_v24 = vpop.xlane.xlu0 %3214 }
 0x99c   : > { %v3134_v36 = vadd.f32 %v7180_v3, %v3133_v34  ;;  %v3237_v37 = vsub.f32 %v3077_v58, %v3215_v24 }
 0x99d   : > { %v3114_v42 = vpop.f32.mrf.mxu1 }
 0x99e   : > { %v3245_v43 = vmul.f32 1.442695, %v3237_v37  ;;  %v3115_v44 = vadd.f32 %v7180_v3, %v3114_v42  ;;  %v3222_v45 = vsel %vm1606_vm9, %v3134_v36, -inf }
 0x99f   : > { %3223 = vmax.xlane.f32.xlu1 %v3222_v45 }
 0x9a0   : > { %5916 = vpow2.f32 %v3245_v43  ;;  %v3219_v46 = vsel %vm1606_vm9, %v3115_v44, -inf }
 0x9a1   : > { %3220 = vmax.xlane.f32.xlu2 %v3219_v46 }
 0x9a3   : > { %v3135_v47 = vpop.f32.mrf.mxu2 }
 0x9a5   : > { %v3116_v49 = vpop.f32.mrf.mxu1 }
 0x9a6   : > { %v5917_v50 = vpop.eup %5916 }
 0x9a7   : > { %v3285_v51 = vpack.c.bf16 %v5917_v50, %v5917_v50  ;;  %v3261_v7 = vsel %vm1606_vm9, %v5917_v50, 0.0 }
 0x9a9   : > { %v3152_v53 = vpop.f32.mrf.mxu3  ;;  %5114 = vmatmul.msk.bf16.vlgmr.msrb.gmra.mxu3 %vm1606_vm9, %v3285_v51 }
 0x9aa   : > { %v3153_v54 = vadd.f32 %v7180_v3, %v3152_v53 }
 0x9ab   : > { %v3209_v56 = vpop.f32.mrf.mxu2  ;;  %v3218_v57 = vpop.xlane.xlu0 %3217 }
 0x9ac   : > { %v3238_v4 = vsub.f32 %v3096_v27, %v3218_v57  ;;  %v3225_v60 = vsel %vm1606_vm9, %v3153_v54, -inf  ;;  %v3210_v5 = vadd.f32 %v7180_v3, %v3209_v56 }
 0x9ad   : > { %v3190_v61 = vpop.f32.mrf.mxu1  ;;  %3226 = vmax.xlane.f32.xlu0 %v3225_v60 }
 0x9ae   : > { %v3247_v14 = vmul.f32 1.442695, %v3238_v4  ;;  %v3191_v62 = vadd.f32 %v7180_v3, %v3190_v61  ;;  %v3234_v6 = vsel %vm1606_vm9, %v3210_v5, -inf }
 0x9af   : > { %v3171_v63 = vpop.f32.mrf.mxu0 }
 0x9b0   : > { %5918 = vpow2.f32 %v3247_v14  ;;  %v3172_v0 = vadd.f32 %v7180_v3, %v3171_v63  ;;  %v3231_v58 = vsel %vm1606_vm9, %v3191_v62, -inf }
 0x9b1   : > { %v3154_v18 = vpop.f32.mrf.mxu3 }
 0x9b2   : > { %v3228_v38 = vsel %vm1606_vm9, %v3172_v0, -inf }
 0x9b3   : > { %v3211_v59 = vpop.f32.mrf.mxu2  ;;  %3229 = vmax.xlane.f32.xlu2 %v3228_v38  ;;  %v5539_v38 = vld [vmem:[#allocation18 + $0x18] sm:$0xff] }
 0x9b4   : > { %3501 = vmatpush.bf16.msrb.mxu3 %v5539_v38  ;;  %v5538_v59 = vld [vmem:[#allocation18 + $0x10] sm:$0xff] }
 0x9b5   : > { %v3192_v1 = vpop.f32.mrf.mxu1 }
 0x9b6   : > { %v7206_v40 = vpop.eup %5918 }
 0x9b7   : > { %v3286_v2 = vpack.c.bf16 %v7206_v40, %v7206_v40  ;;  %v3173_v23 = vpop.f32.mrf.mxu0  ;;  %v3264_v18 = vsel %vm1606_vm9, %v7206_v40, 0.0 }
 0x9b8   : > { %3035 = vrot.lane.b32.xlu1 %v7155_v39, %s6584_s1  ;;  %3502 = vmatpush.bf16.msrb.mxu3 %v5538_v59  ;;  %v5541_v23 = vld [vmem:[#allocation18 + $0x28] sm:$0xff]  ;;  %s1098_s1 = scalar_lea.vmem %s7395_s30, %s4605_s18 }
 0x9b9   : > { %5115 = vmatmul.msk.bf16.vlgmr.msrb.gmra.mxu0 %vm1606_vm9, %v3286_v2 }
 0x9bb   : > { %3232 = vmax.xlane.f32.xlu2 %v3231_v58  ;;  %v5540_v58 = vld [vmem:[#allocation18 + $0x20] sm:$0xff] }
 0x9c1   : > { %3041 = vrot.lane.b32.xlu0 %v7155_v39, %s6582_s0 }
 0x9c3   : > { %3235 = vmax.xlane.f32.xlu2 %v3234_v6 }
 0x9db   : > { %3039 = vrot.lane.b32.xlu2 %v7158_v41, %s6582_s0 }
 0x9e2   : > { %3262 = vadd.xlane.f32.xlu1 %v3261_v7  ;;  %v5537_v7 = vld [vmem:[#allocation18 + $0x8] sm:$0xff] }
 0xa12   : > { %v3224_v8 = vpop.xlane.xlu1 %3223 }
 0xa13   : > { %v3240_v9 = vsub.f32 %v3134_v36, %v3224_v8 }
 0xa14   : > { %v3221_v12 = vpop.xlane.xlu2 %3220 }
 0xa15   : > { %v3251_v52 = vmul.f32 1.442695, %v3240_v9  ;;  %v3239_v10 = vsub.f32 %v3115_v44, %v3221_v12 }
 0xa17   : > { %5920 = vpow2.f32 %v3251_v52  ;;  %v3249_v13 = vmul.f32 1.442695, %v3239_v10  ;;  %v5543_v52 = vld [vmem:[#allocation18 + $0x38] sm:$0xff] }
 0xa19   : > { %5922 = vpow2.f32 %v3249_v13  ;;  %v5536_v13 = vld [vmem:[#allocation18] sm:$0xff] }
 0xa1d   : > { %v5921_v3 = vpop.eup %5920 }
 0xa1e   : > { %v3288_v15 = vpack.c.bf16 %v5921_v3, %v5921_v3  ;;  %v3270_v39 = vsel %vm1606_vm9, %v5921_v3, 0.0 }
 0xa1f   : > { %v5923_v55 = vpop.eup %5922  ;;  %3271 = vadd.xlane.f32.xlu1 %v3270_v39 }
 0xa20   : > { %v3287_v16 = vpack.c.bf16 %v5923_v55, %v5923_v55  ;;  %5117 = vmatmul.msk.bf16.vlgmr.msra.gmra.mxu2 %vm1606_vm9, %v3288_v15  ;;  %v3227_v41 = vpop.xlane.xlu0 %3226  ;;  %v3267_v31 = vsel %vm1606_vm9, %v5923_v55, 0.0  ;;  %v5542_v15 = vld [vmem:[#allocation18 + $0x30] sm:$0xff] }
 0xa21   : > { %v3241_v17 = vsub.f32 %v3153_v54, %v3227_v41  ;;  %3268 = vadd.xlane.f32.xlu0 %v3267_v31 }
 0xa22   : > { %5116 = vmatmul.msk.bf16.vlgmr.msra.gmra.mxu1 %vm1606_vm9, %v3287_v16 }
 0xa23   : > { %v3253_v19 = vmul.f32 1.442695, %v3241_v17 }
 0xa25   : > { %5924 = vpow2.f32 %v3253_v19 }
 0xa26   : > { %v3230_v20 = vpop.xlane.xlu2 %3229 }
 0xa27   : > { %v3242_v22 = vsub.f32 %v3172_v0, %v3230_v20 }
 0xa29   : > { %v3255_v25 = vmul.f32 1.442695, %v3242_v22 }
 0xa2a   : > { %v3036_v35 = vpop.permute.xlu1 %3035 }
 0xa2b   : > { %v5925_v26 = vpop.eup %5924  ;;  %5926 = vpow2.f32 %v3255_v25  ;;  %v3298_v27 = vpack.c.bf16 %v3036_v35, %v3036_v35 }
 0xa2c   : > { %v3289_v28 = vpack.c.bf16 %v5925_v26, %v5925_v26  ;;  %v7226_v30 = vpop.f32.mrf.mxu3  ;;  %v3273_v48 = vsel %vm1606_vm9, %v5925_v26, 0.0 }
 0xa2d   : > { %v3400_v32 = vsel %vm1698_vm8, %v3298_v27, 0  ;;  %3274 = vadd.xlane.f32.xlu1 %v3273_v48 }
 0xa2e   : > { %3409 = vmatpush.bf16.msra.mxu0 %v3400_v32  ;;  %v3233_v33 = vpop.xlane.xlu2 %3232  ;;  %5118 = vmatmul.msk.bf16.vlgmr.msra.gmra.mxu3 %vm1606_vm9, %v3289_v28 }
 0xa2f   : > { %v3243_v34 = vsub.f32 %v3191_v62, %v3233_v33 }
 0xa31   : > { %v5927_v24 = vpop.eup %5926  ;;  %v3257_v36 = vmul.f32 1.442695, %v3243_v34 }
 0xa32   : > { %v3290_v37 = vpack.c.bf16 %v5927_v24, %v5927_v24  ;;  %v3276_v14 = vsel %vm1606_vm9, %v5927_v24, 0.0  ;;  %3530 = vmatpush.bf16.msrb.mxu0 %v5537_v7 }
 0xa33   : > { %5928 = vpow2.f32 %v3257_v36  ;;  %v3042_v42 = vpop.permute.xlu0 %3041 }
 0xa34   : > { %v3300_v43 = vpack.c.bf16 %v3042_v42, %v3042_v42  ;;  %v3318_v44 = vpop.f32.mrf.mxu3  ;;  %5119 = vmatmul.msk.bf16.vlgmr.msra.gmra.mxu0 %vm1606_vm9, %v3290_v37 }
 0xa36   : > { %v3438_v45 = vsel %vm1698_vm8, %v3300_v43, 0  ;;  %v3236_v46 = vpop.xlane.xlu2 %3235  ;;  %v7233_v47 = vpop.f32.mrf.mxu0  ;;  %3531 = vmatpush.bf16.msrb.mxu0 %v5536_v13  ;;  %v5274_v13 = vld [vmem:[#allocation24 + $0xf0] sm:$0xf0] }
 0xa37   : > { %v3244_v49 = vsub.f32 %v3210_v5, %v3236_v46  ;;  %3447 = vmatpush.bf16.msrb.mxu2 %v3438_v45 }
 0xa39   : > { %v5929_v50 = vpop.eup %5928  ;;  %v3259_v51 = vmul.f32 1.442695, %v3244_v49 }
 0xa3a   : > { %v3279_v53 = vsel %vm1606_vm9, %v5929_v50, 0.0  ;;  %v3291_v0 = vpack.c.bf16 %v5929_v50, %v5929_v50 }
 0xa3b   : > { %5930 = vpow2.f32 %v3259_v51  ;;  %3280 = vadd.xlane.f32.xlu2 %v3279_v53  ;;  %3602 = vmatpush.bf16.msra.mxu2 %v5543_v52  ;;  %v5572_v52 = vld [vmem:[#allocation24 + $0xe4] sm:$0xf] }
 0xa3e   : > { %v3040_v54 = vpop.permute.xlu2 %3039  ;;  %v3337_v56 = vpop.f32.mrf.mxu0 }
 0xa3f   : > { %v3299_v57 = vpack.c.bf16 %v3040_v54, %v3040_v54  ;;  %3603 = vmatpush.bf16.msra.mxu2 %v5542_v15  ;;  %v5575_v15 = vld [vmem:[#allocation24 + $0xf4] sm:$0xf0] }
 0xa41   : > { %v5931_v4 = vpop.eup %5930  ;;  %v3419_v60 = vsel %vm1698_vm8, %v3299_v57, 0 }
 0xa42   : > { %v3292_v61 = vpack.c.bf16 %v5931_v4, %v5931_v4  ;;  %3428 = vmatpush.bf16.msrb.mxu1 %v3419_v60  ;;  %v3282_v63 = vsel %vm1606_vm9, %v5931_v4, 0.0 }
 0xa43   : > { %3277 = vadd.xlane.f32.xlu2 %v3276_v14  ;;  %3283 = vadd.xlane.f32.xlu0 %v3282_v63 }
 0xa44   : > { %5121 = vmatmul.msk.bf16.vlgmr.msrb.gmra.mxu2 %vm1606_vm9, %v3292_v61  ;;  %v5850_v61 = vld [vmem:[#allocation19] ss:$0 sm:$0xff] }
 0xa45   : > { %5120 = vmatmul.msk.bf16.vlgmr.msrb.gmra.mxu1 %vm1606_vm9, %v3291_v0 }
 0xa46   : > { %3565 = vmatpush.bf16.msra.mxu1 %v5541_v23 }
 0xa4a   : > { %3566 = vmatpush.bf16.msra.mxu1 %v5540_v58 }
 0xa4b   : > { %3265 = vadd.xlane.f32.xlu0 %v3264_v18 }
 0xa55   : > { %v3263_v1 = vpop.xlane.xlu1 %3262 }
 0xa92   : > { %v3272_v62 = vpop.xlane.xlu1 %3271 }
 0xa93   : > { %5932 = vrcp.f32 %v3272_v62 }
 0xa94   : > { %v3269_v2 = vpop.xlane.xlu0 %3268 }
 0xa95   : > { %5934 = vrcp.f32 %v3269_v2 }
 0xa99   : > { %v5933_v6 = vpop.eup %5932 }
 0xa9b   : > { %v5935_v8 = vpop.eup %5934 }
 0xa9f   : > { %v3354_v5 = vpop.f32.mrf.mxu1 }
 0xaa0   : > { %v3463_v40 = vmul.f32 %v5935_v8, %v3354_v5  ;;  %v3275_v31 = vpop.xlane.xlu1 %3274 }
 0xaa1   : > { %5936 = vrcp.f32 %v3275_v31 }
 0xaa3   : > { %v3373_v9 = vpop.f32.mrf.mxu2 }
 0xaa4   : > { %v3464_v12 = vmul.f32 %v5933_v6, %v3373_v9 }
 0xaa6   : > { %v3479_v10 = vpack.c.bf16 %v3464_v12, %v3463_v40  ;;  %v5272_v40 = vld [vmem:[#allocation24 + $0xe0] sm:$0xf]  ;;  %v5574_v12 = vld [vmem:[#allocation24 + $0xec] sm:$0xf0] }
 0xaa7   : > { %v3356_v3 = vpop.f32.mrf.mxu1  ;;  %v5937_v25 = vpop.eup %5936 }
 0xaa8   : > { %5130 = vmatmul.msk.bf16.vlgmr.msrb.gmra.mxu3 %vm1453_vm7, %v3479_v10  ;;  %v5273_v10 = vor.u32 %v5574_v12, %v5272_v40  ;;  %v5280_v3 = vld [vmem:[#allocation24 + $0xe8] sm:$0xf]  ;;  %v5192_v12 = vld [vmem:[#allocation24 + $0x40] sm:$0xf] }
 0xaaa   : > { %3875 = vmatpush.bf16.msra.mxu3 %v5273_v10  ;;  %v5552_v10 = vld [vmem:[#allocation24 + $0x44] sm:$0xf] }
 0xaab   : > { %v3375_v39 = vpop.f32.mrf.mxu2 }
 0xaac   : > { %v5277_v39 = vor.u32 %v5572_v52, %v5274_v13  ;;  %v5554_v52 = vld [vmem:[#allocation24 + $0x4c] sm:$0xf0] }
 0xaad   : > { %v5193_v13 = vor.u32 %v5554_v52, %v5192_v12 }
 0xaae   : > { %v3281_v55 = vpop.xlane.xlu2 %3280  ;;  %3889 = vmatpush.bf16.msra.mxu0 %v5277_v39  ;;  %v5555_v39 = vld [vmem:[#allocation24 + $0x54] sm:$0xf0] }
 0xab1   : > { %v3392_v16 = vpop.f32.mrf.mxu3  ;;  %v3411_v41 = vpop.f32.mrf.mxu0 }
 0xab2   : > { %v3465_v26 = vmul.f32 %v5937_v25, %v3392_v16  ;;  %v5573_v16 = vld [vmem:[#allocation24 + $0xec] sm:$0xf]  ;;  %v5258_v25 = vld [vmem:[#allocation24 + $0xd0] sm:$0xf0] }
 0xab6   : > { %v3278_v17 = vpop.xlane.xlu2 %3277  ;;  %v3284_v19 = vpop.xlane.xlu0 %3283 }
 0xab7   : > { %5938 = vrcp.f32 %v3278_v17  ;;  %v5256_v17 = vld [vmem:[#allocation24 + $0xc0] sm:$0xf] }
 0xab8   : > { %5940 = vrcp.f32 %v3263_v1 }
 0xab9   : > { %v3394_v20 = vpop.f32.mrf.mxu3  ;;  %v3413_v22 = vpop.f32.mrf.mxu0 }
 0xaba   : > { %v5568_v20 = vld [vmem:[#allocation24 + $0xc4] sm:$0xf] }
 0xabd   : > { %v5939_v35 = vpop.eup %5938 }
 0xabe   : > { %v3466_v27 = vmul.f32 %v5939_v35, %v3411_v41  ;;  %v3266_v28 = vpop.xlane.xlu0 %3265  ;;  %v5941_v33 = vpop.eup %5940  ;;  %v5282_v41 = vld [vmem:[#allocation24 + $0xf8] sm:$0xf0]  ;;  %v5264_v35 = vld [vmem:[#allocation24 + $0xc8] sm:$0xf] }
 0xabf   : > { %5942 = vrcp.f32 %v3266_v28  ;;  %v3461_v36 = vmul.f32 %v5941_v33, %v7226_v30  ;;  %v5285_v31 = vor.u32 %v5573_v16, %v5282_v41  ;;  %v5553_v41 = vld [vmem:[#allocation24 + $0x4c] sm:$0xf] }
 0xac0   : > { %5944 = vrcp.f32 %v3281_v55  ;;  %v3543_v48 = vpack.c.bf16 %v3466_v27, %v3465_v26  ;;  %v5281_v55 = vor.u32 %v5575_v15, %v5280_v3  ;;  %v5571_v26 = vld [vmem:[#allocation24 + $0xd4] sm:$0xf0]  ;;  %v5261_v27 = vor.u32 %v5568_v20, %v5258_v25  ;;  %v5194_v3 = vld [vmem:[#allocation24 + $0x50] sm:$0xf0]  ;;  %v5200_v15 = vld [vmem:[#allocation24 + $0x48] sm:$0xf] }
 0xac1   : > { %5946 = vrcp.f32 %v3284_v19  ;;  %v5570_v19 = vld [vmem:[#allocation24 + $0xcc] sm:$0xf0]  ;;  %3917 = vmatpush.bf16.msrb.mxu2 %v5285_v31  ;;  %v5265_v28 = vor.u32 %v5571_v26, %v5264_v35  ;;  %v5201_v16 = vor.u32 %v5555_v39, %v5200_v15  ;;  %v5202_v31 = vld [vmem:[#allocation24 + $0x58] sm:$0xf0]  ;;  %v5178_v35 = vld [vmem:[#allocation24 + $0x30] sm:$0xf0] }
 0xac2   : > { %v3430_v32 = vpop.f32.mrf.mxu1  ;;  %5148 = vmatmul.msk.bf16.vlgmr.msra.gmra.mxu1 %vm1453_vm7, %v3543_v48  ;;  %v5257_v22 = vor.u32 %v5570_v19, %v5256_v17  ;;  %v5569_v48 = vld [vmem:[#allocation24 + $0xcc] sm:$0xf]  ;;  %3890 = vmatpush.bf16.msra.mxu0 %v5261_v27  ;;  %v5205_v17 = vor.u32 %v5553_v41, %v5202_v31  ;;  %v5176_v19 = vld [vmem:[#allocation24 + $0x20] sm:$0xf]  ;;  %v5550_v20 = vld [vmem:[#allocation24 + $0x2c] sm:$0xf0] }
 0xac3   : > { %3903 = vmatpush.bf16.msrb.mxu1 %v5281_v55  ;;  %v5197_v55 = vor.u32 %v5552_v10, %v5194_v3  ;;  %v5177_v25 = vor.u32 %v5550_v20, %v5176_v19  ;;  %v5184_v26 = vld [vmem:[#allocation24 + $0x28] sm:$0xf]  ;;  %v5551_v27 = vld [vmem:[#allocation24 + $0x34] sm:$0xf0]  ;;  %v5591_v15 = vld [vmem:[#allocation27 + $0x78] sm:$0xff] }
 0xac4   : > { %3876 = vmatpush.bf16.msra.mxu3 %v5257_v22  ;;  %v5548_v22 = vld [vmem:[#allocation24 + $0x24] sm:$0xf]  ;;  %v5599_v39 = vld [vmem:[#allocation27 + $0xb8] sm:$0xff]  ;;  %v5597_v31 = vld [vmem:[#allocation27 + $0xa8] sm:$0xff] }
 0xac5   : > { %v5943_v34 = vpop.eup %5942  ;;  %v5607_v41 = vld [vmem:[#allocation27 + $0xf8] sm:$0xff]  ;;  %v5606_v19 = vld [vmem:[#allocation27 + $0xf0] sm:$0xff]  ;;  %v5588_v20 = vld [vmem:[#allocation27 + $0x60] sm:$0xff] }
 0xac6   : > { %v5945_v24 = vpop.eup %5944  ;;  %v3462_v37 = vmul.f32 %v5943_v34, %v7233_v47  ;;  %v5240_v34 = vld [vmem:[#allocation24 + $0xa0] sm:$0xf] }
 0xac7   : > { %v5947_v42 = vpop.eup %5946  ;;  %v3449_v43 = vpop.f32.mrf.mxu2  ;;  %v3467_v45 = vmul.f32 %v5945_v24, %v3430_v32  ;;  %v5266_v32 = vld [vmem:[#allocation24 + $0xd8] sm:$0xf0]  ;;  %3904 = vmatpush.bf16.msrb.mxu1 %v5265_v28  ;;  %v5566_v24 = vld [vmem:[#allocation24 + $0xac] sm:$0xf0] }
 0xac8   : > { %v3473_v44 = vpack.c.bf16 %v3462_v37, %v3461_v36  ;;  %v3468_v46 = vmul.f32 %v5947_v42, %v3449_v43  ;;  %v5269_v33 = vor.u32 %v5569_v48, %v5266_v32  ;;  %v5564_v36 = vld [vmem:[#allocation24 + $0xa4] sm:$0xf]  ;;  %v5241_v37 = vor.u32 %v5566_v24, %v5240_v34  ;;  %v5242_v42 = vld [vmem:[#allocation24 + $0xb0] sm:$0xf0]  ;;  %v5248_v43 = vld [vmem:[#allocation24 + $0xa8] sm:$0xf] }
 0xac9   : > { %v5181_v48 = vor.u32 %v5548_v22, %v5178_v35  ;;  %v5185_v32 = vor.u32 %v5551_v27, %v5184_v26  ;;  %v5186_v34 = vld [vmem:[#allocation24 + $0x38] sm:$0xf0]  ;;  %v5596_v22 = vld [vmem:[#allocation27 + $0xa0] sm:$0xff]  ;;  %v5605_v35 = vld [vmem:[#allocation27 + $0xe8] sm:$0xff] }
 0xaca   : > { %v3580_v49 = vpack.c.bf16 %v3468_v46, %v3467_v45  ;;  %v3432_v50 = vpop.f32.mrf.mxu1  ;;  %5139 = vmatmul.msk.bf16.vlgmr.msrb.gmra.mxu0 %vm1453_vm7, %v3473_v44  ;;  %3918 = vmatpush.bf16.msrb.mxu2 %v5269_v33  ;;  %v5567_v44 = vld [vmem:[#allocation24 + $0xb4] sm:$0xf0]  ;;  %v5245_v45 = vor.u32 %v5564_v36, %v5242_v42  ;;  %v5549_v33 = vld [vmem:[#allocation24 + $0x2c] sm:$0xf]  ;;  %v5546_v42 = vld [vmem:[#allocation24 + $0xc] sm:$0xf0] }
 0xacb   : > { %v5249_v46 = vor.u32 %v5567_v44, %v5248_v43  ;;  %v5250_v50 = vld [vmem:[#allocation24 + $0xb8] sm:$0xf0]  ;;  %3877 = vmatpush.bf16.msra.mxu3 %v5241_v37  ;;  %v5189_v36 = vor.u32 %v5549_v33, %v5186_v34  ;;  %v5160_v37 = vld [vmem:[#allocation24] sm:$0xf]  ;;  %v5544_v43 = vld [vmem:[#allocation24 + $0x4] sm:$0xf] }
 0xacc   : > { %5157 = vmatmul.msk.bf16.vlgmr.msra.gmra.mxu2 %vm1453_vm7, %v3580_v49  ;;  %v5565_v49 = vld [vmem:[#allocation24 + $0xac] sm:$0xf]  ;;  %3891 = vmatpush.bf16.msra.mxu0 %v5245_v45  ;;  %v5161_v45 = vor.u32 %v5546_v42, %v5160_v37  ;;  %v5587_v26 = vld [vmem:[#allocation27 + $0x58] sm:$0xff]  ;;  %v5594_v33 = vld [vmem:[#allocation27 + $0x90] sm:$0xff] }
 0xacd   : > { %3905 = vmatpush.bf16.msrb.mxu1 %v5249_v46  ;;  %v5162_v46 = vld [vmem:[#allocation24 + $0x10] sm:$0xf0]  ;;  %v5595_v27 = vld [vmem:[#allocation27 + $0x98] sm:$0xff]  ;;  %v5585_v37 = vld [vmem:[#allocation27 + $0x48] sm:$0xff] }
 0xace   : > { %v5579_v34 = vld [vmem:[#allocation27 + $0x18] sm:$0xff]  ;;  %v5593_v42 = vld [vmem:[#allocation27 + $0x88] sm:$0xff] }
 0xacf   : > { %v3451_v51 = vpop.f32.mrf.mxu2 }
 0xad0   : > { %v5253_v51 = vor.u32 %v5565_v49, %v5250_v50  ;;  %v5168_v49 = vld [vmem:[#allocation24 + $0x8] sm:$0xf]  ;;  %v5165_v50 = vor.u32 %v5544_v43, %v5162_v46  ;;  %v5578_v43 = vld [vmem:[#allocation27 + $0x10] sm:$0xff] }
 0xad2   : > { %3919 = vmatpush.bf16.msrb.mxu2 %v5253_v51  ;;  %v5547_v51 = vld [vmem:[#allocation24 + $0x14] sm:$0xf0] }
 0xb2b   : > { %v3504_v53 = vpop.f32.mrf.mxu3 }
 0xb33   : > { %v3506_v14 = vpop.f32.mrf.mxu3 }
 0xb3f   : > { %v3568_v57 = vpop.f32.mrf.mxu1 }
 0xb47   : > { %v3533_v54 = vpop.f32.mrf.mxu0  ;;  %v3570_v38 = vpop.f32.mrf.mxu1 }
 0xb48   : > { %v3534_v56 = vadd.f32 %v3533_v54, %v3504_v53  ;;  %v5224_v53 = vld [vmem:[#allocation24 + $0x80] sm:$0xf]  ;;  %v5562_v54 = vld [vmem:[#allocation24 + $0x8c] sm:$0xf0] }
 0xb4a   : > { %v3573_v4 = vadd.f32 %v3568_v57, %v3534_v56  ;;  %v5560_v56 = vld [vmem:[#allocation24 + $0x84] sm:$0xf]  ;;  %v5225_v57 = vor.u32 %v5562_v54, %v5224_v53  ;;  %v5545_v53 = vld [vmem:[#allocation24 + $0xc] sm:$0xf]  ;;  %v5170_v54 = vld [vmem:[#allocation24 + $0x18] sm:$0xf0] }
 0xb4c   : > { %3878 = vmatpush.bf16.msra.mxu3 %v5225_v57  ;;  %v5173_v57 = vor.u32 %v5545_v53, %v5170_v54  ;;  %v5577_v53 = vld [vmem:[#allocation27 + $0x8] sm:$0xff] }
 0xb4d   : > { %v5601_v54 = vld [vmem:[#allocation27 + $0xc8] sm:$0xff] }
 0xb4f   : > { %v3535_v30 = vpop.f32.mrf.mxu0  ;;  %v3605_v60 = vpop.f32.mrf.mxu2 }
 0xb50   : > { %v3610_v47 = vadd.f32 %v3605_v60, %v3573_v4  ;;  %v3536_v63 = vadd.f32 %v3535_v30, %v3506_v14  ;;  %v5226_v4 = vld [vmem:[#allocation24 + $0x90] sm:$0xf0]  ;;  %v5232_v30 = vld [vmem:[#allocation24 + $0x88] sm:$0xf]  ;;  %v5563_v60 = vld [vmem:[#allocation24 + $0x94] sm:$0xf0] }
 0xb51   : > { %v5561_v14 = vld [vmem:[#allocation24 + $0x8c] sm:$0xf] }
 0xb52   : > { %v3612_v0 = vadd.f32 %v3610_v47, %v7120_v21  ;;  %v3574_v59 = vadd.f32 %v3570_v38, %v3536_v63  ;;  %v5229_v47 = vor.u32 %v5560_v56, %v5226_v4  ;;  %v5234_v63 = vld [vmem:[#allocation24 + $0x98] sm:$0xf0]  ;;  %v5208_v38 = vld [vmem:[#allocation24 + $0x60] sm:$0xf]  ;;  %v5169_v56 = vor.u32 %v5547_v51, %v5168_v49  ;;  %v5584_v49 = vld [vmem:[#allocation27 + $0x40] sm:$0xff] }
 0xb54   : > { %v7250_v18 = vadd.f32 %v5850_v61, %v3612_v0  ;;  %v5237_v0 = vor.u32 %v5561_v14, %v5234_v63  ;;  %3892 = vmatpush.bf16.msra.mxu0 %v5229_v47 }
 0xb56   : > { %3622 = vadd.xlane.f32.xlu0 %v7250_v18  ;;  %3920 = vmatpush.bf16.msrb.mxu2 %v5237_v0 }
 0xb57   : > { %v3607_v1 = vpop.f32.mrf.mxu2 }
 0xb58   : > { %v3611_v62 = vadd.f32 %v3607_v1, %v3574_v59  ;;  %v5558_v59 = vld [vmem:[#allocation24 + $0x6c] sm:$0xf0]  ;;  %v5556_v1 = vld [vmem:[#allocation24 + $0x64] sm:$0xf] }
 0xb5a   : > { %v3613_v2 = vadd.f32 %v3611_v62, %v7124_v29  ;;  %v5209_v62 = vor.u32 %v5558_v59, %v5208_v38 }
 0xb5c   : > { %v7254_v23 = vadd.f32 %v5850_v61, %v3613_v2  ;;  %v5233_v61 = vor.u32 %v5563_v60, %v5232_v30  ;;  %v5210_v2 = vld [vmem:[#allocation24 + $0x70] sm:$0xf0]  ;;  %3879 = vmatpush.bf16.msra.mxu3 %v5209_v62 }
 0xb5e   : > { %3624 = vadd.xlane.f32.xlu1 %v7254_v23  ;;  %3906 = vmatpush.bf16.msrb.mxu1 %v5233_v61 }
 0xb60   : > { %3880 = vmatpush.bf16.msra.mxu3 %v5193_v13 }
 0xb64   : > { %3881 = vmatpush.bf16.msra.mxu3 %v5177_v25  ;;  %v5581_v25 = vld [vmem:[#allocation27 + $0x28] sm:$0xff] }
 0xb68   : > { %3882 = vmatpush.bf16.msra.mxu3 %v5161_v45 }
 0xbc9   : > { %v3623_v58 = vpop.xlane.xlu0 %3622 }
 0xbca   : > { %v3626_v5 = vmul.f32 %v3623_v58, %v6924_v11  ;;  %v5216_v58 = vld [vmem:[#allocation24 + $0x68] sm:$0xf] }
 0xbcc   : > { %v7259_v6 = vsub.f32 %v7250_v18, %v3626_v5  ;;  %v5559_v5 = vld [vmem:[#allocation24 + $0x74] sm:$0xf0] }
 0xbce   : > { %v3630_v21 = vmul.f32 %v7259_v6, %v7259_v6 }
 0xbd0   : > { %3632 = vadd.xlane.f32.xlu2 %v3630_v21  ;;  %v5213_v21 = vor.u32 %v5556_v1, %v5210_v2 }
 0xbd1   : > { %v3625_v7 = vpop.xlane.xlu1 %3624 }
 0xbd2   : > { %v3627_v8 = vmul.f32 %v3625_v7, %v6924_v11  ;;  %v5217_v7 = vor.u32 %v5559_v5, %v5216_v58  ;;  %3893 = vmatpush.bf16.msra.mxu0 %v5213_v21  ;;  %v5851_v21 = vld [vmem:[#allocation21] ss:$0 sm:$0xff] }
 0xbd4   : > { %v7265_v9 = vsub.f32 %v7254_v23, %v3627_v8  ;;  %v5557_v8 = vld [vmem:[#allocation24 + $0x6c] sm:$0xf]  ;;  %3907 = vmatpush.bf16.msrb.mxu1 %v5217_v7 }
 0xbd6   : > { %v3631_v29 = vmul.f32 %v7265_v9, %v7265_v9  ;;  %3894 = vmatpush.bf16.msra.mxu0 %v5197_v55  ;;  %v5598_v55 = vld [vmem:[#allocation27 + $0xb0] sm:$0xff] }
 0xbd8   : > { %3634 = vadd.xlane.f32.xlu0 %v3631_v29  ;;  %v5218_v29 = vld [vmem:[#allocation24 + $0x78] sm:$0xf0]  ;;  %3908 = vmatpush.bf16.msrb.mxu1 %v5201_v16 }
 0xbd9   : > { %v5221_v40 = vor.u32 %v5557_v8, %v5218_v29  ;;  %v5852_v29 = vld [vmem:[#allocation22] ss:$0 sm:$0xff] }
 0xbda   : > { %3895 = vmatpush.bf16.msra.mxu0 %v5181_v48  ;;  %v5583_v16 = vld [vmem:[#allocation27 + $0x38] sm:$0xff]  ;;  %v5604_v48 = vld [vmem:[#allocation27 + $0xe0] sm:$0xff] }
 0xbdb   : > { %3921 = vmatpush.bf16.msrb.mxu2 %v5221_v40  ;;  %4263 = vmatpush.bf16.msrb.mxu3 %v5583_v16 }
 0xbdc   : > { %3909 = vmatpush.bf16.msrb.mxu1 %v5185_v32  ;;  %v5586_v32 = vld [vmem:[#allocation27 + $0x50] sm:$0xff] }
 0xbde   : > { %3896 = vmatpush.bf16.msra.mxu0 %v5165_v50  ;;  %v5592_v50 = vld [vmem:[#allocation27 + $0x80] sm:$0xff] }
 0xbdf   : > { %3922 = vmatpush.bf16.msrb.mxu2 %v5205_v17  ;;  %v5582_v17 = vld [vmem:[#allocation27 + $0x30] sm:$0xff] }
 0xbe0   : > { %3910 = vmatpush.bf16.msrb.mxu1 %v5169_v56  ;;  %4264 = vmatpush.bf16.msrb.mxu3 %v5582_v17 }
 0xbe2   : > { %4277 = vmatpush.bf16.msrb.mxu0 %v5591_v15 }
 0xbe3   : > { %3923 = vmatpush.bf16.msrb.mxu2 %v5189_v36  ;;  %v7273_v36 = vld [vmem:[#allocation25] sm:$0xf] }
 0xbe4   : > { %4291 = vmatpush.bf16.msra.mxu1 %v5599_v39  ;;  %4265 = vmatpush.bf16.msrb.mxu3 %v5581_v25  ;;  %v3708_v45 = vperm.slane %v7273_v36, 1  ;;  %v3709_v46 = vperm.slane %v7273_v36, 2 }
 0xbe7   : > { %3924 = vmatpush.bf16.msrb.mxu2 %v5173_v57 }
 0xbe8   : > { %4292 = vmatpush.bf16.msra.mxu1 %v5598_v55 }
 0xbeb   : > { %4305 = vmatpush.bf16.msra.mxu2 %v5607_v41 }
 0xbec   : > { %4293 = vmatpush.bf16.msra.mxu1 %v5597_v31 }
 0xbef   : > { %4306 = vmatpush.bf16.msra.mxu2 %v5606_v19 }
 0xbf0   : > { %4294 = vmatpush.bf16.msra.mxu1 %v5596_v22 }
 0xbf3   : > { %4307 = vmatpush.bf16.msra.mxu2 %v5605_v35 }
 0xbf4   : > { %4295 = vmatpush.bf16.msra.mxu1 %v5595_v27 }
 0xbf7   : > { %4308 = vmatpush.bf16.msra.mxu2 %v5604_v48 }
 0xbf8   : > { %4296 = vmatpush.bf16.msra.mxu1 %v5594_v33 }
 0xbfc   : > { %4297 = vmatpush.bf16.msra.mxu1 %v5593_v42 }
 0xc00   : > { %4298 = vmatpush.bf16.msra.mxu1 %v5592_v50 }
 0xc43   : > { %v3633_v28 = vpop.xlane.xlu2 %3632 }
 0xc44   : > { %v3636_v24 = vmul.f32 %v3633_v28, %v6924_v11  ;;  %v5580_v28 = vld [vmem:[#allocation27 + $0x20] sm:$0xff] }
 0xc45   : > { %4266 = vmatpush.bf16.msrb.mxu3 %v5580_v28 }
 0xc46   : > { %v3638_v44 = vadd.f32 1e-05, %v3636_v24  ;;  %v5603_v24 = vld [vmem:[#allocation27 + $0xd8] sm:$0xff] }
 0xc47   : > { %4309 = vmatpush.bf16.msra.mxu2 %v5603_v24 }
 0xc48   : > { %5948 = vrsqrt.f32 %v3638_v44  ;;  %vm3646_vm7 = vweird.f32 %v3638_v44 }
 0xc49   : > { %4267 = vmatpush.bf16.msrb.mxu3 %v5579_v34 }
 0xc4b   : > { %v3635_v4 = vpop.xlane.xlu0 %3634 }
 0xc4c   : > { %v3637_v30 = vmul.f32 %v3635_v4, %v6924_v11 }
 0xc4d   : > { %4268 = vmatpush.bf16.msrb.mxu3 %v5578_v43 }
 0xc4e   : > { %v5949_v60 = vpop.eup %5948  ;;  %v3639_v47 = vadd.f32 1e-05, %v3637_v30 }
 0xc4f   : > { %v3641_v61 = vmul.f32 %v5949_v60, %v3638_v44  ;;  %vm3647_vm6 = vweird.f32 %v5949_v60  ;;  %v5602_v44 = vld [vmem:[#allocation27 + $0xd0] sm:$0xff] }
 0xc50   : > { %5950 = vrsqrt.f32 %v3639_v47  ;;  %vm3648_vm8 = vmor %vm3646_vm7, %vm3647_vm6  ;;  %vm3656_vm10 = vweird.f32 %v3639_v47  ;;  %4310 = vmatpush.bf16.msra.mxu2 %v5602_v44 }
 0xc51   : > { %v3642_v14 = vmul.f32 %v5949_v60, %v3641_v61  ;;  %4269 = vmatpush.bf16.msrb.mxu3 %v5577_v53  ;;  %v3710_v61 = vperm.slane %v7273_v36, 3 }
 0xc53   : > { %v3643_v63 = vmul.f32 0.5, %v3642_v14  ;;  %v5576_v14 = vld [vmem:[#allocation27] sm:$0xff] }
 0xc54   : > { %4311 = vmatpush.bf16.msra.mxu2 %v5601_v54 }
 0xc55   : > { %v3644_v0 = vsub.f32 1.5, %v3643_v63  ;;  %v5600_v63 = vld [vmem:[#allocation27 + $0xc0] sm:$0xff]  ;;  %4270 = vmatpush.bf16.msrb.mxu3 %v5576_v14 }
 0xc56   : > { %v5951_v38 = vpop.eup %5950 }
 0xc57   : > { %v3645_v59 = vmul.f32 %v5949_v60, %v3644_v0  ;;  %v3651_v1 = vmul.f32 %v5951_v38, %v3639_v47  ;;  %vm3657_vm9 = vweird.f32 %v5951_v38 }
 0xc58   : > { %vm3658_vm11 = vmor %vm3656_vm10, %vm3657_vm9  ;;  %4312 = vmatpush.bf16.msra.mxu2 %v5600_v63 }
 0xc59   : > { %v3652_v62 = vmul.f32 %v5951_v38, %v3651_v1  ;;  %v3649_v2 = vsel %vm3648_vm8, %v5949_v60, %v3645_v59  ;;  %v3707_v60 = vperm.slane %v7273_v36, 0 }
 0xc5a   : > { %v3660_v11 = vmul.f32 %v3649_v2, %v7259_v6  ;;  %v5590_v6 = vld [vmem:[#allocation27 + $0x70] sm:$0xff] }
 0xc5b   : > { %v3653_v58 = vmul.f32 0.5, %v3652_v62  ;;  %4278 = vmatpush.bf16.msrb.mxu0 %v5590_v6 }
 0xc5c   : > { %v3665_v40 = vmul.f32 %v5851_v21, %v3660_v11 }
 0xc5d   : > { %v3654_v5 = vsub.f32 1.5, %v3653_v58 }
 0xc5e   : > { %v3670_v10 = vadd.f32 %v5852_v29, %v3665_v40 }
 0xc5f   : > { %v3655_v7 = vmul.f32 %v5951_v38, %v3654_v5 }
 0xc61   : > { %v3659_v8 = vsel %vm3658_vm11, %v5951_v38, %v3655_v7 }
 0xc62   : > { %v3661_v12 = vmul.f32 %v3659_v8, %v7265_v9  ;;  %v5589_v9 = vld [vmem:[#allocation27 + $0x68] sm:$0xff] }
 0xc63   : > { %4279 = vmatpush.bf16.msrb.mxu0 %v5589_v9 }
 0xc64   : > { %v3666_v52 = vmul.f32 %v5851_v21, %v3661_v12 }
 0xc66   : > { %v3671_v13 = vadd.f32 %v5852_v29, %v3666_v52 }
 0xc67   : > { %4280 = vmatpush.bf16.msrb.mxu0 %v5588_v20 }
 0xc68   : > { %v3704_v3 = vpack.c.bf16 %v3671_v13, %v3670_v10 }
 0xc6a   : > { %3883 = vmatmul.bf16.vlgmr.msra.gmra.mxu3 %v3704_v3  ;;  %3897 = vmatmul.bf16.vlgmr.msra.gmra.mxu0 %v3704_v3 }
 0xc6b   : > { %3911 = vmatmul.bf16.vlgmr.msrb.gmra.mxu1 %v3704_v3  ;;  %3925 = vmatmul.bf16.vlgmr.msrb.gmra.mxu2 %v3704_v3 }
 0xc6c   : > { %4281 = vmatpush.bf16.msrb.mxu0 %v5587_v26 }
 0xc70   : > { %4282 = vmatpush.bf16.msrb.mxu0 %v5586_v32 }
 0xc74   : > { %4283 = vmatpush.bf16.msrb.mxu0 %v5585_v37 }
 0xc78   : > { %4284 = vmatpush.bf16.msrb.mxu0 %v5584_v49 }
 0xce7   : > { %v3898_v51 = vpop.f32.mrf.mxu0 }
 0xce8   : > { %v7277_v56 = vadd.f32 %v3898_v51, %v3708_v45  ;;  %v3912_v57 = vpop.f32.mrf.mxu1 }
 0xce9   : > { %v7279_v4 = vadd.f32 %v3912_v57, %v3709_v46 }
 0xcea   : > { %v3940_v30 = vmul.f32 %v7277_v56, %v7277_v56 }
 0xceb   : > { %v3941_v47 = vmul.f32 %v7279_v4, %v7279_v4 }
 0xcec   : > { %v3948_v0 = vmul.f32 %v3940_v30, %v7277_v56 }
 0xced   : > { %v3949_v38 = vmul.f32 %v3941_v47, %v7279_v4  ;;  %v3884_v59 = vpop.f32.mrf.mxu3  ;;  %v3932_v47 = vmul.f32 0.5, %v7277_v56 }
 0xcee   : > { %v3956_v1 = vmul.f32 0.044715, %v3948_v0  ;;  %v7289_v62 = vadd.f32 %v3884_v59, %v3707_v60  ;;  %v3926_v2 = vpop.f32.mrf.mxu2  ;;  %v3933_v0 = vmul.f32 0.5, %v7279_v4 }
 0xcef   : > { %v3957_v58 = vmul.f32 0.044715, %v3949_v38  ;;  %v7291_v5 = vadd.f32 %v3926_v2, %v3710_v61  ;;  %v3900_v21 = vpop.f32.mrf.mxu0 }
 0xcf0   : > { %v3964_v11 = vadd.f32 %v3956_v1, %v7277_v56  ;;  %v3939_v7 = vmul.f32 %v7289_v62, %v7289_v62  ;;  %v3901_v8 = vadd.f32 %v3900_v21, %v3708_v45  ;;  %v3914_v29 = vpop.f32.mrf.mxu1  ;;  %v3931_v56 = vmul.f32 0.5, %v7289_v62 }
 0xcf1   : > { %v3965_v40 = vadd.f32 %v3957_v58, %v7279_v4  ;;  %v3942_v12 = vmul.f32 %v7291_v5, %v7291_v5  ;;  %v3915_v52 = vadd.f32 %v3914_v29, %v3709_v46  ;;  %v3934_v4 = vmul.f32 0.5, %v7291_v5 }
 0xcf2   : > { %v3947_v10 = vmul.f32 %v3939_v7, %v7289_v62  ;;  %v3944_v13 = vmul.f32 %v3901_v8, %v3901_v8  ;;  %v3972_v39 = vmul.f32 0.7978846, %v3964_v11 }
 0xcf3   : > { %v3950_v3 = vmul.f32 %v3942_v12, %v7291_v5  ;;  %v3945_v15 = vmul.f32 %v3915_v52, %v3915_v52  ;;  %v3973_v16 = vmul.f32 0.7978846, %v3965_v40  ;;  %v3937_v38 = vmul.f32 0.5, %v3915_v52 }
 0xcf4   : > { %v3955_v6 = vmul.f32 0.044715, %v3947_v10  ;;  %v3952_v55 = vmul.f32 %v3944_v13, %v3901_v8  ;;  %5952 = vtanh.f32 %v3972_v39 }
 0xcf5   : > { %v3958_v41 = vmul.f32 0.044715, %v3950_v3  ;;  %v3953_v9 = vmul.f32 %v3945_v15, %v3915_v52  ;;  %v3886_v31 = vpop.f32.mrf.mxu3  ;;  %5954 = vtanh.f32 %v3973_v16 }
 0xcf6   : > { %v3963_v17 = vadd.f32 %v3955_v6, %v7289_v62  ;;  %v3960_v19 = vmul.f32 0.044715, %v3952_v55  ;;  %v3887_v20 = vadd.f32 %v3886_v31, %v3707_v60  ;;  %v3928_v22 = vpop.f32.mrf.mxu2 }
 0xcf7   : > { %v3966_v25 = vadd.f32 %v3958_v41, %v7291_v5  ;;  %v3961_v35 = vmul.f32 0.044715, %v3953_v9  ;;  %v3929_v26 = vadd.f32 %v3928_v22, %v3710_v61  ;;  %v3936_v61 = vmul.f32 0.5, %v3901_v8 }
 0xcf8   : > { %v3968_v27 = vadd.f32 %v3960_v19, %v3901_v8  ;;  %v3943_v28 = vmul.f32 %v3887_v20, %v3887_v20  ;;  %v3971_v33 = vmul.f32 0.7978846, %v3963_v17  ;;  %v3935_v8 = vmul.f32 0.5, %v3887_v20 }
 0xcf9   : > { %v3969_v48 = vadd.f32 %v3961_v35, %v3915_v52  ;;  %v3946_v32 = vmul.f32 %v3929_v26, %v3929_v26  ;;  %v3974_v36 = vmul.f32 0.7978846, %v3966_v25  ;;  %v3938_v52 = vmul.f32 0.5, %v3929_v26 }
 0xcfa   : > { %v3976_v34 = vmul.f32 0.7978846, %v3968_v27  ;;  %v3951_v24 = vmul.f32 %v3943_v28, %v3887_v20  ;;  %v5953_v45 = vpop.eup %5952 }
 0xcfb   : > { %v3977_v37 = vmul.f32 0.7978846, %v3969_v48  ;;  %v3954_v42 = vmul.f32 %v3946_v32, %v3929_v26  ;;  %v5955_v49 = vpop.eup %5954  ;;  %v3988_v53 = vadd.f32 1.0, %v5953_v45 }
 0xcfc   : > { %5956 = vtanh.f32 %v3976_v34  ;;  %v3959_v43 = vmul.f32 0.044715, %v3951_v24  ;;  %v3989_v30 = vadd.f32 1.0, %v5955_v49 }
 0xcfd   : > { %5958 = vtanh.f32 %v3977_v37  ;;  %v3962_v44 = vmul.f32 0.044715, %v3954_v42  ;;  %v3996_v2 = vmul.f32 %v3988_v53, %v3932_v47 }
 0xcfe   : > { %5960 = vtanh.f32 %v3971_v33  ;;  %v3967_v46 = vadd.f32 %v3959_v43, %v3887_v20  ;;  %v3997_v21 = vmul.f32 %v3989_v30, %v3933_v0  ;;  %v5853_v33 = vld [vmem:[#allocation28] ss:$0 sm:$0xff] }
 0xcff   : > { %5962 = vtanh.f32 %v3974_v36  ;;  %v3970_v50 = vadd.f32 %v3962_v44, %v3929_v26 }
 0xd00   : > { %v3975_v51 = vmul.f32 0.7978846, %v3967_v46 }
 0xd01   : > { %v3978_v54 = vmul.f32 0.7978846, %v3970_v50 }
 0xd02   : > { %v5957_v57 = vpop.eup %5956  ;;  %5964 = vtanh.f32 %v3975_v51 }
 0xd03   : > { %v5959_v60 = vpop.eup %5958  ;;  %v3992_v14 = vadd.f32 1.0, %v5957_v57  ;;  %5966 = vtanh.f32 %v3978_v54 }
 0xd04   : > { %v5961_v63 = vpop.eup %5960  ;;  %v3993_v59 = vadd.f32 1.0, %v5959_v60 }
 0xd05   : > { %v5963_v1 = vpop.eup %5962  ;;  %v4000_v58 = vmul.f32 %v3992_v14, %v3936_v61  ;;  %v3987_v7 = vadd.f32 1.0, %v5961_v63 }
 0xd06   : > { %v4001_v11 = vmul.f32 %v3993_v59, %v3937_v38  ;;  %v3990_v12 = vadd.f32 1.0, %v5963_v1 }
 0xd07   : > { %v4068_v29 = vpack.c.bf16 %v4000_v58, %v3996_v2  ;;  %v3995_v39 = vmul.f32 %v3987_v7, %v3931_v56 }
 0xd08   : > { %v5965_v40 = vpop.eup %5964  ;;  %v4069_v10 = vpack.c.bf16 %v4001_v11, %v3997_v21  ;;  %v3998_v55 = vmul.f32 %v3990_v12, %v3934_v4 }
 0xd09   : > { %v5967_v13 = vpop.eup %5966  ;;  %v3991_v3 = vadd.f32 1.0, %v5965_v40  ;;  %4285 = vmatmul.bf16.vlgmr.msrb.gmra.mxu0 %v4068_v29 }
 0xd0a   : > { %v3994_v15 = vadd.f32 1.0, %v5967_v13  ;;  %4299 = vmatmul.bf16.vlgmr.msra.gmra.mxu1 %v4069_v10 }
 0xd0b   : > { %v3999_v6 = vmul.f32 %v3991_v3, %v3935_v8 }
 0xd0c   : > { %v4002_v16 = vmul.f32 %v3994_v15, %v3938_v52 }
 0xd0d   : > { %v4067_v41 = vpack.c.bf16 %v3999_v6, %v3995_v39 }
 0xd0e   : > { %v4070_v9 = vpack.c.bf16 %v4002_v16, %v3998_v55 }
 0xd0f   : > { %4271 = vmatmul.bf16.vlgmr.msrb.gmra.mxu3 %v4067_v41 }
 0xd10   : > { %4313 = vmatmul.bf16.vlgmr.msra.gmra.mxu2 %v4070_v9 }
 0xd86   : > { %v4286_v31 = vpop.f32.mrf.mxu0 }
 0xd87   : > { %v4300_v17 = vpop.f32.mrf.mxu1 }
 0xd8e   : > { %v4288_v25 = vpop.f32.mrf.mxu0 }
 0xd8f   : > { %v4302_v27 = vpop.f32.mrf.mxu1 }
 0xd92   : > { %v4272_v62 = vpop.f32.mrf.mxu3 }
 0xd93   : > { %v4287_v19 = vadd.f32 %v4286_v31, %v4272_v62  ;;  %v4314_v20 = vpop.f32.mrf.mxu2 }
 0xd95   : > { %v4301_v22 = vadd.f32 %v4300_v17, %v4287_v19 }
 0xd97   : > { %v4315_v35 = vadd.f32 %v4314_v20, %v4301_v22 }
 0xd99   : > { %v4319_v32 = vadd.f32 %v4315_v35, %v7250_v18 }
 0xd9a   : > { %v4274_v5 = vpop.f32.mrf.mxu3 }
 0xd9b   : > { %v4289_v26 = vadd.f32 %v4288_v25, %v4274_v5  ;;  %v4316_v48 = vpop.f32.mrf.mxu2  ;;  %v4325_v36 = vadd.f32 %v5853_v33, %v4319_v32 }
 0xd9d   : > { %v4303_v28 = vadd.f32 %v4302_v27, %v4289_v26 }
 0xd9f   : > { %v4317_v34 = vadd.f32 %v4316_v48, %v4303_v28 }
 0xda1   : > { %v4320_v24 = vadd.f32 %v4317_v34, %v7254_v23 }
 0xda3   : > { %v4326_v37 = vadd.f32 %v5853_v33, %v4320_v24 }
 0xda5   : > { %v5611_v42 = vpack.c.bf16 %v4326_v37, %v4325_v36 }
 0xda7   : > { %5612 = vst [vmem:[%s1098_s1] sm:$0xff] %v5611_v42  }
 0xda8 PF: > { %s47_s7 = sadd.s32 1, %s6555_s7  }
 0xda9   : > { %p44_p7 = scmp.ge.s32.totalorder %s47_s7, 4  }
 0xdab   :  { %46 = sbr.rel (!%p44_p7) target bundleno = 28 (0x1c), region = 237 }
 0xdb0   :  { %4353 = vsyncpa [#allocation3], 1 }
 0xdb1   :  { %4355 = vsyncpa [#allocation3 + $0x1], 1 }
 0xdb2   :  { %4356 = vsyncpa [#allocation5], 1 }
 0xdb3   :  { %4357 = vsyncpa [#allocation8], 1 }
 0xdb4   :  { %4358 = vsyncpa [#allocation11], 1 }
 0xdb5   :  { %4359 = vsyncpa [#allocation14], 1 }
 0xdb6   :  { %4360 = vsyncpa [#allocation17], 1 }
 0xdb7   :  { %4361 = vsyncpa [#allocation20], 1 }
 0xdb8   :  { %4362 = vsyncpa [#allocation23], 1 }
 0xdb9   :  { %4363 = vsyncpa [#allocation26], 1 }
 0xdba   :  { %4364 = vsyncpa [#allocation29], 1 }

// kernel: transformer_forward.4
= control target key start
LH: loop header
LB: loop body
LE: loop exit
PB: predicated region body
PF: predicated region fallthrough
CT: control target
= control target key end

     0   :  { %s5441_s27 = smov 0   ;;  %s6798_s0 = inlined_call_operand.vmem [shape: bf16[4,8,128], index: 0, kind: input, shape index: {}]   ;;  %s6799_s1 = inlined_call_operand.vmem [shape: f32[8,8], index: 1, kind: input, shape index: {}]   ;;  %s6800_s2 = inlined_call_operand.vmem [shape: f32[1,128], index: 2, kind: input, shape index: {}]   ;;  %s6801_s3 = inlined_call_operand.vmem [shape: f32[1,128], index: 3, kind: input, shape index: {}]   ;;  %s6802_s4 = inlined_call_operand.vmem [shape: bf16[128,384], index: 4, kind: input, shape index: {}]   ;;  %s6803_s5 = inlined_call_operand.vmem [shape: f32[1,384], index: 5, kind: input, shape index: {}]   ;;  %s6804_s6 = inlined_call_operand.vmem [shape: bf16[4,32,128], index: 6, kind: input, shape index: {}]   ;;  %s6805_s7 = inlined_call_operand.vmem [shape: f32[1,128], index: 7, kind: input, shape index: {}]   ;;  %s6806_s8 = inlined_call_operand.vmem [shape: f32[1,128], index: 8, kind: input, shape index: {}]   ;;  %s6807_s9 = inlined_call_operand.vmem [shape: f32[1,128], index: 9, kind: input, shape index: {}]   ;;  %s6808_s10 = inlined_call_operand.vmem [shape: bf16[128,512], index: 10, kind: input, shape index: {}]   ;;  %s6809_s11 = inlined_call_operand.vmem [shape: f32[1,512], index: 11, kind: input, shape index: {}]   ;;  %s6810_s12 = inlined_call_operand.vmem [shape: bf16[512,128], index: 12, kind: input, shape index: {}]   ;;  %s6811_s13 = inlined_call_operand.vmem [shape: f32[1,128], index: 13, kind: input, shape index: {}]   ;;  %s6812_s14 = inlined_call_operand.vmem [shape: f32[1,128], index: 14, kind: input, shape index: {}]   ;;  %s6813_s15 = inlined_call_operand.vmem [shape: f32[1,128], index: 15, kind: input, shape index: {}]   ;;  %s6814_s16 = inlined_call_operand.vmem [shape: bf16[128,384], index: 16, kind: input, shape index: {}]   ;;  %s6815_s17 = inlined_call_operand.vmem [shape: f32[1,384], index: 17, kind: input, shape index: {}]   ;;  %s6816_s18 = inlined_call_operand.vmem [shape: bf16[4,32,128], index: 18, kind: input, shape index: {}]   ;;  %s6817_s19 = inlined_call_operand.vmem [shape: f32[1,128], index: 19, kind: input, shape index: {}]   ;;  %s6818_s20 = inlined_call_operand.vmem [shape: f32[1,128], index: 20, kind: input, shape index: {}]   ;;  %s6819_s21 = inlined_call_operand.vmem [shape: f32[1,128], index: 21, kind: input, shape index: {}]   ;;  %s6820_s22 = inlined_call_operand.vmem [shape: bf16[128,512], index: 22, kind: input, shape index: {}]   ;;  %s6821_s23 = inlined_call_operand.vmem [shape: f32[1,512], index: 23, kind: input, shape index: {}]   ;;  %s6822_s24 = inlined_call_operand.vmem [shape: bf16[512,128], index: 24, kind: input, shape index: {}]   ;;  %s6823_s25 = inlined_call_operand.vmem [shape: f32[1,128], index: 25, kind: input, shape index: {}]   ;;  %s6824_s26 = inlined_call_operand.vmem [shape: bf16[4,8,128], index: 26, kind: output, shape index: {}]  }
   0x1   :  { %6838 = sst [smem:[#allocation2_spill]] %s6798_s0 }
   0x2   :  { %6839 = sst [smem:[#allocation3_spill]] %s6799_s1 }
   0x3   :  { %6840 = sst [smem:[#allocation4_spill]] %s6800_s2 }
   0x4   :  { %6841 = sst [smem:[#allocation5_spill]] %s6801_s3 }
   0x5   :  { %6842 = sst [smem:[#allocation6_spill]] %s6802_s4 }
   0x6   :  { %6843 = sst [smem:[#allocation7_spill]] %s6803_s5 }
   0x7   :  { %6844 = sst [smem:[#allocation8_spill]] %s6804_s6 }
   0x8   :  { %6845 = sst [smem:[#allocation9_spill]] %s6805_s7 }
   0x9   :  { %6846 = sst [smem:[#allocation10_spill]] %s6806_s8 }
   0xa   :  { %6847 = sst [smem:[#allocation11_spill]] %s6807_s9 }
   0xb   :  { %6848 = sst [smem:[#allocation12_spill]] %s6808_s10 }
   0xc LB: > { %s4081_s3 = sadd.s32 4294967295, %s5300_s27   ;;  %p4085_p0 = scmp.ge.s32.totalorder %s5300_s27, 1  ;;  %s5300_s27 = sphi %s5441_s27, %s36_s27  }
   0xd   : > { %p713_p1 = scmp.lt.s32.totalorder %s5300_s27, 3 }
   0xf   : > { %p714_p2 = pnand %p4085_p0, %p713_p1 }
  0x10   : > { %s4086_s7 = sshll.u32 (!%p714_p2), %s4081_s3, 1  ;;  %s6849_s29 = sld [smem:[#allocation2_spill]] (!%p714_p2) }
  0x11   : > { %717 = sbr.rel (%p714_p2) target bundleno = 3405 (0xd4d), region = 124  ;;  %p784_p3 = scmp.lt.s32.totalorder (!%p714_p2), %s4086_s7, 3 }
  0x12   : > { %s6850_s2 = sld [smem:[#allocation6_spill]] (!%p714_p2)  ;;  %s6832_s3 = smov (!%p714_p2), 32  }
  0x13   : > { %s6852_s5 = sld [smem:[#allocation5_spill]] (!%p714_p2)  ;;  %s6834_s8 = smov (!%p714_p2), 96  }
  0x14   : > { %s6853_s1 = sld [smem:[#allocation7_spill]] (!%p714_p2)  ;;  %s6830_s4 = smov (!%p714_p2), 64  }
  0x15   : > { %s6854_s9 = sld [smem:[#allocation3_spill]] (!%p714_p2) }
  0x16   : > { %s6865_s7 = smov (!%p784_p3, %s4086_s7), 3  ;;  %v5302_v3 = vmov 128.0   ;;  %vm1147_vm7 = vcmask 261120   ;;  %vm1392_vm8 = vcmask 1043456   ;;  %vm1300_vm9 = vcmask 64512   ;;  %s6855_s10 = sld [smem:[#allocation8_spill]] }
  0x17   : > { %s6829_s28 = sshll.u32 %s6865_s7, 2  ;;  %5179 = vrcp.f32 %v5302_v3  ;;  %s6856_s6 = sld [smem:[#allocation9_spill]] }
  0x18   : > { %s787_s0 = scalar_lea.vmem %s6849_s29, %s6829_s28  ;;  %v4176_v18 = vld [vmem:[%s6850_s2 + $0xa8] sm:$0xf]  ;;  %v4946_v19 = vld [vmem:[%s6850_s2 + $0xb0] sm:$0xf0]  ;;  %v4945_v20 = vld [vmem:[%s6850_s2 + $0xac] sm:$0xf] }
  0x19   : > { %v5117_v0 = vld [vmem:[%s787_s0] sm:$0xff]   ;;  %v4177_v21 = vor.u32 %v4946_v19, %v4176_v18  ;;  %v4178_v22 = vld [vmem:[%s6850_s2 + $0xb4] sm:$0xf0]  ;;  %v4184_v23 = vld [vmem:[%s6850_s2 + $0xb0] sm:$0xf]  ;;  %s6851_s0 = sld [smem:[#allocation4_spill]] }
  0x1a   : > { %v5457_v1 = vunpack.c.l.bf16 %v5117_v0  ;;  %v5460_v2 = vunpack.c.h.bf16 %v5117_v0  ;;  %v4947_v24 = vld [vmem:[%s6850_s2 + $0xb8] sm:$0xf0]  ;;  %v4181_v25 = vor.u32 %v4945_v20, %v4178_v22  ;;  %v4164_v27 = vld [vmem:[%s6850_s2 + $0x90] sm:$0xf]  ;;  %v4942_v29 = vld [vmem:[%s6850_s2 + $0x94] sm:$0xf] }
  0x1b   : > { %v4185_v26 = vor.u32 %v4947_v24, %v4184_v23  ;;  %1029 = vmatpush.bf16.msra.mxu0 %v4177_v21  ;;  %v4943_v28 = vld [vmem:[%s6850_s2 + $0x98] sm:$0xf0]  ;;  %v4166_v31 = vld [vmem:[%s6850_s2 + $0x9c] sm:$0xf0]  ;;  %v4172_v32 = vld [vmem:[%s6850_s2 + $0x98] sm:$0xf] }
  0x1c   : > { %803 = vadd.xlane.f32.xlu0 %v5457_v1  ;;  %1043 = vmatpush.bf16.msra.mxu1 %v4181_v25  ;;  %v4165_v30 = vor.u32 %v4943_v28, %v4164_v27  ;;  %v4944_v33 = vld [vmem:[%s6850_s2 + $0xa0] sm:$0xf0]  ;;  %v4169_v34 = vor.u32 %v4942_v29, %v4166_v31  ;;  %v4152_v36 = vld [vmem:[%s6850_s2 + $0x78] sm:$0xf]  ;;  %v4939_v38 = vld [vmem:[%s6850_s2 + $0x7c] sm:$0xf] }
  0x1d   : > { %v5180_v4 = vpop.eup %5179  ;;  %1057 = vmatpush.bf16.msra.mxu2 %v4185_v26  ;;  %v4173_v35 = vor.u32 %v4944_v33, %v4172_v32  ;;  %v4940_v37 = vld [vmem:[%s6850_s2 + $0x80] sm:$0xf0]  ;;  %v4154_v40 = vld [vmem:[%s6850_s2 + $0x84] sm:$0xf0]  ;;  %v4160_v41 = vld [vmem:[%s6850_s2 + $0x80] sm:$0xf] }
  0x1e   : > { %v808_v5 = vmul.f32 128.0, %v5180_v4  ;;  %vm812_vm0 = vweird.f32 %v5180_v4  ;;  %v4153_v39 = vor.u32 %v4940_v37, %v4152_v36  ;;  %v4941_v42 = vld [vmem:[%s6850_s2 + $0x88] sm:$0xf0]  ;;  %v4157_v43 = vor.u32 %v4939_v38, %v4154_v40  ;;  %v4140_v45 = vld [vmem:[%s6850_s2 + $0x60] sm:$0xf]  ;;  %s6859_s29 = sld [smem:[#allocation11_spill]] }
  0x1f   : > { %1030 = vmatpush.bf16.msra.mxu0 %v4165_v30  ;;  %v4161_v44 = vor.u32 %v4941_v42, %v4160_v41  ;;  %v4937_v46 = vld [vmem:[%s6850_s2 + $0x68] sm:$0xf0]  ;;  %v4936_v47 = vld [vmem:[%s6850_s2 + $0x64] sm:$0xf]  ;;  %v4142_v49 = vld [vmem:[%s6850_s2 + $0x6c] sm:$0xf0] }
  0x20   : > { %v809_v6 = vsub.f32 1.0, %v808_v5  ;;  %1044 = vmatpush.bf16.msra.mxu1 %v4169_v34  ;;  %v4141_v48 = vor.u32 %v4937_v46, %v4140_v45  ;;  %v4148_v50 = vld [vmem:[%s6850_s2 + $0x68] sm:$0xf]  ;;  %v4938_v51 = vld [vmem:[%s6850_s2 + $0x70] sm:$0xf0]  ;;  %v4145_v52 = vor.u32 %v4936_v47, %v4142_v49 }
  0x21   : > { %1058 = vmatpush.bf16.msra.mxu2 %v4173_v35  ;;  %v4149_v53 = vor.u32 %v4938_v51, %v4148_v50  ;;  %v4128_v54 = vld [vmem:[%s6850_s2 + $0x48] sm:$0xf]  ;;  %v4934_v55 = vld [vmem:[%s6850_s2 + $0x50] sm:$0xf0]  ;;  %v4933_v56 = vld [vmem:[%s6850_s2 + $0x4c] sm:$0xf] }
  0x22   : > { %v810_v7 = vmul.f32 %v5180_v4, %v809_v6  ;;  %v4129_v57 = vor.u32 %v4934_v55, %v4128_v54  ;;  %v4130_v58 = vld [vmem:[%s6850_s2 + $0x54] sm:$0xf0]  ;;  %v4136_v59 = vld [vmem:[%s6850_s2 + $0x50] sm:$0xf]  ;;  %v4935_v60 = vld [vmem:[%s6850_s2 + $0x58] sm:$0xf0] }
  0x23   : > { %1031 = vmatpush.bf16.msra.mxu0 %v4153_v39  ;;  %v4133_v61 = vor.u32 %v4933_v56, %v4130_v58  ;;  %v4137_v62 = vor.u32 %v4935_v60, %v4136_v59  ;;  %v4116_v63 = vld [vmem:[%s6850_s2 + $0x30] sm:$0xf]  ;;  %v4931_v0 = vld [vmem:[%s6850_s2 + $0x38] sm:$0xf0]  ;;  %v4930_v3 = vld [vmem:[%s6850_s2 + $0x34] sm:$0xf] }
  0x24   : > { %805 = vadd.xlane.f32.xlu0 %v5460_v2  ;;  %v811_v8 = vadd.f32 %v5180_v4, %v810_v7  ;;  %1045 = vmatpush.bf16.msra.mxu1 %v4157_v43  ;;  %v4118_v5 = vld [vmem:[%s6850_s2 + $0x3c] sm:$0xf0]  ;;  %v4124_v6 = vld [vmem:[%s6850_s2 + $0x38] sm:$0xf]  ;;  %v4932_v7 = vld [vmem:[%s6850_s2 + $0x40] sm:$0xf0] }
  0x25   : > { %1059 = vmatpush.bf16.msra.mxu2 %v4161_v44  ;;  %v4112_v18 = vld [vmem:[%s6850_s2 + $0x20] sm:$0xf]  ;;  %v4929_v19 = vld [vmem:[%s6850_s2 + $0x28] sm:$0xf0]  ;;  %v4924_v24 = vld [vmem:[%s6850_s2 + $0x4] sm:$0xf] }
  0x26   : > { %v5463_v9 = vsel %vm812_vm0, %v5180_v4, %v811_v8  ;;  %v4117_v4 = vor.u32 %v4931_v0, %v4116_v63  ;;  %v4121_v8 = vor.u32 %v4930_v3, %v4118_v5  ;;  %v4113_v21 = vor.u32 %v4929_v19, %v4112_v18  ;;  %v4092_v22 = vld [vmem:[%s6850_s2] sm:$0xf]  ;;  %v4925_v23 = vld [vmem:[%s6850_s2 + $0x8] sm:$0xf0]  ;;  %v4094_v27 = vld [vmem:[%s6850_s2 + $0xc] sm:$0xf0] }
  0x27   : > { %1032 = vmatpush.bf16.msra.mxu0 %v4141_v48  ;;  %v4093_v26 = vor.u32 %v4925_v23, %v4092_v22  ;;  %v4100_v28 = vld [vmem:[%s6850_s2 + $0x8] sm:$0xf]  ;;  %v4926_v29 = vld [vmem:[%s6850_s2 + $0x10] sm:$0xf0]  ;;  %v4097_v31 = vor.u32 %v4924_v24, %v4094_v27  ;;  %v5167_v50 = vld [vmem:[%s6851_s0] ss:$0 sm:$0xff] }
  0x28   : > { %1046 = vmatpush.bf16.msra.mxu1 %v4145_v52  ;;  %v4101_v32 = vor.u32 %v4926_v29, %v4100_v28  ;;  %v5168_v55 = vld [vmem:[%s6852_s5] ss:$0 sm:$0xff]  ;;  %s6857_s0 = sld [smem:[#allocation12_spill]] }
  0x29   : > { %1060 = vmatpush.bf16.msra.mxu2 %v4149_v53 }
  0x2b   : > { %1033 = vmatpush.bf16.msra.mxu0 %v4129_v57 }
  0x2c   : > { %1047 = vmatpush.bf16.msra.mxu1 %v4133_v61 }
  0x2d   : > { %1061 = vmatpush.bf16.msra.mxu2 %v4137_v62 }
  0x2f   : > { %1034 = vmatpush.bf16.msra.mxu0 %v4117_v4 }
  0x30   : > { %1048 = vmatpush.bf16.msra.mxu1 %v4121_v8 }
  0x8f   : > { %v804_v10 = vpop.xlane.xlu0 %803 }
  0x90   : > { %v814_v11 = vmul.f32 %v5463_v9, %v804_v10  ;;  %v4125_v10 = vor.u32 %v4932_v7, %v4124_v6 }
  0x92   : > { %v5467_v12 = vsub.f32 %v5457_v1, %v814_v11  ;;  %1062 = vmatpush.bf16.msra.mxu2 %v4125_v10  ;;  %v4104_v11 = vld [vmem:[%s6850_s2 + $0x18] sm:$0xf] }
  0x94   : > { %v818_v13 = vmul.f32 %v5467_v12, %v5467_v12 }
  0x96   : > { %820 = vadd.xlane.f32.xlu1 %v818_v13  ;;  %v4928_v13 = vld [vmem:[%s6850_s2 + $0x20] sm:$0xf0]  ;;  %1063 = vmatpush.bf16.msra.mxu2 %v4113_v21 }
  0x97   : > { %v806_v14 = vpop.xlane.xlu0 %805 }
  0x98   : > { %v815_v15 = vmul.f32 %v5463_v9, %v806_v14  ;;  %v4927_v14 = vld [vmem:[%s6850_s2 + $0x1c] sm:$0xf] }
  0x9a   : > { %v5473_v16 = vsub.f32 %v5460_v2, %v815_v15  ;;  %v4105_v15 = vor.u32 %v4928_v13, %v4104_v11  ;;  %1064 = vmatpush.bf16.msra.mxu2 %v4101_v32 }
  0x9c   : > { %v819_v17 = vmul.f32 %v5473_v16, %v5473_v16  ;;  %1035 = vmatpush.bf16.msra.mxu0 %v4105_v15 }
  0x9e   : > { %822 = vadd.xlane.f32.xlu1 %v819_v17  ;;  %v4106_v17 = vld [vmem:[%s6850_s2 + $0x24] sm:$0xf0] }
  0x9f   : > { %v4109_v20 = vor.u32 %v4927_v14, %v4106_v17 }
  0xa0   : > { %1036 = vmatpush.bf16.msra.mxu0 %v4093_v26 }
  0xa1   : > { %1049 = vmatpush.bf16.msra.mxu1 %v4109_v20 }
  0xa5   : > { %1050 = vmatpush.bf16.msra.mxu1 %v4097_v31 }
 0x109   : > { %v821_v25 = vpop.xlane.xlu1 %820 }
 0x10a   : > { %v824_v30 = vmul.f32 %v821_v25, %v5463_v9 }
 0x10c   : > { %v826_v33 = vadd.f32 1e-05, %v824_v30 }
 0x10e   : > { %5181 = vrsqrt.f32 %v826_v33  ;;  %vm834_vm2 = vweird.f32 %v826_v33 }
 0x111   : > { %v823_v34 = vpop.xlane.xlu1 %822 }
 0x112   : > { %v825_v35 = vmul.f32 %v823_v34, %v5463_v9 }
 0x114   : > { %v5182_v36 = vpop.eup %5181  ;;  %v827_v37 = vadd.f32 1e-05, %v825_v35 }
 0x115   : > { %v829_v38 = vmul.f32 %v5182_v36, %v826_v33  ;;  %vm835_vm1 = vweird.f32 %v5182_v36 }
 0x116   : > { %5183 = vrsqrt.f32 %v827_v37  ;;  %vm836_vm3 = vmor %vm834_vm2, %vm835_vm1  ;;  %vm844_vm5 = vweird.f32 %v827_v37 }
 0x117   : > { %v830_v39 = vmul.f32 %v5182_v36, %v829_v38 }
 0x119   : > { %v831_v40 = vmul.f32 0.5, %v830_v39 }
 0x11b   : > { %v832_v41 = vsub.f32 1.5, %v831_v40 }
 0x11c   : > { %v5184_v42 = vpop.eup %5183 }
 0x11d   : > { %v833_v43 = vmul.f32 %v5182_v36, %v832_v41  ;;  %v839_v44 = vmul.f32 %v5184_v42, %v827_v37  ;;  %vm845_vm4 = vweird.f32 %v5184_v42 }
 0x11e   : > { %vm846_vm6 = vmor %vm844_vm5, %vm845_vm4 }
 0x11f   : > { %v840_v45 = vmul.f32 %v5184_v42, %v839_v44  ;;  %v837_v46 = vsel %vm836_vm3, %v5182_v36, %v833_v43 }
 0x120   : > { %v848_v49 = vmul.f32 %v837_v46, %v5467_v12  ;;  %v893_v12 = vld [vmem:[%s6853_s1] sm:$0x7] }
 0x121   : > { %v841_v47 = vmul.f32 0.5, %v840_v45  ;;  %v895_v60 = vperm.slane %v893_v12, 0  ;;  %v896_v61 = vperm.slane %v893_v12, 1  ;;  %v897_v20 = vperm.slane %v893_v12, 2 }
 0x122   : > { %v853_v54 = vmul.f32 %v5167_v50, %v848_v49 }
 0x123   : > { %v842_v48 = vsub.f32 1.5, %v841_v47 }
 0x124   : > { %v858_v57 = vadd.f32 %v5168_v55, %v853_v54 }
 0x125   : > { %v843_v51 = vmul.f32 %v5184_v42, %v842_v48 }
 0x127   : > { %v847_v52 = vsel %vm846_vm6, %v5184_v42, %v843_v51 }
 0x128   : > { %v849_v53 = vmul.f32 %v847_v52, %v5473_v16 }
 0x12a   : > { %v854_v56 = vmul.f32 %v5167_v50, %v849_v53 }
 0x12c   : > { %v859_v58 = vadd.f32 %v5168_v55, %v854_v56 }
 0x12e   : > { %v892_v59 = vpack.c.bf16 %v859_v58, %v858_v57  ;;  %v5675_v58 = vld [vmem:[%s6854_s9] sm:$0xff] }
 0x130   : > { %1037 = vmatmul.bf16.vlgmr.msra.gmra.mxu0 %v892_v59  ;;  %1051 = vmatmul.bf16.vlgmr.msra.gmra.mxu1 %v892_v59 }
 0x131   : > { %1065 = vmatmul.bf16.vlgmr.msra.gmra.mxu2 %v892_v59 }
 0x1ad   : > { %v1038_v62 = vpop.f32.mrf.mxu0  ;;  %v1052_v16 = vpop.f32.mrf.mxu1 }
 0x1ae   : > { %v1039_v63 = vadd.f32 %v1038_v62, %v895_v60  ;;  %v1053_v0 = vadd.f32 %v1052_v16, %v896_v61 }
 0x1b0   : > { %1105 = vrot.lane.b32.xlu1 %v1053_v0, %s6832_s3  ;;  %v5137_v3 = vpack.i.bf16 %v1039_v63, %v1053_v0  ;;  %v1139_v4 = vpack.c.bf16 %v1053_v0, %v1053_v0  ;;  %v1131_v13 = vpack.c.bf16 %v1039_v63, %v1039_v63 }
 0x1b2   : > { %5138 = vrot.lane.b32.xlu2 %v5137_v3, %s6834_s8  ;;  %v1152_v5 = vsel %vm1147_vm7, %v1139_v4, 0 }
 0x1b3   : > { %1161 = vmatpush.bf16.xpose.msra.mxu3 %v1152_v5 }
 0x1b4   : > { %v1066_v18 = vpop.f32.mrf.mxu2 }
 0x1b5   : > { %v1040_v6 = vpop.f32.mrf.mxu0  ;;  %v1054_v7 = vpop.f32.mrf.mxu1  ;;  %v5650_v22 = vadd.f32 %v1066_v18, %v897_v20 }
 0x1b6   : > { %v1041_v8 = vadd.f32 %v1040_v6, %v895_v60  ;;  %v1055_v10 = vadd.f32 %v1054_v7, %v896_v61 }
 0x1b7   : > { %v1381_v38 = vpack.c.bf16 %v5650_v22, %v5650_v22 }
 0x1b8   : > { %1095 = vrot.lane.b32.xlu0 %v1055_v10, %s6834_s8  ;;  %1087 = vrot.lane.b32.xlu1 %v1041_v8, %s6832_s3  ;;  %v5142_v11 = vpack.i.bf16 %v1041_v8, %v1055_v10  ;;  %v1140_v14 = vpack.c.bf16 %v1055_v10, %v1055_v10  ;;  %v1132_v17 = vpack.c.bf16 %v1041_v8, %v1041_v8 }
 0x1b9   : > { %v1394_v42 = vsel %vm1392_vm8, %v1381_v38, 0 }
 0x1ba   : > { %5143 = vrot.lane.b32.xlu2 %v5142_v11, %s6830_s4  ;;  %4186 = vmatmul.msk.bf16.vlgmr.msra.gmra.mxu3 %vm1147_vm7, %v1131_v13  ;;  %v1171_v15 = vsel %vm1147_vm7, %v1140_v14, 0 }
 0x1bb   : > { %1180 = vmatpush.bf16.xpose.msrb.mxu3 %v1171_v15 }
 0x1bc   : > { %v1068_v19 = vpop.f32.mrf.mxu2 }
 0x1bd   : > { %v5648_v21 = vadd.f32 %v1068_v19, %v897_v20 }
 0x1bf   : > { %v5147_v23 = vpack.i.bf16 %v5648_v21, %v5650_v22  ;;  %v1382_v31 = vpack.c.bf16 %v5648_v21, %v5648_v21 }
 0x1c0   : > { %1079 = vrot.lane.b32.xlu0 %v1039_v63, %s6830_s4 }
 0x1c1   : > { %v1413_v35 = vsel %vm1392_vm8, %v1382_v31, 0 }
 0x1c2   : > { %1099 = vrot.lane.b32.xlu2 %v1053_v0, %s6830_s4 }
 0x1ca   : > { %1085 = vrot.lane.b32.xlu2 %v1039_v63, %s6832_s3  ;;  %4187 = vmatmul.msk.bf16.vlgmr.msrb.gmra.mxu3 %vm1147_vm7, %v1132_v17 }
 0x1d2   : > { %1075 = vrot.lane.b32.xlu2 %v1041_v8, %s6834_s8 }
 0x1da   : > { %1107 = vrot.lane.b32.xlu2 %v1055_v10, %s6832_s3 }
 0x1e2   : > { %5148 = vrot.lane.b32.xlu2 %v5147_v23, %s6834_s8  ;;  %s6860_s8 = smov 96  }
 0x20c   : > { %v5139_v24 = vpop.permute.xlu2 %5138 }
 0x20d   : > { %v5140_v25 = vunpack.i.l.bf16 %v5139_v24  ;;  %v5141_v28 = vunpack.i.h.bf16 %v5139_v24 }
 0x20f   : > { %v1141_v26 = vpack.c.bf16 %v5140_v25, %v5140_v25  ;;  %v1133_v32 = vpack.c.bf16 %v5141_v28, %v5141_v28 }
 0x211   : > { %v1190_v27 = vsel %vm1147_vm7, %v1141_v26, 0 }
 0x212   : > { %1199 = vmatpush.bf16.xpose.msra.mxu3 %v1190_v27 }
 0x214   : > { %v5144_v29 = vpop.permute.xlu2 %5143 }
 0x215   : > { %v5145_v30 = vunpack.i.l.bf16 %v5144_v29  ;;  %v5146_v36 = vunpack.i.h.bf16 %v5144_v29 }
 0x217   : > { %v1144_v33 = vpack.c.bf16 %v5145_v30, %v5145_v30  ;;  %v1136_v40 = vpack.c.bf16 %v5146_v36, %v5146_v36 }
 0x219   : > { %4188 = vmatmul.msk.bf16.vlgmr.msra.gmra.mxu3 %vm1147_vm7, %v1133_v32  ;;  %v1247_v34 = vsel %vm1147_vm7, %v1144_v33, 0 }
 0x21a   : > { %1256 = vmatpush.bf16.xpose.msrb.mxu2 %v1247_v34 }
 0x21c   : > { %v1100_v37 = vpop.permute.xlu2 %1099 }
 0x21d   : > { %v1143_v39 = vpack.c.bf16 %v1100_v37, %v1100_v37 }
 0x21f   : > { %v1228_v41 = vsel %vm1147_vm7, %v1143_v39, 0 }
 0x220   : > { %1237 = vmatpush.bf16.xpose.msrb.mxu1 %v1228_v41 }
 0x221   : > { %4191 = vmatmul.msk.bf16.vlgmr.msrb.gmra.mxu2 %vm1147_vm7, %v1136_v40 }
 0x222   : > { %1422 = vmatpush.bf16.msra.mxu2 %v1413_v35  ;;  %v1106_v43 = vpop.permute.xlu1 %1105 }
 0x223   : > { %v1145_v44 = vpack.c.bf16 %v1106_v43, %v1106_v43 }
 0x224   : > { %v1086_v45 = vpop.permute.xlu2 %1085 }
 0x225   : > { %v1266_v46 = vsel %vm1147_vm7, %v1145_v44, 0  ;;  %v1137_v48 = vpack.c.bf16 %v1086_v45, %v1086_v45 }
 0x226   : > { %1275 = vmatpush.bf16.xpose.msrb.mxu3 %v1266_v46 }
 0x228   : > { %1403 = vmatpush.bf16.msra.mxu1 %v1394_v42  ;;  %v5152_v42 = vpack.i.bf16 %v5650_v22, %v5648_v21 }
 0x22a   : > { %v1096_v47 = vpop.permute.xlu0 %1095  ;;  %v1088_v0 = vpop.permute.xlu1 %1087 }
 0x22b   : > { %v1142_v49 = vpack.c.bf16 %v1096_v47, %v1096_v47  ;;  %v1138_v6 = vpack.c.bf16 %v1088_v0, %v1088_v0 }
 0x22c   : > { %v1076_v50 = vpop.permute.xlu2 %1075 }
 0x22d   : > { %4192 = vmatmul.msk.bf16.vlgmr.msrb.gmra.mxu3 %vm1147_vm7, %v1137_v48  ;;  %v1209_v51 = vsel %vm1147_vm7, %v1142_v49, 0  ;;  %v1134_v53 = vpack.c.bf16 %v1076_v50, %v1076_v50 }
 0x22e   : > { %1218 = vmatpush.bf16.xpose.msrb.mxu0 %v1209_v51 }
 0x232   : > { %v1080_v52 = vpop.permute.xlu0 %1079 }
 0x233   : > { %v1135_v54 = vpack.c.bf16 %v1080_v52, %v1080_v52 }
 0x234   : > { %v1108_v55 = vpop.permute.xlu2 %1107 }
 0x235   : > { %v1146_v56 = vpack.c.bf16 %v1108_v55, %v1108_v55  ;;  %4189 = vmatmul.msk.bf16.vlgmr.msrb.gmra.mxu0 %vm1147_vm7, %v1134_v53  ;;  %4190 = vmatmul.msk.bf16.vlgmr.msrb.gmra.mxu1 %vm1147_vm7, %v1135_v54 }
 0x237   : > { %v1285_v57 = vsel %vm1147_vm7, %v1146_v56, 0 }
 0x238   : > { %1294 = vmatpush.bf16.xpose.msra.mxu0 %v1285_v57 }
 0x23c   : > { %v5149_v59 = vpop.permute.xlu2 %5148 }
 0x23d   : > { %v5151_v12 = vunpack.i.h.bf16 %v5149_v59  ;;  %v5150_v60 = vunpack.i.l.bf16 %v5149_v59  ;;  %v1163_v61 = vpop.f32.mrf.mxu3 }
 0x23e   : > { %v1164_v62 = vadd.f32 %v1163_v61, %v5675_v58 }
 0x23f   : > { %v1384_v16 = vpack.c.bf16 %v5151_v12, %v5151_v12  ;;  %v1383_v63 = vpack.c.bf16 %v5150_v60, %v5150_v60 }
 0x240   : > { %v1301_v3 = vsel %vm1300_vm9, %v1164_v62, -inf }
 0x241   : > { %1302 = vmax.xlane.f32.xlu2 %v1301_v3  ;;  %v1432_v4 = vsel %vm1392_vm8, %v1383_v63, 0  ;;  %v1451_v5 = vsel %vm1392_vm8, %v1384_v16, 0 }
 0x242   : > { %1441 = vmatpush.bf16.msra.mxu3 %v1432_v4  ;;  %1460 = vmatpush.bf16.msrb.mxu0 %v1451_v5 }
 0x245   : > { %v1165_v7 = vpop.f32.mrf.mxu3  ;;  %4193 = vmatmul.msk.bf16.vlgmr.msra.gmra.mxu0 %vm1147_vm7, %v1138_v6 }
 0x24d   : > { %v1182_v8 = vpop.f32.mrf.mxu3 }
 0x24e   : > { %v1183_v10 = vadd.f32 %v1182_v8, %v5675_v58 }
 0x250   : > { %v1304_v11 = vsel %vm1300_vm9, %v1183_v10, -inf }
 0x251   : > { %1305 = vmax.xlane.f32.xlu0 %v1304_v11 }
 0x255   : > { %v1184_v13 = vpop.f32.mrf.mxu3 }
 0x259   : > { %1125 = vrot.lane.b32.xlu2 %v5650_v22, %s6832_s3 }
 0x29c   : > { %v1201_v14 = vpop.f32.mrf.mxu3 }
 0x29d   : > { %v1202_v15 = vadd.f32 %v1201_v14, %v5675_v58 }
 0x29f   : > { %v1307_v17 = vsel %vm1300_vm9, %v1202_v15, -inf }
 0x2a0   : > { %1308 = vmax.xlane.f32.xlu1 %v1307_v17 }
 0x2a4   : > { %v1203_v18 = vpop.f32.mrf.mxu3  ;;  %v1258_v19 = vpop.f32.mrf.mxu2 }
 0x2a5   : > { %v5689_v20 = vadd.f32 %v1258_v19, %v5675_v58 }
 0x2a7   : > { %v1316_v23 = vsel %vm1300_vm9, %v5689_v20, -inf }
 0x2a8   : > { %1317 = vmax.xlane.f32.xlu1 %v1316_v23 }
 0x2ac   : > { %v1260_v24 = vpop.f32.mrf.mxu2 }
 0x2b0   : > { %v1277_v25 = vpop.f32.mrf.mxu3 }
 0x2b1   : > { %v1278_v45 = vadd.f32 %v1277_v25, %v5675_v58 }
 0x2b2   : > { %v1220_v26 = vpop.f32.mrf.mxu0  ;;  %v1239_v27 = vpop.f32.mrf.mxu1 }
 0x2b3   : > { %v1240_v28 = vadd.f32 %v1239_v27, %v5675_v58  ;;  %v1221_v34 = vadd.f32 %v1220_v26, %v5675_v58  ;;  %v1319_v49 = vsel %vm1300_vm9, %v1278_v45, -inf }
 0x2b4   : > { %v1303_v29 = vpop.xlane.xlu2 %1302 }
 0x2b5   : > { %v1325_v30 = vsub.f32 %v1164_v62, %v1303_v29  ;;  %v1313_v31 = vsel %vm1300_vm9, %v1240_v28, -inf  ;;  %v1310_v39 = vsel %vm1300_vm9, %v1221_v34, -inf }
 0x2b6   : > { %1314 = vmax.xlane.f32.xlu0 %v1313_v31 }
 0x2b7   : > { %v1333_v32 = vmul.f32 1.442695, %v1325_v30 }
 0x2b8   : > { %v1279_v33 = vpop.f32.mrf.mxu3 }
 0x2b9   : > { %5185 = vpow2.f32 %v1333_v32  ;;  %v4949_v32 = vld [vmem:[%s6855_s10 + $0x8] sm:$0xff] }
 0x2ba   : > { %v1222_v35 = vpop.f32.mrf.mxu0  ;;  %v1241_v36 = vpop.f32.mrf.mxu1 }
 0x2bc   : > { %v1126_v37 = vpop.permute.xlu2 %1125 }
 0x2bd   : > { %v1387_v38 = vpack.c.bf16 %v1126_v37, %v1126_v37 }
 0x2be   : > { %1311 = vmax.xlane.f32.xlu0 %v1310_v39 }
 0x2bf   : > { %v5186_v40 = vpop.eup %5185  ;;  %v1508_v41 = vsel %vm1392_vm8, %v1387_v38, 0  ;;  %v4948_v38 = vld [vmem:[%s6855_s10] sm:$0xff] }
 0x2c0   : > { %v1373_v43 = vpack.c.bf16 %v5186_v40, %v5186_v40  ;;  %1517 = vmatpush.bf16.msrb.mxu3 %v1508_v41  ;;  %v1349_v44 = vsel %vm1300_vm9, %v5186_v40, 0.0 }
 0x2c1   : > { %5153 = vrot.lane.b32.xlu1 %v5152_v42, %s6830_s4  ;;  %1350 = vadd.xlane.f32.xlu2 %v1349_v44  ;;  %s6858_s4 = sld [smem:[#allocation10_spill]] }
 0x2c2   : > { %v1296_v46 = vpop.f32.mrf.mxu0  ;;  %4194 = vmatmul.msk.bf16.vlgmr.msra.gmra.mxu1 %vm1300_vm9, %v1373_v43 }
 0x2c3   : > { %v5706_v22 = vadd.f32 %v1296_v46, %v5675_v58 }
 0x2c4   : > { %v1306_v47 = vpop.xlane.xlu0 %1305 }
 0x2c5   : > { %v1326_v48 = vsub.f32 %v1183_v10, %v1306_v47  ;;  %v1322_v52 = vsel %vm1300_vm9, %v5706_v22, -inf }
 0x2c6   : > { %1320 = vmax.xlane.f32.xlu0 %v1319_v49 }
 0x2c7   : > { %v1335_v50 = vmul.f32 1.442695, %v1326_v48 }
 0x2c9   : > { %5187 = vpow2.f32 %v1335_v50 }
 0x2ca   : > { %v1298_v51 = vpop.f32.mrf.mxu0 }
 0x2ce   : > { %1323 = vmax.xlane.f32.xlu0 %v1322_v52 }
 0x2cf   : > { %v5188_v53 = vpop.eup %5187 }
 0x2d0   : > { %v1374_v54 = vpack.c.bf16 %v5188_v53, %v5188_v53  ;;  %v1352_v55 = vsel %vm1300_vm9, %v5188_v53, 0.0 }
 0x2d2   : > { %4195 = vmatmul.msk.bf16.vlgmr.msra.gmra.mxu2 %vm1300_vm9, %v1374_v54  ;;  %v4951_v54 = vld [vmem:[%s6855_s10 + $0x18] sm:$0xff] }
 0x2e2   : > { %1127 = vrot.lane.b32.xlu0 %v5648_v21, %s6832_s3 }
 0x2eb   : > { %1353 = vadd.xlane.f32.xlu1 %v1352_v55  ;;  %v4950_v55 = vld [vmem:[%s6855_s10 + $0x10] sm:$0xff] }
 0x313   : > { %v1309_v56 = vpop.xlane.xlu1 %1308 }
 0x314   : > { %v1327_v57 = vsub.f32 %v1202_v15, %v1309_v56  ;;  %v4953_v56 = vld [vmem:[%s6855_s10 + $0x28] sm:$0xff] }
 0x316   : > { %v1337_v58 = vmul.f32 1.442695, %v1327_v57  ;;  %v4952_v57 = vld [vmem:[%s6855_s10 + $0x20] sm:$0xff] }
 0x318   : > { %5189 = vpow2.f32 %v1337_v58 }
 0x31b   : > { %v1318_v61 = vpop.xlane.xlu1 %1317 }
 0x31c   : > { %v1330_v62 = vsub.f32 %v5689_v20, %v1318_v61  ;;  %v4955_v61 = vld [vmem:[%s6855_s10 + $0x38] sm:$0xff] }
 0x31e   : > { %v5190_v59 = vpop.eup %5189  ;;  %v1343_v0 = vmul.f32 1.442695, %v1330_v62 }
 0x31f   : > { %v1375_v12 = vpack.c.bf16 %v5190_v59, %v5190_v59  ;;  %v1355_v60 = vsel %vm1300_vm9, %v5190_v59, 0.0 }
 0x320   : > { %1356 = vadd.xlane.f32.xlu1 %v1355_v60 }
 0x321   : > { %4196 = vmatmul.msk.bf16.vlgmr.msra.gmra.mxu3 %vm1300_vm9, %v1375_v12 }
 0x322   : > { %1654 = vmatpush.bf16.msra.mxu3 %v4953_v56 }
 0x326   : > { %1655 = vmatpush.bf16.msra.mxu3 %v4952_v57  ;;  %v4364_v57 = vld [vmem:[%s6857_s0 + $0xe0] sm:$0xf] }
 0x329   : > { %v1315_v16 = vpop.xlane.xlu0 %1314 }
 0x32a   : > { %v1329_v63 = vsub.f32 %v1240_v28, %v1315_v16 }
 0x32c   : > { %v1341_v21 = vmul.f32 1.442695, %v1329_v63  ;;  %v4954_v63 = vld [vmem:[%s6855_s10 + $0x30] sm:$0xff]  ;;  %s6861_s10 = smov 32  }
 0x32e   : > { %5191 = vpow2.f32 %v1341_v21 }
 0x32f   : > { %5193 = vpow2.f32 %v1343_v0 }
 0x331   : > { %v1312_v3 = vpop.xlane.xlu0 %1311 }
 0x332   : > { %v1328_v4 = vsub.f32 %v1221_v34, %v1312_v3 }
 0x333   : > { %v5154_v5 = vpop.permute.xlu1 %5153 }
 0x334   : > { %v5192_v6 = vpop.eup %5191  ;;  %v1339_v7 = vmul.f32 1.442695, %v1328_v4  ;;  %v5156_v8 = vunpack.i.h.bf16 %v5154_v5  ;;  %v5155_v10 = vunpack.i.l.bf16 %v5154_v5  ;;  %v1351_v47 = vpop.xlane.xlu2 %1350 }
 0x335   : > { %v1361_v11 = vsel %vm1300_vm9, %v5192_v6, 0.0  ;;  %v5194_v15 = vpop.eup %5193  ;;  %v1377_v23 = vpack.c.bf16 %v5192_v6, %v5192_v6 }
 0x336   : > { %5195 = vpow2.f32 %v1339_v7  ;;  %v1385_v13 = vpack.c.bf16 %v5156_v8, %v5156_v8  ;;  %v1386_v14 = vpack.c.bf16 %v5155_v10, %v5155_v10  ;;  %1362 = vadd.xlane.f32.xlu0 %v1361_v11  ;;  %v1378_v20 = vpack.c.bf16 %v5194_v15, %v5194_v15 }
 0x337   : > { %v1364_v37 = vsel %vm1300_vm9, %v5194_v15, 0.0 }
 0x338   : > { %v1470_v17 = vsel %vm1392_vm8, %v1385_v13, 0  ;;  %v1489_v18 = vsel %vm1392_vm8, %v1386_v14, 0 }
 0x339   : > { %1479 = vmatpush.bf16.msrb.mxu1 %v1470_v17  ;;  %1498 = vmatpush.bf16.msrb.mxu2 %v1489_v18  ;;  %v1321_v19 = vpop.xlane.xlu0 %1320 }
 0x33a   : > { %v1331_v24 = vsub.f32 %v1278_v45, %v1321_v19 }
 0x33c   : > { %v5196_v25 = vpop.eup %5195  ;;  %v1345_v26 = vmul.f32 1.442695, %v1331_v24  ;;  %4198 = vmatmul.msk.bf16.vlgmr.msrb.gmra.mxu1 %vm1300_vm9, %v1377_v23  ;;  %4199 = vmatmul.msk.bf16.vlgmr.msrb.gmra.mxu2 %vm1300_vm9, %v1378_v20 }
 0x33d   : > { %v1376_v27 = vpack.c.bf16 %v5196_v25, %v5196_v25  ;;  %v1358_v28 = vsel %vm1300_vm9, %v5196_v25, 0.0  ;;  %1619 = vmatpush.bf16.msra.mxu2 %v4949_v32  ;;  %1590 = vmatpush.bf16.msra.mxu1 %v4951_v54 }
 0x33e   : > { %5197 = vpow2.f32 %v1345_v26  ;;  %1359 = vadd.xlane.f32.xlu2 %v1358_v28 }
 0x33f   : > { %v1405_v29 = vpop.f32.mrf.mxu1  ;;  %4197 = vmatmul.msk.bf16.vlgmr.msrb.gmra.mxu0 %vm1300_vm9, %v1376_v27 }
 0x341   : > { %v1324_v30 = vpop.xlane.xlu0 %1323  ;;  %1620 = vmatpush.bf16.msra.mxu2 %v4948_v38  ;;  %1591 = vmatpush.bf16.msra.mxu1 %v4950_v55 }
 0x342   : > { %v1332_v31 = vsub.f32 %v5706_v22, %v1324_v30 }
 0x344   : > { %v5198_v33 = vpop.eup %5197  ;;  %v1347_v34 = vmul.f32 1.442695, %v1332_v31 }
 0x345   : > { %v1379_v35 = vpack.c.bf16 %v5198_v33, %v5198_v33  ;;  %v1367_v36 = vsel %vm1300_vm9, %v5198_v33, 0.0 }
 0x346   : > { %5199 = vpow2.f32 %v1347_v34  ;;  %1368 = vadd.xlane.f32.xlu1 %v1367_v36  ;;  %1365 = vadd.xlane.f32.xlu2 %v1364_v37 }
 0x347   : > { %v1407_v39 = vpop.f32.mrf.mxu1  ;;  %4200 = vmatmul.msk.bf16.vlgmr.msrb.gmra.mxu3 %vm1300_vm9, %v1379_v35  ;;  %5201 = vrcp.f32 %v1351_v47 }
 0x34c   : > { %v5200_v40 = vpop.eup %5199 }
 0x34d   : > { %v1370_v41 = vsel %vm1300_vm9, %v5200_v40, 0.0  ;;  %v1380_v46 = vpack.c.bf16 %v5200_v40, %v5200_v40  ;;  %v5202_v50 = vpop.eup %5201  ;;  %v5169_v40 = vld [vmem:[%s6856_s6] ss:$0 sm:$0xff]  ;;  %s6863_s6 = sshll.u32 %s6865_s7, 2 }
 0x34e   : > { %1371 = vadd.xlane.f32.xlu2 %v1370_v41  ;;  %v1550_v51 = vmul.f32 %v5202_v50, %v1405_v29  ;;  %s793_s30 = scalar_lea.vmem %s6824_s26, %s6863_s6 }
 0x354   : > { %v1128_v42 = vpop.permute.xlu0 %1127 }
 0x355   : > { %v1388_v43 = vpack.c.bf16 %v1128_v42, %v1128_v42  ;;  %v1424_v44 = vpop.f32.mrf.mxu2 }
 0x357   : > { %v1527_v45 = vsel %vm1392_vm8, %v1388_v43, 0 }
 0x358   : > { %1536 = vmatpush.bf16.msra.mxu0 %v1527_v45 }
 0x35b   : > { %4201 = vmatmul.msk.bf16.vlgmr.msra.gmra.mxu0 %vm1300_vm9, %v1380_v46 }
 0x35c   : > { %1691 = vmatpush.bf16.msrb.mxu0 %v4955_v61  ;;  %v4372_v61 = vld [vmem:[%s6857_s0 + $0xe8] sm:$0xf] }
 0x35d   : > { %v1426_v48 = vpop.f32.mrf.mxu2 }
 0x35e   : > { %v1354_v49 = vpop.xlane.xlu1 %1353 }
 0x35f   : > { %5203 = vrcp.f32 %v1354_v49 }
 0x360   : > { %1692 = vmatpush.bf16.msrb.mxu0 %v4954_v63 }
 0x365   : > { %v5204_v22 = vpop.eup %5203 }
 0x366   : > { %v1551_v52 = vmul.f32 %v5204_v22, %v1424_v44 }
 0x368   : > { %v1562_v53 = vpack.c.bf16 %v1551_v52, %v1550_v51 }
 0x36a   : > { %4223 = vmatmul.msk.bf16.vlgmr.msra.gmra.mxu2 %vm1147_vm7, %v1562_v53 }
 0x393   : > { %v1357_v60 = vpop.xlane.xlu1 %1356 }
 0x394   : > { %5205 = vrcp.f32 %v1357_v60  ;;  %v4366_v60 = vld [vmem:[%s6857_s0 + $0xf0] sm:$0xf0] }
 0x39a   : > { %v5206_v0 = vpop.eup %5205 }
 0x3a4   : > { %v1443_v58 = vpop.f32.mrf.mxu3 }
 0x3a5   : > { %v1552_v5 = vmul.f32 %v5206_v0, %v1443_v58  ;;  %v4986_v58 = vld [vmem:[%s6857_s0 + $0xec] sm:$0xf0]  ;;  %v4374_v0 = vld [vmem:[%s6857_s0 + $0xf8] sm:$0xf0] }
 0x3a9   : > { %v1363_v62 = vpop.xlane.xlu0 %1362 }
 0x3ac   : > { %v1445_v59 = vpop.f32.mrf.mxu3 }
 0x3ad   : > { %v4984_v59 = vld [vmem:[%s6857_s0 + $0xe4] sm:$0xf] }
 0x3b1   : > { %v1360_v12 = vpop.xlane.xlu2 %1359 }
 0x3b2   : > { %5207 = vrcp.f32 %v1360_v12  ;;  %v4365_v12 = vor.u32 %v4986_v58, %v4364_v57  ;;  %v4284_v58 = vld [vmem:[%s6857_s0 + $0x40] sm:$0xf] }
 0x3b3   : > { %5209 = vrcp.f32 %v1363_v62  ;;  %v4987_v62 = vld [vmem:[%s6857_s0 + $0xf4] sm:$0xf0] }
 0x3b4   : > { %v4373_v63 = vor.u32 %v4987_v62, %v4372_v61  ;;  %1964 = vmatpush.bf16.msrb.mxu1 %v4365_v12  ;;  %v4964_v12 = vld [vmem:[%s6857_s0 + $0x44] sm:$0xf]  ;;  %v4286_v61 = vld [vmem:[%s6857_s0 + $0x50] sm:$0xf0]  ;;  %v4292_v62 = vld [vmem:[%s6857_s0 + $0x48] sm:$0xf] }
 0x3b6   : > { %1992 = vmatpush.bf16.msrb.mxu3 %v4373_v63  ;;  %v4289_v63 = vor.u32 %v4964_v12, %v4286_v61 }
 0x3b8   : > { %v5208_v3 = vpop.eup %5207 }
 0x3b9   : > { %v1481_v16 = vpop.f32.mrf.mxu1  ;;  %v1366_v21 = vpop.xlane.xlu2 %1365 }
 0x3ba   : > { %5211 = vrcp.f32 %v1366_v21  ;;  %v5210_v10 = vpop.eup %5209  ;;  %v1369_v23 = vpop.xlane.xlu1 %1368  ;;  %v4985_v21 = vld [vmem:[%s6857_s0 + $0xec] sm:$0xf] }
 0x3bb   : > { %v1554_v14 = vmul.f32 %v5210_v10, %v1481_v16  ;;  %5213 = vrcp.f32 %v1369_v23  ;;  %v4369_v16 = vor.u32 %v4984_v59, %v4366_v60  ;;  %v4356_v10 = vld [vmem:[%s6857_s0 + $0xc8] sm:$0xf]  ;;  %v4976_v23 = vld [vmem:[%s6857_s0 + $0xa4] sm:$0xf]  ;;  %v4966_v59 = vld [vmem:[%s6857_s0 + $0x4c] sm:$0xf0] }
 0x3bc   : > { %v1462_v4 = vpop.f32.mrf.mxu0  ;;  %v4285_v60 = vor.u32 %v4966_v59, %v4284_v58  ;;  %v5171_v59 = vld [vmem:[%s6859_s29] ss:$0 sm:$0xff] }
 0x3bd   : > { %v1553_v6 = vmul.f32 %v5208_v3, %v1462_v4  ;;  %v4377_v3 = vor.u32 %v4985_v21, %v4374_v0  ;;  %1978 = vmatpush.bf16.msrb.mxu2 %v4369_v16  ;;  %v4348_v4 = vld [vmem:[%s6857_s0 + $0xc0] sm:$0xf]  ;;  %v4967_v16 = vld [vmem:[%s6857_s0 + $0x54] sm:$0xf0]  ;;  %v4965_v0 = vld [vmem:[%s6857_s0 + $0x4c] sm:$0xf] }
 0x3be   : > { %v4293_v21 = vor.u32 %v4967_v16, %v4292_v62  ;;  %v4994_v16 = vld [vmem:[%s6810_s12 + $0x30] sm:$0xff] }
 0x3bf   : > { %v1568_v7 = vpack.c.bf16 %v1553_v6, %v1552_v5  ;;  %v1500_v8 = vpop.f32.mrf.mxu2  ;;  %v4982_v5 = vld [vmem:[%s6857_s0 + $0xcc] sm:$0xf0]  ;;  %v4980_v6 = vld [vmem:[%s6857_s0 + $0xc4] sm:$0xf]  ;;  %2006 = vmatpush.bf16.msra.mxu0 %v4377_v3  ;;  %v4294_v3 = vld [vmem:[%s6857_s0 + $0x58] sm:$0xf0] }
 0x3c0   : > { %v5212_v11 = vpop.eup %5211 }
 0x3c1   : > { %v1483_v13 = vpop.f32.mrf.mxu1  ;;  %4214 = vmatmul.msk.bf16.vlgmr.msra.gmra.mxu1 %vm1147_vm7, %v1568_v7  ;;  %v1555_v15 = vmul.f32 %v5212_v11, %v1500_v8  ;;  %v1372_v24 = vpop.xlane.xlu2 %1371  ;;  %v4349_v7 = vor.u32 %v4982_v5, %v4348_v4  ;;  %v4350_v8 = vld [vmem:[%s6857_s0 + $0xd0] sm:$0xf0]  ;;  %v4983_v11 = vld [vmem:[%s6857_s0 + $0xd4] sm:$0xf0]  ;;  %v4297_v4 = vor.u32 %v4965_v0, %v4294_v3  ;;  %v4268_v5 = vld [vmem:[%s6857_s0 + $0x20] sm:$0xf] }
 0x3c2   : > { %5215 = vrcp.f32 %v1372_v24  ;;  %v5214_v26 = vpop.eup %5213  ;;  %v4353_v13 = vor.u32 %v4980_v6, %v4350_v8  ;;  %v4962_v6 = vld [vmem:[%s6857_s0 + $0x2c] sm:$0xf0]  ;;  %v5011_v0 = vld [vmem:[%s6810_s12 + $0xb8] sm:$0xff]  ;;  %v4993_v3 = vld [vmem:[%s6810_s12 + $0x28] sm:$0xff] }
 0x3c3   : > { %v1632_v17 = vpack.c.bf16 %v1555_v15, %v1554_v14  ;;  %v4357_v14 = vor.u32 %v4983_v11, %v4356_v10  ;;  %v4981_v15 = vld [vmem:[%s6857_s0 + $0xcc] sm:$0xf]  ;;  %1965 = vmatpush.bf16.msrb.mxu1 %v4349_v7  ;;  %v4960_v7 = vld [vmem:[%s6857_s0 + $0x24] sm:$0xf]  ;;  %v4269_v8 = vor.u32 %v4962_v6, %v4268_v5  ;;  %v4270_v10 = vld [vmem:[%s6857_s0 + $0x30] sm:$0xf0] }
 0x3c4   : > { %v1464_v18 = vpop.f32.mrf.mxu0  ;;  %1979 = vmatpush.bf16.msrb.mxu2 %v4353_v13  ;;  %v4276_v11 = vld [vmem:[%s6857_s0 + $0x28] sm:$0xf]  ;;  %v4963_v13 = vld [vmem:[%s6857_s0 + $0x34] sm:$0xf0]  ;;  %v5002_v5 = vld [vmem:[%s6810_s12 + $0x70] sm:$0xff] }
 0x3c5   : > { %4236 = vmatmul.msk.bf16.vlgmr.msra.gmra.mxu3 %vm1147_vm7, %v1632_v17  ;;  %v4358_v17 = vld [vmem:[%s6857_s0 + $0xd8] sm:$0xf0]  ;;  %v5010_v6 = vld [vmem:[%s6810_s12 + $0xb0] sm:$0xff] }
 0x3c6   : > { %v4361_v18 = vor.u32 %v4981_v15, %v4358_v17  ;;  %1993 = vmatpush.bf16.msrb.mxu3 %v4357_v14  ;;  %v4273_v15 = vor.u32 %v4960_v7, %v4270_v10  ;;  %v4277_v17 = vor.u32 %v4963_v13, %v4276_v11  ;;  %v4992_v7 = vld [vmem:[%s6810_s12 + $0x20] sm:$0xff]  ;;  %v5001_v10 = vld [vmem:[%s6810_s12 + $0x68] sm:$0xff]  ;;  %v4991_v13 = vld [vmem:[%s6810_s12 + $0x18] sm:$0xff] }
 0x3c7   : > { %v1502_v19 = vpop.f32.mrf.mxu2  ;;  %v5009_v11 = vld [vmem:[%s6810_s12 + $0xa8] sm:$0xff] }
 0x3c8   : > { %v5216_v27 = vpop.eup %5215  ;;  %v4332_v19 = vld [vmem:[%s6857_s0 + $0xa0] sm:$0xf]  ;;  %2007 = vmatpush.bf16.msra.mxu0 %v4361_v18  ;;  %v4961_v18 = vld [vmem:[%s6857_s0 + $0x2c] sm:$0xf] }
 0x3ca   : > { %v1519_v20 = vpop.f32.mrf.mxu3 }
 0x3cb   : > { %v1556_v29 = vmul.f32 %v5214_v26, %v1519_v20  ;;  %v4978_v20 = vld [vmem:[%s6857_s0 + $0xac] sm:$0xf0]  ;;  %v4340_v26 = vld [vmem:[%s6857_s0 + $0xa8] sm:$0xf] }
 0x3cc   : > { %v4333_v24 = vor.u32 %v4978_v20, %v4332_v19  ;;  %v4278_v19 = vld [vmem:[%s6857_s0 + $0x38] sm:$0xf0]  ;;  %v4252_v20 = vld [vmem:[%s6857_s0] sm:$0xf] }
 0x3ce   : > { %1966 = vmatpush.bf16.msrb.mxu1 %v4333_v24  ;;  %v4281_v24 = vor.u32 %v4961_v18, %v4278_v19  ;;  %v4990_v18 = vld [vmem:[%s6810_s12 + $0x10] sm:$0xff] }
 0x3cf   : > { %v5014_v19 = vld [vmem:[%s6810_s12 + $0xd0] sm:$0xff] }
 0x3d2   : > { %v1521_v25 = vpop.f32.mrf.mxu3 }
 0x3d3   : > { %v4334_v25 = vld [vmem:[%s6857_s0 + $0xb0] sm:$0xf0] }
 0x3d8   : > { %v1538_v28 = vpop.f32.mrf.mxu0 }
 0x3d9   : > { %v1557_v30 = vmul.f32 %v5216_v27, %v1538_v28  ;;  %v4979_v27 = vld [vmem:[%s6857_s0 + $0xb4] sm:$0xf0]  ;;  %v4337_v28 = vor.u32 %v4976_v23, %v4334_v25  ;;  %v4958_v25 = vld [vmem:[%s6857_s0 + $0xc] sm:$0xf0] }
 0x3db   : > { %v1669_v31 = vpack.c.bf16 %v1557_v30, %v1556_v29  ;;  %v4341_v29 = vor.u32 %v4979_v27, %v4340_v26  ;;  %v4977_v30 = vld [vmem:[%s6857_s0 + $0xac] sm:$0xf]  ;;  %1980 = vmatpush.bf16.msrb.mxu2 %v4337_v28  ;;  %v4956_v26 = vld [vmem:[%s6857_s0 + $0x4] sm:$0xf]  ;;  %v4254_v27 = vld [vmem:[%s6857_s0 + $0x10] sm:$0xf0]  ;;  %v4253_v28 = vor.u32 %v4958_v25, %v4252_v20 }
 0x3dc   : > { %v4999_v20 = vld [vmem:[%s6810_s12 + $0x58] sm:$0xff]  ;;  %v4989_v25 = vld [vmem:[%s6810_s12 + $0x8] sm:$0xff] }
 0x3dd   : > { %4249 = vmatmul.msk.bf16.vlgmr.msrb.gmra.mxu0 %vm1147_vm7, %v1669_v31  ;;  %v4342_v31 = vld [vmem:[%s6857_s0 + $0xb8] sm:$0xf0]  ;;  %1994 = vmatpush.bf16.msrb.mxu3 %v4341_v29  ;;  %v4257_v29 = vor.u32 %v4956_v26, %v4254_v27  ;;  %v5013_v26 = vld [vmem:[%s6810_s12 + $0xc8] sm:$0xff]  ;;  %v4998_v27 = vld [vmem:[%s6810_s12 + $0x50] sm:$0xff] }
 0x3e0   : > { %v1540_v32 = vpop.f32.mrf.mxu0 }
 0x3e1   : > { %v4345_v32 = vor.u32 %v4977_v30, %v4342_v31  ;;  %v4260_v30 = vld [vmem:[%s6857_s0 + $0x8] sm:$0xf]  ;;  %v4959_v31 = vld [vmem:[%s6857_s0 + $0x14] sm:$0xf0] }
 0x3e3   : > { %2008 = vmatpush.bf16.msra.mxu0 %v4345_v32  ;;  %v4957_v32 = vld [vmem:[%s6857_s0 + $0xc] sm:$0xf] }
 0x3ed   : > { %v1622_v34 = vpop.f32.mrf.mxu2 }
 0x3f5   : > { %v1624_v43 = vpop.f32.mrf.mxu2 }
 0x43e   : > { %v1593_v33 = vpop.f32.mrf.mxu1 }
 0x43f   : > { %v1623_v36 = vadd.f32 %v1622_v34, %v1593_v33  ;;  %v4316_v33 = vld [vmem:[%s6857_s0 + $0x80] sm:$0xf]  ;;  %v4974_v34 = vld [vmem:[%s6857_s0 + $0x8c] sm:$0xf0] }
 0x446   : > { %v1595_v41 = vpop.f32.mrf.mxu1 }
 0x447   : > { %v1625_v45 = vadd.f32 %v1624_v43, %v1595_v41  ;;  %v4326_v43 = vld [vmem:[%s6857_s0 + $0x98] sm:$0xf0] }
 0x448   : > { %v1657_v35 = vpop.f32.mrf.mxu3 }
 0x449   : > { %v1662_v37 = vadd.f32 %v1657_v35, %v1623_v36  ;;  %v4972_v35 = vld [vmem:[%s6857_s0 + $0x84] sm:$0xf]  ;;  %v4317_v36 = vor.u32 %v4974_v34, %v4316_v33  ;;  %v4261_v34 = vor.u32 %v4959_v31, %v4260_v30 }
 0x44a   : > { %v4988_v31 = vld [vmem:[%s6810_s12] sm:$0xff] }
 0x44b   : > { %1967 = vmatpush.bf16.msrb.mxu1 %v4317_v36 }
 0x450   : > { %v1659_v44 = vpop.f32.mrf.mxu3 }
 0x451   : > { %v1663_v47 = vadd.f32 %v1659_v44, %v1625_v45  ;;  %v4300_v45 = vld [vmem:[%s6857_s0 + $0x60] sm:$0xf] }
 0x45a   : > { %v1694_v38 = vpop.f32.mrf.mxu0 }
 0x45b   : > { %v1699_v39 = vadd.f32 %v1694_v38, %v1662_v37  ;;  %v4318_v37 = vld [vmem:[%s6857_s0 + $0x90] sm:$0xf0]  ;;  %v4324_v38 = vld [vmem:[%s6857_s0 + $0x88] sm:$0xf] }
 0x45d   : > { %v1701_v42 = vadd.f32 %v5457_v1, %v1699_v39  ;;  %v4975_v39 = vld [vmem:[%s6857_s0 + $0x94] sm:$0xf0] }
 0x45e   : > { %v4325_v41 = vor.u32 %v4975_v39, %v4324_v38 }
 0x45f   : > { %v5763_v46 = vadd.f32 %v5169_v40, %v1701_v42  ;;  %v4973_v42 = vld [vmem:[%s6857_s0 + $0x8c] sm:$0xf] }
 0x460   : > { %v4329_v44 = vor.u32 %v4973_v42, %v4326_v43  ;;  %1995 = vmatpush.bf16.msrb.mxu3 %v4325_v41 }
 0x461   : > { %1711 = vadd.xlane.f32.xlu0 %v5763_v46 }
 0x462   : > { %v1696_v48 = vpop.f32.mrf.mxu0  ;;  %2009 = vmatpush.bf16.msra.mxu0 %v4329_v44 }
 0x463   : > { %v1700_v49 = vadd.f32 %v1696_v48, %v1663_v47  ;;  %v4970_v47 = vld [vmem:[%s6857_s0 + $0x6c] sm:$0xf0]  ;;  %v4968_v48 = vld [vmem:[%s6857_s0 + $0x64] sm:$0xf] }
 0x465   : > { %v1702_v50 = vadd.f32 %v5460_v2, %v1700_v49  ;;  %v4301_v49 = vor.u32 %v4970_v47, %v4300_v45 }
 0x467   : > { %v5767_v22 = vadd.f32 %v5169_v40, %v1702_v50  ;;  %v4321_v40 = vor.u32 %v4972_v35, %v4318_v37  ;;  %v4302_v50 = vld [vmem:[%s6857_s0 + $0x70] sm:$0xf0]  ;;  %1968 = vmatpush.bf16.msrb.mxu1 %v4301_v49  ;;  %v4262_v35 = vld [vmem:[%s6857_s0 + $0x18] sm:$0xf0] }
 0x468   : > { %v4265_v36 = vor.u32 %v4957_v32, %v4262_v35  ;;  %v5012_v32 = vld [vmem:[%s6810_s12 + $0xc0] sm:$0xff]  ;;  %v5005_v35 = vld [vmem:[%s6810_s12 + $0x88] sm:$0xff] }
 0x469   : > { %1713 = vadd.xlane.f32.xlu1 %v5767_v22  ;;  %1981 = vmatpush.bf16.msrb.mxu2 %v4321_v40 }
 0x46b   : > { %1969 = vmatpush.bf16.msrb.mxu1 %v4285_v60 }
 0x46f   : > { %1970 = vmatpush.bf16.msrb.mxu1 %v4269_v8  ;;  %v5016_v8 = vld [vmem:[%s6810_s12 + $0xe0] sm:$0xff] }
 0x473   : > { %1971 = vmatpush.bf16.msrb.mxu1 %v4253_v28  ;;  %v5006_v28 = vld [vmem:[%s6810_s12 + $0x90] sm:$0xff] }
 0x4d4   : > { %v1712_v51 = vpop.xlane.xlu0 %1711 }
 0x4d5   : > { %v1715_v52 = vmul.f32 %v1712_v51, %v5463_v9  ;;  %v4308_v51 = vld [vmem:[%s6857_s0 + $0x68] sm:$0xf] }
 0x4d7   : > { %v5772_v1 = vsub.f32 %v5763_v46, %v1715_v52  ;;  %v4971_v52 = vld [vmem:[%s6857_s0 + $0x74] sm:$0xf0] }
 0x4d9   : > { %v1719_v53 = vmul.f32 %v5772_v1, %v5772_v1 }
 0x4db   : > { %1721 = vadd.xlane.f32.xlu2 %v1719_v53  ;;  %v4305_v53 = vor.u32 %v4968_v48, %v4302_v50 }
 0x4dc   : > { %v1714_v54 = vpop.xlane.xlu1 %1713 }
 0x4dd   : > { %v1716_v55 = vmul.f32 %v1714_v54, %v5463_v9  ;;  %v4309_v54 = vor.u32 %v4971_v52, %v4308_v51  ;;  %1982 = vmatpush.bf16.msrb.mxu2 %v4305_v53 }
 0x4df   : > { %v5778_v56 = vsub.f32 %v5767_v22, %v1716_v55  ;;  %v4969_v55 = vld [vmem:[%s6857_s0 + $0x6c] sm:$0xf]  ;;  %1996 = vmatpush.bf16.msrb.mxu3 %v4309_v54  ;;  %v5170_v54 = vld [vmem:[%s6858_s4] ss:$0 sm:$0xff]  ;;  %s6862_s4 = smov 64  }
 0x4e1   : > { %v1720_v2 = vmul.f32 %v5778_v56, %v5778_v56  ;;  %1983 = vmatpush.bf16.msrb.mxu2 %v4289_v63  ;;  %v5018_v63 = vld [vmem:[%s6810_s12 + $0xf0] sm:$0xff] }
 0x4e3   : > { %1723 = vadd.xlane.f32.xlu0 %v1720_v2  ;;  %v4310_v2 = vld [vmem:[%s6857_s0 + $0x78] sm:$0xf0]  ;;  %1997 = vmatpush.bf16.msrb.mxu3 %v4293_v21 }
 0x4e4   : > { %v4313_v57 = vor.u32 %v4969_v55, %v4310_v2  ;;  %v5003_v21 = vld [vmem:[%s6810_s12 + $0x78] sm:$0xff] }
 0x4e5   : > { %1984 = vmatpush.bf16.msrb.mxu2 %v4273_v15  ;;  %v5000_v15 = vld [vmem:[%s6810_s12 + $0x60] sm:$0xff] }
 0x4e6   : > { %2010 = vmatpush.bf16.msra.mxu0 %v4313_v57 }
 0x4e7   : > { %1998 = vmatpush.bf16.msrb.mxu3 %v4277_v17  ;;  %v5008_v17 = vld [vmem:[%s6810_s12 + $0xa0] sm:$0xff] }
 0x4e9   : > { %1985 = vmatpush.bf16.msrb.mxu2 %v4257_v29 }
 0x4ea   : > { %2011 = vmatpush.bf16.msra.mxu0 %v4297_v4  ;;  %v5017_v4 = vld [vmem:[%s6810_s12 + $0xe8] sm:$0xff] }
 0x4eb   : > { %1999 = vmatpush.bf16.msrb.mxu3 %v4261_v34  ;;  %v4997_v34 = vld [vmem:[%s6810_s12 + $0x48] sm:$0xff] }
 0x4ed   : > { %2366 = vmatpush.bf16.msra.mxu2 %v5003_v21 }
 0x4ee   : > { %2012 = vmatpush.bf16.msra.mxu0 %v4281_v24  ;;  %v6053_v24 = vld [vmem:[%s6809_s11] sm:$0xf] }
 0x4ef   : > { %2380 = vmatpush.bf16.msra.mxu3 %v5011_v0  ;;  %v1796_v29 = vperm.slane %v6053_v24, 0  ;;  %v1799_v30 = vperm.slane %v6053_v24, 3 }
 0x4f1   : > { %2367 = vmatpush.bf16.msra.mxu2 %v5002_v5 }
 0x4f2   : > { %2013 = vmatpush.bf16.msra.mxu0 %v4265_v36 }
 0x4f3   : > { %2381 = vmatpush.bf16.msra.mxu3 %v5010_v6 }
 0x4f5   : > { %2368 = vmatpush.bf16.msra.mxu2 %v5001_v10 }
 0x4f7   : > { %2382 = vmatpush.bf16.msra.mxu3 %v5009_v11 }
 0x4f9   : > { %2369 = vmatpush.bf16.msra.mxu2 %v5000_v15 }
 0x4fb   : > { %2383 = vmatpush.bf16.msra.mxu3 %v5008_v17 }
 0x4fd   : > { %2370 = vmatpush.bf16.msra.mxu2 %v4999_v20 }
 0x501   : > { %2371 = vmatpush.bf16.msra.mxu2 %v4998_v27 }
 0x505   : > { %2372 = vmatpush.bf16.msra.mxu2 %v4997_v34 }
 0x54e   : > { %v1722_v14 = vpop.xlane.xlu2 %1721 }
 0x54f   : > { %v1725_v23 = vmul.f32 %v1722_v14, %v5463_v9  ;;  %v5015_v14 = vld [vmem:[%s6810_s12 + $0xd8] sm:$0xff] }
 0x551   : > { %v1727_v33 = vadd.f32 1e-05, %v1725_v23  ;;  %v5007_v23 = vld [vmem:[%s6810_s12 + $0x98] sm:$0xff] }
 0x552   : > { %2384 = vmatpush.bf16.msra.mxu3 %v5007_v23 }
 0x553   : > { %5217 = vrsqrt.f32 %v1727_v33  ;;  %vm1735_vm11 = vweird.f32 %v1727_v33 }
 0x556   : > { %v1724_v37 = vpop.xlane.xlu0 %1723  ;;  %2385 = vmatpush.bf16.msra.mxu3 %v5006_v28 }
 0x557   : > { %v1726_v38 = vmul.f32 %v1724_v37, %v5463_v9 }
 0x559   : > { %v5218_v39 = vpop.eup %5217  ;;  %v1728_v40 = vadd.f32 1e-05, %v1726_v38 }
 0x55a   : > { %v1730_v41 = vmul.f32 %v5218_v39, %v1727_v33  ;;  %vm1736_vm10 = vweird.f32 %v5218_v39  ;;  %2386 = vmatpush.bf16.msra.mxu3 %v5005_v35 }
 0x55b   : > { %5219 = vrsqrt.f32 %v1728_v40  ;;  %vm1737_vm12 = vmor %vm1735_vm11, %vm1736_vm10  ;;  %vm1745_vm14 = vweird.f32 %v1728_v40 }
 0x55c   : > { %v1731_v42 = vmul.f32 %v5218_v39, %v1730_v41  ;;  %v4996_v41 = vld [vmem:[%s6810_s12 + $0x40] sm:$0xff] }
 0x55d   : > { %2373 = vmatpush.bf16.msra.mxu2 %v4996_v41 }
 0x55e   : > { %v1732_v43 = vmul.f32 0.5, %v1731_v42  ;;  %v5004_v42 = vld [vmem:[%s6810_s12 + $0x80] sm:$0xff] }
 0x55f   : > { %2387 = vmatpush.bf16.msra.mxu3 %v5004_v42 }
 0x560   : > { %v1733_v44 = vsub.f32 1.5, %v1732_v43 }
 0x561   : > { %v5220_v45 = vpop.eup %5219 }
 0x562   : > { %v1734_v47 = vmul.f32 %v5218_v39, %v1733_v44  ;;  %v1740_v48 = vmul.f32 %v5220_v45, %v1728_v40  ;;  %vm1746_vm13 = vweird.f32 %v5220_v45  ;;  %v1797_v40 = vperm.slane %v6053_v24, 1 }
 0x563   : > { %vm1747_vm15 = vmor %vm1745_vm14, %vm1746_vm13  ;;  %v1798_v44 = vperm.slane %v6053_v24, 2 }
 0x564   : > { %v1741_v49 = vmul.f32 %v5220_v45, %v1740_v48  ;;  %v1738_v50 = vsel %vm1737_vm12, %v5218_v39, %v1734_v47 }
 0x565   : > { %v1749_v53 = vmul.f32 %v1738_v50, %v5772_v1  ;;  %v4995_v1 = vld [vmem:[%s6810_s12 + $0x38] sm:$0xff] }
 0x566   : > { %v1742_v51 = vmul.f32 0.5, %v1741_v49  ;;  %2352 = vmatpush.bf16.msra.mxu1 %v4995_v1 }
 0x567   : > { %v1754_v58 = vmul.f32 %v5170_v54, %v1749_v53 }
 0x568   : > { %v1743_v52 = vsub.f32 1.5, %v1742_v51 }
 0x569   : > { %v1759_v60 = vadd.f32 %v5171_v59, %v1754_v58 }
 0x56a   : > { %v1744_v55 = vmul.f32 %v5220_v45, %v1743_v52  ;;  %2353 = vmatpush.bf16.msra.mxu1 %v4994_v16 }
 0x56c   : > { %v1748_v2 = vsel %vm1747_vm15, %v5220_v45, %v1744_v55 }
 0x56d   : > { %v1750_v57 = vmul.f32 %v1748_v2, %v5778_v56  ;;  %v5019_v56 = vld [vmem:[%s6810_s12 + $0xf8] sm:$0xff] }
 0x56e   : > { %2394 = vmatpush.bf16.msrb.mxu0 %v5019_v56  ;;  %2354 = vmatpush.bf16.msra.mxu1 %v4993_v3 }
 0x56f   : > { %v1755_v12 = vmul.f32 %v5170_v54, %v1750_v57 }
 0x571   : > { %v1760_v61 = vadd.f32 %v5171_v59, %v1755_v12 }
 0x572   : > { %2395 = vmatpush.bf16.msrb.mxu0 %v5018_v63  ;;  %2355 = vmatpush.bf16.msra.mxu1 %v4992_v7 }
 0x573   : > { %v1793_v62 = vpack.c.bf16 %v1760_v61, %v1759_v60 }
 0x575   : > { %1972 = vmatmul.bf16.vlgmr.msrb.gmra.mxu1 %v1793_v62  ;;  %1986 = vmatmul.bf16.vlgmr.msrb.gmra.mxu2 %v1793_v62 }
 0x576   : > { %2000 = vmatmul.bf16.vlgmr.msrb.gmra.mxu3 %v1793_v62  ;;  %2014 = vmatmul.bf16.vlgmr.msra.gmra.mxu0 %v1793_v62 }
 0x577   : > { %2396 = vmatpush.bf16.msrb.mxu0 %v5017_v4  ;;  %2356 = vmatpush.bf16.msra.mxu1 %v4991_v13 }
 0x57b   : > { %2397 = vmatpush.bf16.msrb.mxu0 %v5016_v8  ;;  %2357 = vmatpush.bf16.msra.mxu1 %v4990_v18 }
 0x57f   : > { %2398 = vmatpush.bf16.msrb.mxu0 %v5015_v14  ;;  %2358 = vmatpush.bf16.msra.mxu1 %v4989_v25 }
 0x583   : > { %2399 = vmatpush.bf16.msrb.mxu0 %v5014_v19  ;;  %2359 = vmatpush.bf16.msra.mxu1 %v4988_v31 }
 0x587   : > { %2400 = vmatpush.bf16.msrb.mxu0 %v5013_v26 }
 0x58b   : > { %2401 = vmatpush.bf16.msrb.mxu0 %v5012_v32 }
 0x5f2   : > { %v1973_v33 = vpop.f32.mrf.mxu1 }
 0x5f3   : > { %v6081_v36 = vadd.f32 %v1973_v33, %v1796_v29  ;;  %v2015_v37 = vpop.f32.mrf.mxu0 }
 0x5f4   : > { %v6083_v38 = vadd.f32 %v2015_v37, %v1799_v30 }
 0x5f5   : > { %v2028_v39 = vmul.f32 %v6081_v36, %v6081_v36  ;;  %v2020_v42 = vmul.f32 0.5, %v6081_v36 }
 0x5f6   : > { %v2031_v43 = vmul.f32 %v6083_v38, %v6083_v38 }
 0x5f7   : > { %v2036_v45 = vmul.f32 %v2028_v39, %v6081_v36 }
 0x5f8   : > { %v2039_v47 = vmul.f32 %v2031_v43, %v6083_v38  ;;  %v1987_v48 = vpop.f32.mrf.mxu2 }
 0x5f9   : > { %v2044_v49 = vmul.f32 0.044715, %v2036_v45  ;;  %v6099_v50 = vadd.f32 %v1987_v48, %v1797_v40  ;;  %v2001_v51 = vpop.f32.mrf.mxu3 }
 0x5fa   : > { %v2047_v52 = vmul.f32 0.044715, %v2039_v47  ;;  %v6101_v53 = vadd.f32 %v2001_v51, %v1798_v44  ;;  %v1975_v54 = vpop.f32.mrf.mxu1  ;;  %v2023_v47 = vmul.f32 0.5, %v6083_v38 }
 0x5fb   : > { %v2052_v55 = vadd.f32 %v2044_v49, %v6081_v36  ;;  %v2029_v2 = vmul.f32 %v6099_v50, %v6099_v50  ;;  %v1976_v57 = vadd.f32 %v1975_v54, %v1796_v29  ;;  %v2017_v58 = vpop.f32.mrf.mxu0  ;;  %v2021_v36 = vmul.f32 0.5, %v6099_v50 }
 0x5fc   : > { %v2055_v59 = vadd.f32 %v2047_v52, %v6083_v38  ;;  %v2030_v12 = vmul.f32 %v6101_v53, %v6101_v53  ;;  %v2018_v60 = vadd.f32 %v2017_v58, %v1799_v30  ;;  %v2022_v38 = vmul.f32 0.5, %v6101_v53 }
 0x5fd   : > { %v2037_v61 = vmul.f32 %v2029_v2, %v6099_v50  ;;  %v2032_v62 = vmul.f32 %v1976_v57, %v1976_v57  ;;  %v2060_v16 = vmul.f32 0.7978846, %v2052_v55  ;;  %v2024_v43 = vmul.f32 0.5, %v1976_v57 }
 0x5fe   : > { %v2038_v1 = vmul.f32 %v2030_v12, %v6101_v53  ;;  %v2035_v56 = vmul.f32 %v2018_v60, %v2018_v60  ;;  %v2063_v0 = vmul.f32 0.7978846, %v2055_v59  ;;  %v2027_v48 = vmul.f32 0.5, %v2018_v60 }
 0x5ff   : > { %v2045_v63 = vmul.f32 0.044715, %v2037_v61  ;;  %v2040_v21 = vmul.f32 %v2032_v62, %v1976_v57  ;;  %5221 = vtanh.f32 %v2060_v16 }
 0x600   : > { %v2046_v3 = vmul.f32 0.044715, %v2038_v1  ;;  %v2043_v4 = vmul.f32 %v2035_v56, %v2018_v60  ;;  %v1989_v5 = vpop.f32.mrf.mxu2  ;;  %5223 = vtanh.f32 %v2063_v0 }
 0x601   : > { %v2053_v6 = vadd.f32 %v2045_v63, %v6099_v50  ;;  %v2048_v7 = vmul.f32 0.044715, %v2040_v21  ;;  %v1990_v8 = vadd.f32 %v1989_v5, %v1797_v40  ;;  %v2003_v10 = vpop.f32.mrf.mxu3 }
 0x602   : > { %v2054_v11 = vadd.f32 %v2046_v3, %v6101_v53  ;;  %v2051_v13 = vmul.f32 0.044715, %v2043_v4  ;;  %v2004_v14 = vadd.f32 %v2003_v10, %v1798_v44  ;;  %v5172_v53 = vld [vmem:[%s6811_s13] ss:$0 sm:$0xff] }
 0x603   : > { %v2056_v15 = vadd.f32 %v2048_v7, %v1976_v57  ;;  %v2033_v17 = vmul.f32 %v1990_v8, %v1990_v8  ;;  %v2061_v20 = vmul.f32 0.7978846, %v2053_v6  ;;  %v2025_v57 = vmul.f32 0.5, %v1990_v8 }
 0x604   : > { %v2059_v18 = vadd.f32 %v2051_v13, %v2018_v60  ;;  %v2034_v19 = vmul.f32 %v2004_v14, %v2004_v14  ;;  %v2062_v25 = vmul.f32 0.7978846, %v2054_v11  ;;  %v2026_v60 = vmul.f32 0.5, %v2004_v14 }
 0x605   : > { %v2064_v23 = vmul.f32 0.7978846, %v2056_v15  ;;  %v2041_v24 = vmul.f32 %v2033_v17, %v1990_v8  ;;  %v5222_v30 = vpop.eup %5221 }
 0x606   : > { %v2067_v26 = vmul.f32 0.7978846, %v2059_v18  ;;  %v2042_v27 = vmul.f32 %v2034_v19, %v2004_v14  ;;  %v5224_v32 = vpop.eup %5223  ;;  %v2076_v35 = vadd.f32 1.0, %v5222_v30 }
 0x607   : > { %5225 = vtanh.f32 %v2064_v23  ;;  %v2049_v28 = vmul.f32 0.044715, %v2041_v24  ;;  %v2079_v40 = vadd.f32 1.0, %v5224_v32 }
 0x608   : > { %5227 = vtanh.f32 %v2067_v26  ;;  %v2050_v29 = vmul.f32 0.044715, %v2042_v27  ;;  %v2084_v52 = vmul.f32 %v2076_v35, %v2020_v42  ;;  %v5042_v35 = vld [vmem:[%s6814_s16 + $0xb0] sm:$0xf0]  ;;  %v5043_v42 = vld [vmem:[%s6814_s16 + $0xb8] sm:$0xf0] }
 0x609   : > { %5229 = vtanh.f32 %v2061_v20  ;;  %v2057_v31 = vadd.f32 %v2049_v28, %v1990_v8  ;;  %v2087_v55 = vmul.f32 %v2079_v40, %v2023_v47  ;;  %v4594_v40 = vld [vmem:[%s6814_s16 + $0xb4] sm:$0xf0]  ;;  %v5039_v47 = vld [vmem:[%s6814_s16 + $0x98] sm:$0xf0] }
 0x60a   : > { %5231 = vtanh.f32 %v2062_v25  ;;  %v2058_v33 = vadd.f32 %v2050_v29, %v2004_v14 }
 0x60b   : > { %v2065_v34 = vmul.f32 0.7978846, %v2057_v31 }
 0x60c   : > { %v2066_v37 = vmul.f32 0.7978846, %v2058_v33 }
 0x60d   : > { %v5226_v39 = vpop.eup %5225  ;;  %5233 = vtanh.f32 %v2065_v34  ;;  %v4592_v34 = vld [vmem:[%s6814_s16 + $0xa8] sm:$0xf] }
 0x60e   : > { %v5228_v41 = vpop.eup %5227  ;;  %v2080_v44 = vadd.f32 1.0, %v5226_v39  ;;  %5235 = vtanh.f32 %v2066_v37  ;;  %v5041_v37 = vld [vmem:[%s6814_s16 + $0xac] sm:$0xf]  ;;  %v4593_v39 = vor.u32 %v5042_v35, %v4592_v34  ;;  %v4528_v34 = vld [vmem:[%s6814_s16 + $0x20] sm:$0xf] }
 0x60f   : > { %v5230_v45 = vpop.eup %5229  ;;  %v2083_v49 = vadd.f32 1.0, %v5228_v41  ;;  %v4600_v41 = vld [vmem:[%s6814_s16 + $0xb0] sm:$0xf]  ;;  %v5025_v35 = vld [vmem:[%s6814_s16 + $0x28] sm:$0xf0] }
 0x610   : > { %v5232_v51 = vpop.eup %5231  ;;  %v2088_v54 = vmul.f32 %v2080_v44, %v2024_v43  ;;  %v2077_v58 = vadd.f32 1.0, %v5230_v45  ;;  %v4597_v43 = vor.u32 %v5041_v37, %v4594_v40  ;;  %v4601_v44 = vor.u32 %v5043_v42, %v4600_v41  ;;  %2637 = vmatpush.bf16.msrb.mxu1 %v4593_v39  ;;  %v4580_v45 = vld [vmem:[%s6814_s16 + $0x90] sm:$0xf]  ;;  %v4508_v41 = vld [vmem:[%s6814_s16] sm:$0xf] }
 0x611   : > { %v2091_v2 = vmul.f32 %v2083_v49, %v2027_v48  ;;  %v2078_v61 = vadd.f32 1.0, %v5232_v51  ;;  %v5038_v48 = vld [vmem:[%s6814_s16 + $0x94] sm:$0xf]  ;;  %v4581_v49 = vor.u32 %v5039_v47, %v4580_v45  ;;  %v4582_v51 = vld [vmem:[%s6814_s16 + $0x9c] sm:$0xf0]  ;;  %v4529_v40 = vor.u32 %v5025_v35, %v4528_v34 }
 0x612   : > { %v2156_v59 = vpack.c.bf16 %v2088_v54, %v2084_v52  ;;  %v2085_v63 = vmul.f32 %v2077_v58, %v2021_v36  ;;  %2651 = vmatpush.bf16.msrb.mxu2 %v4597_v43  ;;  %2665 = vmatpush.bf16.msrb.mxu3 %v4601_v44  ;;  %v4588_v52 = vld [vmem:[%s6814_s16 + $0x98] sm:$0xf]  ;;  %v5040_v54 = vld [vmem:[%s6814_s16 + $0xa0] sm:$0xf0]  ;;  %v5037_v36 = vld [vmem:[%s6814_s16 + $0x88] sm:$0xf0] }
 0x613   : > { %v5234_v12 = vpop.eup %5233  ;;  %v2159_v62 = vpack.c.bf16 %v2091_v2, %v2087_v55  ;;  %v2086_v0 = vmul.f32 %v2078_v61, %v2022_v38  ;;  %v4585_v55 = vor.u32 %v5038_v48, %v4582_v51  ;;  %v4589_v2 = vor.u32 %v5040_v54, %v4588_v52  ;;  %v4568_v58 = vld [vmem:[%s6814_s16 + $0x78] sm:$0xf]  ;;  %v4556_v38 = vld [vmem:[%s6814_s16 + $0x60] sm:$0xf]  ;;  %v5021_v42 = vld [vmem:[%s6814_s16 + $0x8] sm:$0xf0] }
 0x614   : > { %v5236_v1 = vpop.eup %5235  ;;  %v2081_v56 = vadd.f32 1.0, %v5234_v12  ;;  %2360 = vmatmul.bf16.vlgmr.msra.gmra.mxu1 %v2156_v59  ;;  %v5036_v59 = vld [vmem:[%s6814_s16 + $0x80] sm:$0xf0]  ;;  %v5035_v12 = vld [vmem:[%s6814_s16 + $0x7c] sm:$0xf]  ;;  %v4509_v45 = vor.u32 %v5021_v42, %v4508_v41 }
 0x615   : > { %v2082_v16 = vadd.f32 1.0, %v5236_v1  ;;  %2402 = vmatmul.bf16.vlgmr.msrb.gmra.mxu0 %v2159_v62  ;;  %2638 = vmatpush.bf16.msrb.mxu1 %v4581_v49  ;;  %v4569_v61 = vor.u32 %v5036_v59, %v4568_v58  ;;  %v4570_v62 = vld [vmem:[%s6814_s16 + $0x84] sm:$0xf0]  ;;  %v4576_v1 = vld [vmem:[%s6814_s16 + $0x80] sm:$0xf] }
 0x616   : > { %v2089_v21 = vmul.f32 %v2081_v56, %v2025_v57  ;;  %2652 = vmatpush.bf16.msrb.mxu2 %v4585_v55  ;;  %2666 = vmatpush.bf16.msrb.mxu3 %v4589_v2  ;;  %v4573_v57 = vor.u32 %v5035_v12, %v4570_v62  ;;  %v4577_v56 = vor.u32 %v5037_v36, %v4576_v1  ;;  %v5020_v43 = vld [vmem:[%s6814_s16 + $0x4] sm:$0xf]  ;;  %v4510_v47 = vld [vmem:[%s6814_s16 + $0xc] sm:$0xf0]  ;;  %v4516_v48 = vld [vmem:[%s6814_s16 + $0x8] sm:$0xf] }
 0x617   : > { %v2090_v3 = vmul.f32 %v2082_v16, %v2026_v60  ;;  %v5033_v60 = vld [vmem:[%s6814_s16 + $0x68] sm:$0xf0]  ;;  %v5032_v16 = vld [vmem:[%s6814_s16 + $0x64] sm:$0xf]  ;;  %v5022_v49 = vld [vmem:[%s6814_s16 + $0x10] sm:$0xf0]  ;;  %v4513_v51 = vor.u32 %v5020_v43, %v4510_v47 }
 0x618   : > { %v2157_v4 = vpack.c.bf16 %v2089_v21, %v2085_v63  ;;  %v4557_v63 = vor.u32 %v5033_v60, %v4556_v38  ;;  %v4558_v21 = vld [vmem:[%s6814_s16 + $0x6c] sm:$0xf0]  ;;  %v4517_v52 = vor.u32 %v5022_v49, %v4516_v48 }
 0x619   : > { %v2158_v5 = vpack.c.bf16 %v2090_v3, %v2086_v0  ;;  %2639 = vmatpush.bf16.msrb.mxu1 %v4569_v61  ;;  %v4564_v0 = vld [vmem:[%s6814_s16 + $0x68] sm:$0xf]  ;;  %v5034_v3 = vld [vmem:[%s6814_s16 + $0x70] sm:$0xf0] }
 0x61a   : > { %2374 = vmatmul.bf16.vlgmr.msra.gmra.mxu2 %v2157_v4  ;;  %2667 = vmatpush.bf16.msrb.mxu3 %v4577_v56  ;;  %v4561_v4 = vor.u32 %v5032_v16, %v4558_v21 }
 0x61b   : > { %2388 = vmatmul.bf16.vlgmr.msra.gmra.mxu3 %v2158_v5  ;;  %2653 = vmatpush.bf16.msrb.mxu2 %v4573_v57  ;;  %v4565_v5 = vor.u32 %v5034_v3, %v4564_v0  ;;  %v5173_v0 = vld [vmem:[%s6812_s14] ss:$0 sm:$0xff] }
 0x61d   : > { %2640 = vmatpush.bf16.msrb.mxu1 %v4557_v63 }
 0x61e   : > { %2668 = vmatpush.bf16.msrb.mxu3 %v4565_v5 }
 0x61f   : > { %2654 = vmatpush.bf16.msrb.mxu2 %v4561_v4 }
 0x691   : > { %v2361_v6 = vpop.f32.mrf.mxu1 }
 0x692   : > { %v2403_v8 = vpop.f32.mrf.mxu0 }
 0x699   : > { %v2363_v15 = vpop.f32.mrf.mxu1 }
 0x69a   : > { %v2405_v24 = vpop.f32.mrf.mxu0 }
 0x69d   : > { %v2375_v7 = vpop.f32.mrf.mxu2 }
 0x69e   : > { %v2376_v10 = vadd.f32 %v2375_v7, %v2361_v6  ;;  %v2389_v50 = vpop.f32.mrf.mxu3  ;;  %v4544_v6 = vld [vmem:[%s6814_s16 + $0x48] sm:$0xf]  ;;  %v5030_v7 = vld [vmem:[%s6814_s16 + $0x50] sm:$0xf0] }
 0x6a0   : > { %v2390_v11 = vadd.f32 %v2389_v50, %v2376_v10  ;;  %v5029_v10 = vld [vmem:[%s6814_s16 + $0x4c] sm:$0xf]  ;;  %v4545_v50 = vor.u32 %v5030_v7, %v4544_v6  ;;  %v5174_v7 = vld [vmem:[%s6813_s15] ss:$0 sm:$0xff] }
 0x6a2   : > { %v2404_v13 = vadd.f32 %v2403_v8, %v2390_v11  ;;  %v4546_v8 = vld [vmem:[%s6814_s16 + $0x54] sm:$0xf0]  ;;  %v4552_v11 = vld [vmem:[%s6814_s16 + $0x50] sm:$0xf]  ;;  %2641 = vmatpush.bf16.msrb.mxu1 %v4545_v50 }
 0x6a4   : > { %v2408_v14 = vadd.f32 %v2404_v13, %v5763_v46  ;;  %v5031_v13 = vld [vmem:[%s6814_s16 + $0x58] sm:$0xf0] }
 0x6a5   : > { %v2377_v17 = vpop.f32.mrf.mxu2 }
 0x6a6   : > { %v2378_v18 = vadd.f32 %v2377_v17, %v2363_v15  ;;  %v6121_v19 = vadd.f32 %v5172_v53, %v2408_v14  ;;  %v2391_v20 = vpop.f32.mrf.mxu3  ;;  %v4553_v14 = vor.u32 %v5031_v13, %v4552_v11  ;;  %v4532_v15 = vld [vmem:[%s6814_s16 + $0x30] sm:$0xf]  ;;  %v5027_v17 = vld [vmem:[%s6814_s16 + $0x38] sm:$0xf0]  ;;  %v2501_v13 = vld [vmem:[%s6815_s17] sm:$0x7] }
 0x6a7   : > { %v2505_v34 = vperm.slane %v2501_v13, 2 }
 0x6a8   : > { %v2392_v23 = vadd.f32 %v2391_v20, %v2378_v18  ;;  %2418 = vadd.xlane.f32.xlu1 %v6121_v19  ;;  %2669 = vmatpush.bf16.msrb.mxu3 %v4553_v14  ;;  %v5026_v18 = vld [vmem:[%s6814_s16 + $0x34] sm:$0xf]  ;;  %v4533_v20 = vor.u32 %v5027_v17, %v4532_v15 }
 0x6aa   : > { %v2406_v25 = vadd.f32 %v2405_v24, %v2392_v23  ;;  %v4534_v23 = vld [vmem:[%s6814_s16 + $0x3c] sm:$0xf0]  ;;  %v4540_v24 = vld [vmem:[%s6814_s16 + $0x38] sm:$0xf]  ;;  %2642 = vmatpush.bf16.msrb.mxu1 %v4533_v20 }
 0x6ac   : > { %v2409_v26 = vadd.f32 %v2406_v25, %v5767_v22  ;;  %v5028_v25 = vld [vmem:[%s6814_s16 + $0x40] sm:$0xf0] }
 0x6ae   : > { %v6125_v27 = vadd.f32 %v5172_v53, %v2409_v26  ;;  %v4549_v53 = vor.u32 %v5029_v10, %v4546_v8  ;;  %v4537_v26 = vor.u32 %v5026_v18, %v4534_v23 }
 0x6b0   : > { %2420 = vadd.xlane.f32.xlu2 %v6125_v27  ;;  %2655 = vmatpush.bf16.msrb.mxu2 %v4549_v53  ;;  %v2504_v53 = vperm.slane %v2501_v13, 1 }
 0x6b4   : > { %2656 = vmatpush.bf16.msrb.mxu2 %v4537_v26 }
 0x71b   : > { %v2419_v28 = vpop.xlane.xlu1 %2418 }
 0x71c   : > { %v2422_v46 = vmul.f32 %v2419_v28, %v5463_v9  ;;  %v4541_v28 = vor.u32 %v5028_v25, %v4540_v24 }
 0x71e   : > { %v6130_v29 = vsub.f32 %v6121_v19, %v2422_v46  ;;  %2670 = vmatpush.bf16.msrb.mxu3 %v4541_v28  ;;  %v4520_v46 = vld [vmem:[%s6814_s16 + $0x18] sm:$0xf] }
 0x720   : > { %v2426_v30 = vmul.f32 %v6130_v29, %v6130_v29 }
 0x722   : > { %2428 = vadd.xlane.f32.xlu0 %v2426_v30  ;;  %v5024_v30 = vld [vmem:[%s6814_s16 + $0x20] sm:$0xf0]  ;;  %2671 = vmatpush.bf16.msrb.mxu3 %v4529_v40 }
 0x723   : > { %v2421_v31 = vpop.xlane.xlu2 %2420 }
 0x724   : > { %v2423_v32 = vmul.f32 %v2421_v31, %v5463_v9  ;;  %v5023_v31 = vld [vmem:[%s6814_s16 + $0x1c] sm:$0xf] }
 0x726   : > { %v6136_v33 = vsub.f32 %v6125_v27, %v2423_v32  ;;  %v4521_v32 = vor.u32 %v5024_v30, %v4520_v46  ;;  %2672 = vmatpush.bf16.msrb.mxu3 %v4517_v52 }
 0x728   : > { %v2427_v22 = vmul.f32 %v6136_v33, %v6136_v33  ;;  %2643 = vmatpush.bf16.msrb.mxu1 %v4521_v32 }
 0x72a   : > { %2430 = vadd.xlane.f32.xlu1 %v2427_v22  ;;  %v4522_v22 = vld [vmem:[%s6814_s16 + $0x24] sm:$0xf0] }
 0x72b   : > { %v4525_v39 = vor.u32 %v5023_v31, %v4522_v22 }
 0x72c   : > { %2644 = vmatpush.bf16.msrb.mxu1 %v4509_v45 }
 0x72d   : > { %2657 = vmatpush.bf16.msrb.mxu2 %v4525_v39 }
 0x731   : > { %2658 = vmatpush.bf16.msrb.mxu2 %v4513_v51 }
 0x795   : > { %v2429_v37 = vpop.xlane.xlu0 %2428 }
 0x796   : > { %v2432_v44 = vmul.f32 %v2429_v37, %v5463_v9 }
 0x798   : > { %v2434_v54 = vadd.f32 1e-05, %v2432_v44 }
 0x79a   : > { %5237 = vrsqrt.f32 %v2434_v54  ;;  %vm2442_vm1 = vweird.f32 %v2434_v54 }
 0x79d   : > { %v2431_v55 = vpop.xlane.xlu1 %2430 }
 0x79e   : > { %v2433_v2 = vmul.f32 %v2431_v55, %v5463_v9 }
 0x7a0   : > { %v5238_v58 = vpop.eup %5237  ;;  %v2435_v59 = vadd.f32 1e-05, %v2433_v2 }
 0x7a1   : > { %v2437_v12 = vmul.f32 %v5238_v58, %v2434_v54  ;;  %vm2443_vm0 = vweird.f32 %v5238_v58 }
 0x7a2   : > { %5239 = vrsqrt.f32 %v2435_v59  ;;  %vm2444_vm2 = vmor %vm2442_vm1, %vm2443_vm0  ;;  %vm2452_vm4 = vweird.f32 %v2435_v59 }
 0x7a3   : > { %v2438_v61 = vmul.f32 %v5238_v58, %v2437_v12 }
 0x7a5   : > { %v2439_v62 = vmul.f32 0.5, %v2438_v61 }
 0x7a7   : > { %v2440_v1 = vsub.f32 1.5, %v2439_v62 }
 0x7a8   : > { %v5240_v36 = vpop.eup %5239 }
 0x7a9   : > { %v2441_v57 = vmul.f32 %v5238_v58, %v2440_v1  ;;  %v2447_v56 = vmul.f32 %v5240_v36, %v2435_v59  ;;  %vm2453_vm3 = vweird.f32 %v5240_v36 }
 0x7aa   : > { %vm2454_vm5 = vmor %vm2452_vm4, %vm2453_vm3 }
 0x7ab   : > { %v2448_v38 = vmul.f32 %v5240_v36, %v2447_v56  ;;  %v2445_v60 = vsel %vm2444_vm2, %v5238_v58, %v2441_v57 }
 0x7ac   : > { %v2456_v21 = vmul.f32 %v2445_v60, %v6130_v29 }
 0x7ad   : > { %v2449_v16 = vmul.f32 0.5, %v2448_v38 }
 0x7ae   : > { %v2461_v6 = vmul.f32 %v5173_v0, %v2456_v21  ;;  %v6334_v21 = vld [vmem:[%s6854_s9] sm:$0xff] }
 0x7af   : > { %v2450_v63 = vsub.f32 1.5, %v2449_v16 }
 0x7b0   : > { %v2466_v50 = vadd.f32 %v5174_v7, %v2461_v6 }
 0x7b1   : > { %v2451_v3 = vmul.f32 %v5240_v36, %v2450_v63 }
 0x7b3   : > { %v2455_v4 = vsel %vm2454_vm5, %v5240_v36, %v2451_v3 }
 0x7b4   : > { %v2457_v5 = vmul.f32 %v2455_v4, %v6136_v33  ;;  %v2503_v33 = vperm.slane %v2501_v13, 0 }
 0x7b6   : > { %v2462_v10 = vmul.f32 %v5173_v0, %v2457_v5 }
 0x7b8   : > { %v2467_v8 = vadd.f32 %v5174_v7, %v2462_v10 }
 0x7ba   : > { %v2500_v11 = vpack.c.bf16 %v2467_v8, %v2466_v50 }
 0x7bc   : > { %2645 = vmatmul.bf16.vlgmr.msrb.gmra.mxu1 %v2500_v11  ;;  %2659 = vmatmul.bf16.vlgmr.msrb.gmra.mxu2 %v2500_v11 }
 0x7bd   : > { %2673 = vmatmul.bf16.vlgmr.msrb.gmra.mxu3 %v2500_v11 }
 0x839   : > { %v2646_v29 = vpop.f32.mrf.mxu1 }
 0x83a   : > { %v2647_v25 = vadd.f32 %v2646_v29, %v2503_v33 }
 0x83c   : > { %v2739_v46 = vpack.c.bf16 %v2647_v25, %v2647_v25 }
 0x83f   : > { %v2660_v14 = vpop.f32.mrf.mxu2 }
 0x840   : > { %v2661_v15 = vadd.f32 %v2660_v14, %v2504_v53  ;;  %v2674_v32 = vpop.f32.mrf.mxu3 }
 0x841   : > { %v2648_v17 = vpop.f32.mrf.mxu1  ;;  %v6312_v39 = vadd.f32 %v2674_v32, %v2505_v34 }
 0x842   : > { %v2649_v18 = vadd.f32 %v2648_v17, %v2503_v33  ;;  %v2747_v20 = vpack.c.bf16 %v2661_v15, %v2661_v15 }
 0x843   : > { %v2987_v45 = vpack.c.bf16 %v6312_v39, %v6312_v39 }
 0x844   : > { %v2759_v23 = vsel %vm1147_vm7, %v2747_v20, 0  ;;  %v5157_v24 = vpack.i.bf16 %v2661_v15, %v2649_v18  ;;  %v2740_v35 = vpack.c.bf16 %v2649_v18, %v2649_v18 }
 0x845   : > { %2768 = vmatpush.bf16.xpose.msra.mxu0 %v2759_v23  ;;  %v2999_v49 = vsel %vm1392_vm8, %v2987_v45, 0 }
 0x846   : > { %5158 = vrot.lane.b32.xlu0 %v5157_v24, %s6860_s8 }
 0x847   : > { %v2662_v26 = vpop.f32.mrf.mxu2 }
 0x848   : > { %v2663_v28 = vadd.f32 %v2662_v26, %v2504_v53  ;;  %v2676_v22 = vpop.f32.mrf.mxu3 }
 0x849   : > { %v6309_v37 = vadd.f32 %v2676_v22, %v2505_v34 }
 0x84a   : > { %2715 = vrot.lane.b32.xlu1 %v2663_v28, %s6861_s10  ;;  %2703 = vrot.lane.b32.xlu2 %v2663_v28, %s6860_s8  ;;  %v2748_v30 = vpack.c.bf16 %v2663_v28, %v2663_v28 }
 0x84b   : > { %v5162_v40 = vpack.i.bf16 %v6312_v39, %v6309_v37  ;;  %v2988_v6 = vpack.c.bf16 %v6309_v37, %v6309_v37 }
 0x84c   : > { %4602 = vmatmul.msk.bf16.vlgmr.msra.gmra.mxu0 %vm1147_vm7, %v2739_v46  ;;  %v2778_v31 = vsel %vm1147_vm7, %v2748_v30, 0 }
 0x84d   : > { %2787 = vmatpush.bf16.xpose.msrb.mxu0 %v2778_v31  ;;  %v3018_v8 = vsel %vm1392_vm8, %v2988_v6, 0 }
 0x84e   : > { %2681 = vrot.lane.b32.xlu0 %v2647_v25, %s6860_s8 }
 0x852   : > { %2707 = vrot.lane.b32.xlu2 %v2661_v15, %s6862_s4  ;;  %2695 = vrot.lane.b32.xlu1 %v2649_v18, %s6861_s10 }
 0x856   : > { %2687 = vrot.lane.b32.xlu0 %v2647_v25, %s6862_s4 }
 0x85a   : > { %2713 = vrot.lane.b32.xlu2 %v2661_v15, %s6861_s10  ;;  %2709 = vrot.lane.b32.xlu1 %v2663_v28, %s6862_s4 }
 0x85c   : > { %4603 = vmatmul.msk.bf16.vlgmr.msrb.gmra.mxu0 %vm1147_vm7, %v2740_v35 }
 0x85e   : > { %2693 = vrot.lane.b32.xlu0 %v2647_v25, %s6861_s10 }
 0x862   : > { %2689 = vrot.lane.b32.xlu2 %v2649_v18, %s6862_s4  ;;  %5163 = vrot.lane.b32.xlu1 %v5162_v40, %s6860_s8 }
 0x86a   : > { %2727 = vrot.lane.b32.xlu1 %v6312_v39, %s6862_s4 }
 0x8a4   : > { %v2704_v41 = vpop.permute.xlu2 %2703 }
 0x8a5   : > { %v2750_v42 = vpack.c.bf16 %v2704_v41, %v2704_v41 }
 0x8a7   : > { %v2816_v43 = vsel %vm1147_vm7, %v2750_v42, 0 }
 0x8a8   : > { %2825 = vmatpush.bf16.xpose.msra.mxu2 %v2816_v43 }
 0x8ac   : > { %v2708_v44 = vpop.permute.xlu2 %2707 }
 0x8ad   : > { %v2751_v47 = vpack.c.bf16 %v2708_v44, %v2708_v44 }
 0x8af   : > { %v2835_v48 = vsel %vm1147_vm7, %v2751_v47, 0 }
 0x8b0   : > { %2844 = vmatpush.bf16.xpose.msra.mxu3 %v2835_v48 }
 0x8b4   : > { %v2714_v51 = vpop.permute.xlu2 %2713 }
 0x8b5   : > { %v2753_v2 = vpack.c.bf16 %v2714_v51, %v2714_v51 }
 0x8b7   : > { %v2873_v1 = vsel %vm1147_vm7, %v2753_v2, 0 }
 0x8b8   : > { %3008 = vmatpush.bf16.msrb.mxu3 %v2999_v49  ;;  %v5159_v52 = vpop.permute.xlu0 %5158 }
 0x8b9   : > { %v5161_v54 = vunpack.i.h.bf16 %v5159_v52  ;;  %v5160_v55 = vunpack.i.l.bf16 %v5159_v52 }
 0x8bb   : > { %v2749_v58 = vpack.c.bf16 %v5161_v54, %v5161_v54  ;;  %v2742_v59 = vpack.c.bf16 %v5160_v55, %v5160_v55 }
 0x8bc   : > { %v2716_v12 = vpop.permute.xlu1 %2715  ;;  %v2690_v29 = vpop.permute.xlu2 %2689 }
 0x8bd   : > { %v2754_v61 = vpack.c.bf16 %v2716_v12, %v2716_v12  ;;  %4605 = vmatmul.msk.bf16.vlgmr.msra.gmra.mxu2 %vm1147_vm7, %v2742_v59  ;;  %v2797_v62 = vsel %vm1147_vm7, %v2749_v58, 0  ;;  %v2744_v14 = vpack.c.bf16 %v2690_v29, %v2690_v29 }
 0x8be   : > { %2806 = vmatpush.bf16.xpose.msra.mxu1 %v2797_v62 }
 0x8bf   : > { %v2892_v36 = vsel %vm1147_vm7, %v2754_v61, 0 }
 0x8c0   : > { %2901 = vmatpush.bf16.xpose.msrb.mxu2 %v2892_v36  ;;  %v2682_v57 = vpop.permute.xlu0 %2681 }
 0x8c1   : > { %v2741_v56 = vpack.c.bf16 %v2682_v57, %v2682_v57 }
 0x8c4   : > { %v2696_v38 = vpop.permute.xlu1 %2695 }
 0x8c5   : > { %4604 = vmatmul.msk.bf16.vlgmr.msra.gmra.mxu1 %vm1147_vm7, %v2741_v56  ;;  %v2746_v3 = vpack.c.bf16 %v2696_v38, %v2696_v38 }
 0x8c6   : > { %2882 = vmatpush.bf16.xpose.msrb.mxu1 %v2873_v1 }
 0x8c8   : > { %v2688_v60 = vpop.permute.xlu0 %2687 }
 0x8c9   : > { %v2743_v16 = vpack.c.bf16 %v2688_v60, %v2688_v60  ;;  %v2770_v63 = vpop.f32.mrf.mxu0 }
 0x8ca   : > { %v2771_v0 = vadd.f32 %v6334_v21, %v2770_v63 }
 0x8cb   : > { %4606 = vmatmul.msk.bf16.vlgmr.msra.gmra.mxu3 %vm1147_vm7, %v2743_v16 }
 0x8cc   : > { %v2710_v4 = vpop.permute.xlu1 %2709  ;;  %v2907_v5 = vsel %vm1300_vm9, %v2771_v0, -inf }
 0x8cd   : > { %v2752_v7 = vpack.c.bf16 %v2710_v4, %v2710_v4  ;;  %4609 = vmatmul.msk.bf16.vlgmr.msrb.gmra.mxu2 %vm1147_vm7, %v2746_v3  ;;  %2908 = vmax.xlane.f32.xlu0 %v2907_v5 }
 0x8cf   : > { %v2854_v10 = vsel %vm1147_vm7, %v2752_v7, 0 }
 0x8d0   : > { %v2694_v50 = vpop.permute.xlu0 %2693  ;;  %2863 = vmatpush.bf16.xpose.msra.mxu0 %v2854_v10 }
 0x8d1   : > { %v2772_v11 = vpop.f32.mrf.mxu0  ;;  %v2745_v13 = vpack.c.bf16 %v2694_v50, %v2694_v50 }
 0x8d4   : > { %v5164_v53 = vpop.permute.xlu1 %5163 }
 0x8d5   : > { %v5166_v33 = vunpack.i.h.bf16 %v5164_v53  ;;  %v5165_v15 = vunpack.i.l.bf16 %v5164_v53  ;;  %4608 = vmatmul.msk.bf16.vlgmr.msrb.gmra.mxu1 %vm1147_vm7, %v2745_v13 }
 0x8d7   : > { %v2989_v17 = vpack.c.bf16 %v5166_v33, %v5166_v33  ;;  %v2990_v18 = vpack.c.bf16 %v5165_v15, %v5165_v15  ;;  %4607 = vmatmul.msk.bf16.vlgmr.msra.gmra.mxu0 %vm1147_vm7, %v2744_v14 }
 0x8d8   : > { %3027 = vmatpush.bf16.msrb.mxu0 %v3018_v8 }
 0x8d9   : > { %v2789_v20 = vpop.f32.mrf.mxu0  ;;  %v3037_v23 = vsel %vm1392_vm8, %v2989_v17, 0  ;;  %v3056_v24 = vsel %vm1392_vm8, %v2990_v18, 0 }
 0x8da   : > { %v2790_v25 = vadd.f32 %v6334_v21, %v2789_v20  ;;  %3046 = vmatpush.bf16.msra.mxu1 %v3037_v23  ;;  %3065 = vmatpush.bf16.msra.mxu2 %v3056_v24 }
 0x8dc   : > { %v2728_v26 = vpop.permute.xlu1 %2727  ;;  %v2910_v28 = vsel %vm1300_vm9, %v2790_v25, -inf }
 0x8dd   : > { %v2991_v46 = vpack.c.bf16 %v2728_v26, %v2728_v26  ;;  %2911 = vmax.xlane.f32.xlu0 %v2910_v28 }
 0x8df   : > { %v3075_v30 = vsel %vm1392_vm8, %v2991_v46, 0 }
 0x8e0   : > { %3084 = vmatpush.bf16.msra.mxu3 %v3075_v30 }
 0x8e1   : > { %v2791_v31 = vpop.f32.mrf.mxu0 }
 0x940   : > { %v2827_v32 = vpop.f32.mrf.mxu2  ;;  %v2909_v22 = vpop.xlane.xlu0 %2908 }
 0x941   : > { %v2828_v34 = vadd.f32 %v6334_v21, %v2827_v32  ;;  %v2931_v35 = vsub.f32 %v2771_v0, %v2909_v22 }
 0x942   : > { %v2808_v40 = vpop.f32.mrf.mxu1 }
 0x943   : > { %v2939_v41 = vmul.f32 1.442695, %v2931_v35  ;;  %v2809_v42 = vadd.f32 %v6334_v21, %v2808_v40  ;;  %v2916_v43 = vsel %vm1300_vm9, %v2828_v34, -inf }
 0x944   : > { %2917 = vmax.xlane.f32.xlu1 %v2916_v43 }
 0x945   : > { %5241 = vpow2.f32 %v2939_v41  ;;  %v2913_v44 = vsel %vm1300_vm9, %v2809_v42, -inf }
 0x946   : > { %2914 = vmax.xlane.f32.xlu2 %v2913_v44 }
 0x948   : > { %v2829_v45 = vpop.f32.mrf.mxu2 }
 0x94a   : > { %v2810_v47 = vpop.f32.mrf.mxu1 }
 0x94b   : > { %v5242_v48 = vpop.eup %5241 }
 0x94c   : > { %v2979_v49 = vpack.c.bf16 %v5242_v48, %v5242_v48  ;;  %v2955_v5 = vsel %vm1300_vm9, %v5242_v48, 0.0 }
 0x94e   : > { %v2846_v51 = vpop.f32.mrf.mxu3  ;;  %4610 = vmatmul.msk.bf16.vlgmr.msrb.gmra.mxu3 %vm1300_vm9, %v2979_v49 }
 0x94f   : > { %v2847_v52 = vadd.f32 %v6334_v21, %v2846_v51 }
 0x950   : > { %v2903_v54 = vpop.f32.mrf.mxu2  ;;  %v2912_v55 = vpop.xlane.xlu0 %2911 }
 0x951   : > { %v2932_v2 = vsub.f32 %v2790_v25, %v2912_v55  ;;  %v2919_v58 = vsel %vm1300_vm9, %v2847_v52, -inf  ;;  %v2904_v3 = vadd.f32 %v6334_v21, %v2903_v54 }
 0x952   : > { %v2884_v59 = vpop.f32.mrf.mxu1  ;;  %2920 = vmax.xlane.f32.xlu0 %v2919_v58 }
 0x953   : > { %v2941_v12 = vmul.f32 1.442695, %v2932_v2  ;;  %v2885_v60 = vadd.f32 %v6334_v21, %v2884_v59  ;;  %v2928_v4 = vsel %vm1300_vm9, %v2904_v3, -inf }
 0x954   : > { %v2865_v61 = vpop.f32.mrf.mxu0 }
 0x955   : > { %5243 = vpow2.f32 %v2941_v12  ;;  %v2866_v62 = vadd.f32 %v6334_v21, %v2865_v61  ;;  %v2925_v0 = vsel %vm1300_vm9, %v2885_v60, -inf }
 0x956   : > { %v2848_v1 = vpop.f32.mrf.mxu3 }
 0x957   : > { %v2922_v36 = vsel %vm1300_vm9, %v2866_v62, -inf }
 0x958   : > { %v2905_v57 = vpop.f32.mrf.mxu2  ;;  %2923 = vmax.xlane.f32.xlu2 %v2922_v36  ;;  %v5047_v36 = vld [vmem:[%s6816_s18 + $0x18] sm:$0xff] }
 0x959   : > { %3195 = vmatpush.bf16.msrb.mxu3 %v5047_v36  ;;  %v5046_v57 = vld [vmem:[%s6816_s18 + $0x10] sm:$0xff] }
 0x95a   : > { %v2886_v56 = vpop.f32.mrf.mxu1 }
 0x95b   : > { %v6360_v38 = vpop.eup %5243 }
 0x95c   : > { %v2980_v16 = vpack.c.bf16 %v6360_v38, %v6360_v38  ;;  %v2867_v63 = vpop.f32.mrf.mxu0  ;;  %v2958_v1 = vsel %vm1300_vm9, %v6360_v38, 0.0  ;;  %v5048_v38 = vld [vmem:[%s6816_s18 + $0x20] sm:$0xff] }
 0x95d   : > { %2729 = vrot.lane.b32.xlu1 %v6309_v37, %s6862_s4  ;;  %3196 = vmatpush.bf16.msrb.mxu3 %v5046_v57  ;;  %v5049_v63 = vld [vmem:[%s6816_s18 + $0x28] sm:$0xff] }
 0x95e   : > { %4611 = vmatmul.msk.bf16.vlgmr.msrb.gmra.mxu0 %vm1300_vm9, %v2980_v16 }
 0x960   : > { %2926 = vmax.xlane.f32.xlu2 %v2925_v0 }
 0x966   : > { %2735 = vrot.lane.b32.xlu0 %v6309_v37, %s6861_s10 }
 0x968   : > { %2929 = vmax.xlane.f32.xlu2 %v2928_v4  ;;  %v5045_v4 = vld [vmem:[%s6816_s18 + $0x8] sm:$0xff] }
 0x980   : > { %2733 = vrot.lane.b32.xlu2 %v6312_v39, %s6861_s10 }
 0x987   : > { %2956 = vadd.xlane.f32.xlu1 %v2955_v5 }
 0x9b7   : > { %v2918_v6 = vpop.xlane.xlu1 %2917 }
 0x9b8   : > { %v2934_v7 = vsub.f32 %v2828_v34, %v2918_v6 }
 0x9b9   : > { %v2915_v10 = vpop.xlane.xlu2 %2914 }
 0x9ba   : > { %v2945_v50 = vmul.f32 1.442695, %v2934_v7  ;;  %v2933_v8 = vsub.f32 %v2809_v42, %v2915_v10 }
 0x9bc   : > { %5245 = vpow2.f32 %v2945_v50  ;;  %v2943_v11 = vmul.f32 1.442695, %v2933_v8  ;;  %v5051_v50 = vld [vmem:[%s6816_s18 + $0x38] sm:$0xff] }
 0x9be   : > { %5247 = vpow2.f32 %v2943_v11  ;;  %v5044_v11 = vld [vmem:[%s6816_s18] sm:$0xff] }
 0x9c2   : > { %v5246_v21 = vpop.eup %5245 }
 0x9c3   : > { %v2982_v29 = vpack.c.bf16 %v5246_v21, %v5246_v21  ;;  %v2964_v37 = vsel %vm1300_vm9, %v5246_v21, 0.0 }
 0x9c4   : > { %v5248_v13 = vpop.eup %5247  ;;  %2965 = vadd.xlane.f32.xlu1 %v2964_v37 }
 0x9c5   : > { %v2981_v53 = vpack.c.bf16 %v5248_v13, %v5248_v13  ;;  %4613 = vmatmul.msk.bf16.vlgmr.msra.gmra.mxu2 %vm1300_vm9, %v2982_v29  ;;  %v2921_v39 = vpop.xlane.xlu0 %2920  ;;  %v2961_v14 = vsel %vm1300_vm9, %v5248_v13, 0.0  ;;  %v5050_v29 = vld [vmem:[%s6816_s18 + $0x30] sm:$0xff] }
 0x9c6   : > { %v2935_v33 = vsub.f32 %v2847_v52, %v2921_v39  ;;  %2962 = vadd.xlane.f32.xlu0 %v2961_v14 }
 0x9c7   : > { %4612 = vmatmul.msk.bf16.vlgmr.msra.gmra.mxu1 %vm1300_vm9, %v2981_v53 }
 0x9c8   : > { %v2947_v15 = vmul.f32 1.442695, %v2935_v33 }
 0x9ca   : > { %5249 = vpow2.f32 %v2947_v15 }
 0x9cb   : > { %v2924_v17 = vpop.xlane.xlu2 %2923 }
 0x9cc   : > { %v2936_v18 = vsub.f32 %v2866_v62, %v2924_v17 }
 0x9ce   : > { %v2949_v20 = vmul.f32 1.442695, %v2936_v18 }
 0x9cf   : > { %v2730_v23 = vpop.permute.xlu1 %2729 }
 0x9d0   : > { %v5250_v24 = vpop.eup %5249  ;;  %5251 = vpow2.f32 %v2949_v20  ;;  %v2992_v25 = vpack.c.bf16 %v2730_v23, %v2730_v23 }
 0x9d1   : > { %v2983_v26 = vpack.c.bf16 %v5250_v24, %v5250_v24  ;;  %v6380_v28 = vpop.f32.mrf.mxu3  ;;  %v2967_v46 = vsel %vm1300_vm9, %v5250_v24, 0.0 }
 0x9d2   : > { %v3094_v30 = vsel %vm1392_vm8, %v2992_v25, 0  ;;  %2968 = vadd.xlane.f32.xlu1 %v2967_v46 }
 0x9d3   : > { %3103 = vmatpush.bf16.msra.mxu0 %v3094_v30  ;;  %v2927_v31 = vpop.xlane.xlu2 %2926  ;;  %4614 = vmatmul.msk.bf16.vlgmr.msra.gmra.mxu3 %vm1300_vm9, %v2983_v26 }
 0x9d4   : > { %v2937_v32 = vsub.f32 %v2885_v60, %v2927_v31 }
 0x9d6   : > { %v5252_v22 = vpop.eup %5251  ;;  %v2951_v34 = vmul.f32 1.442695, %v2937_v32 }
 0x9d7   : > { %v2984_v35 = vpack.c.bf16 %v5252_v22, %v5252_v22  ;;  %v2970_v12 = vsel %vm1300_vm9, %v5252_v22, 0.0  ;;  %3224 = vmatpush.bf16.msrb.mxu0 %v5045_v4 }
 0x9d8   : > { %5253 = vpow2.f32 %v2951_v34  ;;  %v2736_v40 = vpop.permute.xlu0 %2735 }
 0x9d9   : > { %v2994_v41 = vpack.c.bf16 %v2736_v40, %v2736_v40  ;;  %v3012_v42 = vpop.f32.mrf.mxu3  ;;  %4615 = vmatmul.msk.bf16.vlgmr.msra.gmra.mxu0 %vm1300_vm9, %v2984_v35 }
 0x9db   : > { %v3132_v43 = vsel %vm1392_vm8, %v2994_v41, 0  ;;  %v2930_v44 = vpop.xlane.xlu2 %2929  ;;  %v6387_v45 = vpop.f32.mrf.mxu0  ;;  %3225 = vmatpush.bf16.msrb.mxu0 %v5044_v11  ;;  %v4782_v11 = vld [vmem:[%s6820_s22 + $0xf0] sm:$0xf0] }
 0x9dc   : > { %v2938_v47 = vsub.f32 %v2904_v3, %v2930_v44  ;;  %3141 = vmatpush.bf16.msrb.mxu2 %v3132_v43 }
 0x9de   : > { %v5254_v48 = vpop.eup %5253  ;;  %v2953_v49 = vmul.f32 1.442695, %v2938_v47 }
 0x9df   : > { %v2973_v51 = vsel %vm1300_vm9, %v5254_v48, 0.0  ;;  %v2985_v62 = vpack.c.bf16 %v5254_v48, %v5254_v48 }
 0x9e0   : > { %5255 = vpow2.f32 %v2953_v49  ;;  %2974 = vadd.xlane.f32.xlu2 %v2973_v51  ;;  %3296 = vmatpush.bf16.msra.mxu2 %v5051_v50  ;;  %v5080_v50 = vld [vmem:[%s6820_s22 + $0xe4] sm:$0xf] }
 0x9e3   : > { %v2734_v52 = vpop.permute.xlu2 %2733  ;;  %v3031_v54 = vpop.f32.mrf.mxu0 }
 0x9e4   : > { %v2993_v55 = vpack.c.bf16 %v2734_v52, %v2734_v52  ;;  %3297 = vmatpush.bf16.msra.mxu2 %v5050_v29  ;;  %v5083_v29 = vld [vmem:[%s6820_s22 + $0xf4] sm:$0xf0] }
 0x9e6   : > { %v5256_v2 = vpop.eup %5255  ;;  %v3113_v58 = vsel %vm1392_vm8, %v2993_v55, 0 }
 0x9e7   : > { %v2986_v59 = vpack.c.bf16 %v5256_v2, %v5256_v2  ;;  %3122 = vmatpush.bf16.msrb.mxu1 %v3113_v58  ;;  %v2976_v61 = vsel %vm1300_vm9, %v5256_v2, 0.0 }
 0x9e8   : > { %2971 = vadd.xlane.f32.xlu2 %v2970_v12  ;;  %2977 = vadd.xlane.f32.xlu0 %v2976_v61 }
 0x9e9   : > { %4617 = vmatmul.msk.bf16.vlgmr.msrb.gmra.mxu2 %vm1300_vm9, %v2986_v59  ;;  %v5175_v59 = vld [vmem:[%s6817_s19] ss:$0 sm:$0xff] }
 0x9ea   : > { %4616 = vmatmul.msk.bf16.vlgmr.msrb.gmra.mxu1 %vm1300_vm9, %v2985_v62 }
 0x9eb   : > { %3259 = vmatpush.bf16.msra.mxu1 %v5049_v63 }
 0x9ef   : > { %3260 = vmatpush.bf16.msra.mxu1 %v5048_v38 }
 0x9f0   : > { %2959 = vadd.xlane.f32.xlu0 %v2958_v1 }
 0x9fa   : > { %v2957_v56 = vpop.xlane.xlu1 %2956 }
 0xa37   : > { %v2966_v60 = vpop.xlane.xlu1 %2965 }
 0xa38   : > { %5257 = vrcp.f32 %v2966_v60 }
 0xa39   : > { %v2963_v16 = vpop.xlane.xlu0 %2962 }
 0xa3a   : > { %5259 = vrcp.f32 %v2963_v16 }
 0xa3e   : > { %v5258_v3 = vpop.eup %5257 }
 0xa40   : > { %v5260_v5 = vpop.eup %5259 }
 0xa44   : > { %v3048_v0 = vpop.f32.mrf.mxu1 }
 0xa45   : > { %v3157_v7 = vmul.f32 %v5260_v5, %v3048_v0  ;;  %v2969_v14 = vpop.xlane.xlu1 %2968 }
 0xa46   : > { %5261 = vrcp.f32 %v2969_v14 }
 0xa48   : > { %v3067_v6 = vpop.f32.mrf.mxu2 }
 0xa49   : > { %v3158_v10 = vmul.f32 %v5258_v3, %v3067_v6 }
 0xa4b   : > { %v3173_v8 = vpack.c.bf16 %v3158_v10, %v3157_v7  ;;  %v4780_v7 = vld [vmem:[%s6820_s22 + $0xe0] sm:$0xf]  ;;  %v5082_v10 = vld [vmem:[%s6820_s22 + $0xec] sm:$0xf0] }
 0xa4c   : > { %v3050_v21 = vpop.f32.mrf.mxu1  ;;  %v5262_v20 = vpop.eup %5261 }
 0xa4d   : > { %4630 = vmatmul.msk.bf16.vlgmr.msrb.gmra.mxu3 %vm1147_vm7, %v3173_v8  ;;  %v4781_v8 = vor.u32 %v5082_v10, %v4780_v7  ;;  %v4788_v21 = vld [vmem:[%s6820_s22 + $0xe8] sm:$0xf]  ;;  %v4700_v10 = vld [vmem:[%s6820_s22 + $0x40] sm:$0xf] }
 0xa4f   : > { %3569 = vmatpush.bf16.msra.mxu3 %v4781_v8  ;;  %v5060_v8 = vld [vmem:[%s6820_s22 + $0x44] sm:$0xf] }
 0xa50   : > { %v3069_v37 = vpop.f32.mrf.mxu2 }
 0xa51   : > { %v4785_v37 = vor.u32 %v5080_v50, %v4782_v11  ;;  %v5062_v50 = vld [vmem:[%s6820_s22 + $0x4c] sm:$0xf0] }
 0xa52   : > { %v4701_v11 = vor.u32 %v5062_v50, %v4700_v10 }
 0xa53   : > { %v2975_v13 = vpop.xlane.xlu2 %2974  ;;  %3583 = vmatpush.bf16.msra.mxu0 %v4785_v37  ;;  %v5063_v37 = vld [vmem:[%s6820_s22 + $0x54] sm:$0xf0] }
 0xa56   : > { %v3086_v53 = vpop.f32.mrf.mxu3  ;;  %v3105_v39 = vpop.f32.mrf.mxu0 }
 0xa57   : > { %v3159_v24 = vmul.f32 %v5262_v20, %v3086_v53  ;;  %v5081_v53 = vld [vmem:[%s6820_s22 + $0xec] sm:$0xf]  ;;  %v4766_v20 = vld [vmem:[%s6820_s22 + $0xd0] sm:$0xf0] }
 0xa5b   : > { %v2972_v33 = vpop.xlane.xlu2 %2971  ;;  %v2978_v15 = vpop.xlane.xlu0 %2977 }
 0xa5c   : > { %5263 = vrcp.f32 %v2972_v33  ;;  %v4764_v33 = vld [vmem:[%s6820_s22 + $0xc0] sm:$0xf] }
 0xa5d   : > { %5265 = vrcp.f32 %v2957_v56 }
 0xa5e   : > { %v3088_v17 = vpop.f32.mrf.mxu3  ;;  %v3107_v18 = vpop.f32.mrf.mxu0 }
 0xa5f   : > { %v5076_v17 = vld [vmem:[%s6820_s22 + $0xc4] sm:$0xf] }
 0xa62   : > { %v5264_v23 = vpop.eup %5263 }
 0xa63   : > { %v3160_v25 = vmul.f32 %v5264_v23, %v3105_v39  ;;  %v2960_v26 = vpop.xlane.xlu0 %2959  ;;  %v5266_v31 = vpop.eup %5265  ;;  %v4790_v39 = vld [vmem:[%s6820_s22 + $0xf8] sm:$0xf0]  ;;  %v4772_v23 = vld [vmem:[%s6820_s22 + $0xc8] sm:$0xf] }
 0xa64   : > { %5267 = vrcp.f32 %v2960_v26  ;;  %v3155_v34 = vmul.f32 %v5266_v31, %v6380_v28  ;;  %v4793_v14 = vor.u32 %v5081_v53, %v4790_v39  ;;  %v5061_v39 = vld [vmem:[%s6820_s22 + $0x4c] sm:$0xf] }
 0xa65   : > { %5269 = vrcp.f32 %v2975_v13  ;;  %v3237_v46 = vpack.c.bf16 %v3160_v25, %v3159_v24  ;;  %v4789_v13 = vor.u32 %v5083_v29, %v4788_v21  ;;  %v5079_v24 = vld [vmem:[%s6820_s22 + $0xd4] sm:$0xf0]  ;;  %v4769_v25 = vor.u32 %v5076_v17, %v4766_v20  ;;  %v4702_v21 = vld [vmem:[%s6820_s22 + $0x50] sm:$0xf0]  ;;  %v4708_v29 = vld [vmem:[%s6820_s22 + $0x48] sm:$0xf] }
 0xa66   : > { %5271 = vrcp.f32 %v2978_v15  ;;  %v5078_v15 = vld [vmem:[%s6820_s22 + $0xcc] sm:$0xf0]  ;;  %3611 = vmatpush.bf16.msrb.mxu2 %v4793_v14  ;;  %v4773_v26 = vor.u32 %v5079_v24, %v4772_v23  ;;  %v4709_v53 = vor.u32 %v5063_v37, %v4708_v29  ;;  %v4710_v14 = vld [vmem:[%s6820_s22 + $0x58] sm:$0xf0]  ;;  %v4686_v23 = vld [vmem:[%s6820_s22 + $0x30] sm:$0xf0] }
 0xa67   : > { %v3124_v30 = vpop.f32.mrf.mxu1  ;;  %4652 = vmatmul.msk.bf16.vlgmr.msra.gmra.mxu1 %vm1147_vm7, %v3237_v46  ;;  %v4765_v18 = vor.u32 %v5078_v15, %v4764_v33  ;;  %v5077_v46 = vld [vmem:[%s6820_s22 + $0xcc] sm:$0xf]  ;;  %3584 = vmatpush.bf16.msra.mxu0 %v4769_v25  ;;  %v4713_v33 = vor.u32 %v5061_v39, %v4710_v14  ;;  %v4684_v15 = vld [vmem:[%s6820_s22 + $0x20] sm:$0xf]  ;;  %v5058_v17 = vld [vmem:[%s6820_s22 + $0x2c] sm:$0xf0] }
 0xa68   : > { %3597 = vmatpush.bf16.msrb.mxu1 %v4789_v13  ;;  %v4705_v13 = vor.u32 %v5060_v8, %v4702_v21  ;;  %v4685_v20 = vor.u32 %v5058_v17, %v4684_v15  ;;  %v4692_v24 = vld [vmem:[%s6820_s22 + $0x28] sm:$0xf]  ;;  %v5059_v25 = vld [vmem:[%s6820_s22 + $0x34] sm:$0xf0]  ;;  %v5106_v37 = vld [vmem:[%s6822_s24 + $0xb0] sm:$0xff] }
 0xa69   : > { %3570 = vmatpush.bf16.msra.mxu3 %v4765_v18  ;;  %v5056_v18 = vld [vmem:[%s6820_s22 + $0x24] sm:$0xf]  ;;  %v5107_v29 = vld [vmem:[%s6822_s24 + $0xb8] sm:$0xff]  ;;  %v5097_v39 = vld [vmem:[%s6822_s24 + $0x68] sm:$0xff] }
 0xa6a   : > { %v5268_v32 = vpop.eup %5267  ;;  %v5105_v14 = vld [vmem:[%s6822_s24 + $0xa8] sm:$0xff]  ;;  %v5114_v15 = vld [vmem:[%s6822_s24 + $0xf0] sm:$0xff]  ;;  %v5096_v17 = vld [vmem:[%s6822_s24 + $0x60] sm:$0xff] }
 0xa6b   : > { %v5270_v22 = vpop.eup %5269  ;;  %v3156_v35 = vmul.f32 %v5268_v32, %v6387_v45  ;;  %v4748_v32 = vld [vmem:[%s6820_s22 + $0xa0] sm:$0xf] }
 0xa6c   : > { %v5272_v40 = vpop.eup %5271  ;;  %v3143_v41 = vpop.f32.mrf.mxu2  ;;  %v3161_v43 = vmul.f32 %v5270_v22, %v3124_v30  ;;  %v4774_v30 = vld [vmem:[%s6820_s22 + $0xd8] sm:$0xf0]  ;;  %3598 = vmatpush.bf16.msrb.mxu1 %v4773_v26  ;;  %v5074_v22 = vld [vmem:[%s6820_s22 + $0xac] sm:$0xf0] }
 0xa6d   : > { %v3167_v42 = vpack.c.bf16 %v3156_v35, %v3155_v34  ;;  %v3162_v44 = vmul.f32 %v5272_v40, %v3143_v41  ;;  %v4777_v31 = vor.u32 %v5077_v46, %v4774_v30  ;;  %v5072_v34 = vld [vmem:[%s6820_s22 + $0xa4] sm:$0xf]  ;;  %v4749_v35 = vor.u32 %v5074_v22, %v4748_v32  ;;  %v4750_v40 = vld [vmem:[%s6820_s22 + $0xb0] sm:$0xf0]  ;;  %v4756_v41 = vld [vmem:[%s6820_s22 + $0xa8] sm:$0xf] }
 0xa6e   : > { %v4689_v46 = vor.u32 %v5056_v18, %v4686_v23  ;;  %v4693_v30 = vor.u32 %v5059_v25, %v4692_v24  ;;  %v4694_v32 = vld [vmem:[%s6820_s22 + $0x38] sm:$0xf0]  ;;  %v5104_v18 = vld [vmem:[%s6822_s24 + $0xa0] sm:$0xff]  ;;  %v5113_v23 = vld [vmem:[%s6822_s24 + $0xe8] sm:$0xff] }
 0xa6f   : > { %v3274_v47 = vpack.c.bf16 %v3162_v44, %v3161_v43  ;;  %v3126_v48 = vpop.f32.mrf.mxu1  ;;  %4639 = vmatmul.msk.bf16.vlgmr.msrb.gmra.mxu0 %vm1147_vm7, %v3167_v42  ;;  %3612 = vmatpush.bf16.msrb.mxu2 %v4777_v31  ;;  %v5075_v42 = vld [vmem:[%s6820_s22 + $0xb4] sm:$0xf0]  ;;  %v4753_v43 = vor.u32 %v5072_v34, %v4750_v40  ;;  %v5057_v31 = vld [vmem:[%s6820_s22 + $0x2c] sm:$0xf]  ;;  %v5054_v40 = vld [vmem:[%s6820_s22 + $0xc] sm:$0xf0] }
 0xa70   : > { %v4757_v44 = vor.u32 %v5075_v42, %v4756_v41  ;;  %v4758_v48 = vld [vmem:[%s6820_s22 + $0xb8] sm:$0xf0]  ;;  %3571 = vmatpush.bf16.msra.mxu3 %v4749_v35  ;;  %v4697_v34 = vor.u32 %v5057_v31, %v4694_v32  ;;  %v4668_v35 = vld [vmem:[%s6820_s22] sm:$0xf]  ;;  %v5052_v41 = vld [vmem:[%s6820_s22 + $0x4] sm:$0xf] }
 0xa71   : > { %4665 = vmatmul.msk.bf16.vlgmr.msra.gmra.mxu2 %vm1147_vm7, %v3274_v47  ;;  %v5073_v47 = vld [vmem:[%s6820_s22 + $0xac] sm:$0xf]  ;;  %3585 = vmatpush.bf16.msra.mxu0 %v4753_v43  ;;  %v4669_v43 = vor.u32 %v5054_v40, %v4668_v35  ;;  %v5095_v24 = vld [vmem:[%s6822_s24 + $0x58] sm:$0xff]  ;;  %v5102_v31 = vld [vmem:[%s6822_s24 + $0x90] sm:$0xff] }
 0xa72   : > { %3599 = vmatpush.bf16.msrb.mxu1 %v4757_v44  ;;  %v4670_v44 = vld [vmem:[%s6820_s22 + $0x10] sm:$0xf0]  ;;  %v5103_v25 = vld [vmem:[%s6822_s24 + $0x98] sm:$0xff]  ;;  %v5093_v35 = vld [vmem:[%s6822_s24 + $0x48] sm:$0xff] }
 0xa73   : > { %v5087_v32 = vld [vmem:[%s6822_s24 + $0x18] sm:$0xff]  ;;  %v5101_v40 = vld [vmem:[%s6822_s24 + $0x88] sm:$0xff] }
 0xa74   : > { %v3145_v49 = vpop.f32.mrf.mxu2 }
 0xa75   : > { %v4761_v49 = vor.u32 %v5073_v47, %v4758_v48  ;;  %v4676_v47 = vld [vmem:[%s6820_s22 + $0x8] sm:$0xf]  ;;  %v4673_v48 = vor.u32 %v5052_v41, %v4670_v44  ;;  %v5086_v41 = vld [vmem:[%s6822_s24 + $0x10] sm:$0xff] }
 0xa77   : > { %3613 = vmatpush.bf16.msrb.mxu2 %v4761_v49  ;;  %v5055_v49 = vld [vmem:[%s6820_s22 + $0x14] sm:$0xf0] }
 0xad0   : > { %v3198_v51 = vpop.f32.mrf.mxu3 }
 0xad8   : > { %v3200_v12 = vpop.f32.mrf.mxu3 }
 0xae4   : > { %v3262_v55 = vpop.f32.mrf.mxu1 }
 0xaec   : > { %v3227_v52 = vpop.f32.mrf.mxu0  ;;  %v3264_v36 = vpop.f32.mrf.mxu1 }
 0xaed   : > { %v3228_v54 = vadd.f32 %v3227_v52, %v3198_v51  ;;  %v4732_v51 = vld [vmem:[%s6820_s22 + $0x80] sm:$0xf]  ;;  %v5070_v52 = vld [vmem:[%s6820_s22 + $0x8c] sm:$0xf0] }
 0xaef   : > { %v3267_v2 = vadd.f32 %v3262_v55, %v3228_v54  ;;  %v5068_v54 = vld [vmem:[%s6820_s22 + $0x84] sm:$0xf]  ;;  %v4733_v55 = vor.u32 %v5070_v52, %v4732_v51  ;;  %v5053_v51 = vld [vmem:[%s6820_s22 + $0xc] sm:$0xf]  ;;  %v4678_v52 = vld [vmem:[%s6820_s22 + $0x18] sm:$0xf0] }
 0xaf1   : > { %3572 = vmatpush.bf16.msra.mxu3 %v4733_v55  ;;  %v4681_v55 = vor.u32 %v5053_v51, %v4678_v52  ;;  %v5085_v51 = vld [vmem:[%s6822_s24 + $0x8] sm:$0xff] }
 0xaf2   : > { %v5109_v52 = vld [vmem:[%s6822_s24 + $0xc8] sm:$0xff] }
 0xaf4   : > { %v3229_v28 = vpop.f32.mrf.mxu0  ;;  %v3299_v58 = vpop.f32.mrf.mxu2 }
 0xaf5   : > { %v3304_v45 = vadd.f32 %v3299_v58, %v3267_v2  ;;  %v3230_v61 = vadd.f32 %v3229_v28, %v3200_v12  ;;  %v4734_v2 = vld [vmem:[%s6820_s22 + $0x90] sm:$0xf0]  ;;  %v4740_v28 = vld [vmem:[%s6820_s22 + $0x88] sm:$0xf]  ;;  %v5071_v58 = vld [vmem:[%s6820_s22 + $0x94] sm:$0xf0] }
 0xaf6   : > { %v5069_v12 = vld [vmem:[%s6820_s22 + $0x8c] sm:$0xf] }
 0xaf7   : > { %v3306_v62 = vadd.f32 %v3304_v45, %v6121_v19  ;;  %v3268_v57 = vadd.f32 %v3264_v36, %v3230_v61  ;;  %v4737_v45 = vor.u32 %v5068_v54, %v4734_v2  ;;  %v4742_v61 = vld [vmem:[%s6820_s22 + $0x98] sm:$0xf0]  ;;  %v4716_v36 = vld [vmem:[%s6820_s22 + $0x60] sm:$0xf]  ;;  %v4677_v54 = vor.u32 %v5055_v49, %v4676_v47 }
 0xaf8   : > { %v5092_v47 = vld [vmem:[%s6822_s24 + $0x40] sm:$0xff] }
 0xaf9   : > { %v6431_v1 = vadd.f32 %v5175_v59, %v3306_v62  ;;  %v4745_v62 = vor.u32 %v5069_v12, %v4742_v61  ;;  %3586 = vmatpush.bf16.msra.mxu0 %v4737_v45 }
 0xafb   : > { %3316 = vadd.xlane.f32.xlu0 %v6431_v1  ;;  %3614 = vmatpush.bf16.msrb.mxu2 %v4745_v62 }
 0xafc   : > { %v3301_v56 = vpop.f32.mrf.mxu2 }
 0xafd   : > { %v3305_v60 = vadd.f32 %v3301_v56, %v3268_v57  ;;  %v5066_v57 = vld [vmem:[%s6820_s22 + $0x6c] sm:$0xf0]  ;;  %v5064_v56 = vld [vmem:[%s6820_s22 + $0x64] sm:$0xf] }
 0xaff   : > { %v3307_v16 = vadd.f32 %v3305_v60, %v6125_v27  ;;  %v4717_v60 = vor.u32 %v5066_v57, %v4716_v36 }
 0xb01   : > { %v6435_v63 = vadd.f32 %v5175_v59, %v3307_v16  ;;  %v4741_v59 = vor.u32 %v5071_v58, %v4740_v28  ;;  %v4718_v16 = vld [vmem:[%s6820_s22 + $0x70] sm:$0xf0]  ;;  %3573 = vmatpush.bf16.msra.mxu3 %v4717_v60 }
 0xb03   : > { %3318 = vadd.xlane.f32.xlu1 %v6435_v63  ;;  %3600 = vmatpush.bf16.msrb.mxu1 %v4741_v59 }
 0xb05   : > { %3574 = vmatpush.bf16.msra.mxu3 %v4701_v11 }
 0xb09   : > { %3575 = vmatpush.bf16.msra.mxu3 %v4685_v20  ;;  %v5089_v20 = vld [vmem:[%s6822_s24 + $0x28] sm:$0xff] }
 0xb0d   : > { %3576 = vmatpush.bf16.msra.mxu3 %v4669_v43 }
 0xb6e   : > { %v3317_v38 = vpop.xlane.xlu0 %3316 }
 0xb6f   : > { %v3320_v0 = vmul.f32 %v3317_v38, %v5463_v9  ;;  %v4724_v38 = vld [vmem:[%s6820_s22 + $0x68] sm:$0xf] }
 0xb71   : > { %v6440_v3 = vsub.f32 %v6431_v1, %v3320_v0  ;;  %v5067_v0 = vld [vmem:[%s6820_s22 + $0x74] sm:$0xf0] }
 0xb73   : > { %v3324_v19 = vmul.f32 %v6440_v3, %v6440_v3 }
 0xb75   : > { %3326 = vadd.xlane.f32.xlu2 %v3324_v19  ;;  %v4721_v19 = vor.u32 %v5064_v56, %v4718_v16 }
 0xb76   : > { %v3319_v4 = vpop.xlane.xlu1 %3318 }
 0xb77   : > { %v3321_v5 = vmul.f32 %v3319_v4, %v5463_v9  ;;  %v4725_v4 = vor.u32 %v5067_v0, %v4724_v38  ;;  %3587 = vmatpush.bf16.msra.mxu0 %v4721_v19 }
 0xb79   : > { %v6446_v6 = vsub.f32 %v6435_v63, %v3321_v5  ;;  %v5065_v5 = vld [vmem:[%s6820_s22 + $0x6c] sm:$0xf]  ;;  %3601 = vmatpush.bf16.msrb.mxu1 %v4725_v4 }
 0xb7b   : > { %v3325_v27 = vmul.f32 %v6446_v6, %v6446_v6  ;;  %3588 = vmatpush.bf16.msra.mxu0 %v4705_v13  ;;  %v5091_v13 = vld [vmem:[%s6822_s24 + $0x38] sm:$0xff] }
 0xb7c   : > { %3957 = vmatpush.bf16.msrb.mxu3 %v5091_v13 }
 0xb7d   : > { %3328 = vadd.xlane.f32.xlu0 %v3325_v27  ;;  %v4726_v27 = vld [vmem:[%s6820_s22 + $0x78] sm:$0xf0]  ;;  %3602 = vmatpush.bf16.msrb.mxu1 %v4709_v53 }
 0xb7e   : > { %v4729_v7 = vor.u32 %v5065_v5, %v4726_v27  ;;  %v5177_v27 = vld [vmem:[%s6819_s21] ss:$0 sm:$0xff]  ;;  %v5115_v53 = vld [vmem:[%s6822_s24 + $0xf8] sm:$0xff] }
 0xb7f   : > { %3589 = vmatpush.bf16.msra.mxu0 %v4689_v46  ;;  %v5112_v46 = vld [vmem:[%s6822_s24 + $0xe0] sm:$0xff] }
 0xb80   : > { %3615 = vmatpush.bf16.msrb.mxu2 %v4729_v7 }
 0xb81   : > { %3603 = vmatpush.bf16.msrb.mxu1 %v4693_v30  ;;  %v5094_v30 = vld [vmem:[%s6822_s24 + $0x50] sm:$0xff] }
 0xb83   : > { %3590 = vmatpush.bf16.msra.mxu0 %v4673_v48  ;;  %v5100_v48 = vld [vmem:[%s6822_s24 + $0x80] sm:$0xff] }
 0xb84   : > { %3616 = vmatpush.bf16.msrb.mxu2 %v4713_v33  ;;  %v5090_v33 = vld [vmem:[%s6822_s24 + $0x30] sm:$0xff] }
 0xb85   : > { %3604 = vmatpush.bf16.msrb.mxu1 %v4677_v54  ;;  %3958 = vmatpush.bf16.msrb.mxu3 %v5090_v33 }
 0xb88   : > { %3617 = vmatpush.bf16.msrb.mxu2 %v4697_v34  ;;  %v6721_v34 = vld [vmem:[%s6821_s23] sm:$0xf] }
 0xb89   : > { %3985 = vmatpush.bf16.msra.mxu1 %v5107_v29  ;;  %3959 = vmatpush.bf16.msrb.mxu3 %v5089_v20  ;;  %v3402_v43 = vperm.slane %v6721_v34, 1  ;;  %v3403_v44 = vperm.slane %v6721_v34, 2 }
 0xb8c   : > { %3618 = vmatpush.bf16.msrb.mxu2 %v4681_v55 }
 0xb8d   : > { %3986 = vmatpush.bf16.msra.mxu1 %v5106_v37 }
 0xb90   : > { %3999 = vmatpush.bf16.msra.mxu2 %v5115_v53 }
 0xb91   : > { %3987 = vmatpush.bf16.msra.mxu1 %v5105_v14 }
 0xb94   : > { %4000 = vmatpush.bf16.msra.mxu2 %v5114_v15 }
 0xb95   : > { %3988 = vmatpush.bf16.msra.mxu1 %v5104_v18 }
 0xb98   : > { %4001 = vmatpush.bf16.msra.mxu2 %v5113_v23 }
 0xb99   : > { %3989 = vmatpush.bf16.msra.mxu1 %v5103_v25 }
 0xb9c   : > { %4002 = vmatpush.bf16.msra.mxu2 %v5112_v46 }
 0xb9d   : > { %3990 = vmatpush.bf16.msra.mxu1 %v5102_v31 }
 0xba1   : > { %3991 = vmatpush.bf16.msra.mxu1 %v5101_v40 }
 0xba5   : > { %3992 = vmatpush.bf16.msra.mxu1 %v5100_v48 }
 0xbe8   : > { %v3327_v26 = vpop.xlane.xlu2 %3326 }
 0xbe9   : > { %v3330_v22 = vmul.f32 %v3327_v26, %v5463_v9  ;;  %v5088_v26 = vld [vmem:[%s6822_s24 + $0x20] sm:$0xff] }
 0xbea   : > { %3960 = vmatpush.bf16.msrb.mxu3 %v5088_v26 }
 0xbeb   : > { %v3332_v42 = vadd.f32 1e-05, %v3330_v22  ;;  %v5111_v22 = vld [vmem:[%s6822_s24 + $0xd8] sm:$0xff] }
 0xbec   : > { %4003 = vmatpush.bf16.msra.mxu2 %v5111_v22 }
 0xbed   : > { %5273 = vrsqrt.f32 %v3332_v42  ;;  %vm3340_vm7 = vweird.f32 %v3332_v42 }
 0xbee   : > { %3961 = vmatpush.bf16.msrb.mxu3 %v5087_v32 }
 0xbf0   : > { %v3329_v2 = vpop.xlane.xlu0 %3328 }
 0xbf1   : > { %v3331_v28 = vmul.f32 %v3329_v2, %v5463_v9  ;;  %v5176_v9 = vld [vmem:[%s6818_s20] ss:$0 sm:$0xff] }
 0xbf2   : > { %3962 = vmatpush.bf16.msrb.mxu3 %v5086_v41 }
 0xbf3   : > { %v5274_v58 = vpop.eup %5273  ;;  %v3333_v45 = vadd.f32 1e-05, %v3331_v28 }
 0xbf4   : > { %v3335_v59 = vmul.f32 %v5274_v58, %v3332_v42  ;;  %vm3341_vm6 = vweird.f32 %v5274_v58  ;;  %v5110_v42 = vld [vmem:[%s6822_s24 + $0xd0] sm:$0xff] }
 0xbf5   : > { %5275 = vrsqrt.f32 %v3333_v45  ;;  %vm3342_vm8 = vmor %vm3340_vm7, %vm3341_vm6  ;;  %vm3350_vm10 = vweird.f32 %v3333_v45  ;;  %4004 = vmatpush.bf16.msra.mxu2 %v5110_v42 }
 0xbf6   : > { %v3336_v12 = vmul.f32 %v5274_v58, %v3335_v59  ;;  %3963 = vmatpush.bf16.msrb.mxu3 %v5085_v51  ;;  %v3404_v59 = vperm.slane %v6721_v34, 3 }
 0xbf8   : > { %v3337_v61 = vmul.f32 0.5, %v3336_v12  ;;  %v5084_v12 = vld [vmem:[%s6822_s24] sm:$0xff] }
 0xbf9   : > { %4005 = vmatpush.bf16.msra.mxu2 %v5109_v52 }
 0xbfa   : > { %v3338_v62 = vsub.f32 1.5, %v3337_v61  ;;  %v5108_v61 = vld [vmem:[%s6822_s24 + $0xc0] sm:$0xff]  ;;  %3964 = vmatpush.bf16.msrb.mxu3 %v5084_v12 }
 0xbfb   : > { %v5276_v36 = vpop.eup %5275 }
 0xbfc   : > { %v3339_v57 = vmul.f32 %v5274_v58, %v3338_v62  ;;  %v3345_v56 = vmul.f32 %v5276_v36, %v3333_v45  ;;  %vm3351_vm9 = vweird.f32 %v5276_v36 }
 0xbfd   : > { %vm3352_vm11 = vmor %vm3350_vm10, %vm3351_vm9  ;;  %4006 = vmatpush.bf16.msra.mxu2 %v5108_v61 }
 0xbfe   : > { %v3346_v60 = vmul.f32 %v5276_v36, %v3345_v56  ;;  %v3343_v16 = vsel %vm3342_vm8, %v5274_v58, %v3339_v57  ;;  %v3401_v58 = vperm.slane %v6721_v34, 0 }
 0xbff   : > { %v3354_v19 = vmul.f32 %v3343_v16, %v6440_v3  ;;  %v5099_v3 = vld [vmem:[%s6822_s24 + $0x78] sm:$0xff] }
 0xc00   : > { %v3347_v38 = vmul.f32 0.5, %v3346_v60  ;;  %3971 = vmatpush.bf16.msrb.mxu0 %v5099_v3 }
 0xc01   : > { %v3359_v7 = vmul.f32 %v5176_v9, %v3354_v19 }
 0xc02   : > { %v3348_v0 = vsub.f32 1.5, %v3347_v38 }
 0xc03   : > { %v3364_v8 = vadd.f32 %v5177_v27, %v3359_v7 }
 0xc04   : > { %v3349_v4 = vmul.f32 %v5276_v36, %v3348_v0 }
 0xc06   : > { %v3353_v5 = vsel %vm3352_vm11, %v5276_v36, %v3349_v4 }
 0xc07   : > { %v3355_v10 = vmul.f32 %v3353_v5, %v6446_v6  ;;  %v5098_v6 = vld [vmem:[%s6822_s24 + $0x70] sm:$0xff] }
 0xc08   : > { %3972 = vmatpush.bf16.msrb.mxu0 %v5098_v6 }
 0xc09   : > { %v3360_v50 = vmul.f32 %v5176_v9, %v3355_v10 }
 0xc0b   : > { %v3365_v11 = vadd.f32 %v5177_v27, %v3360_v50 }
 0xc0c   : > { %3973 = vmatpush.bf16.msrb.mxu0 %v5097_v39 }
 0xc0d   : > { %v3398_v21 = vpack.c.bf16 %v3365_v11, %v3364_v8 }
 0xc0f   : > { %3577 = vmatmul.bf16.vlgmr.msra.gmra.mxu3 %v3398_v21  ;;  %3591 = vmatmul.bf16.vlgmr.msra.gmra.mxu0 %v3398_v21 }
 0xc10   : > { %3605 = vmatmul.bf16.vlgmr.msrb.gmra.mxu1 %v3398_v21  ;;  %3619 = vmatmul.bf16.vlgmr.msrb.gmra.mxu2 %v3398_v21 }
 0xc11   : > { %3974 = vmatpush.bf16.msrb.mxu0 %v5096_v17 }
 0xc15   : > { %3975 = vmatpush.bf16.msrb.mxu0 %v5095_v24 }
 0xc19   : > { %3976 = vmatpush.bf16.msrb.mxu0 %v5094_v30 }
 0xc1d   : > { %3977 = vmatpush.bf16.msrb.mxu0 %v5093_v35 }
 0xc21   : > { %3978 = vmatpush.bf16.msrb.mxu0 %v5092_v47 }
 0xc8c   : > { %v3592_v49 = vpop.f32.mrf.mxu0 }
 0xc8d   : > { %v6749_v54 = vadd.f32 %v3592_v49, %v3402_v43  ;;  %v3606_v55 = vpop.f32.mrf.mxu1 }
 0xc8e   : > { %v6751_v2 = vadd.f32 %v3606_v55, %v3403_v44 }
 0xc8f   : > { %v3634_v28 = vmul.f32 %v6749_v54, %v6749_v54 }
 0xc90   : > { %v3635_v45 = vmul.f32 %v6751_v2, %v6751_v2 }
 0xc91   : > { %v3642_v62 = vmul.f32 %v3634_v28, %v6749_v54 }
 0xc92   : > { %v3643_v36 = vmul.f32 %v3635_v45, %v6751_v2  ;;  %v3578_v57 = vpop.f32.mrf.mxu3  ;;  %v3626_v45 = vmul.f32 0.5, %v6749_v54 }
 0xc93   : > { %v3650_v56 = vmul.f32 0.044715, %v3642_v62  ;;  %v6767_v60 = vadd.f32 %v3578_v57, %v3401_v58  ;;  %v3620_v16 = vpop.f32.mrf.mxu2  ;;  %v3627_v62 = vmul.f32 0.5, %v6751_v2 }
 0xc94   : > { %v3651_v38 = vmul.f32 0.044715, %v3643_v36  ;;  %v6769_v0 = vadd.f32 %v3620_v16, %v3404_v59  ;;  %v3594_v9 = vpop.f32.mrf.mxu0 }
 0xc95   : > { %v3658_v19 = vadd.f32 %v3650_v56, %v6749_v54  ;;  %v3633_v4 = vmul.f32 %v6767_v60, %v6767_v60  ;;  %v3595_v5 = vadd.f32 %v3594_v9, %v3402_v43  ;;  %v3608_v27 = vpop.f32.mrf.mxu1  ;;  %v3625_v54 = vmul.f32 0.5, %v6767_v60 }
 0xc96   : > { %v3659_v7 = vadd.f32 %v3651_v38, %v6751_v2  ;;  %v3636_v10 = vmul.f32 %v6769_v0, %v6769_v0  ;;  %v3609_v50 = vadd.f32 %v3608_v27, %v3403_v44  ;;  %v3628_v2 = vmul.f32 0.5, %v6769_v0 }
 0xc97   : > { %v3641_v8 = vmul.f32 %v3633_v4, %v6767_v60  ;;  %v3638_v11 = vmul.f32 %v3595_v5, %v3595_v5  ;;  %v3666_v29 = vmul.f32 0.7978846, %v3658_v19 }
 0xc98   : > { %v3644_v21 = vmul.f32 %v3636_v10, %v6769_v0  ;;  %v3639_v3 = vmul.f32 %v3609_v50, %v3609_v50  ;;  %v3667_v13 = vmul.f32 0.7978846, %v3659_v7  ;;  %v3631_v36 = vmul.f32 0.5, %v3609_v50 }
 0xc99   : > { %v3649_v6 = vmul.f32 0.044715, %v3641_v8  ;;  %v3646_v37 = vmul.f32 %v3638_v11, %v3595_v5  ;;  %5277 = vtanh.f32 %v3666_v29 }
 0xc9a   : > { %v3652_v53 = vmul.f32 0.044715, %v3644_v21  ;;  %v3647_v39 = vmul.f32 %v3639_v3, %v3609_v50  ;;  %v3580_v14 = vpop.f32.mrf.mxu3  ;;  %5279 = vtanh.f32 %v3667_v13 }
 0xc9b   : > { %v3657_v33 = vadd.f32 %v3649_v6, %v6767_v60  ;;  %v3654_v15 = vmul.f32 0.044715, %v3646_v37  ;;  %v3581_v17 = vadd.f32 %v3580_v14, %v3401_v58  ;;  %v3622_v18 = vpop.f32.mrf.mxu2 }
 0xc9c   : > { %v3660_v20 = vadd.f32 %v3652_v53, %v6769_v0  ;;  %v3655_v23 = vmul.f32 0.044715, %v3647_v39  ;;  %v3623_v24 = vadd.f32 %v3622_v18, %v3404_v59  ;;  %v3630_v59 = vmul.f32 0.5, %v3595_v5 }
 0xc9d   : > { %v3662_v25 = vadd.f32 %v3654_v15, %v3595_v5  ;;  %v3637_v26 = vmul.f32 %v3581_v17, %v3581_v17  ;;  %v3665_v31 = vmul.f32 0.7978846, %v3657_v33  ;;  %v3629_v5 = vmul.f32 0.5, %v3581_v17 }
 0xc9e   : > { %v3663_v46 = vadd.f32 %v3655_v23, %v3609_v50  ;;  %v3640_v30 = vmul.f32 %v3623_v24, %v3623_v24  ;;  %v3668_v34 = vmul.f32 0.7978846, %v3660_v20  ;;  %v3632_v50 = vmul.f32 0.5, %v3623_v24 }
 0xc9f   : > { %v3670_v32 = vmul.f32 0.7978846, %v3662_v25  ;;  %v3645_v22 = vmul.f32 %v3637_v26, %v3581_v17  ;;  %v5278_v43 = vpop.eup %5277 }
 0xca0   : > { %v3671_v35 = vmul.f32 0.7978846, %v3663_v46  ;;  %v3648_v40 = vmul.f32 %v3640_v30, %v3623_v24  ;;  %v5280_v47 = vpop.eup %5279  ;;  %v3682_v51 = vadd.f32 1.0, %v5278_v43 }
 0xca1   : > { %5281 = vtanh.f32 %v3670_v32  ;;  %v3653_v41 = vmul.f32 0.044715, %v3645_v22  ;;  %v3683_v28 = vadd.f32 1.0, %v5280_v47 }
 0xca2   : > { %5283 = vtanh.f32 %v3671_v35  ;;  %v3656_v42 = vmul.f32 0.044715, %v3648_v40  ;;  %v3690_v16 = vmul.f32 %v3682_v51, %v3626_v45 }
 0xca3   : > { %5285 = vtanh.f32 %v3665_v31  ;;  %v3661_v44 = vadd.f32 %v3653_v41, %v3581_v17  ;;  %v3691_v9 = vmul.f32 %v3683_v28, %v3627_v62  ;;  %v5178_v31 = vld [vmem:[%s6823_s25] ss:$0 sm:$0xff] }
 0xca4   : > { %5287 = vtanh.f32 %v3668_v34  ;;  %v3664_v48 = vadd.f32 %v3656_v42, %v3623_v24 }
 0xca5   : > { %v3669_v49 = vmul.f32 0.7978846, %v3661_v44 }
 0xca6   : > { %v3672_v52 = vmul.f32 0.7978846, %v3664_v48 }
 0xca7   : > { %v5282_v55 = vpop.eup %5281  ;;  %5289 = vtanh.f32 %v3669_v49 }
 0xca8   : > { %v5284_v58 = vpop.eup %5283  ;;  %v3686_v12 = vadd.f32 1.0, %v5282_v55  ;;  %5291 = vtanh.f32 %v3672_v52 }
 0xca9   : > { %v5286_v61 = vpop.eup %5285  ;;  %v3687_v57 = vadd.f32 1.0, %v5284_v58 }
 0xcaa   : > { %v5288_v56 = vpop.eup %5287  ;;  %v3694_v38 = vmul.f32 %v3686_v12, %v3630_v59  ;;  %v3681_v4 = vadd.f32 1.0, %v5286_v61 }
 0xcab   : > { %v3695_v19 = vmul.f32 %v3687_v57, %v3631_v36  ;;  %v3684_v10 = vadd.f32 1.0, %v5288_v56 }
 0xcac   : > { %v3762_v27 = vpack.c.bf16 %v3694_v38, %v3690_v16  ;;  %v3689_v29 = vmul.f32 %v3681_v4, %v3625_v54 }
 0xcad   : > { %v5290_v7 = vpop.eup %5289  ;;  %v3763_v8 = vpack.c.bf16 %v3695_v19, %v3691_v9  ;;  %v3692_v37 = vmul.f32 %v3684_v10, %v3628_v2 }
 0xcae   : > { %v5292_v11 = vpop.eup %5291  ;;  %v3685_v21 = vadd.f32 1.0, %v5290_v7  ;;  %3979 = vmatmul.bf16.vlgmr.msrb.gmra.mxu0 %v3762_v27 }
 0xcaf   : > { %v3688_v3 = vadd.f32 1.0, %v5292_v11  ;;  %3993 = vmatmul.bf16.vlgmr.msra.gmra.mxu1 %v3763_v8 }
 0xcb0   : > { %v3693_v6 = vmul.f32 %v3685_v21, %v3629_v5 }
 0xcb1   : > { %v3696_v13 = vmul.f32 %v3688_v3, %v3632_v50 }
 0xcb2   : > { %v3761_v53 = vpack.c.bf16 %v3693_v6, %v3689_v29 }
 0xcb3   : > { %v3764_v39 = vpack.c.bf16 %v3696_v13, %v3692_v37 }
 0xcb4   : > { %3965 = vmatmul.bf16.vlgmr.msrb.gmra.mxu3 %v3761_v53 }
 0xcb5   : > { %4007 = vmatmul.bf16.vlgmr.msra.gmra.mxu2 %v3764_v39 }
 0xd2b   : > { %v3980_v14 = vpop.f32.mrf.mxu0 }
 0xd2c   : > { %v3994_v33 = vpop.f32.mrf.mxu1 }
 0xd33   : > { %v3982_v20 = vpop.f32.mrf.mxu0 }
 0xd34   : > { %v3996_v25 = vpop.f32.mrf.mxu1 }
 0xd37   : > { %v3966_v15 = vpop.f32.mrf.mxu3 }
 0xd38   : > { %v3981_v60 = vadd.f32 %v3980_v14, %v3966_v15  ;;  %v4008_v17 = vpop.f32.mrf.mxu2 }
 0xd3a   : > { %v3995_v18 = vadd.f32 %v3994_v33, %v3981_v60 }
 0xd3c   : > { %v4009_v23 = vadd.f32 %v4008_v17, %v3995_v18 }
 0xd3e   : > { %v4013_v30 = vadd.f32 %v4009_v23, %v6431_v1 }
 0xd3f   : > { %v3968_v0 = vpop.f32.mrf.mxu3 }
 0xd40   : > { %v3983_v24 = vadd.f32 %v3982_v20, %v3968_v0  ;;  %v4010_v46 = vpop.f32.mrf.mxu2  ;;  %v4019_v34 = vadd.f32 %v5178_v31, %v4013_v30 }
 0xd42   : > { %v3997_v26 = vadd.f32 %v3996_v25, %v3983_v24 }
 0xd44   : > { %v4011_v32 = vadd.f32 %v4010_v46, %v3997_v26 }
 0xd46   : > { %v4014_v22 = vadd.f32 %v4011_v32, %v6435_v63 }
 0xd48   : > { %v4020_v35 = vadd.f32 %v5178_v31, %v4014_v22 }
 0xd4a   : > { %v5123_v40 = vpack.c.bf16 %v4020_v35, %v4019_v34 }
 0xd4c   : > { %5124 = vst [vmem:[%s793_s30] sm:$0xff] %v5123_v40  }
 0xd4d PF: > { %s36_s27 = sadd.s32 1, %s5300_s27  }
 0xd4e   : > { %p33_p4 = scmp.ge.s32.totalorder %s36_s27, 4  }
 0xd50   :  { %35 = sbr.rel (!%p33_p4) target bundleno = 12 (0xc), region = 160 }

</bundles_post_ra>
